<compile_context>
chip_gen: v7x
topology: tpu7x:2x2x1
jax: 0.10.0
libtpu: 0.0.40
codegen_flags: <defaults>
</compile_context>

<pallas_src>
import jax
import jax.numpy as jnp
from jax import lax
from jax.experimental import pallas as pl
from jax.experimental.pallas import tpu as pltpu

EPS = 1e-5
TB = 8            # samples per grid step (review: size for MXU M-efficiency)
L1 = 128          # conv1 output length per sample
HID_PAD = 128     # MLP hidden 100 -> 128 lanes
OUT_PAD = 128     # logits n_classes -> 128 lanes

_WEIGHTS = ("w1", "w2", "w3", "w4", "w5", "fw1", "fw2")


def _roll(x, k):
    """Cyclic roll along the sublane axis with a non-negative static shift."""
    return pltpu.roll(x, shift=k % x.shape[0], axis=0)


# ----------------------------------------------------------------------------
# Fused Pallas kernel: TB samples per grid step, activations stacked along M.
# ----------------------------------------------------------------------------
def _wdcnn_kernel(x_ref, w1_ref, w2_ref, w3_ref, w4_ref, w5_ref,
                  fw1_ref, fw2_ref, sb_ref, o_ref,
                  t1s, t2s, t3s, t4s, t5s):
    """
    x_ref : (TB*128, 64)  conv1 im2col patches (built in the wrapper)
    w1    : (64, 16)      conv1 weight (tap-major)
    w2..5 : (3, Cin, Cout) k=3 conv weights, tap-major
    fw1   : (3, 64, 128)  Linear(192,100)+BN folded, permuted to (L,C,H)
    fw2   : (128, 128)    Linear(100,n_classes) zero-padded
    sb    : (16, 128)     packed folded BN scale/bias rows + head biases
    o_ref : (TB, 128)     padded logits (lane-dense, (8,128)-aligned store)
    tXs   : VMEM scratch holding max(act, roll(act,-1)) for each pool stage
    """
    f32 = jnp.float32

    def sb(row, width):
        # packed constants: rows 2k / 2k+1 = scale / bias of conv k+1,
        # row 10 = folded linear-1 bias, row 11 = linear-2 bias.
        return sb_ref[row:row + 1, 0:width], sb_ref[row + 1:row + 2, 0:width]

    def pool_pairs(act, scratch):
        # MaxPool1d(2,2): t[r] = max(act[r], act[r+1]) via a near-free XLU
        # roll; the even rows (one stride-2 read) are the pooled output.
        scratch[...] = jnp.maximum(act, _roll(act, -1))

    def conv_same(p, w_ref, sb_row, L):
        # k=3 / stride-1 / padding='same' conv on TB samples stacked along M.
        # The rolled operands are zeroed on the first / last row of every
        # L-row sample block (L is a power of two -> cheap bit mask), which
        # reproduces the per-sample zero padding without padded scratch.
        rows = lax.broadcasted_iota(jnp.int32, (p.shape[0], 1), 0)
        pos = rows & (L - 1)                               # position in sample
        x_prev = jnp.where(pos == 0, 0.0, _roll(p, 1))     # x[l-1]
        x_next = jnp.where(pos == L - 1, 0.0, _roll(p, -1))  # x[l+1]
        acc = jnp.dot(x_prev, w_ref[0], preferred_element_type=f32)
        acc = acc + jnp.dot(p, w_ref[1], preferred_element_type=f32)
        acc = acc + jnp.dot(x_next, w_ref[2], preferred_element_type=f32)
        s, b = sb(sb_row, w_ref.shape[2])
        return jnp.maximum(acc * s + b, 0.0)               # folded BN + ReLU

    # ---- layer 1: conv(1->16, k=64, s=16, p=24); im2col done in wrapper ----
    s1, b1 = sb(0, 16)
    a1 = jnp.dot(x_ref[...], w1_ref[...], preferred_element_type=f32)
    a1 = jnp.maximum(a1 * s1 + b1, 0.0)                    # (TB*128, 16)
    pool_pairs(a1, t1s)
    p2 = t1s[pl.ds(0, TB * 64, 2), :]                      # (TB*64, 16)

    # ---- layer 2: conv(16->32, k=3, same) -----------------------------------
    a2 = conv_same(p2, w2_ref, 2, 64)                      # (TB*64, 32)
    pool_pairs(a2, t2s)
    p3 = t2s[pl.ds(0, TB * 32, 2), :]                      # (TB*32, 32)

    # ---- layer 3: conv(32->64, k=3, same) -----------------------------------
    a3 = conv_same(p3, w3_ref, 4, 32)                      # (TB*32, 64)
    pool_pairs(a3, t3s)
    p4 = t3s[pl.ds(0, TB * 16, 2), :]                      # (TB*16, 64)

    # ---- layer 4: conv(64->64, k=3, same) -----------------------------------
    a4 = conv_same(p4, w4_ref, 6, 16)                      # (TB*16, 64)
    pool_pairs(a4, t4s)
    p5 = t4s[pl.ds(0, TB * 8, 2), :]                       # (TB*8, 64)

    # ---- layer 5: conv(64->64, k=3, valid). Per-sample rows 6,7 of the
    # output are garbage (cross-sample roll) but are never read by the pool.
    acc = jnp.dot(p5, w5_ref[0], preferred_element_type=f32)
    acc = acc + jnp.dot(_roll(p5, -1), w5_ref[1], preferred_element_type=f32)
    acc = acc + jnp.dot(_roll(p5, -2), w5_ref[2], preferred_element_type=f32)
    s5, b5 = sb(8, 64)
    a5 = jnp.maximum(acc * s5 + b5, 0.0)                   # (TB*8, 64)
    pool_pairs(a5, t5s)

    # ---- flatten (torch (C,L) order folded into fw1) + batched MLP head -----
    h = sb_ref[10:11, :]                                   # folded lin-1 bias
    for l in range(3):                                     # static unroll
        row_l = t5s[pl.ds(2 * l, TB, 8), :]                # (TB, 64) pooled l
        h = h + jnp.dot(row_l, fw1_ref[l], preferred_element_type=f32)
    h = jnp.maximum(h, 0.0)                                # ReLU, (TB, 128)
    logits = (jnp.dot(h, fw2_ref[...], preferred_element_type=f32)
              + sb_ref[11:12, :])
    o_ref[...] = logits.astype(o_ref.dtype)                # (TB, 128)


def _const_spec(arr):
    zeros = (0,) * arr.ndim
    return pl.BlockSpec(arr.shape, lambda i: zeros)


def wdcnn_forward(x_ncl, params, n_classes=10):
    """x_ncl: (B, 1, 2048) float32 -> logits (B, n_classes)."""
    B = x_ncl.shape[0]
    assert x_ncl.shape[1] == 1 and x_ncl.shape[2] == 2048
    x = x_ncl[:, 0, :]                                     # (B, 2048)

    # conv1 im2col in XLA: pad 24 each side (2096 = 131*16), view as 16-wide
    # rows, concat 4 shifted views -> patch column 16g+t == tap index.
    xp = jnp.pad(x, ((0, 0), (24, 24))).reshape(B, 131, 16)
    patches = jnp.concatenate([xp[:, g:g + L1, :] for g in range(4)], axis=-1)

    # pad batch to a multiple of TB; keep >=2 (ideally even) grid steps at
    # real batch sizes so v7x's two TensorCores both get work.
    Bp = pl.cdiv(B, TB) * TB
    if Bp != B:
        patches = jnp.pad(patches, ((0, Bp - B), (0, 0), (0, 0)))
    patches = patches.reshape(Bp * L1, 64)                 # (Bp*128, 64)

    in_specs = [pl.BlockSpec((TB * L1, 64), lambda i: (i, 0))]
    in_specs += [_const_spec(params[k]) for k in _WEIGHTS]
    in_specs += [_const_spec(params["sb"])]
    args = (patches,) + tuple(params[k] for k in _WEIGHTS) + (params["sb"],)

    out_pad = pl.pallas_call(
        _wdcnn_kernel,
        out_shape=jax.ShapeDtypeStruct((Bp, OUT_PAD), jnp.float32),
        grid_spec=pltpu.PrefetchScalarGridSpec(
            num_scalar_prefetch=0,
            grid=(Bp // TB,),
            in_specs=in_specs,
            out_specs=pl.BlockSpec((TB, OUT_PAD), lambda i: (i, 0)),
            scratch_shapes=[
                pltpu.VMEM((TB * 128, 16), jnp.float32),   # pool-1 pairs
                pltpu.VMEM((TB * 64, 32), jnp.float32),    # pool-2 pairs
                pltpu.VMEM((TB * 32, 64), jnp.float32),    # pool-3 pairs
                pltpu.VMEM((TB * 16, 64), jnp.float32),    # pool-4 pairs
                pltpu.VMEM((TB * 8, 64), jnp.float32),     # pool-5 pairs
            ],
        ),
        compiler_params=pltpu.CompilerParams(dimension_semantics=("parallel",)),
    )(*args)
    return out_pad[:B, :n_classes]


# ----------------------------------------------------------------------------
# Parameter setup (deterministic, synthetic); BN + flatten folded at init.
# ----------------------------------------------------------------------------
def _fold_bn(conv_bias, gamma, beta, mean, var):
    scale = gamma / jnp.sqrt(var + EPS)
    bias = beta + (conv_bias - mean) * scale
    return scale.astype(jnp.float32), bias.astype(jnp.float32)


def _pad128(v):
    return jnp.pad(v, (0, 128 - v.shape[0]))


def init_params(key, n_classes=10, first_kernel=64):
    assert first_kernel == 64, "fused kernel implements the default first_kernel=64"
    nk = iter(jax.random.split(key, 40))

    def conv_params(cin, cout, k):
        w = 0.1 * jax.random.normal(next(nk), (cout, cin, k), jnp.float32)
        b = 0.05 * jax.random.normal(next(nk), (cout,), jnp.float32)
        gamma = jax.random.uniform(next(nk), (cout,), jnp.float32, 0.8, 1.2)
        beta = 0.1 * jax.random.normal(next(nk), (cout,), jnp.float32)
        mean = 0.05 * jax.random.normal(next(nk), (cout,), jnp.float32)
        var = jax.random.uniform(next(nk), (cout,), jnp.float32, 0.5, 1.5)
        return w, b, gamma, beta, mean, var

    p = {}
    sb_rows = []

    # conv1: torch (16, 1, 64) -> tap-major (64, 16)
    w, b, g, be, m, v = conv_params(1, 16, first_kernel)
    p["w1"] = jnp.transpose(w[:, 0, :], (1, 0))
    s, o = _fold_bn(b, g, be, m, v)
    sb_rows += [_pad128(s), _pad128(o)]

    # conv2..conv5: torch (Cout, Cin, K) -> kernel layout (K, Cin, Cout)
    for name, (cin, cout) in zip(["w2", "w3", "w4", "w5"],
                                 [(16, 32), (32, 64), (64, 64), (64, 64)]):
        w, b, g, be, m, v = conv_params(cin, cout, 3)
        p[name] = jnp.transpose(w, (2, 1, 0))
        s, o = _fold_bn(b, g, be, m, v)
        sb_rows += [_pad128(s), _pad128(o)]

    # Linear(192,100)+BN(100) folded; hidden padded 100->128; flatten
    # transpose folded by regrouping torch column index c*3+l to (l, c).
    lin_in, H, HP, OP = 64 * 3, 100, HID_PAD, OUT_PAD
    w1l = 0.1 * jax.random.normal(next(nk), (H, lin_in), jnp.float32)
    b1l = 0.05 * jax.random.normal(next(nk), (H,), jnp.float32)
    g1 = jax.random.uniform(next(nk), (H,), jnp.float32, 0.8, 1.2)
    be1 = 0.1 * jax.random.normal(next(nk), (H,), jnp.float32)
    m1 = 0.05 * jax.random.normal(next(nk), (H,), jnp.float32)
    v1 = jax.random.uniform(next(nk), (H,), jnp.float32, 0.5, 1.5)
    s1l = g1 / jnp.sqrt(v1 + EPS)
    wf = jnp.pad(w1l * s1l[:, None], ((0, HP - H), (0, 0)))        # (128, 192)
    p["fw1"] = jnp.transpose(wf.T.reshape(64, 3, HP), (1, 0, 2))   # (3, 64, 128)
    fb1 = jnp.pad((b1l - m1) * s1l + be1, (0, HP - H))             # (128,)

    # Linear(100, n_classes) padded to (128, 128) for a lane-dense output
    w2l = 0.1 * jax.random.normal(next(nk), (n_classes, H), jnp.float32)
    b2l = 0.05 * jax.random.normal(next(nk), (n_classes,), jnp.float32)
    p["fw2"] = jnp.pad(w2l.T, ((0, HP - H), (0, OP - n_classes)))  # (128, 128)
    fb2 = jnp.pad(b2l, (0, OP - n_classes))                        # (128,)

    sb_rows += [fb1, fb2]
    sb_rows += [jnp.zeros((128,), jnp.float32)] * (16 - len(sb_rows))
    p["sb"] = jnp.stack(sb_rows, axis=0)                           # (16, 128)
    return p


if __name__ == "__main__":
    key = jax.random.PRNGKey(0)
    kx, kp = jax.random.split(key)
    B, n_classes = 2, 10
    # WDCNN's linear head is sized from a (1, 1, 2048) dummy, so L must be 2048.
    x = jax.random.normal(kx, (B, 1, 2048), jnp.float32)
    params = init_params(kp, n_classes=n_classes)

    out = jax.jit(wdcnn_forward)(x, params)
    out = jax.block_until_ready(out)
    assert out.shape == (B, n_classes), out.shape
    assert bool(jnp.all(jnp.isfinite(out)))
    print("KERNEL_OK")
</pallas_src>

<mosaic_0001>
module attributes {stable_mosaic.version = 11 : i64} {
  func.func @_wdcnn_kernel(%arg0: i32, %arg1: memref<1024x64xf32, #tpu.memory_space<vmem>>, %arg2: memref<64x16xf32, #tpu.memory_space<vmem>>, %arg3: memref<3x16x32xf32, #tpu.memory_space<vmem>>, %arg4: memref<3x32x64xf32, #tpu.memory_space<vmem>>, %arg5: memref<3x64x64xf32, #tpu.memory_space<vmem>>, %arg6: memref<3x64x64xf32, #tpu.memory_space<vmem>>, %arg7: memref<3x64x128xf32, #tpu.memory_space<vmem>>, %arg8: memref<128x128xf32, #tpu.memory_space<vmem>>, %arg9: memref<16x128xf32, #tpu.memory_space<vmem>>, %arg10: memref<8x128xf32, #tpu.memory_space<vmem>>, %arg11: memref<1024x16xf32, #tpu.memory_space<vmem>>, %arg12: memref<512x32xf32, #tpu.memory_space<vmem>>, %arg13: memref<256x64xf32, #tpu.memory_space<vmem>>, %arg14: memref<128x64xf32, #tpu.memory_space<vmem>>, %arg15: memref<64x64xf32, #tpu.memory_space<vmem>>) attributes {dimension_semantics = [#tpu.dimension_semantics<parallel>], iteration_bounds = array<i64: 1>, scalar_prefetch = 0 : i64, scratch_operands = 5 : i64, tpu.core_type = #tpu.core_type<tc>, window_params = [{transform_indices = @transform_0, window_bounds = array<i64: 1024, 64>}, {pipeline_mode = #tpu.pipeline_mode<synchronous>, transform_indices = @transform_1, window_bounds = array<i64: 64, 16>}, {pipeline_mode = #tpu.pipeline_mode<synchronous>, transform_indices = @transform_2, window_bounds = array<i64: 3, 16, 32>}, {pipeline_mode = #tpu.pipeline_mode<synchronous>, transform_indices = @transform_3, window_bounds = array<i64: 3, 32, 64>}, {pipeline_mode = #tpu.pipeline_mode<synchronous>, transform_indices = @transform_4, window_bounds = array<i64: 3, 64, 64>}, {pipeline_mode = #tpu.pipeline_mode<synchronous>, transform_indices = @transform_5, window_bounds = array<i64: 3, 64, 64>}, {pipeline_mode = #tpu.pipeline_mode<synchronous>, transform_indices = @transform_6, window_bounds = array<i64: 3, 64, 128>}, {pipeline_mode = #tpu.pipeline_mode<synchronous>, transform_indices = @transform_7, window_bounds = array<i64: 128, 128>}, {pipeline_mode = #tpu.pipeline_mode<synchronous>, transform_indices = @transform_8, window_bounds = array<i64: 16, 128>}, {transform_indices = @transform_9, window_bounds = array<i64: 8, 128>}]} {
    %c0 = arith.constant 0 : index
    %c0_0 = arith.constant 0 : index
    %0 = vector.load %arg9[%c0, %c0_0] : memref<16x128xf32, #tpu.memory_space<vmem>>, vector<1x16xf32>
    %c1 = arith.constant 1 : index
    %c0_1 = arith.constant 0 : index
    %1 = vector.load %arg9[%c1, %c0_1] : memref<16x128xf32, #tpu.memory_space<vmem>>, vector<1x16xf32>
    %c0_2 = arith.constant 0 : index
    %c0_3 = arith.constant 0 : index
    %2 = vector.load %arg1[%c0_2, %c0_3] : memref<1024x64xf32, #tpu.memory_space<vmem>>, vector<1024x64xf32>
    %c0_4 = arith.constant 0 : index
    %c0_5 = arith.constant 0 : index
    %3 = vector.load %arg2[%c0_4, %c0_5] : memref<64x16xf32, #tpu.memory_space<vmem>>, vector<64x16xf32>
    %cst = arith.constant dense<0.000000e+00> : vector<1024x16xf32>
    %4 = tpu.matmul %2, %3, %cst {dimension_numbers = #tpu.dot_dimension_numbers<[1], [0], [0], [1], [0, 0, 1, 1], [], []>} : vector<1024x64xf32>, vector<64x16xf32>, vector<1024x16xf32> -> vector<1024x16xf32>
    %5 = vector.broadcast %0 : vector<1x16xf32> to vector<1024x16xf32>
    %6 = arith.mulf %4, %5 : vector<1024x16xf32>
    %7 = vector.broadcast %1 : vector<1x16xf32> to vector<1024x16xf32>
    %8 = arith.addf %6, %7 : vector<1024x16xf32>
    %cst_6 = arith.constant 0.000000e+00 : f32
    %9 = vector.broadcast %cst_6 : f32 to vector<1024x16xf32>
    %10 = arith.maximumf %8, %9 : vector<1024x16xf32>
    %c1023_i32 = arith.constant 1023 : i32
    %11 = tpu.dynamic_rotate %10 by %c1023_i32 dim 0 : vector<1024x16xf32>, i32 -> vector<1024x16xf32>
    %12 = arith.maximumf %10, %11 : vector<1024x16xf32>
    %c0_7 = arith.constant 0 : index
    %c0_8 = arith.constant 0 : index
    %13 = vector.load %arg11[%c0_7, %c0_8] : memref<1024x16xf32, #tpu.memory_space<vmem>>, vector<1024x16xf32>
    tpu.vector_store %arg11[%c0_7, %c0_8], %12 {strides = array<i32>} : memref<1024x16xf32, #tpu.memory_space<vmem>>, vector<1024x16xf32>,
    %c0_9 = arith.constant 0 : index
    %c0_10 = arith.constant 0 : index
    %14 = tpu.strided_load %arg11[%c0_9, %c0_10] {strides = array<i32: 2, 1>} : memref<1024x16xf32, #tpu.memory_space<vmem>>, vector<512x16xf32>
    %15 = tpu.iota {dimensions = array<i32: 0>} : vector<512x1xi32>
    %c63_i32 = arith.constant 63 : i32
    %16 = vector.broadcast %c63_i32 : i32 to vector<512x1xi32>
    %17 = arith.andi %15, %16 : vector<512x1xi32>
    %c0_i32 = arith.constant 0 : i32
    %18 = vector.broadcast %c0_i32 : i32 to vector<512x1xi32>
    %19 = arith.cmpi eq, %17, %18 : vector<512x1xi32>
    %c1_i32 = arith.constant 1 : i32
    %20 = tpu.dynamic_rotate %14 by %c1_i32 dim 0 : vector<512x16xf32>, i32 -> vector<512x16xf32>
    %cst_11 = arith.constant 0.000000e+00 : f32
    %21 = vector.shape_cast %19 : vector<512x1xi1> to vector<512x1xi1>
    %22 = vector.broadcast %21 : vector<512x1xi1> to vector<512x16xi1>
    %23 = vector.broadcast %cst_11 : f32 to vector<512x16xf32>
    %24 = arith.select %22, %23, %20 : vector<512x16xi1>, vector<512x16xf32>
    %c63_i32_12 = arith.constant 63 : i32
    %25 = vector.broadcast %c63_i32_12 : i32 to vector<512x1xi32>
    %26 = arith.cmpi eq, %17, %25 : vector<512x1xi32>
    %c511_i32 = arith.constant 511 : i32
    %27 = tpu.dynamic_rotate %14 by %c511_i32 dim 0 : vector<512x16xf32>, i32 -> vector<512x16xf32>
    %cst_13 = arith.constant 0.000000e+00 : f32
    %28 = vector.shape_cast %26 : vector<512x1xi1> to vector<512x1xi1>
    %29 = vector.broadcast %28 : vector<512x1xi1> to vector<512x16xi1>
    %30 = vector.broadcast %cst_13 : f32 to vector<512x16xf32>
    %31 = arith.select %29, %30, %27 : vector<512x16xi1>, vector<512x16xf32>
    %c0_14 = arith.constant 0 : index
    %c0_15 = arith.constant 0 : index
    %c0_16 = arith.constant 0 : index
    %32 = vector.load %arg3[%c0_14, %c0_15, %c0_16] : memref<3x16x32xf32, #tpu.memory_space<vmem>>, vector<1x16x32xf32>
    %33 = vector.shape_cast %32 : vector<1x16x32xf32> to vector<16x32xf32>
    %cst_17 = arith.constant dense<0.000000e+00> : vector<512x32xf32>
    %34 = tpu.matmul %24, %33, %cst_17 {dimension_numbers = #tpu.dot_dimension_numbers<[1], [0], [0], [1], [0, 0, 1, 1], [], []>} : vector<512x16xf32>, vector<16x32xf32>, vector<512x32xf32> -> vector<512x32xf32>
    %c1_18 = arith.constant 1 : index
    %c0_19 = arith.constant 0 : index
    %c0_20 = arith.constant 0 : index
    %35 = vector.load %arg3[%c1_18, %c0_19, %c0_20] : memref<3x16x32xf32, #tpu.memory_space<vmem>>, vector<1x16x32xf32>
    %36 = vector.shape_cast %35 : vector<1x16x32xf32> to vector<16x32xf32>
    %cst_21 = arith.constant dense<0.000000e+00> : vector<512x32xf32>
    %37 = tpu.matmul %14, %36, %cst_21 {dimension_numbers = #tpu.dot_dimension_numbers<[1], [0], [0], [1], [0, 0, 1, 1], [], []>} : vector<512x16xf32>, vector<16x32xf32>, vector<512x32xf32> -> vector<512x32xf32>
    %38 = arith.addf %34, %37 : vector<512x32xf32>
    %c2 = arith.constant 2 : index
    %c0_22 = arith.constant 0 : index
    %c0_23 = arith.constant 0 : index
    %39 = vector.load %arg3[%c2, %c0_22, %c0_23] : memref<3x16x32xf32, #tpu.memory_space<vmem>>, vector<1x16x32xf32>
    %40 = vector.shape_cast %39 : vector<1x16x32xf32> to vector<16x32xf32>
    %cst_24 = arith.constant dense<0.000000e+00> : vector<512x32xf32>
    %41 = tpu.matmul %31, %40, %cst_24 {dimension_numbers = #tpu.dot_dimension_numbers<[1], [0], [0], [1], [0, 0, 1, 1], [], []>} : vector<512x16xf32>, vector<16x32xf32>, vector<512x32xf32> -> vector<512x32xf32>
    %42 = arith.addf %38, %41 : vector<512x32xf32>
    %c2_25 = arith.constant 2 : index
    %c0_26 = arith.constant 0 : index
    %43 = vector.load %arg9[%c2_25, %c0_26] : memref<16x128xf32, #tpu.memory_space<vmem>>, vector<1x32xf32>
    %c3 = arith.constant 3 : index
    %c0_27 = arith.constant 0 : index
    %44 = vector.load %arg9[%c3, %c0_27] : memref<16x128xf32, #tpu.memory_space<vmem>>, vector<1x32xf32>
    %45 = vector.broadcast %43 : vector<1x32xf32> to vector<512x32xf32>
    %46 = arith.mulf %42, %45 : vector<512x32xf32>
    %47 = vector.broadcast %44 : vector<1x32xf32> to vector<512x32xf32>
    %48 = arith.addf %46, %47 : vector<512x32xf32>
    %cst_28 = arith.constant 0.000000e+00 : f32
    %49 = vector.broadcast %cst_28 : f32 to vector<512x32xf32>
    %50 = arith.maximumf %48, %49 : vector<512x32xf32>
    %c511_i32_29 = arith.constant 511 : i32
    %51 = tpu.dynamic_rotate %50 by %c511_i32_29 dim 0 : vector<512x32xf32>, i32 -> vector<512x32xf32>
    %52 = arith.maximumf %50, %51 : vector<512x32xf32>
    %c0_30 = arith.constant 0 : index
    %c0_31 = arith.constant 0 : index
    %53 = vector.load %arg12[%c0_30, %c0_31] : memref<512x32xf32, #tpu.memory_space<vmem>>, vector<512x32xf32>
    tpu.vector_store %arg12[%c0_30, %c0_31], %52 {strides = array<i32>} : memref<512x32xf32, #tpu.memory_space<vmem>>, vector<512x32xf32>,
    %c0_32 = arith.constant 0 : index
    %c0_33 = arith.constant 0 : index
    %54 = tpu.strided_load %arg12[%c0_32, %c0_33] {strides = array<i32: 2, 1>} : memref<512x32xf32, #tpu.memory_space<vmem>>, vector<256x32xf32>
    %55 = tpu.iota {dimensions = array<i32: 0>} : vector<256x1xi32>
    %c31_i32 = arith.constant 31 : i32
    %56 = vector.broadcast %c31_i32 : i32 to vector<256x1xi32>
    %57 = arith.andi %55, %56 : vector<256x1xi32>
    %c0_i32_34 = arith.constant 0 : i32
    %58 = vector.broadcast %c0_i32_34 : i32 to vector<256x1xi32>
    %59 = arith.cmpi eq, %57, %58 : vector<256x1xi32>
    %c1_i32_35 = arith.constant 1 : i32
    %60 = tpu.dynamic_rotate %54 by %c1_i32_35 dim 0 : vector<256x32xf32>, i32 -> vector<256x32xf32>
    %cst_36 = arith.constant 0.000000e+00 : f32
    %61 = vector.shape_cast %59 : vector<256x1xi1> to vector<256x1xi1>
    %62 = vector.broadcast %61 : vector<256x1xi1> to vector<256x32xi1>
    %63 = vector.broadcast %cst_36 : f32 to vector<256x32xf32>
    %64 = arith.select %62, %63, %60 : vector<256x32xi1>, vector<256x32xf32>
    %c31_i32_37 = arith.constant 31 : i32
    %65 = vector.broadcast %c31_i32_37 : i32 to vector<256x1xi32>
    %66 = arith.cmpi eq, %57, %65 : vector<256x1xi32>
    %c255_i32 = arith.constant 255 : i32
    %67 = tpu.dynamic_rotate %54 by %c255_i32 dim 0 : vector<256x32xf32>, i32 -> vector<256x32xf32>
    %cst_38 = arith.constant 0.000000e+00 : f32
    %68 = vector.shape_cast %66 : vector<256x1xi1> to vector<256x1xi1>
    %69 = vector.broadcast %68 : vector<256x1xi1> to vector<256x32xi1>
    %70 = vector.broadcast %cst_38 : f32 to vector<256x32xf32>
    %71 = arith.select %69, %70, %67 : vector<256x32xi1>, vector<256x32xf32>
    %c0_39 = arith.constant 0 : index
    %c0_40 = arith.constant 0 : index
    %c0_41 = arith.constant 0 : index
    %72 = vector.load %arg4[%c0_39, %c0_40, %c0_41] : memref<3x32x64xf32, #tpu.memory_space<vmem>>, vector<1x32x64xf32>
    %73 = vector.shape_cast %72 : vector<1x32x64xf32> to vector<32x64xf32>
    %cst_42 = arith.constant dense<0.000000e+00> : vector<256x64xf32>
    %74 = tpu.matmul %64, %73, %cst_42 {dimension_numbers = #tpu.dot_dimension_numbers<[1], [0], [0], [1], [0, 0, 1, 1], [], []>} : vector<256x32xf32>, vector<32x64xf32>, vector<256x64xf32> -> vector<256x64xf32>
    %c1_43 = arith.constant 1 : index
    %c0_44 = arith.constant 0 : index
    %c0_45 = arith.constant 0 : index
    %75 = vector.load %arg4[%c1_43, %c0_44, %c0_45] : memref<3x32x64xf32, #tpu.memory_space<vmem>>, vector<1x32x64xf32>
    %76 = vector.shape_cast %75 : vector<1x32x64xf32> to vector<32x64xf32>
    %cst_46 = arith.constant dense<0.000000e+00> : vector<256x64xf32>
    %77 = tpu.matmul %54, %76, %cst_46 {dimension_numbers = #tpu.dot_dimension_numbers<[1], [0], [0], [1], [0, 0, 1, 1], [], []>} : vector<256x32xf32>, vector<32x64xf32>, vector<256x64xf32> -> vector<256x64xf32>
    %78 = arith.addf %74, %77 : vector<256x64xf32>
    %c2_47 = arith.constant 2 : index
    %c0_48 = arith.constant 0 : index
    %c0_49 = arith.constant 0 : index
    %79 = vector.load %arg4[%c2_47, %c0_48, %c0_49] : memref<3x32x64xf32, #tpu.memory_space<vmem>>, vector<1x32x64xf32>
    %80 = vector.shape_cast %79 : vector<1x32x64xf32> to vector<32x64xf32>
    %cst_50 = arith.constant dense<0.000000e+00> : vector<256x64xf32>
    %81 = tpu.matmul %71, %80, %cst_50 {dimension_numbers = #tpu.dot_dimension_numbers<[1], [0], [0], [1], [0, 0, 1, 1], [], []>} : vector<256x32xf32>, vector<32x64xf32>, vector<256x64xf32> -> vector<256x64xf32>
    %82 = arith.addf %78, %81 : vector<256x64xf32>
    %c4 = arith.constant 4 : index
    %c0_51 = arith.constant 0 : index
    %83 = vector.load %arg9[%c4, %c0_51] : memref<16x128xf32, #tpu.memory_space<vmem>>, vector<1x64xf32>
    %c5 = arith.constant 5 : index
    %c0_52 = arith.constant 0 : index
    %84 = vector.load %arg9[%c5, %c0_52] : memref<16x128xf32, #tpu.memory_space<vmem>>, vector<1x64xf32>
    %85 = vector.broadcast %83 : vector<1x64xf32> to vector<256x64xf32>
    %86 = arith.mulf %82, %85 : vector<256x64xf32>
    %87 = vector.broadcast %84 : vector<1x64xf32> to vector<256x64xf32>
    %88 = arith.addf %86, %87 : vector<256x64xf32>
    %cst_53 = arith.constant 0.000000e+00 : f32
    %89 = vector.broadcast %cst_53 : f32 to vector<256x64xf32>
    %90 = arith.maximumf %88, %89 : vector<256x64xf32>
    %c255_i32_54 = arith.constant 255 : i32
    %91 = tpu.dynamic_rotate %90 by %c255_i32_54 dim 0 : vector<256x64xf32>, i32 -> vector<256x64xf32>
    %92 = arith.maximumf %90, %91 : vector<256x64xf32>
    %c0_55 = arith.constant 0 : index
    %c0_56 = arith.constant 0 : index
    %93 = vector.load %arg13[%c0_55, %c0_56] : memref<256x64xf32, #tpu.memory_space<vmem>>, vector<256x64xf32>
    tpu.vector_store %arg13[%c0_55, %c0_56], %92 {strides = array<i32>} : memref<256x64xf32, #tpu.memory_space<vmem>>, vector<256x64xf32>,
    %c0_57 = arith.constant 0 : index
    %c0_58 = arith.constant 0 : index
    %94 = tpu.strided_load %arg13[%c0_57, %c0_58] {strides = array<i32: 2, 1>} : memref<256x64xf32, #tpu.memory_space<vmem>>, vector<128x64xf32>
    %95 = tpu.iota {dimensions = array<i32: 0>} : vector<128x1xi32>
    %c15_i32 = arith.constant 15 : i32
    %96 = vector.broadcast %c15_i32 : i32 to vector<128x1xi32>
    %97 = arith.andi %95, %96 : vector<128x1xi32>
    %c0_i32_59 = arith.constant 0 : i32
    %98 = vector.broadcast %c0_i32_59 : i32 to vector<128x1xi32>
    %99 = arith.cmpi eq, %97, %98 : vector<128x1xi32>
    %c1_i32_60 = arith.constant 1 : i32
    %100 = tpu.dynamic_rotate %94 by %c1_i32_60 dim 0 : vector<128x64xf32>, i32 -> vector<128x64xf32>
    %cst_61 = arith.constant 0.000000e+00 : f32
    %101 = vector.shape_cast %99 : vector<128x1xi1> to vector<128x1xi1>
    %102 = vector.broadcast %101 : vector<128x1xi1> to vector<128x64xi1>
    %103 = vector.broadcast %cst_61 : f32 to vector<128x64xf32>
    %104 = arith.select %102, %103, %100 : vector<128x64xi1>, vector<128x64xf32>
    %c15_i32_62 = arith.constant 15 : i32
    %105 = vector.broadcast %c15_i32_62 : i32 to vector<128x1xi32>
    %106 = arith.cmpi eq, %97, %105 : vector<128x1xi32>
    %c127_i32 = arith.constant 127 : i32
    %107 = tpu.dynamic_rotate %94 by %c127_i32 dim 0 : vector<128x64xf32>, i32 -> vector<128x64xf32>
    %cst_63 = arith.constant 0.000000e+00 : f32
    %108 = vector.shape_cast %106 : vector<128x1xi1> to vector<128x1xi1>
    %109 = vector.broadcast %108 : vector<128x1xi1> to vector<128x64xi1>
    %110 = vector.broadcast %cst_63 : f32 to vector<128x64xf32>
    %111 = arith.select %109, %110, %107 : vector<128x64xi1>, vector<128x64xf32>
    %c0_64 = arith.constant 0 : index
    %c0_65 = arith.constant 0 : index
    %c0_66 = arith.constant 0 : index
    %112 = vector.load %arg5[%c0_64, %c0_65, %c0_66] : memref<3x64x64xf32, #tpu.memory_space<vmem>>, vector<1x64x64xf32>
    %113 = vector.shape_cast %112 : vector<1x64x64xf32> to vector<64x64xf32>
    %cst_67 = arith.constant dense<0.000000e+00> : vector<128x64xf32>
    %114 = tpu.matmul %104, %113, %cst_67 {dimension_numbers = #tpu.dot_dimension_numbers<[1], [0], [0], [1], [0, 0, 1, 1], [], []>} : vector<128x64xf32>, vector<64x64xf32>, vector<128x64xf32> -> vector<128x64xf32>
    %c1_68 = arith.constant 1 : index
    %c0_69 = arith.constant 0 : index
    %c0_70 = arith.constant 0 : index
    %115 = vector.load %arg5[%c1_68, %c0_69, %c0_70] : memref<3x64x64xf32, #tpu.memory_space<vmem>>, vector<1x64x64xf32>
    %116 = vector.shape_cast %115 : vector<1x64x64xf32> to vector<64x64xf32>
    %cst_71 = arith.constant dense<0.000000e+00> : vector<128x64xf32>
    %117 = tpu.matmul %94, %116, %cst_71 {dimension_numbers = #tpu.dot_dimension_numbers<[1], [0], [0], [1], [0, 0, 1, 1], [], []>} : vector<128x64xf32>, vector<64x64xf32>, vector<128x64xf32> -> vector<128x64xf32>
    %118 = arith.addf %114, %117 : vector<128x64xf32>
    %c2_72 = arith.constant 2 : index
    %c0_73 = arith.constant 0 : index
    %c0_74 = arith.constant 0 : index
    %119 = vector.load %arg5[%c2_72, %c0_73, %c0_74] : memref<3x64x64xf32, #tpu.memory_space<vmem>>, vector<1x64x64xf32>
    %120 = vector.shape_cast %119 : vector<1x64x64xf32> to vector<64x64xf32>
    %cst_75 = arith.constant dense<0.000000e+00> : vector<128x64xf32>
    %121 = tpu.matmul %111, %120, %cst_75 {dimension_numbers = #tpu.dot_dimension_numbers<[1], [0], [0], [1], [0, 0, 1, 1], [], []>} : vector<128x64xf32>, vector<64x64xf32>, vector<128x64xf32> -> vector<128x64xf32>
    %122 = arith.addf %118, %121 : vector<128x64xf32>
    %c6 = arith.constant 6 : index
    %c0_76 = arith.constant 0 : index
    %123 = vector.load %arg9[%c6, %c0_76] : memref<16x128xf32, #tpu.memory_space<vmem>>, vector<1x64xf32>
    %c7 = arith.constant 7 : index
    %c0_77 = arith.constant 0 : index
    %124 = vector.load %arg9[%c7, %c0_77] : memref<16x128xf32, #tpu.memory_space<vmem>>, vector<1x64xf32>
    %125 = vector.broadcast %123 : vector<1x64xf32> to vector<128x64xf32>
    %126 = arith.mulf %122, %125 : vector<128x64xf32>
    %127 = vector.broadcast %124 : vector<1x64xf32> to vector<128x64xf32>
    %128 = arith.addf %126, %127 : vector<128x64xf32>
    %cst_78 = arith.constant 0.000000e+00 : f32
    %129 = vector.broadcast %cst_78 : f32 to vector<128x64xf32>
    %130 = arith.maximumf %128, %129 : vector<128x64xf32>
    %c127_i32_79 = arith.constant 127 : i32
    %131 = tpu.dynamic_rotate %130 by %c127_i32_79 dim 0 : vector<128x64xf32>, i32 -> vector<128x64xf32>
    %132 = arith.maximumf %130, %131 : vector<128x64xf32>
    %c0_80 = arith.constant 0 : index
    %c0_81 = arith.constant 0 : index
    %133 = vector.load %arg14[%c0_80, %c0_81] : memref<128x64xf32, #tpu.memory_space<vmem>>, vector<128x64xf32>
    tpu.vector_store %arg14[%c0_80, %c0_81], %132 {strides = array<i32>} : memref<128x64xf32, #tpu.memory_space<vmem>>, vector<128x64xf32>,
    %c0_82 = arith.constant 0 : index
    %c0_83 = arith.constant 0 : index
    %134 = tpu.strided_load %arg14[%c0_82, %c0_83] {strides = array<i32: 2, 1>} : memref<128x64xf32, #tpu.memory_space<vmem>>, vector<64x64xf32>
    %c0_84 = arith.constant 0 : index
    %c0_85 = arith.constant 0 : index
    %c0_86 = arith.constant 0 : index
    %135 = vector.load %arg6[%c0_84, %c0_85, %c0_86] : memref<3x64x64xf32, #tpu.memory_space<vmem>>, vector<1x64x64xf32>
    %136 = vector.shape_cast %135 : vector<1x64x64xf32> to vector<64x64xf32>
    %cst_87 = arith.constant dense<0.000000e+00> : vector<64x64xf32>
    %137 = tpu.matmul %134, %136, %cst_87 {dimension_numbers = #tpu.dot_dimension_numbers<[1], [0], [0], [1], [0, 0, 1, 1], [], []>} : vector<64x64xf32>, vector<64x64xf32>, vector<64x64xf32> -> vector<64x64xf32>
    %c63_i32_88 = arith.constant 63 : i32
    %138 = tpu.dynamic_rotate %134 by %c63_i32_88 dim 0 : vector<64x64xf32>, i32 -> vector<64x64xf32>
    %c1_89 = arith.constant 1 : index
    %c0_90 = arith.constant 0 : index
    %c0_91 = arith.constant 0 : index
    %139 = vector.load %arg6[%c1_89, %c0_90, %c0_91] : memref<3x64x64xf32, #tpu.memory_space<vmem>>, vector<1x64x64xf32>
    %140 = vector.shape_cast %139 : vector<1x64x64xf32> to vector<64x64xf32>
    %cst_92 = arith.constant dense<0.000000e+00> : vector<64x64xf32>
    %141 = tpu.matmul %138, %140, %cst_92 {dimension_numbers = #tpu.dot_dimension_numbers<[1], [0], [0], [1], [0, 0, 1, 1], [], []>} : vector<64x64xf32>, vector<64x64xf32>, vector<64x64xf32> -> vector<64x64xf32>
    %142 = arith.addf %137, %141 : vector<64x64xf32>
    %c62_i32 = arith.constant 62 : i32
    %143 = tpu.dynamic_rotate %134 by %c62_i32 dim 0 : vector<64x64xf32>, i32 -> vector<64x64xf32>
    %c2_93 = arith.constant 2 : index
    %c0_94 = arith.constant 0 : index
    %c0_95 = arith.constant 0 : index
    %144 = vector.load %arg6[%c2_93, %c0_94, %c0_95] : memref<3x64x64xf32, #tpu.memory_space<vmem>>, vector<1x64x64xf32>
    %145 = vector.shape_cast %144 : vector<1x64x64xf32> to vector<64x64xf32>
    %cst_96 = arith.constant dense<0.000000e+00> : vector<64x64xf32>
    %146 = tpu.matmul %143, %145, %cst_96 {dimension_numbers = #tpu.dot_dimension_numbers<[1], [0], [0], [1], [0, 0, 1, 1], [], []>} : vector<64x64xf32>, vector<64x64xf32>, vector<64x64xf32> -> vector<64x64xf32>
    %147 = arith.addf %142, %146 : vector<64x64xf32>
    %c8 = arith.constant 8 : index
    %c0_97 = arith.constant 0 : index
    %148 = vector.load %arg9[%c8, %c0_97] : memref<16x128xf32, #tpu.memory_space<vmem>>, vector<1x64xf32>
    %c9 = arith.constant 9 : index
    %c0_98 = arith.constant 0 : index
    %149 = vector.load %arg9[%c9, %c0_98] : memref<16x128xf32, #tpu.memory_space<vmem>>, vector<1x64xf32>
    %150 = vector.broadcast %148 : vector<1x64xf32> to vector<64x64xf32>
    %151 = arith.mulf %147, %150 : vector<64x64xf32>
    %152 = vector.broadcast %149 : vector<1x64xf32> to vector<64x64xf32>
    %153 = arith.addf %151, %152 : vector<64x64xf32>
    %cst_99 = arith.constant 0.000000e+00 : f32
    %154 = vector.broadcast %cst_99 : f32 to vector<64x64xf32>
    %155 = arith.maximumf %153, %154 : vector<64x64xf32>
    %c63_i32_100 = arith.constant 63 : i32
    %156 = tpu.dynamic_rotate %155 by %c63_i32_100 dim 0 : vector<64x64xf32>, i32 -> vector<64x64xf32>
    %157 = arith.maximumf %155, %156 : vector<64x64xf32>
    %c0_101 = arith.constant 0 : index
    %c0_102 = arith.constant 0 : index
    %158 = vector.load %arg15[%c0_101, %c0_102] : memref<64x64xf32, #tpu.memory_space<vmem>>, vector<64x64xf32>
    tpu.vector_store %arg15[%c0_101, %c0_102], %157 {strides = array<i32>} : memref<64x64xf32, #tpu.memory_space<vmem>>, vector<64x64xf32>,
    %c10 = arith.constant 10 : index
    %c0_103 = arith.constant 0 : index
    %159 = vector.load %arg9[%c10, %c0_103] : memref<16x128xf32, #tpu.memory_space<vmem>>, vector<1x128xf32>
    %c0_104 = arith.constant 0 : index
    %c0_105 = arith.constant 0 : index
    %160 = tpu.strided_load %arg15[%c0_104, %c0_105] {strides = array<i32: 8, 1>} : memref<64x64xf32, #tpu.memory_space<vmem>>, vector<8x64xf32>
    %c0_106 = arith.constant 0 : index
    %c0_107 = arith.constant 0 : index
    %c0_108 = arith.constant 0 : index
    %161 = vector.load %arg7[%c0_106, %c0_107, %c0_108] : memref<3x64x128xf32, #tpu.memory_space<vmem>>, vector<1x64x128xf32>
    %162 = vector.shape_cast %161 : vector<1x64x128xf32> to vector<64x128xf32>
    %cst_109 = arith.constant dense<0.000000e+00> : vector<8x128xf32>
    %163 = tpu.matmul %160, %162, %cst_109 {dimension_numbers = #tpu.dot_dimension_numbers<[1], [0], [0], [1], [0, 0, 1, 1], [], []>} : vector<8x64xf32>, vector<64x128xf32>, vector<8x128xf32> -> vector<8x128xf32>
    %164 = vector.broadcast %159 : vector<1x128xf32> to vector<8x128xf32>
    %165 = arith.addf %164, %163 : vector<8x128xf32>
    %c2_110 = arith.constant 2 : index
    %c0_111 = arith.constant 0 : index
    %166 = tpu.strided_load %arg15[%c2_110, %c0_111] {strides = array<i32: 8, 1>} : memref<64x64xf32, #tpu.memory_space<vmem>>, vector<8x64xf32>
    %c1_112 = arith.constant 1 : index
    %c0_113 = arith.constant 0 : index
    %c0_114 = arith.constant 0 : index
    %167 = vector.load %arg7[%c1_112, %c0_113, %c0_114] : memref<3x64x128xf32, #tpu.memory_space<vmem>>, vector<1x64x128xf32>
    %168 = vector.shape_cast %167 : vector<1x64x128xf32> to vector<64x128xf32>
    %cst_115 = arith.constant dense<0.000000e+00> : vector<8x128xf32>
    %169 = tpu.matmul %166, %168, %cst_115 {dimension_numbers = #tpu.dot_dimension_numbers<[1], [0], [0], [1], [0, 0, 1, 1], [], []>} : vector<8x64xf32>, vector<64x128xf32>, vector<8x128xf32> -> vector<8x128xf32>
    %170 = arith.addf %165, %169 : vector<8x128xf32>
    %c4_116 = arith.constant 4 : index
    %c0_117 = arith.constant 0 : index
    %171 = tpu.strided_load %arg15[%c4_116, %c0_117] {strides = array<i32: 8, 1>} : memref<64x64xf32, #tpu.memory_space<vmem>>, vector<8x64xf32>
    %c2_118 = arith.constant 2 : index
    %c0_119 = arith.constant 0 : index
    %c0_120 = arith.constant 0 : index
    %172 = vector.load %arg7[%c2_118, %c0_119, %c0_120] : memref<3x64x128xf32, #tpu.memory_space<vmem>>, vector<1x64x128xf32>
    %173 = vector.shape_cast %172 : vector<1x64x128xf32> to vector<64x128xf32>
    %cst_121 = arith.constant dense<0.000000e+00> : vector<8x128xf32>
    %174 = tpu.matmul %171, %173, %cst_121 {dimension_numbers = #tpu.dot_dimension_numbers<[1], [0], [0], [1], [0, 0, 1, 1], [], []>} : vector<8x64xf32>, vector<64x128xf32>, vector<8x128xf32> -> vector<8x128xf32>
    %175 = arith.addf %170, %174 : vector<8x128xf32>
    %cst_122 = arith.constant 0.000000e+00 : f32
    %176 = vector.broadcast %cst_122 : f32 to vector<8x128xf32>
    %177 = arith.maximumf %175, %176 : vector<8x128xf32>
    %c0_123 = arith.constant 0 : index
    %c0_124 = arith.constant 0 : index
    %178 = vector.load %arg8[%c0_123, %c0_124] : memref<128x128xf32, #tpu.memory_space<vmem>>, vector<128x128xf32>
    %cst_125 = arith.constant dense<0.000000e+00> : vector<8x128xf32>
    %179 = tpu.matmul %177, %178, %cst_125 {dimension_numbers = #tpu.dot_dimension_numbers<[1], [0], [0], [1], [0, 0, 1, 1], [], []>} : vector<8x128xf32>, vector<128x128xf32>, vector<8x128xf32> -> vector<8x128xf32>
    %c11 = arith.constant 11 : index
    %c0_126 = arith.constant 0 : index
    %180 = vector.load %arg9[%c11, %c0_126] : memref<16x128xf32, #tpu.memory_space<vmem>>, vector<1x128xf32>
    %181 = vector.broadcast %180 : vector<1x128xf32> to vector<8x128xf32>
    %182 = arith.addf %179, %181 : vector<8x128xf32>
    %c0_127 = arith.constant 0 : index
    %c0_128 = arith.constant 0 : index
    %183 = vector.load %arg10[%c0_127, %c0_128] : memref<8x128xf32, #tpu.memory_space<vmem>>, vector<8x128xf32>
    tpu.vector_store %arg10[%c0_127, %c0_128], %182 {strides = array<i32>} : memref<8x128xf32, #tpu.memory_space<vmem>>, vector<8x128xf32>,
    return
  }
  func.func @transform_0(%arg0: i32) -> (i32, i32) {
    %c0_i32 = arith.constant 0 : i32
    %c0_i32_0 = arith.constant 0 : i32
    return %arg0, %c0_i32 : i32, i32
  }
  func.func @transform_1(%arg0: i32) -> (i32, i32) {
    %c0_i32 = arith.constant 0 : i32
    %c0_i32_0 = arith.constant 0 : i32
    %c0_i32_1 = arith.constant 0 : i32
    return %c0_i32, %c0_i32_0 : i32, i32
  }
  func.func @transform_2(%arg0: i32) -> (i32, i32, i32) {
    %c0_i32 = arith.constant 0 : i32
    %c0_i32_0 = arith.constant 0 : i32
    %c0_i32_1 = arith.constant 0 : i32
    %c0_i32_2 = arith.constant 0 : i32
    return %c0_i32, %c0_i32_0, %c0_i32_1 : i32, i32, i32
  }
  func.func @transform_3(%arg0: i32) -> (i32, i32, i32) {
    %c0_i32 = arith.constant 0 : i32
    %c0_i32_0 = arith.constant 0 : i32
    %c0_i32_1 = arith.constant 0 : i32
    %c0_i32_2 = arith.constant 0 : i32
    return %c0_i32, %c0_i32_0, %c0_i32_1 : i32, i32, i32
  }
  func.func @transform_4(%arg0: i32) -> (i32, i32, i32) {
    %c0_i32 = arith.constant 0 : i32
    %c0_i32_0 = arith.constant 0 : i32
    %c0_i32_1 = arith.constant 0 : i32
    %c0_i32_2 = arith.constant 0 : i32
    return %c0_i32, %c0_i32_0, %c0_i32_1 : i32, i32, i32
  }
  func.func @transform_5(%arg0: i32) -> (i32, i32, i32) {
    %c0_i32 = arith.constant 0 : i32
    %c0_i32_0 = arith.constant 0 : i32
    %c0_i32_1 = arith.constant 0 : i32
    %c0_i32_2 = arith.constant 0 : i32
    return %c0_i32, %c0_i32_0, %c0_i32_1 : i32, i32, i32
  }
  func.func @transform_6(%arg0: i32) -> (i32, i32, i32) {
    %c0_i32 = arith.constant 0 : i32
    %c0_i32_0 = arith.constant 0 : i32
    %c0_i32_1 = arith.constant 0 : i32
    %c0_i32_2 = arith.constant 0 : i32
    return %c0_i32, %c0_i32_0, %c0_i32_1 : i32, i32, i32
  }
  func.func @transform_7(%arg0: i32) -> (i32, i32) {
    %c0_i32 = arith.constant 0 : i32
    %c0_i32_0 = arith.constant 0 : i32
    %c0_i32_1 = arith.constant 0 : i32
    return %c0_i32, %c0_i32_0 : i32, i32
  }
  func.func @transform_8(%arg0: i32) -> (i32, i32) {
    %c0_i32 = arith.constant 0 : i32
    %c0_i32_0 = arith.constant 0 : i32
    %c0_i32_1 = arith.constant 0 : i32
    return %c0_i32, %c0_i32_0 : i32, i32
  }
  func.func @transform_9(%arg0: i32) -> (i32, i32) {
    %c0_i32 = arith.constant 0 : i32
    %c0_i32_0 = arith.constant 0 : i32
    return %arg0, %c0_i32 : i32, i32
  }
}

</mosaic_0001>

<bundles_post_ra>
// kernel: wdcnn_forward.1
= control target key start
LH: loop header
LB: loop body
LE: loop exit
PB: predicated region body
PF: predicated region fallthrough
CT: control target
= control target key end

     0   :  { %vm170_vm0 = vcmask 523264   ;;  %vm2039_vm2 = vcmask 130048   ;;  %s16440_s1 = inlined_call_operand.vmem [shape: f32[64,16], index: 1, kind: input, shape index: {}]   ;;  %s16441_s0 = inlined_call_operand.vmem [shape: f32[1024,64], index: 0, kind: input, shape index: {}]   ;;  %s16442_s2 = inlined_call_operand.vmem [shape: f32[3,16,32], index: 2, kind: input, shape index: {}]   ;;  %s16443_s8 = inlined_call_operand.vmem [shape: f32[16,128], index: 8, kind: input, shape index: {}]   ;;  %s16444_s3 = inlined_call_operand.vmem [shape: f32[3,32,64], index: 3, kind: input, shape index: {}]   ;;  %s16445_s4 = inlined_call_operand.vmem [shape: f32[3,64,64], index: 4, kind: input, shape index: {}]   ;;  %s16446_s5 = inlined_call_operand.vmem [shape: f32[3,64,64], index: 5, kind: input, shape index: {}]   ;;  %s16447_s6 = inlined_call_operand.vmem [shape: f32[3,64,128], index: 6, kind: input, shape index: {}]   ;;  %s16448_s7 = inlined_call_operand.vmem [shape: f32[128,128], index: 7, kind: input, shape index: {}]   ;;  %s16449_s9 = inlined_call_operand.vmem [shape: f32[8,128], index: 9, kind: output, shape index: {}]  }
   0x1   :  { %v162_v0 = vld [vmem:[%s16440_s1] sm:$0xff]  ;;  %v163_v1 = vld [vmem:[%s16440_s1 + $0x8] sm:$0xff]  ;;  %v164_v2 = vld [vmem:[%s16440_s1 + $0x10] sm:$0xff] }
   0x2   :  { %v11194_v3 = vpack.c.bf16 %v163_v1, %v162_v0  ;;  %v165_v4 = vld [vmem:[%s16440_s1 + $0x18] sm:$0xff]  ;;  %v166_v6 = vld [vmem:[%s16440_s1 + $0x20] sm:$0xff]  ;;  %v167_v7 = vld [vmem:[%s16440_s1 + $0x28] sm:$0xff] }
   0x3   :  { %v11198_v5 = vpack.c.bf16 %v165_v4, %v164_v2  ;;  %v34_v8 = vld [vmem:[%s16441_s0] sm:$0xff]  ;;  %v11202_v9 = vpack.c.bf16 %v167_v7, %v166_v6  ;;  %v168_v10 = vld [vmem:[%s16440_s1 + $0x30] sm:$0xff]  ;;  %v169_v11 = vld [vmem:[%s16440_s1 + $0x38] sm:$0xff] }
   0x4   :  { %11195 = vmatprep.subr.bf16.mxu0 %v11194_v3  ;;  %10238 = vmatprep.mubr.msk.f32.mxu0 %vm170_vm0, %v34_v8  ;;  %v11206_v12 = vpack.c.bf16 %v169_v11, %v168_v10  ;;  %v35_v13 = vld [vmem:[%s16441_s0 + $0x8] sm:$0xff]  ;;  %v36_v14 = vld [vmem:[%s16441_s0 + $0x10] sm:$0xff]  ;;  %v37_v15 = vld [vmem:[%s16441_s0 + $0x18] sm:$0xff] }
   0x5   :  { %11197 = vmatpush3.bf16.msra.mxu0 %v11194_v3  ;;  %v38_v16 = vld [vmem:[%s16441_s0 + $0x20] sm:$0xff]  ;;  %v39_v17 = vld [vmem:[%s16441_s0 + $0x28] sm:$0xff]  ;;  %v40_v18 = vld [vmem:[%s16441_s0 + $0x30] sm:$0xff] }
   0x6   :  { %11199 = vmatprep.subr.bf16.mxu0 %v11198_v5  ;;  %v41_v19 = vld [vmem:[%s16441_s0 + $0x38] sm:$0xff]  ;;  %v42_v20 = vld [vmem:[%s16441_s0 + $0x40] sm:$0xff]  ;;  %v43_v21 = vld [vmem:[%s16441_s0 + $0x48] sm:$0xff] }
   0x7   :  { %v44_v22 = vld [vmem:[%s16441_s0 + $0x50] sm:$0xff]  ;;  %v45_v23 = vld [vmem:[%s16441_s0 + $0x58] sm:$0xff]  ;;  %v46_v24 = vld [vmem:[%s16441_s0 + $0x60] sm:$0xff] }
   0x8   :  { %v47_v25 = vld [vmem:[%s16441_s0 + $0x68] sm:$0xff]  ;;  %v48_v26 = vld [vmem:[%s16441_s0 + $0x70] sm:$0xff]  ;;  %v49_v27 = vld [vmem:[%s16441_s0 + $0x78] sm:$0xff] }
   0x9   :  { %11201 = vmatpush3.bf16.msra.mxu0 %v11198_v5  ;;  %v50_v28 = vld [vmem:[%s16441_s0 + $0x80] sm:$0xff]  ;;  %v51_v29 = vld [vmem:[%s16441_s0 + $0x88] sm:$0xff]  ;;  %v52_v30 = vld [vmem:[%s16441_s0 + $0x90] sm:$0xff] }
   0xa   :  { %11203 = vmatprep.subr.bf16.mxu0 %v11202_v9  ;;  %v53_v31 = vld [vmem:[%s16441_s0 + $0x98] sm:$0xff]  ;;  %v54_v32 = vld [vmem:[%s16441_s0 + $0xa0] sm:$0xff]  ;;  %v55_v33 = vld [vmem:[%s16441_s0 + $0xa8] sm:$0xff] }
   0xb   :  { %v56_v34 = vld [vmem:[%s16441_s0 + $0xb0] sm:$0xff]  ;;  %v57_v35 = vld [vmem:[%s16441_s0 + $0xb8] sm:$0xff]  ;;  %v58_v36 = vld [vmem:[%s16441_s0 + $0xc0] sm:$0xff] }
   0xc   :  { %v59_v37 = vld [vmem:[%s16441_s0 + $0xc8] sm:$0xff]  ;;  %v60_v38 = vld [vmem:[%s16441_s0 + $0xd0] sm:$0xff]  ;;  %v61_v39 = vld [vmem:[%s16441_s0 + $0xd8] sm:$0xff] }
   0xd   :  { %11205 = vmatpush3.bf16.msra.mxu0 %v11202_v9  ;;  %v62_v40 = vld [vmem:[%s16441_s0 + $0xe0] sm:$0xff]  ;;  %v63_v41 = vld [vmem:[%s16441_s0 + $0xe8] sm:$0xff]  ;;  %v64_v42 = vld [vmem:[%s16441_s0 + $0xf0] sm:$0xff] }
   0xe   :  { %11207 = vmatprep.subr.bf16.mxu0 %v11206_v12  ;;  %v65_v43 = vld [vmem:[%s16441_s0 + $0xf8] sm:$0xff]  ;;  %v66_v44 = vld [vmem:[%s16441_s0 + $0x100] sm:$0xff]  ;;  %v67_v45 = vld [vmem:[%s16441_s0 + $0x108] sm:$0xff] }
   0xf   :  { %v68_v46 = vld [vmem:[%s16441_s0 + $0x110] sm:$0xff]  ;;  %v69_v47 = vld [vmem:[%s16441_s0 + $0x118] sm:$0xff]  ;;  %v70_v48 = vld [vmem:[%s16441_s0 + $0x120] sm:$0xff] }
  0x10   :  { %v71_v49 = vld [vmem:[%s16441_s0 + $0x128] sm:$0xff]  ;;  %v72_v50 = vld [vmem:[%s16441_s0 + $0x130] sm:$0xff]  ;;  %v73_v51 = vld [vmem:[%s16441_s0 + $0x138] sm:$0xff] }
  0x11   :  { %11209 = vmatpush3.bf16.msra.mxu0 %v11206_v12  ;;  %v74_v52 = vld [vmem:[%s16441_s0 + $0x140] sm:$0xff]  ;;  %v75_v53 = vld [vmem:[%s16441_s0 + $0x148] sm:$0xff]  ;;  %v76_v54 = vld [vmem:[%s16441_s0 + $0x150] sm:$0xff] }
  0x12   :  { %v77_v55 = vld [vmem:[%s16441_s0 + $0x158] sm:$0xff]  ;;  %v78_v56 = vld [vmem:[%s16441_s0 + $0x160] sm:$0xff]  ;;  %v79_v57 = vld [vmem:[%s16441_s0 + $0x168] sm:$0xff] }
  0x13   :  { %v80_v58 = vld [vmem:[%s16441_s0 + $0x170] sm:$0xff]  ;;  %v81_v59 = vld [vmem:[%s16441_s0 + $0x178] sm:$0xff]  ;;  %v82_v60 = vld [vmem:[%s16441_s0 + $0x180] sm:$0xff] }
  0x14   :  { %10239 = vmatmul.mubr.msk.f32.vlgmr.msra.gmra.mrb[0].mxu0 %vm170_vm0, %v35_v13  ;;  %v83_v61 = vld [vmem:[%s16441_s0 + $0x188] sm:$0xff]  ;;  %v84_v62 = vld [vmem:[%s16441_s0 + $0x190] sm:$0xff]  ;;  %v85_v63 = vld [vmem:[%s16441_s0 + $0x198] sm:$0xff] }
  0x15   :  { %10241 = vmatprep.mubr.msk.f32.mxu0 %vm170_vm0, %v36_v14  ;;  %v86_v0 = vld [vmem:[%s16441_s0 + $0x1a0] sm:$0xff]  ;;  %v87_v1 = vld [vmem:[%s16441_s0 + $0x1a8] sm:$0xff]  ;;  %v88_v2 = vld [vmem:[%s16441_s0 + $0x1b0] sm:$0xff] }
  0x16   :  { %v89_v3 = vld [vmem:[%s16441_s0 + $0x1b8] sm:$0xff]  ;;  %v9183_v4 = vld [vmem:[%s16442_s2 + $0x10] sm:$0xff]  ;;  %v90_v6 = vld [vmem:[%s16441_s0 + $0x1c0] sm:$0xff] }
  0x17   :  { %v9184_v5 = vld [vmem:[%s16442_s2 + $0x18] sm:$0xff]  ;;  %v91_v8 = vld [vmem:[%s16441_s0 + $0x1c8] sm:$0xff]  ;;  %v92_v9 = vld [vmem:[%s16441_s0 + $0x1d0] sm:$0xff] }
  0x18   :  { %10242 = vmatmul.mubr.msk.f32.gmra.mrb[2].mxu0 %vm170_vm0, %v37_v15  ;;  %v11210_v7 = vpack.c.bf16 %v9184_v5, %v9183_v4  ;;  %v93_v10 = vld [vmem:[%s16441_s0 + $0x1d8] sm:$0xff]  ;;  %v94_v11 = vld [vmem:[%s16441_s0 + $0x1e0] sm:$0xff]  ;;  %v95_v12 = vld [vmem:[%s16441_s0 + $0x1e8] sm:$0xff] }
  0x19   :  { %10244 = vmatprep.mubr.msk.f32.mxu0 %vm170_vm0, %v38_v16  ;;  %v96_v13 = vld [vmem:[%s16441_s0 + $0x1f0] sm:$0xff]  ;;  %v97_v14 = vld [vmem:[%s16441_s0 + $0x1f8] sm:$0xff]  ;;  %v98_v15 = vld [vmem:[%s16441_s0 + $0x200] sm:$0xff] }
  0x1a   :  { %11211 = vmatprep.subr.bf16.mxu1 %v11210_v7  ;;  %v99_v16 = vld [vmem:[%s16441_s0 + $0x208] sm:$0xff] }
  0x1b   :  { %11213 = vmatpush3.bf16.msra.mxu1 %v11210_v7 }
  0x1c   :  { %10245 = vmatmul.mubr.msk.f32.gmra.mrb[4].mxu0 %vm170_vm0, %v39_v17  ;;  %v100_v17 = vld [vmem:[%s16441_s0 + $0x210] sm:$0xff] }
  0x1d   :  { %10247 = vmatprep.mubr.msk.f32.mxu0 %vm170_vm0, %v40_v18  ;;  %v101_v18 = vld [vmem:[%s16441_s0 + $0x218] sm:$0xff] }
  0x20   :  { %10248 = vmatmul.mubr.msk.f32.gmra.mrb[6].mxu0 %vm170_vm0, %v41_v19  ;;  %v102_v19 = vld [vmem:[%s16441_s0 + $0x220] sm:$0xff] }
  0x21   :  { %10250 = vmatprep.mubr.msk.f32.mxu0 %vm170_vm0, %v42_v20  ;;  %v103_v20 = vld [vmem:[%s16441_s0 + $0x228] sm:$0xff] }
  0x24   :  { %10251 = vmatmul.mubr.msk.f32.gmra.mrb[8].mxu0 %vm170_vm0, %v43_v21  ;;  %v104_v21 = vld [vmem:[%s16441_s0 + $0x230] sm:$0xff] }
  0x25   :  { %10253 = vmatprep.mubr.msk.f32.mxu0 %vm170_vm0, %v44_v22  ;;  %v105_v22 = vld [vmem:[%s16441_s0 + $0x238] sm:$0xff] }
  0x28   :  { %10254 = vmatmul.mubr.msk.f32.gmra.mrb[10].mxu0 %vm170_vm0, %v45_v23  ;;  %v106_v23 = vld [vmem:[%s16441_s0 + $0x240] sm:$0xff] }
  0x29   :  { %10256 = vmatprep.mubr.msk.f32.mxu0 %vm170_vm0, %v46_v24  ;;  %v107_v24 = vld [vmem:[%s16441_s0 + $0x248] sm:$0xff] }
  0x2c   :  { %10257 = vmatmul.mubr.msk.f32.gmra.mrb[12].mxu0 %vm170_vm0, %v47_v25  ;;  %v108_v25 = vld [vmem:[%s16441_s0 + $0x250] sm:$0xff] }
  0x2d   :  { %10259 = vmatprep.mubr.msk.f32.mxu0 %vm170_vm0, %v48_v26  ;;  %v109_v26 = vld [vmem:[%s16441_s0 + $0x258] sm:$0xff] }
  0x30   :  { %10260 = vmatmul.mubr.msk.f32.gmra.mrb[14].mxu0 %vm170_vm0, %v49_v27  ;;  %v110_v27 = vld [vmem:[%s16441_s0 + $0x260] sm:$0xff] }
  0x31   :  { %10262 = vmatprep.mubr.msk.f32.mxu0 %vm170_vm0, %v50_v28  ;;  %v111_v28 = vld [vmem:[%s16441_s0 + $0x268] sm:$0xff] }
  0x34   :  { %10263 = vmatmul.mubr.msk.f32.gmra.mrb[16].mxu0 %vm170_vm0, %v51_v29  ;;  %v112_v29 = vld [vmem:[%s16441_s0 + $0x270] sm:$0xff] }
  0x35   :  { %10265 = vmatprep.mubr.msk.f32.mxu0 %vm170_vm0, %v52_v30  ;;  %v113_v30 = vld [vmem:[%s16441_s0 + $0x278] sm:$0xff] }
  0x38   :  { %10266 = vmatmul.mubr.msk.f32.gmra.mrb[18].mxu0 %vm170_vm0, %v53_v31  ;;  %v114_v31 = vld [vmem:[%s16441_s0 + $0x280] sm:$0xff] }
  0x39   :  { %10268 = vmatprep.mubr.msk.f32.mxu0 %vm170_vm0, %v54_v32  ;;  %v115_v32 = vld [vmem:[%s16441_s0 + $0x288] sm:$0xff] }
  0x3c   :  { %10269 = vmatmul.mubr.msk.f32.gmra.mrb[20].mxu0 %vm170_vm0, %v55_v33  ;;  %v116_v33 = vld [vmem:[%s16441_s0 + $0x290] sm:$0xff] }
  0x3d   :  { %10271 = vmatprep.mubr.msk.f32.mxu0 %vm170_vm0, %v56_v34  ;;  %v117_v34 = vld [vmem:[%s16441_s0 + $0x298] sm:$0xff] }
  0x40   :  { %10272 = vmatmul.mubr.msk.f32.gmra.mrb[22].mxu0 %vm170_vm0, %v57_v35  ;;  %v118_v35 = vld [vmem:[%s16441_s0 + $0x2a0] sm:$0xff] }
  0x41   :  { %10274 = vmatprep.mubr.msk.f32.mxu0 %vm170_vm0, %v58_v36  ;;  %v119_v36 = vld [vmem:[%s16441_s0 + $0x2a8] sm:$0xff] }
  0x44   :  { %10275 = vmatmul.mubr.msk.f32.gmra.mrb[24].mxu0 %vm170_vm0, %v59_v37  ;;  %v120_v37 = vld [vmem:[%s16441_s0 + $0x2b0] sm:$0xff] }
  0x45   :  { %10277 = vmatprep.mubr.msk.f32.mxu0 %vm170_vm0, %v60_v38  ;;  %v121_v38 = vld [vmem:[%s16441_s0 + $0x2b8] sm:$0xff] }
  0x48   :  { %10278 = vmatmul.mubr.msk.f32.gmra.mrb[26].mxu0 %vm170_vm0, %v61_v39  ;;  %v122_v39 = vld [vmem:[%s16441_s0 + $0x2c0] sm:$0xff] }
  0x49   :  { %10280 = vmatprep.mubr.msk.f32.mxu0 %vm170_vm0, %v62_v40  ;;  %v123_v40 = vld [vmem:[%s16441_s0 + $0x2c8] sm:$0xff] }
  0x4c   :  { %10281 = vmatmul.mubr.msk.f32.gmra.mrb[28].mxu0 %vm170_vm0, %v63_v41  ;;  %v124_v41 = vld [vmem:[%s16441_s0 + $0x2d0] sm:$0xff] }
  0x4d   :  { %10283 = vmatprep.mubr.msk.f32.mxu0 %vm170_vm0, %v64_v42  ;;  %v125_v42 = vld [vmem:[%s16441_s0 + $0x2d8] sm:$0xff] }
  0x50   :  { %10284 = vmatmul.mubr.msk.f32.gmra.mrb[30].mxu0 %vm170_vm0, %v65_v43  ;;  %v126_v43 = vld [vmem:[%s16441_s0 + $0x2e0] sm:$0xff] }
  0x51   :  { %10286 = vmatprep.mubr.msk.f32.mxu0 %vm170_vm0, %v66_v44  ;;  %v127_v44 = vld [vmem:[%s16441_s0 + $0x2e8] sm:$0xff] }
  0x54   :  { %10287 = vmatmul.mubr.msk.f32.gmra.mrb[32].mxu0 %vm170_vm0, %v67_v45  ;;  %v128_v45 = vld [vmem:[%s16441_s0 + $0x2f0] sm:$0xff] }
  0x55   :  { %10289 = vmatprep.mubr.msk.f32.mxu0 %vm170_vm0, %v68_v46  ;;  %v129_v46 = vld [vmem:[%s16441_s0 + $0x2f8] sm:$0xff] }
  0x58   :  { %10290 = vmatmul.mubr.msk.f32.gmra.mrb[34].mxu0 %vm170_vm0, %v69_v47  ;;  %v130_v47 = vld [vmem:[%s16441_s0 + $0x300] sm:$0xff] }
  0x59   :  { %10292 = vmatprep.mubr.msk.f32.mxu0 %vm170_vm0, %v70_v48  ;;  %v131_v48 = vld [vmem:[%s16441_s0 + $0x308] sm:$0xff] }
  0x5c   :  { %10293 = vmatmul.mubr.msk.f32.gmra.mrb[36].mxu0 %vm170_vm0, %v71_v49  ;;  %v132_v49 = vld [vmem:[%s16441_s0 + $0x310] sm:$0xff] }
  0x5d   :  { %10295 = vmatprep.mubr.msk.f32.mxu0 %vm170_vm0, %v72_v50  ;;  %v133_v50 = vld [vmem:[%s16441_s0 + $0x318] sm:$0xff] }
  0x60   :  { %10296 = vmatmul.mubr.msk.f32.gmra.mrb[38].mxu0 %vm170_vm0, %v73_v51  ;;  %v134_v51 = vld [vmem:[%s16441_s0 + $0x320] sm:$0xff] }
  0x61   :  { %10298 = vmatprep.mubr.msk.f32.mxu0 %vm170_vm0, %v74_v52  ;;  %v135_v52 = vld [vmem:[%s16441_s0 + $0x328] sm:$0xff] }
  0x64   :  { %10299 = vmatmul.mubr.msk.f32.gmra.mrb[40].mxu0 %vm170_vm0, %v75_v53  ;;  %v136_v53 = vld [vmem:[%s16441_s0 + $0x330] sm:$0xff] }
  0x65   :  { %10301 = vmatprep.mubr.msk.f32.mxu0 %vm170_vm0, %v76_v54  ;;  %v137_v54 = vld [vmem:[%s16441_s0 + $0x338] sm:$0xff] }
  0x68   :  { %10302 = vmatmul.mubr.msk.f32.gmra.mrb[42].mxu0 %vm170_vm0, %v77_v55  ;;  %v138_v55 = vld [vmem:[%s16441_s0 + $0x340] sm:$0xff] }
  0x69   :  { %10304 = vmatprep.mubr.msk.f32.mxu0 %vm170_vm0, %v78_v56  ;;  %v139_v56 = vld [vmem:[%s16441_s0 + $0x348] sm:$0xff] }
  0x6c   :  { %10305 = vmatmul.mubr.msk.f32.gmra.mrb[44].mxu0 %vm170_vm0, %v79_v57  ;;  %v140_v57 = vld [vmem:[%s16441_s0 + $0x350] sm:$0xff] }
  0x6d   :  { %10307 = vmatprep.mubr.msk.f32.mxu0 %vm170_vm0, %v80_v58  ;;  %v12170_v58 = vld [vmem:[%s16443_s8] ss:$0 sm:$0xff] }
  0x70   :  { %10308 = vmatmul.mubr.msk.f32.gmra.mrb[46].mxu0 %vm170_vm0, %v81_v59  ;;  %v141_v59 = vld [vmem:[%s16441_s0 + $0x358] sm:$0xff] }
  0x71   :  { %10310 = vmatprep.mubr.msk.f32.mxu0 %vm170_vm0, %v82_v60  ;;  %v1780_v60 = vlaneseq }
  0x73   :  { %v12192_v5 = vshrl.u32 %v1780_v60, 7 }
  0x74   :  { %10311 = vmatmul.mubr.msk.f32.gmra.mrb[48].mxu0 %vm170_vm0, %v83_v61  ;;  %v142_v61 = vld [vmem:[%s16441_s0 + $0x360] sm:$0xff] }
  0x75   :  { %10313 = vmatprep.mubr.msk.f32.mxu0 %vm170_vm0, %v84_v62  ;;  %v12182_v62 = vld [vmem:[%s16443_s8 + $0x1] ss:$0 sm:$0xff]  ;;  %vm1782_vm1 = vcmp.lt.s32.totalorder %v12192_v5, 7  ;;  %vm2550_vm3 = vcmp.lt.s32.totalorder %v12192_v5, 1 }
  0x78   :  { %10314 = vmatmul.mubr.msk.f32.gmra.mrb[50].mxu0 %vm170_vm0, %v85_v63 }
  0x79   :  { %10316 = vmatprep.mubr.msk.f32.mxu0 %vm170_vm0, %v86_v0 }
  0x7c   :  { %10317 = vmatmul.mubr.msk.f32.gmra.mrb[52].mxu0 %vm170_vm0, %v87_v1 }
  0x7d   :  { %10319 = vmatprep.mubr.msk.f32.mxu0 %vm170_vm0, %v88_v2 }
  0x80   :  { %10320 = vmatmul.mubr.msk.f32.gmra.mrb[54].mxu0 %vm170_vm0, %v89_v3  ;;  %v143_v3 = vld [vmem:[%s16441_s0 + $0x368] sm:$0xff] }
  0x81   :  { %10322 = vmatprep.mubr.msk.f32.mxu0 %vm170_vm0, %v90_v6  ;;  %v144_v6 = vld [vmem:[%s16441_s0 + $0x370] sm:$0xff] }
  0x84   :  { %10323 = vmatmul.mubr.msk.f32.gmra.mrb[56].mxu0 %vm170_vm0, %v91_v8 }
  0x85   :  { %10325 = vmatprep.mubr.msk.f32.mxu0 %vm170_vm0, %v92_v9 }
  0x88   :  { %10326 = vmatmul.mubr.msk.f32.gmra.mrb[58].mxu0 %vm170_vm0, %v93_v10 }
  0x89   :  { %10328 = vmatprep.mubr.msk.f32.mxu0 %vm170_vm0, %v94_v11 }
  0x8c   :  { %10329 = vmatmul.mubr.msk.f32.gmra.mrb[60].mxu0 %vm170_vm0, %v95_v12 }
  0x8d   :  { %10331 = vmatprep.mubr.msk.f32.mxu0 %vm170_vm0, %v96_v13 }
  0x90   :  { %10332 = vmatmul.mubr.msk.f32.gmra.mrb[62].mxu0 %vm170_vm0, %v97_v14  ;;  %v145_v14 = vld [vmem:[%s16441_s0 + $0x378] sm:$0xff] }
  0x91   :  { %10334 = vmatprep.mubr.msk.f32.mxu0 %vm170_vm0, %v98_v15 }
  0x94   :  { %10335 = vmatmul.mubr.msk.f32.gmra.mrb[64].mxu0 %vm170_vm0, %v99_v16 }
  0x95   :  { %10337 = vmatprep.mubr.msk.f32.mxu0 %vm170_vm0, %v100_v17  ;;  %v146_v17 = vld [vmem:[%s16441_s0 + $0x380] sm:$0xff] }
  0x98   :  { %10338 = vmatmul.mubr.msk.f32.gmra.mrb[66].mxu0 %vm170_vm0, %v101_v18 }
  0x99   :  { %10340 = vmatprep.mubr.msk.f32.mxu0 %vm170_vm0, %v102_v19 }
  0x9c   :  { %10341 = vmatmul.mubr.msk.f32.gmra.mrb[68].mxu0 %vm170_vm0, %v103_v20 }
  0x9d   :  { %10343 = vmatprep.mubr.msk.f32.mxu0 %vm170_vm0, %v104_v21 }
  0xa0   :  { %10344 = vmatmul.mubr.msk.f32.gmra.mrb[70].mxu0 %vm170_vm0, %v105_v22 }
  0xa1   :  { %10346 = vmatprep.mubr.msk.f32.mxu0 %vm170_vm0, %v106_v23 }
  0xa4   :  { %10347 = vmatmul.mubr.msk.f32.gmra.mrb[72].mxu0 %vm170_vm0, %v107_v24 }
  0xa5   :  { %10349 = vmatprep.mubr.msk.f32.mxu0 %vm170_vm0, %v108_v25 }
  0xa8   :  { %10350 = vmatmul.mubr.msk.f32.gmra.mrb[74].mxu0 %vm170_vm0, %v109_v26 }
  0xa9   :  { %10352 = vmatprep.mubr.msk.f32.mxu0 %vm170_vm0, %v110_v27  ;;  %v147_v27 = vld [vmem:[%s16441_s0 + $0x388] sm:$0xff] }
  0xac   :  { %10353 = vmatmul.mubr.msk.f32.gmra.mrb[76].mxu0 %vm170_vm0, %v111_v28 }
  0xad   :  { %10355 = vmatprep.mubr.msk.f32.mxu0 %vm170_vm0, %v112_v29 }
  0xb0   :  { %10356 = vmatmul.mubr.msk.f32.gmra.mrb[78].mxu0 %vm170_vm0, %v113_v30 }
  0xb1   :  { %10358 = vmatprep.mubr.msk.f32.mxu0 %vm170_vm0, %v114_v31  ;;  %v148_v31 = vld [vmem:[%s16441_s0 + $0x390] sm:$0xff] }
  0xb4   :  { %10359 = vmatmul.mubr.msk.f32.gmra.mrb[80].mxu0 %vm170_vm0, %v115_v32 }
  0xb5   :  { %10361 = vmatprep.mubr.msk.f32.mxu0 %vm170_vm0, %v116_v33 }
  0xb8   :  { %10362 = vmatmul.mubr.msk.f32.gmra.mrb[82].mxu0 %vm170_vm0, %v117_v34 }
  0xb9   :  { %10364 = vmatprep.mubr.msk.f32.mxu0 %vm170_vm0, %v118_v35 }
  0xbc   :  { %10365 = vmatmul.mubr.msk.f32.gmra.mrb[84].mxu0 %vm170_vm0, %v119_v36 }
  0xbd   :  { %10367 = vmatprep.mubr.msk.f32.mxu0 %vm170_vm0, %v120_v37 }
  0xc0   :  { %10368 = vmatmul.mubr.msk.f32.gmra.mrb[86].mxu0 %vm170_vm0, %v121_v38 }
  0xc1   :  { %10370 = vmatprep.mubr.msk.f32.mxu0 %vm170_vm0, %v122_v39 }
  0xc4   :  { %10371 = vmatmul.mubr.msk.f32.gmra.mrb[88].mxu0 %vm170_vm0, %v123_v40 }
  0xc5   :  { %10373 = vmatprep.mubr.msk.f32.mxu0 %vm170_vm0, %v124_v41 }
  0xc8   :  { %10374 = vmatmul.mubr.msk.f32.gmra.mrb[90].mxu0 %vm170_vm0, %v125_v42  ;;  %v149_v42 = vld [vmem:[%s16441_s0 + $0x398] sm:$0xff] }
  0xc9   :  { %10376 = vmatprep.mubr.msk.f32.mxu0 %vm170_vm0, %v126_v43 }
  0xcc   :  { %10377 = vmatmul.mubr.msk.f32.gmra.mrb[92].mxu0 %vm170_vm0, %v127_v44 }
  0xcd   :  { %10379 = vmatprep.mubr.msk.f32.mxu0 %vm170_vm0, %v128_v45 }
  0xd0   :  { %10380 = vmatmul.mubr.msk.f32.gmra.mrb[94].mxu0 %vm170_vm0, %v129_v46 }
  0xd1   :  { %10382 = vmatprep.mubr.msk.f32.mxu0 %vm170_vm0, %v130_v47  ;;  %v150_v47 = vld [vmem:[%s16441_s0 + $0x3a0] sm:$0xff] }
  0xd4   :  { %10383 = vmatmul.mubr.msk.f32.gmra.mrb[96].mxu0 %vm170_vm0, %v131_v48 }
  0xd5   :  { %10385 = vmatprep.mubr.msk.f32.mxu0 %vm170_vm0, %v132_v49 }
  0xd8   :  { %10386 = vmatmul.mubr.msk.f32.gmra.mrb[98].mxu0 %vm170_vm0, %v133_v50 }
  0xd9   :  { %10388 = vmatprep.mubr.msk.f32.mxu0 %vm170_vm0, %v134_v51 }
  0xdc   :  { %10389 = vmatmul.mubr.msk.f32.gmra.mrb[100].mxu0 %vm170_vm0, %v135_v52 }
  0xdd   :  { %10391 = vmatprep.mubr.msk.f32.mxu0 %vm170_vm0, %v136_v53 }
  0xe0   :  { %10392 = vmatmul.mubr.msk.f32.gmra.mrb[102].mxu0 %vm170_vm0, %v137_v54 }
  0xe1   :  { %10394 = vmatprep.mubr.msk.f32.mxu0 %vm170_vm0, %v138_v55 }
  0xe4   :  { %10395 = vmatmul.mubr.msk.f32.gmra.mrb[104].mxu0 %vm170_vm0, %v139_v56 }
  0xe5   :  { %10397 = vmatprep.mubr.msk.f32.mxu0 %vm170_vm0, %v140_v57 }
  0xe7   :  { %v10240_v63 = vpop.f32.mrb[0].mxu0 }
  0xe8   :  { %v1265_v0 = vmul.f32 %v10240_v63, %v12170_v58  ;;  %v621_v1 = vpop.f32.mrb[1].mxu0  ;;  %10398 = vmatmul.mubr.msk.f32.gmra.mrb[106].mxu0 %vm170_vm0, %v141_v59  ;;  %v151_v59 = vld [vmem:[%s16441_s0 + $0x3a8] sm:$0xff] }
  0xe9   :  { %v1264_v2 = vmul.f32 %v12170_v58, %v621_v1  ;;  %10400 = vmatprep.mubr.msk.f32.mxu0 %vm170_vm0, %v142_v61  ;;  %v152_v1 = vld [vmem:[%s16441_s0 + $0x3b0] sm:$0xff] }
  0xea   :  { %v1397_v4 = vadd.f32 %v12182_v62, %v1265_v0 }
  0xeb   :  { %v1396_v7 = vadd.f32 %v12182_v62, %v1264_v2  ;;  %v10243_v8 = vpop.f32.mrb[2].mxu0 }
  0xec   :  { %v1525_v9 = vmax.f32 %v1397_v4, 0.0  ;;  %v1267_v10 = vmul.f32 %v10243_v8, %v12170_v58  ;;  %v631_v11 = vpop.f32.mrb[3].mxu0  ;;  %10401 = vmatmul.mubr.msk.f32.gmra.mrb[108].mxu0 %vm170_vm0, %v143_v3 }
  0xed   :  { %v1524_v12 = vmax.f32 %v1396_v7, 0.0  ;;  %v1266_v13 = vmul.f32 %v12170_v58, %v631_v11  ;;  %10403 = vmatprep.mubr.msk.f32.mxu0 %vm170_vm0, %v144_v6 }
  0xee   :  { %v1653_v15 = vrot.slane %v1525_v9, 1  ;;  %v1399_v16 = vadd.f32 %v12182_v62, %v1267_v10 }
  0xef   :  { %v12210_v18 = vrot.slane %v1524_v12, 1  ;;  %v1398_v19 = vadd.f32 %v12182_v62, %v1266_v13  ;;  %v10246_v20 = vpop.f32.mrb[4].mxu0  ;;  %v153_v13 = vld [vmem:[%s16441_s0 + $0x3b8] sm:$0xff] }
  0xf0   :  { %v1527_v21 = vmax.f32 %v1399_v16, 0.0  ;;  %v1269_v22 = vmul.f32 %v10246_v20, %v12170_v58  ;;  %v641_v23 = vpop.f32.mrb[5].mxu0  ;;  %10404 = vmatmul.mubr.msk.f32.gmra.mrb[110].mxu0 %vm170_vm0, %v145_v14 }
  0xf1   :  { %v1909_v24 = vsel %vm1782_vm1, %v12210_v18, %v1653_v15  ;;  %v1526_v25 = vmax.f32 %v1398_v19, 0.0  ;;  %v1268_v26 = vmul.f32 %v12170_v58, %v641_v23  ;;  %10406 = vmatprep.mubr.msk.f32.mxu0 %vm170_vm0, %v146_v17  ;;  %v154_v19 = vld [vmem:[%s16441_s0 + $0x3c0] sm:$0xff] }
  0xf2   :  { %v1911_v28 = vmax.f32 %v1524_v12, %v1909_v24  ;;  %v1655_v29 = vrot.slane %v1527_v21, 1  ;;  %v1401_v30 = vadd.f32 %v12182_v62, %v1269_v22 }
  0xf3   :  { %v1654_v32 = vrot.slane %v1526_v25, 1  ;;  %v1400_v33 = vadd.f32 %v12182_v62, %v1268_v26  ;;  %v10249_v34 = vpop.f32.mrb[6].mxu0 }
  0xf4   :  { %2040 = vst.msk [vmem:[#allocation2] sm:$0xff] %vm2039_vm2, %v1911_v28  ;;  %v1529_v35 = vmax.f32 %v1401_v30, 0.0  ;;  %v1271_v36 = vmul.f32 %v10249_v34, %v12170_v58  ;;  %v651_v37 = vpop.f32.mrb[7].mxu0  ;;  %10407 = vmatmul.mubr.msk.f32.gmra.mrb[112].mxu0 %vm170_vm0, %v147_v27 }
  0xf5   :  { %v1907_v38 = vsel %vm1782_vm1, %v1654_v32, %v1655_v29  ;;  %v1908_v39 = vsel %vm1782_vm1, %v1653_v15, %v1654_v32  ;;  %v1528_v40 = vmax.f32 %v1400_v33, 0.0  ;;  %v1270_v41 = vmul.f32 %v12170_v58, %v651_v37  ;;  %10409 = vmatprep.mubr.msk.f32.mxu0 %vm170_vm0, %v148_v31  ;;  %v155_v31 = vld [vmem:[%s16441_s0 + $0x3c8] sm:$0xff] }
  0xf6   :  { %v1912_v43 = vmax.f32 %v1525_v9, %v1908_v39  ;;  %v1913_v44 = vmax.f32 %v1526_v25, %v1907_v38  ;;  %v1657_v45 = vrot.slane %v1529_v35, 1  ;;  %v1403_v46 = vadd.f32 %v12182_v62, %v1271_v36  ;;  %v156_v36 = vld [vmem:[%s16441_s0 + $0x3d0] sm:$0xff] }
  0xf7   :  { %v1656_v48 = vrot.slane %v1528_v40, 1  ;;  %v1402_v49 = vadd.f32 %v12182_v62, %v1270_v41  ;;  %v10252_v50 = vpop.f32.mrb[8].mxu0 }
  0xf8   :  { %2041 = vst.msk [vmem:[#allocation2 + $0x8] sm:$0xff] %vm2039_vm2, %v1912_v43  ;;  %2042 = vst.msk [vmem:[#allocation2 + $0x10] sm:$0xff] %vm2039_vm2, %v1913_v44  ;;  %v1531_v51 = vmax.f32 %v1403_v46, 0.0  ;;  %v1273_v52 = vmul.f32 %v10252_v50, %v12170_v58  ;;  %v661_v53 = vpop.f32.mrb[9].mxu0  ;;  %10410 = vmatmul.mubr.msk.f32.gmra.mrb[114].mxu0 %vm170_vm0, %v149_v42  ;;  %v157_v50 = vld [vmem:[%s16441_s0 + $0x3d8] sm:$0xff] }
  0xf9   :  { %v1905_v54 = vsel %vm1782_vm1, %v1656_v48, %v1657_v45  ;;  %v1906_v55 = vsel %vm1782_vm1, %v1655_v29, %v1656_v48  ;;  %v1530_v56 = vmax.f32 %v1402_v49, 0.0  ;;  %v1272_v57 = vmul.f32 %v12170_v58, %v661_v53  ;;  %10412 = vmatprep.mubr.msk.f32.mxu0 %vm170_vm0, %v150_v47 }
  0xfa   :  { %v1914_v60 = vmax.f32 %v1527_v21, %v1906_v55  ;;  %v1915_v61 = vmax.f32 %v1528_v40, %v1905_v54  ;;  %v1659_v63 = vrot.slane %v1531_v51, 1  ;;  %v12259_v0 = vadd.f32 %v12182_v62, %v1273_v52  ;;  %v158_v55 = vld [vmem:[%s16441_s0 + $0x3e0] sm:$0xff] }
  0xfb   :  { %v1658_v2 = vrot.slane %v1530_v56, 1  ;;  %v1404_v3 = vadd.f32 %v12182_v62, %v1272_v57  ;;  %v10255_v4 = vpop.f32.mrb[10].mxu0 }
  0xfc   :  { %2043 = vst.msk [vmem:[#allocation2 + $0x18] sm:$0xff] %vm2039_vm2, %v1914_v60  ;;  %2044 = vst.msk [vmem:[#allocation2 + $0x20] sm:$0xff] %vm2039_vm2, %v1915_v61  ;;  %v1533_v6 = vmax.f32 %v12259_v0, 0.0  ;;  %v1275_v7 = vmul.f32 %v10255_v4, %v12170_v58  ;;  %v671_v8 = vpop.f32.mrb[11].mxu0  ;;  %10413 = vmatmul.mubr.msk.f32.gmra.mrb[116].mxu0 %vm170_vm0, %v151_v59  ;;  %v3192_v4 = vld [vmem:[%s16442_s2 + $0x8] sm:$0xff] }
  0xfd   :  { %v1903_v9 = vsel %vm1782_vm1, %v1658_v2, %v1659_v63  ;;  %v1904_v10 = vsel %vm1782_vm1, %v1657_v45, %v1658_v2  ;;  %v1532_v11 = vmax.f32 %v1404_v3, 0.0  ;;  %v1274_v12 = vmul.f32 %v12170_v58, %v671_v8  ;;  %10415 = vmatprep.mubr.msk.f32.mxu0 %vm170_vm0, %v152_v1  ;;  %v3191_v3 = vld [vmem:[%s16442_s2] sm:$0xff] }
  0xfe   :  { %v1916_v14 = vmax.f32 %v1529_v35, %v1904_v10  ;;  %v1917_v15 = vmax.f32 %v1530_v56, %v1903_v9  ;;  %v1661_v16 = vrot.slane %v1533_v6, 1  ;;  %v12280_v17 = vadd.f32 %v12182_v62, %v1275_v7  ;;  %v159_v10 = vld [vmem:[%s16441_s0 + $0x3e8] sm:$0xff] }
  0xff   :  { %v1660_v20 = vrot.slane %v1532_v11, 1  ;;  %v1406_v21 = vadd.f32 %v12182_v62, %v1274_v12  ;;  %v10258_v22 = vpop.f32.mrb[12].mxu0  ;;  %v12286_v23 = vld [vmem:[#allocation2] ss:$2 sm:$0xff] }
 0x100   :  { %2045 = vst.msk [vmem:[#allocation2 + $0x28] sm:$0xff] %vm2039_vm2, %v1916_v14  ;;  %2046 = vst.msk [vmem:[#allocation2 + $0x30] sm:$0xff] %vm2039_vm2, %v1917_v15  ;;  %v1535_v24 = vmax.f32 %v12280_v17, 0.0  ;;  %v1277_v25 = vmul.f32 %v10258_v22, %v12170_v58  ;;  %v681_v26 = vpop.f32.mrb[13].mxu0  ;;  %10416 = vmatmul.mubr.msk.f32.gmra.mrb[118].mxu0 %vm170_vm0, %v153_v13  ;;  %10434 = vmatprep.mubr.msk.f32.mxu1 %vm2039_vm2, %v12286_v23  ;;  %v16451_v42 = vrot.slane %v12286_v23, 7  ;;  %v160_v15 = vld [vmem:[%s16441_s0 + $0x3f0] sm:$0xff] }
 0x101   :  { %v1901_v27 = vsel %vm1782_vm1, %v1660_v20, %v1661_v16  ;;  %v1902_v28 = vsel %vm1782_vm1, %v1659_v63, %v1660_v20  ;;  %v1534_v29 = vmax.f32 %v1406_v21, 0.0  ;;  %v1276_v30 = vmul.f32 %v12170_v58, %v681_v26  ;;  %10418 = vmatprep.mubr.msk.f32.mxu0 %vm170_vm0, %v154_v19 }
 0x102   :  { %v1918_v32 = vmax.f32 %v1531_v51, %v1902_v28  ;;  %v1919_v33 = vmax.f32 %v1532_v11, %v1901_v27  ;;  %v1663_v34 = vrot.slane %v1535_v24, 1  ;;  %v12305_v35 = vadd.f32 %v12182_v62, %v1277_v25 }
 0x103   :  { %v1662_v37 = vrot.slane %v1534_v29, 1  ;;  %v1408_v38 = vadd.f32 %v12182_v62, %v1276_v30  ;;  %v10261_v39 = vpop.f32.mrb[14].mxu0  ;;  %v12311_v40 = vld [vmem:[#allocation2 + $0x10] ss:$2 sm:$0xff]  ;;  %v11214_v21 = vpack.c.bf16 %v3192_v4, %v3191_v3 }
 0x104   :  { %16463 = vst [vmem:[#allocation7_spill] sm:$0xff] %v12311_v40  ;;  %2047 = vst.msk [vmem:[#allocation2 + $0x38] sm:$0xff] %vm2039_vm2, %v1918_v32  ;;  %v1537_v41 = vmax.f32 %v12305_v35, 0.0  ;;  %v1279_v43 = vmul.f32 %v10261_v39, %v12170_v58  ;;  %v691_v44 = vpop.f32.mrb[15].mxu0  ;;  %10419 = vmatmul.mubr.msk.f32.gmra.mrb[120].mxu0 %vm170_vm0, %v155_v31  ;;  %v2487_v45 = vrot.slane %v12311_v40, 7  ;;  %10435 = vmatmul.mubr.msk.f32.vlgmr.msra.gmra.mrb[0].mxu1 %vm2039_vm2, %v12311_v40  ;;  %v161_v32 = vld [vmem:[%s16441_s0 + $0x3f8] sm:$0xff] }
 0x105   :  { %2048 = vst.msk [vmem:[#allocation2 + $0x40] sm:$0xff] %vm2039_vm2, %v1919_v33  ;;  %v1899_v46 = vsel %vm1782_vm1, %v1662_v37, %v1663_v34  ;;  %v1900_v47 = vsel %vm1782_vm1, %v1661_v16, %v1662_v37  ;;  %v1536_v48 = vmax.f32 %v1408_v38, 0.0  ;;  %v1278_v49 = vmul.f32 %v12170_v58, %v691_v44  ;;  %10421 = vmatprep.mubr.msk.f32.mxu0 %vm170_vm0, %v156_v36 }
 0x106   :  { %v1920_v51 = vmax.f32 %v1533_v6, %v1900_v47  ;;  %v1921_v52 = vmax.f32 %v1534_v29, %v1899_v46  ;;  %v1665_v53 = vrot.slane %v1537_v41, 1  ;;  %v12335_v54 = vadd.f32 %v12182_v62, %v1279_v43  ;;  %11215 = vmatprep.subr.bf16.mxu1 %v11214_v21 }
 0x107   :  { %v1664_v56 = vrot.slane %v1536_v48, 1  ;;  %v1410_v57 = vadd.f32 %v12182_v62, %v1278_v49  ;;  %v10264_v59 = vpop.f32.mrb[16].mxu0  ;;  %v12341_v60 = vld [vmem:[#allocation2 + $0x20] ss:$2 sm:$0xff]  ;;  %v12347_v61 = vsel %vm2550_vm3, %v16451_v42, %v2487_v45  ;;  %11217 = vmatpush3.bf16.msra.mxu1 %v11214_v21  ;;  %v16450_v35 = vrot.slane %v12311_v40, 1 }
 0x108   :  { %2049 = vst.msk [vmem:[#allocation2 + $0x48] sm:$0xff] %vm2039_vm2, %v1920_v51  ;;  %2050 = vst.msk [vmem:[#allocation2 + $0x50] sm:$0xff] %vm2039_vm2, %v1921_v52  ;;  %v1539_v63 = vmax.f32 %v12335_v54, 0.0  ;;  %v1281_v0 = vmul.f32 %v10264_v59, %v12170_v58  ;;  %v701_v1 = vpop.f32.mrb[17].mxu0  ;;  %10422 = vmatmul.mubr.msk.f32.gmra.mrb[122].mxu0 %vm170_vm0, %v157_v50  ;;  %v2488_v2 = vrot.slane %v12341_v60, 7  ;;  %10437 = vmatprep.mubr.msk.f32.mxu1 %vm2039_vm2, %v12341_v60  ;;  %v2873_v59 = vrot.slane %v12341_v60, 1 }
 0x109   :  { %v1897_v6 = vsel %vm1782_vm1, %v1664_v56, %v1665_v53  ;;  %v1898_v7 = vsel %vm1782_vm1, %v1663_v34, %v1664_v56  ;;  %v1538_v8 = vmax.f32 %v1410_v57, 0.0  ;;  %v1280_v9 = vmul.f32 %v12170_v58, %v701_v1  ;;  %10424 = vmatprep.mubr.msk.f32.mxu0 %vm170_vm0, %v158_v55 }
 0x10a   :  { %v1922_v11 = vmax.f32 %v1535_v24, %v1898_v7  ;;  %v1923_v12 = vmax.f32 %v1536_v48, %v1897_v6  ;;  %v1667_v13 = vrot.slane %v1539_v63, 1  ;;  %v12375_v14 = vadd.f32 %v12182_v62, %v1281_v0 }
 0x10b   :  { %v1666_v16 = vrot.slane %v1538_v8, 1  ;;  %v1412_v17 = vadd.f32 %v12182_v62, %v1280_v9  ;;  %v10267_v19 = vpop.f32.mrb[18].mxu0  ;;  %v12381_v20 = vld [vmem:[#allocation2 + $0x30] ss:$2 sm:$0xff]  ;;  %v12385_v22 = vsel %vm2550_vm3, %v2487_v45, %v2488_v2 }
 0x10c   :  { %16464 = vst [vmem:[#allocation8_spill] sm:$0xff] %v12385_v22  ;;  %2051 = vst.msk [vmem:[#allocation2 + $0x58] sm:$0xff] %vm2039_vm2, %v1922_v11  ;;  %v1541_v24 = vmax.f32 %v12375_v14, 0.0  ;;  %v1283_v25 = vmul.f32 %v10267_v19, %v12170_v58  ;;  %v711_v26 = vpop.f32.mrb[19].mxu0  ;;  %10425 = vmatmul.mubr.msk.f32.gmra.mrb[124].mxu0 %vm170_vm0, %v159_v10  ;;  %v2489_v27 = vrot.slane %v12381_v20, 7  ;;  %10438 = vmatmul.mubr.msk.f32.gmra.mrb[2].mxu1 %vm2039_vm2, %v12381_v20  ;;  %v2874_v54 = vrot.slane %v12381_v20, 1 }
 0x10d   :  { %2052 = vst.msk [vmem:[#allocation2 + $0x60] sm:$0xff] %vm2039_vm2, %v1923_v12  ;;  %v1895_v28 = vsel %vm1782_vm1, %v1666_v16, %v1667_v13  ;;  %v1896_v29 = vsel %vm1782_vm1, %v1665_v53, %v1666_v16  ;;  %v1540_v30 = vmax.f32 %v1412_v17, 0.0  ;;  %v1282_v31 = vmul.f32 %v12170_v58, %v711_v26  ;;  %10427 = vmatprep.mubr.msk.f32.mxu0 %vm170_vm0, %v160_v15 }
 0x10e   :  { %v1924_v33 = vmax.f32 %v1537_v41, %v1896_v29  ;;  %v1925_v34 = vmax.f32 %v1538_v8, %v1895_v28  ;;  %v1669_v36 = vrot.slane %v1541_v24, 1  ;;  %v12407_v37 = vadd.f32 %v12182_v62, %v1283_v25 }
 0x10f   :  { %v1668_v38 = vrot.slane %v1540_v30, 1  ;;  %v1414_v39 = vadd.f32 %v12182_v62, %v1282_v31  ;;  %v10270_v43 = vpop.f32.mrb[20].mxu0  ;;  %v12410_v44 = vld [vmem:[#allocation2 + $0x40] ss:$2 sm:$0xff]  ;;  %v12414_v45 = vsel %vm2550_vm3, %v2488_v2, %v2489_v27  ;;  %v12468_v26 = vsel %vm1782_vm1, %v16450_v35, %v2873_v59 }
 0x110   :  { %16465 = vst [vmem:[#allocation9_spill] sm:$0xff] %v12414_v45  ;;  %2053 = vst.msk [vmem:[#allocation2 + $0x68] sm:$0xff] %vm2039_vm2, %v1924_v33  ;;  %v1543_v41 = vmax.f32 %v12407_v37, 0.0  ;;  %v1285_v46 = vmul.f32 %v10270_v43, %v12170_v58  ;;  %v721_v47 = vpop.f32.mrb[21].mxu0  ;;  %10428 = vmatmul.mubr.msk.f32.gmra.mrb[126].mxu0 %vm170_vm0, %v161_v32  ;;  %v2490_v48 = vrot.slane %v12410_v44, 7  ;;  %10440 = vmatprep.mubr.msk.f32.mxu1 %vm2039_vm2, %v12410_v44 }
 0x111   :  { %2054 = vst.msk [vmem:[#allocation2 + $0x70] sm:$0xff] %vm2039_vm2, %v1925_v34  ;;  %v1893_v49 = vsel %vm1782_vm1, %v1668_v38, %v1669_v36  ;;  %v1894_v50 = vsel %vm1782_vm1, %v1667_v13, %v1668_v38  ;;  %v1542_v51 = vmax.f32 %v1414_v39, 0.0  ;;  %v1284_v52 = vmul.f32 %v12170_v58, %v721_v47  ;;  %16468 = vst [vmem:[#allocation12_spill] sm:$0xff] %v12468_v26 }
 0x112   :  { %v1926_v53 = vmax.f32 %v1539_v63, %v1894_v50  ;;  %v1927_v55 = vmax.f32 %v1540_v30, %v1893_v49  ;;  %v1671_v56 = vrot.slane %v1543_v41, 1  ;;  %v12433_v57 = vadd.f32 %v12182_v62, %v1285_v46 }
 0x113   :  { %v1670_v0 = vrot.slane %v1542_v51, 1  ;;  %v1416_v1 = vadd.f32 %v12182_v62, %v1284_v52  ;;  %v10273_v2 = vpop.f32.mrb[22].mxu0  ;;  %v12437_v3 = vld [vmem:[#allocation2 + $0x50] ss:$2 sm:$0xff]  ;;  %v12441_v4 = vsel %vm2550_vm3, %v2489_v27, %v2490_v48  ;;  %v12494_v50 = vsel %vm1782_vm1, %v2873_v59, %v2874_v54 }
 0x114   :  { %16466 = vst [vmem:[#allocation10_spill] sm:$0xff] %v12441_v4  ;;  %2055 = vst.msk [vmem:[#allocation2 + $0x78] sm:$0xff] %vm2039_vm2, %v1926_v53  ;;  %v1545_v63 = vmax.f32 %v12433_v57, 0.0  ;;  %v1287_v60 = vmul.f32 %v10273_v2, %v12170_v58  ;;  %v731_v6 = vpop.f32.mrb[23].mxu0  ;;  %v2491_v7 = vrot.slane %v12437_v3, 7  ;;  %10441 = vmatmul.mubr.msk.f32.gmra.mrb[4].mxu1 %vm2039_vm2, %v12437_v3 }
 0x115   :  { %2056 = vst.msk [vmem:[#allocation2 + $0x80] sm:$0xff] %vm2039_vm2, %v1927_v55  ;;  %v1891_v8 = vsel %vm1782_vm1, %v1670_v0, %v1671_v56  ;;  %v1892_v9 = vsel %vm1782_vm1, %v1669_v36, %v1670_v0  ;;  %v1544_v10 = vmax.f32 %v1416_v1, 0.0  ;;  %v1286_v11 = vmul.f32 %v12170_v58, %v731_v6  ;;  %16470 = vst [vmem:[#allocation14_spill] sm:$0xff] %v12494_v50 }
 0x116   :  { %v1928_v12 = vmax.f32 %v1541_v24, %v1892_v9  ;;  %v1929_v13 = vmax.f32 %v1542_v51, %v1891_v8  ;;  %v1673_v14 = vrot.slane %v1545_v63, 1  ;;  %v1419_v15 = vadd.f32 %v12182_v62, %v1287_v60 }
 0x117   :  { %v1672_v16 = vrot.slane %v1544_v10, 1  ;;  %v1418_v17 = vadd.f32 %v12182_v62, %v1286_v11  ;;  %v10276_v19 = vpop.f32.mrb[24].mxu0  ;;  %v12458_v21 = vld [vmem:[#allocation2 + $0x60] ss:$2 sm:$0xff]  ;;  %v12462_v25 = vsel %vm2550_vm3, %v2490_v48, %v2491_v7  ;;  %v2875_v24 = vrot.slane %v12410_v44, 1 }
 0x118   :  { %16467 = vst [vmem:[#allocation11_spill] sm:$0xff] %v12462_v25  ;;  %2057 = vst.msk [vmem:[#allocation2 + $0x88] sm:$0xff] %vm2039_vm2, %v1928_v12  ;;  %v1547_v27 = vmax.f32 %v1419_v15, 0.0  ;;  %v1289_v28 = vmul.f32 %v10276_v19, %v12170_v58  ;;  %v741_v29 = vpop.f32.mrb[25].mxu0  ;;  %v2492_v30 = vrot.slane %v12458_v21, 7  ;;  %10443 = vmatprep.mubr.msk.f32.mxu1 %vm2039_vm2, %v12458_v21 }
 0x119   :  { %2058 = vst.msk [vmem:[#allocation2 + $0x90] sm:$0xff] %vm2039_vm2, %v1929_v13  ;;  %v1889_v31 = vsel %vm1782_vm1, %v1672_v16, %v1673_v14  ;;  %v1890_v32 = vsel %vm1782_vm1, %v1671_v56, %v1672_v16  ;;  %v1546_v33 = vmax.f32 %v1418_v17, 0.0  ;;  %v1288_v34 = vmul.f32 %v12170_v58, %v741_v29 }
 0x11a   :  { %v1930_v36 = vmax.f32 %v1543_v41, %v1890_v32  ;;  %v1931_v37 = vmax.f32 %v1544_v10, %v1889_v31  ;;  %v1675_v38 = vrot.slane %v1547_v27, 1  ;;  %v1421_v39 = vadd.f32 %v12182_v62, %v1289_v28 }
 0x11b   :  { %v1674_v43 = vrot.slane %v1546_v33, 1  ;;  %v1420_v46 = vadd.f32 %v12182_v62, %v1288_v34  ;;  %v10279_v47 = vpop.f32.mrb[26].mxu0  ;;  %v12484_v48 = vld [vmem:[#allocation2 + $0x70] ss:$2 sm:$0xff]  ;;  %v12488_v49 = vsel %vm2550_vm3, %v2491_v7, %v2492_v30 }
 0x11c   :  { %16469 = vst [vmem:[#allocation13_spill] sm:$0xff] %v12488_v49  ;;  %2059 = vst.msk [vmem:[#allocation2 + $0x98] sm:$0xff] %vm2039_vm2, %v1930_v36  ;;  %v1549_v41 = vmax.f32 %v1421_v39, 0.0  ;;  %v1291_v51 = vmul.f32 %v10279_v47, %v12170_v58  ;;  %v751_v52 = vpop.f32.mrb[27].mxu0  ;;  %v2493_v53 = vrot.slane %v12484_v48, 7  ;;  %10444 = vmatmul.mubr.msk.f32.gmra.mrb[6].mxu1 %vm2039_vm2, %v12484_v48 }
 0x11d   :  { %2060 = vst.msk [vmem:[#allocation2 + $0xa0] sm:$0xff] %vm2039_vm2, %v1931_v37  ;;  %v1887_v55 = vsel %vm1782_vm1, %v1674_v43, %v1675_v38  ;;  %v1888_v56 = vsel %vm1782_vm1, %v1673_v14, %v1674_v43  ;;  %v1548_v57 = vmax.f32 %v1420_v46, 0.0  ;;  %v1290_v59 = vmul.f32 %v12170_v58, %v751_v52 }
 0x11e   :  { %v1932_v0 = vmax.f32 %v1545_v63, %v1888_v56  ;;  %v1933_v1 = vmax.f32 %v1546_v33, %v1887_v55  ;;  %v1677_v2 = vrot.slane %v1549_v41, 1  ;;  %v1423_v60 = vadd.f32 %v12182_v62, %v1291_v51 }
 0x11f   :  { %v1676_v6 = vrot.slane %v1548_v57, 1  ;;  %v1422_v7 = vadd.f32 %v12182_v62, %v1290_v59  ;;  %v10282_v8 = vpop.f32.mrb[28].mxu0  ;;  %v12509_v9 = vld [vmem:[#allocation2 + $0x80] ss:$2 sm:$0xff]  ;;  %v12513_v10 = vsel %vm2550_vm3, %v2492_v30, %v2493_v53  ;;  %v12521_v63 = vsel %vm1782_vm1, %v2874_v54, %v2875_v24 }
 0x120   :  { %16471 = vst [vmem:[#allocation15_spill] sm:$0xff] %v12513_v10  ;;  %16472 = vst [vmem:[#allocation16_spill] sm:$0xff] %v12521_v63  ;;  %v1551_v11 = vmax.f32 %v1423_v60, 0.0  ;;  %v1293_v12 = vmul.f32 %v10282_v8, %v12170_v58  ;;  %v761_v13 = vpop.f32.mrb[29].mxu0  ;;  %v2494_v14 = vrot.slane %v12509_v9, 7  ;;  %10446 = vmatprep.mubr.msk.f32.mxu1 %vm2039_vm2, %v12509_v9 }
 0x121   :  { %2061 = vst.msk [vmem:[#allocation2 + $0xa8] sm:$0xff] %vm2039_vm2, %v1932_v0  ;;  %2062 = vst.msk [vmem:[#allocation2 + $0xb0] sm:$0xff] %vm2039_vm2, %v1933_v1  ;;  %v1885_v20 = vsel %vm1782_vm1, %v1676_v6, %v1677_v2  ;;  %v1886_v54 = vsel %vm1782_vm1, %v1675_v38, %v1676_v6  ;;  %v1550_v15 = vmax.f32 %v1422_v7, 0.0  ;;  %v1292_v16 = vmul.f32 %v12170_v58, %v761_v13 }
 0x122   :  { %v1934_v17 = vmax.f32 %v1547_v27, %v1886_v54  ;;  %v1935_v19 = vmax.f32 %v1548_v57, %v1885_v20  ;;  %v1679_v28 = vrot.slane %v1551_v11, 1  ;;  %v1425_v29 = vadd.f32 %v12182_v62, %v1293_v12 }
 0x123   :  { %v1678_v30 = vrot.slane %v1550_v15, 1  ;;  %v1424_v31 = vadd.f32 %v12182_v62, %v1292_v16  ;;  %v10285_v32 = vpop.f32.mrb[30].mxu0  ;;  %v12536_v33 = vld [vmem:[#allocation2 + $0x90] ss:$2 sm:$0xff]  ;;  %v12540_v34 = vsel %vm2550_vm3, %v2493_v53, %v2494_v14 }
 0x124   :  { %16473 = vst [vmem:[#allocation17_spill] sm:$0xff] %v12540_v34  ;;  %2063 = vst.msk [vmem:[#allocation2 + $0xb8] sm:$0xff] %vm2039_vm2, %v1934_v17  ;;  %v1553_v36 = vmax.f32 %v1425_v29, 0.0  ;;  %v1295_v27 = vmul.f32 %v10285_v32, %v12170_v58  ;;  %v771_v37 = vpop.f32.mrb[31].mxu0  ;;  %v2495_v38 = vrot.slane %v12536_v33, 7  ;;  %10447 = vmatmul.mubr.msk.f32.gmra.mrb[8].mxu1 %vm2039_vm2, %v12536_v33 }
 0x125   :  { %2064 = vst.msk [vmem:[#allocation2 + $0xc0] sm:$0xff] %vm2039_vm2, %v1935_v19  ;;  %v1883_v39 = vsel %vm1782_vm1, %v1678_v30, %v1679_v28  ;;  %v1884_v43 = vsel %vm1782_vm1, %v1677_v2, %v1678_v30  ;;  %v1552_v46 = vmax.f32 %v1424_v31, 0.0  ;;  %v1294_v47 = vmul.f32 %v12170_v58, %v771_v37 }
 0x126   :  { %v1936_v51 = vmax.f32 %v1549_v41, %v1884_v43  ;;  %v1937_v52 = vmax.f32 %v1550_v15, %v1883_v39  ;;  %v1681_v53 = vrot.slane %v1553_v36, 1  ;;  %v1427_v55 = vadd.f32 %v12182_v62, %v1295_v27 }
 0x127   :  { %v1680_v56 = vrot.slane %v1552_v46, 1  ;;  %v1426_v57 = vadd.f32 %v12182_v62, %v1294_v47  ;;  %v10288_v59 = vpop.f32.mrb[32].mxu0  ;;  %v12559_v1 = vsel %vm2550_vm3, %v2494_v14, %v2495_v38 }
 0x128   :  { %v12555_v0 = vld [vmem:[#allocation2 + $0xa0] ss:$2 sm:$0xff]  ;;  %16474 = vst [vmem:[#allocation18_spill] sm:$0xff] %v12559_v1  ;;  %2065 = vst.msk [vmem:[#allocation2 + $0xc8] sm:$0xff] %vm2039_vm2, %v1936_v51  ;;  %v1555_v2 = vmax.f32 %v1427_v55, 0.0  ;;  %v1297_v41 = vmul.f32 %v10288_v59, %v12170_v58  ;;  %v781_v60 = vpop.f32.mrb[33].mxu0 }
 0x129   :  { %2066 = vst.msk [vmem:[#allocation2 + $0xd0] sm:$0xff] %vm2039_vm2, %v1937_v52  ;;  %v2496_v6 = vrot.slane %v12555_v0, 7  ;;  %10449 = vmatprep.mubr.msk.f32.mxu1 %vm2039_vm2, %v12555_v0  ;;  %v1881_v7 = vsel %vm1782_vm1, %v1680_v56, %v1681_v53  ;;  %v1882_v8 = vsel %vm1782_vm1, %v1679_v28, %v1680_v56  ;;  %v1554_v12 = vmax.f32 %v1426_v57, 0.0 }
 0x12a   :  { %v1296_v13 = vmul.f32 %v12170_v58, %v781_v60  ;;  %v1938_v14 = vmax.f32 %v1551_v11, %v1882_v8  ;;  %v1939_v20 = vmax.f32 %v1552_v46, %v1881_v7  ;;  %v1683_v54 = vrot.slane %v1555_v2, 1 }
 0x12b   :  { %v1429_v15 = vadd.f32 %v12182_v62, %v1297_v41  ;;  %v1682_v16 = vrot.slane %v1554_v12, 1  ;;  %v10291_v19 = vpop.f32.mrb[34].mxu0  ;;  %v12574_v29 = vld [vmem:[#allocation2 + $0xb0] ss:$2 sm:$0xff]  ;;  %v12578_v30 = vsel %vm2550_vm3, %v2495_v38, %v2496_v6  ;;  %v2876_v52 = vrot.slane %v12437_v3, 1 }
 0x12c   :  { %v1428_v17 = vadd.f32 %v12182_v62, %v1296_v13  ;;  %16475 = vst [vmem:[#allocation19_spill] sm:$0xff] %v12578_v30  ;;  %2067 = vst.msk [vmem:[#allocation2 + $0xd8] sm:$0xff] %vm2039_vm2, %v1938_v14  ;;  %v1299_v11 = vmul.f32 %v10291_v19, %v12170_v58  ;;  %v791_v31 = vpop.f32.mrb[35].mxu0  ;;  %v2497_v32 = vrot.slane %v12574_v29, 7  ;;  %10450 = vmatmul.mubr.msk.f32.gmra.mrb[10].mxu1 %vm2039_vm2, %v12574_v29  ;;  %v2877_v41 = vrot.slane %v12458_v21, 1 }
 0x12d   :  { %2068 = vst.msk [vmem:[#allocation2 + $0xe0] sm:$0xff] %vm2039_vm2, %v1939_v20  ;;  %v1557_v28 = vmax.f32 %v1429_v15, 0.0  ;;  %v1879_v27 = vsel %vm1782_vm1, %v1682_v16, %v1683_v54  ;;  %v1880_v37 = vsel %vm1782_vm1, %v1681_v53, %v1682_v16  ;;  %v1298_v39 = vmul.f32 %v12170_v58, %v791_v31 }
 0x12e   :  { %v1556_v38 = vmax.f32 %v1428_v17, 0.0  ;;  %v1940_v43 = vmax.f32 %v1553_v36, %v1880_v37  ;;  %v1941_v46 = vmax.f32 %v1554_v12, %v1879_v27  ;;  %v12592_v51 = vadd.f32 %v12182_v62, %v1299_v11 }
 0x12f   :  { %v1685_v47 = vrot.slane %v1557_v28, 1  ;;  %v1430_v56 = vadd.f32 %v12182_v62, %v1298_v39  ;;  %v10294_v57 = vpop.f32.mrb[36].mxu0  ;;  %v12596_v59 = vld [vmem:[#allocation2 + $0xc0] ss:$2 sm:$0xff]  ;;  %v12600_v53 = vsel %vm2550_vm3, %v2496_v6, %v2497_v32 }
 0x130   :  { %v1684_v55 = vrot.slane %v1556_v38, 1  ;;  %16476 = vst [vmem:[#allocation20_spill] sm:$0xff] %v12600_v53  ;;  %2069 = vst.msk [vmem:[#allocation2 + $0xe8] sm:$0xff] %vm2039_vm2, %v1940_v43  ;;  %v1559_v36 = vmax.f32 %v12592_v51, 0.0  ;;  %v1301_v3 = vmul.f32 %v10294_v57, %v12170_v58  ;;  %v801_v60 = vpop.f32.mrb[37].mxu0  ;;  %v2498_v7 = vrot.slane %v12596_v59, 7  ;;  %10452 = vmatprep.mubr.msk.f32.mxu1 %vm2039_vm2, %v12596_v59 }
 0x131   :  { %2070 = vst.msk [vmem:[#allocation2 + $0xf0] sm:$0xff] %vm2039_vm2, %v1941_v46  ;;  %v1558_v12 = vmax.f32 %v1430_v56, 0.0  ;;  %v1300_v13 = vmul.f32 %v12170_v58, %v801_v60 }
 0x132   :  { %v1877_v6 = vsel %vm1782_vm1, %v1684_v55, %v1685_v47  ;;  %v1878_v8 = vsel %vm1782_vm1, %v1683_v54, %v1684_v55  ;;  %v1687_v15 = vrot.slane %v1559_v36, 1  ;;  %v12616_v16 = vadd.f32 %v12182_v62, %v1301_v3 }
 0x133   :  { %v1942_v14 = vmax.f32 %v1555_v2, %v1878_v8  ;;  %v1943_v20 = vmax.f32 %v1556_v38, %v1877_v6  ;;  %v1686_v17 = vrot.slane %v1558_v12, 1  ;;  %v1432_v19 = vadd.f32 %v12182_v62, %v1300_v13  ;;  %v10297_v11 = vpop.f32.mrb[38].mxu0  ;;  %v12619_v31 = vld [vmem:[#allocation2 + $0xd0] ss:$2 sm:$0xff] }
 0x134   :  { %v12623_v27 = vsel %vm2550_vm3, %v2497_v32, %v2498_v7  ;;  %v12629_v2 = vsel %vm1782_vm1, %v2875_v24, %v2876_v52  ;;  %v2878_v54 = vrot.slane %v12484_v48, 1  ;;  %v1561_v37 = vmax.f32 %v12616_v16, 0.0  ;;  %v811_v39 = vpop.f32.mrb[39].mxu0  ;;  %10453 = vmatmul.mubr.msk.f32.gmra.mrb[12].mxu1 %vm2039_vm2, %v12619_v31 }
 0x135   :  { %16477 = vst [vmem:[#allocation21_spill] sm:$0xff] %v12623_v27  ;;  %16478 = vst [vmem:[#allocation22_spill] sm:$0xff] %v12629_v2  ;;  %v1303_v38 = vmul.f32 %v10297_v11, %v12170_v58  ;;  %v2499_v32 = vrot.slane %v12619_v31, 7  ;;  %v1875_v44 = vsel %vm1782_vm1, %v1686_v17, %v1687_v15  ;;  %v1876_v24 = vsel %vm1782_vm1, %v1685_v47, %v1686_v17 }
 0x136   :  { %2071 = vst.msk [vmem:[#allocation2 + $0xf8] sm:$0xff] %vm2039_vm2, %v1942_v14  ;;  %2072 = vst.msk [vmem:[#allocation2 + $0x100] sm:$0xff] %vm2039_vm2, %v1943_v20  ;;  %v1560_v43 = vmax.f32 %v1432_v19, 0.0  ;;  %v1302_v46 = vmul.f32 %v12170_v58, %v811_v39  ;;  %v1944_v51 = vmax.f32 %v1557_v28, %v1876_v24  ;;  %v1945_v55 = vmax.f32 %v1558_v12, %v1875_v44 }
 0x137   :  { %v1689_v56 = vrot.slane %v1561_v37, 1  ;;  %v1435_v57 = vadd.f32 %v12182_v62, %v1303_v38  ;;  %v10300_v6 = vpop.f32.mrb[40].mxu0  ;;  %v12646_v8 = vld [vmem:[#allocation2 + $0xe0] ss:$2 sm:$0xff]  ;;  %v12650_v13 = vsel %vm2550_vm3, %v2498_v7, %v2499_v32  ;;  %v12656_v47 = vsel %vm1782_vm1, %v2876_v52, %v2877_v41 }
 0x138   :  { %v1688_v3 = vrot.slane %v1560_v43, 1  ;;  %v1434_v60 = vadd.f32 %v12182_v62, %v1302_v46  ;;  %16479 = vst [vmem:[#allocation23_spill] sm:$0xff] %v12650_v13  ;;  %16480 = vst [vmem:[#allocation24_spill] sm:$0xff] %v12656_v47  ;;  %v16452_v28 = vrot.slane %v12509_v9, 1  ;;  %v1305_v14 = vmul.f32 %v10300_v6, %v12170_v58  ;;  %v821_v20 = vpop.f32.mrb[41].mxu0  ;;  %10455 = vmatprep.mubr.msk.f32.mxu1 %vm2039_vm2, %v12646_v8 }
 0x139   :  { %2073 = vst.msk [vmem:[#allocation2 + $0x108] sm:$0xff] %vm2039_vm2, %v1944_v51  ;;  %2074 = vst.msk [vmem:[#allocation2 + $0x110] sm:$0xff] %vm2039_vm2, %v1945_v55  ;;  %v1563_v12 = vmax.f32 %v1435_v57, 0.0  ;;  %v2500_v16 = vrot.slane %v12646_v8, 7  ;;  %v1304_v19 = vmul.f32 %v12170_v58, %v821_v20 }
 0x13a   :  { %v1873_v7 = vsel %vm1782_vm1, %v1688_v3, %v1689_v56  ;;  %v1874_v52 = vsel %vm1782_vm1, %v1687_v15, %v1688_v3  ;;  %v1562_v17 = vmax.f32 %v1434_v60, 0.0  ;;  %v1437_v44 = vadd.f32 %v12182_v62, %v1305_v14 }
 0x13b   :  { %v1946_v11 = vmax.f32 %v1559_v36, %v1874_v52  ;;  %v1947_v38 = vmax.f32 %v1560_v43, %v1873_v7  ;;  %v1691_v39 = vrot.slane %v1563_v12, 1  ;;  %v1436_v46 = vadd.f32 %v12182_v62, %v1304_v19  ;;  %v10303_v51 = vpop.f32.mrb[42].mxu0 }
 0x13c   :  { %v1690_v24 = vrot.slane %v1562_v17, 1  ;;  %v12676_v57 = vsel %vm2550_vm3, %v2499_v32, %v2500_v16  ;;  %v12684_v36 = vsel %vm1782_vm1, %v2877_v41, %v2878_v54  ;;  %v1565_v15 = vmax.f32 %v1437_v44, 0.0  ;;  %v831_v3 = vpop.f32.mrb[43].mxu0 }
 0x13d   :  { %v12672_v55 = vld [vmem:[#allocation2 + $0xf0] ss:$2 sm:$0xff]  ;;  %16481 = vst [vmem:[#allocation25_spill] sm:$0xff] %v12676_v57  ;;  %16482 = vst [vmem:[#allocation26_spill] sm:$0xff] %v12684_v36  ;;  %v1307_v43 = vmul.f32 %v10303_v51, %v12170_v58  ;;  %v1564_v32 = vmax.f32 %v1436_v46, 0.0  ;;  %v1306_v6 = vmul.f32 %v12170_v58, %v831_v3 }
 0x13e   :  { %2075 = vst.msk [vmem:[#allocation2 + $0x118] sm:$0xff] %vm2039_vm2, %v1946_v11  ;;  %2076 = vst.msk [vmem:[#allocation2 + $0x120] sm:$0xff] %vm2039_vm2, %v1947_v38  ;;  %v2501_v60 = vrot.slane %v12672_v55, 7  ;;  %10456 = vmatmul.mubr.msk.f32.gmra.mrb[14].mxu1 %vm2039_vm2, %v12672_v55  ;;  %v1871_v21 = vsel %vm1782_vm1, %v1690_v24, %v1691_v39  ;;  %v1872_v41 = vsel %vm1782_vm1, %v1689_v56, %v1690_v24  ;;  %v1693_v7 = vrot.slane %v1565_v15, 1 }
 0x13f   :  { %v1948_v14 = vmax.f32 %v1561_v37, %v1872_v41  ;;  %v1949_v20 = vmax.f32 %v1562_v17, %v1871_v21  ;;  %v1439_v52 = vadd.f32 %v12182_v62, %v1307_v43  ;;  %v1692_v19 = vrot.slane %v1564_v32, 1  ;;  %v10306_v38 = vpop.f32.mrb[44].mxu0 }
 0x140   :  { %v1438_v11 = vadd.f32 %v12182_v62, %v1306_v6  ;;  %v12699_v44 = vld [vmem:[#allocation2 + $0x100] ss:$2 sm:$0xff]  ;;  %v12703_v51 = vsel %vm2550_vm3, %v2500_v16, %v2501_v60  ;;  %v12711_v37 = vsel %vm1782_vm1, %v2878_v54, %v16452_v28  ;;  %v1309_v17 = vmul.f32 %v10306_v38, %v12170_v58  ;;  %v841_v24 = vpop.f32.mrb[45].mxu0 }
 0x141   :  { %16483 = vst [vmem:[#allocation27_spill] sm:$0xff] %v12703_v51  ;;  %16484 = vst [vmem:[#allocation28_spill] sm:$0xff] %v12711_v37  ;;  %v1567_v56 = vmax.f32 %v1439_v52, 0.0  ;;  %v2502_v46 = vrot.slane %v12699_v44, 7  ;;  %10458 = vmatprep.mubr.msk.f32.mxu1 %vm2039_vm2, %v12699_v44  ;;  %v1869_v48 = vsel %vm1782_vm1, %v1692_v19, %v1693_v7  ;;  %v1870_v54 = vsel %vm1782_vm1, %v1691_v39, %v1692_v19 }
 0x142   :  { %2077 = vst.msk [vmem:[#allocation2 + $0x128] sm:$0xff] %vm2039_vm2, %v1948_v14  ;;  %2078 = vst.msk [vmem:[#allocation2 + $0x130] sm:$0xff] %vm2039_vm2, %v1949_v20  ;;  %v1566_v16 = vmax.f32 %v1438_v11, 0.0  ;;  %v1308_v43 = vmul.f32 %v12170_v58, %v841_v24  ;;  %v1950_v3 = vmax.f32 %v1563_v12, %v1870_v54  ;;  %v1951_v21 = vmax.f32 %v1564_v32, %v1869_v48 }
 0x143   :  { %v1695_v41 = vrot.slane %v1567_v56, 1  ;;  %v1441_v6 = vadd.f32 %v12182_v62, %v1309_v17  ;;  %v10309_v52 = vpop.f32.mrb[46].mxu0  ;;  %v12730_v35 = vsel %vm2550_vm3, %v2501_v60, %v2502_v46 }
 0x144   :  { %v1694_v14 = vrot.slane %v1566_v16, 1  ;;  %v1440_v20 = vadd.f32 %v12182_v62, %v1308_v43  ;;  %16485 = vst [vmem:[#allocation29_spill] sm:$0xff] %v12730_v35  ;;  %2079 = vst.msk [vmem:[#allocation2 + $0x138] sm:$0xff] %vm2039_vm2, %v1950_v3  ;;  %v1311_v12 = vmul.f32 %v10309_v52, %v12170_v58  ;;  %v851_v32 = vpop.f32.mrb[47].mxu0 }
 0x145   :  { %v12726_v38 = vld [vmem:[#allocation2 + $0x110] ss:$2 sm:$0xff]  ;;  %2080 = vst.msk [vmem:[#allocation2 + $0x140] sm:$0xff] %vm2039_vm2, %v1951_v21  ;;  %v1569_v39 = vmax.f32 %v1441_v6, 0.0  ;;  %v1310_v24 = vmul.f32 %v12170_v58, %v851_v32 }
 0x146   :  { %v2503_v19 = vrot.slane %v12726_v38, 7  ;;  %10459 = vmatmul.mubr.msk.f32.gmra.mrb[16].mxu1 %vm2039_vm2, %v12726_v38  ;;  %v1867_v11 = vsel %vm1782_vm1, %v1694_v14, %v1695_v41  ;;  %v1868_v60 = vsel %vm1782_vm1, %v1693_v7, %v1694_v14  ;;  %v1568_v17 = vmax.f32 %v1440_v20, 0.0 }
 0x147   :  { %v1952_v48 = vmax.f32 %v1565_v15, %v1868_v60  ;;  %v1953_v54 = vmax.f32 %v1566_v16, %v1867_v11  ;;  %v1697_v43 = vrot.slane %v1569_v39, 1  ;;  %v1443_v3 = vadd.f32 %v12182_v62, %v1311_v12  ;;  %v10312_v52 = vpop.f32.mrb[48].mxu0  ;;  %v12764_v12 = vld [vmem:[%s16443_s8] ss:$0 sm:$0xff] }
 0x148   :  { %v1696_v21 = vrot.slane %v1568_v17, 1  ;;  %v1442_v6 = vadd.f32 %v12182_v62, %v1310_v24  ;;  %v12749_v28 = vsel %vm2550_vm3, %v2502_v46, %v2503_v19  ;;  %v1313_v15 = vmul.f32 %v10312_v52, %v12170_v58  ;;  %v861_v16 = vpop.f32.mrb[49].mxu0  ;;  %v12770_v24 = vld [vmem:[%s16443_s8 + $0x1] ss:$0 sm:$0xff] }
 0x149   :  { %v12745_v42 = vld [vmem:[#allocation2 + $0x120] ss:$2 sm:$0xff]  ;;  %16486 = vst [vmem:[#allocation30_spill] sm:$0xff] %v12749_v28  ;;  %2081 = vst.msk [vmem:[#allocation2 + $0x148] sm:$0xff] %vm2039_vm2, %v1952_v48  ;;  %v1571_v7 = vmax.f32 %v1443_v3, 0.0  ;;  %v1312_v58 = vmul.f32 %v12764_v12, %v861_v16 }
 0x14a   :  { %2082 = vst.msk [vmem:[#allocation2 + $0x150] sm:$0xff] %vm2039_vm2, %v1953_v54  ;;  %v2504_v14 = vrot.slane %v12745_v42, 7  ;;  %10461 = vmatprep.mubr.msk.f32.mxu1 %vm2039_vm2, %v12745_v42  ;;  %v1865_v62 = vsel %vm1782_vm1, %v1696_v21, %v1697_v43  ;;  %v1866_v46 = vsel %vm1782_vm1, %v1695_v41, %v1696_v21  ;;  %v1570_v20 = vmax.f32 %v1442_v6, 0.0 }
 0x14b   :  { %v1954_v32 = vmax.f32 %v1567_v56, %v1866_v46  ;;  %v1955_v11 = vmax.f32 %v1568_v17, %v1865_v62  ;;  %v1699_v60 = vrot.slane %v1571_v7, 1  ;;  %v1445_v48 = vadd.f32 %v12770_v24, %v1313_v15  ;;  %v10315_v3 = vpop.f32.mrb[50].mxu0  ;;  %v12774_v21 = vld [vmem:[#allocation2 + $0x130] ss:$2 sm:$0xff] }
 0x14c   :  { %v1698_v54 = vrot.slane %v1570_v20, 1  ;;  %v1444_v41 = vadd.f32 %v12770_v24, %v1312_v58  ;;  %v12778_v6 = vsel %vm2550_vm3, %v2503_v19, %v2504_v14  ;;  %v1315_v17 = vmul.f32 %v12764_v12, %v10315_v3  ;;  %v871_v52 = vpop.f32.mrb[51].mxu0  ;;  %10462 = vmatmul.mubr.msk.f32.gmra.mrb[18].mxu1 %vm2039_vm2, %v12774_v21 }
 0x14d   :  { %16487 = vst [vmem:[#allocation31_spill] sm:$0xff] %v12778_v6  ;;  %2083 = vst.msk [vmem:[#allocation2 + $0x158] sm:$0xff] %vm2039_vm2, %v1954_v32  ;;  %v1573_v56 = vmax.f32 %v1445_v48, 0.0  ;;  %v2505_v15 = vrot.slane %v12774_v21, 7  ;;  %v1314_v46 = vmul.f32 %v12764_v12, %v871_v52 }
 0x14e   :  { %2084 = vst.msk [vmem:[#allocation2 + $0x160] sm:$0xff] %vm2039_vm2, %v1955_v11  ;;  %v1863_v16 = vsel %vm1782_vm1, %v1698_v54, %v1699_v60  ;;  %v1864_v19 = vsel %vm1782_vm1, %v1697_v43, %v1698_v54  ;;  %v1572_v62 = vmax.f32 %v1444_v41, 0.0  ;;  %v1447_v48 = vadd.f32 %v12770_v24, %v1315_v17 }
 0x14f   :  { %v1956_v58 = vmax.f32 %v1569_v39, %v1864_v19  ;;  %v1957_v32 = vmax.f32 %v1570_v20, %v1863_v16  ;;  %v1701_v11 = vrot.slane %v1573_v56, 1  ;;  %v1446_v37 = vadd.f32 %v12770_v24, %v1314_v46  ;;  %v10318_v36 = vpop.f32.mrb[52].mxu0 }
 0x150   :  { %v1700_v3 = vrot.slane %v1572_v62, 1  ;;  %v12793_v47 = vld [vmem:[#allocation2 + $0x140] ss:$2 sm:$0xff]  ;;  %v12797_v2 = vsel %vm2550_vm3, %v2504_v14, %v2505_v15  ;;  %v1575_v43 = vmax.f32 %v1447_v48, 0.0  ;;  %v1317_v39 = vmul.f32 %v12764_v12, %v10318_v36  ;;  %v881_v20 = vpop.f32.mrb[53].mxu0 }
 0x151   :  { %16488 = vst [vmem:[#allocation32_spill] sm:$0xff] %v12797_v2  ;;  %2085 = vst.msk [vmem:[#allocation2 + $0x168] sm:$0xff] %vm2039_vm2, %v1956_v58  ;;  %v2506_v54 = vrot.slane %v12793_v47, 7  ;;  %10464 = vmatprep.mubr.msk.f32.mxu1 %vm2039_vm2, %v12793_v47  ;;  %v1574_v17 = vmax.f32 %v1446_v37, 0.0  ;;  %v1316_v52 = vmul.f32 %v12764_v12, %v881_v20  ;;  %v2880_v58 = vrot.slane %v12536_v33, 1 }
 0x152   :  { %2086 = vst.msk [vmem:[#allocation2 + $0x170] sm:$0xff] %vm2039_vm2, %v1957_v32  ;;  %v1861_v41 = vsel %vm1782_vm1, %v1700_v3, %v1701_v11  ;;  %v1862_v14 = vsel %vm1782_vm1, %v1699_v60, %v1700_v3  ;;  %v1703_v46 = vrot.slane %v1575_v43, 1  ;;  %v12811_v36 = vadd.f32 %v12770_v24, %v1317_v39 }
 0x153   :  { %v1958_v16 = vmax.f32 %v1571_v7, %v1862_v14  ;;  %v1959_v19 = vmax.f32 %v1572_v62, %v1861_v41  ;;  %v1702_v32 = vrot.slane %v1574_v17, 1  ;;  %v1448_v48 = vadd.f32 %v12770_v24, %v1316_v52  ;;  %v10321_v63 = vpop.f32.mrb[54].mxu0 }
 0x154   :  { %v12815_v50 = vld [vmem:[#allocation2 + $0x150] ss:$2 sm:$0xff]  ;;  %v12819_v60 = vsel %vm2550_vm3, %v2505_v15, %v2506_v54  ;;  %v1577_v7 = vmax.f32 %v12811_v36, 0.0  ;;  %v1319_v33 = vmul.f32 %v12764_v12, %v10321_v63  ;;  %v891_v62 = vpop.f32.mrb[55].mxu0 }
 0x155   :  { %16489 = vst [vmem:[#allocation33_spill] sm:$0xff] %v12819_v60  ;;  %2087 = vst.msk [vmem:[#allocation2 + $0x178] sm:$0xff] %vm2039_vm2, %v1958_v16  ;;  %v2507_v3 = vrot.slane %v12815_v50, 7  ;;  %10465 = vmatmul.mubr.msk.f32.gmra.mrb[20].mxu1 %vm2039_vm2, %v12815_v50  ;;  %v1859_v15 = vsel %vm1782_vm1, %v1702_v32, %v1703_v46  ;;  %v1860_v39 = vsel %vm1782_vm1, %v1701_v11, %v1702_v32  ;;  %v1576_v20 = vmax.f32 %v1448_v48, 0.0 }
 0x156   :  { %2088 = vst.msk [vmem:[#allocation2 + $0x180] sm:$0xff] %vm2039_vm2, %v1959_v19  ;;  %v1318_v41 = vmul.f32 %v12764_v12, %v891_v62  ;;  %v1960_v14 = vmax.f32 %v1573_v56, %v1860_v39  ;;  %v1961_v52 = vmax.f32 %v1574_v17, %v1859_v15  ;;  %v1705_v16 = vrot.slane %v1577_v7, 1 }
 0x157   :  { %v1451_v63 = vadd.f32 %v12770_v24, %v1319_v33  ;;  %v1704_v19 = vrot.slane %v1576_v20, 1  ;;  %v10324_v37 = vpop.f32.mrb[56].mxu0  ;;  %v12840_v40 = vsel %vm2550_vm3, %v2506_v54, %v2507_v3  ;;  %v16491_v11 = vrot.slane %v12509_v9, 1 }
 0x158   :  { %v1450_v36 = vadd.f32 %v12770_v24, %v1318_v41  ;;  %v12836_v26 = vld [vmem:[#allocation2 + $0x160] ss:$2 sm:$0xff]  ;;  %16490 = vst [vmem:[#allocation34_spill] sm:$0xff] %v12840_v40  ;;  %2089 = vst.msk [vmem:[#allocation2 + $0x188] sm:$0xff] %vm2039_vm2, %v1960_v14  ;;  %v1321_v48 = vmul.f32 %v12764_v12, %v10324_v37  ;;  %v901_v33 = vpop.f32.mrb[57].mxu0 }
 0x159   :  { %v12846_v32 = vsel %vm1782_vm1, %v16491_v11, %v2880_v58  ;;  %2090 = vst.msk [vmem:[#allocation2 + $0x190] sm:$0xff] %vm2039_vm2, %v1961_v52  ;;  %v1579_v17 = vmax.f32 %v1451_v63, 0.0  ;;  %v2508_v62 = vrot.slane %v12836_v26, 7  ;;  %10467 = vmatprep.mubr.msk.f32.mxu1 %vm2039_vm2, %v12836_v26  ;;  %v1857_v9 = vsel %vm1782_vm1, %v1704_v19, %v1705_v16 }
 0x15a   :  { %16492 = vst [vmem:[#allocation35_spill] sm:$0xff] %v12846_v32  ;;  %v1858_v54 = vsel %vm1782_vm1, %v1703_v46, %v1704_v19  ;;  %v1578_v15 = vmax.f32 %v1450_v36, 0.0  ;;  %v1320_v39 = vmul.f32 %v12764_v12, %v901_v33  ;;  %v1963_v14 = vmax.f32 %v1576_v20, %v1857_v9 }
 0x15b   :  { %v1962_v41 = vmax.f32 %v1575_v43, %v1858_v54  ;;  %v1707_v52 = vrot.slane %v1579_v17, 1  ;;  %v1453_v37 = vadd.f32 %v12770_v24, %v1321_v48  ;;  %v10327_v56 = vpop.f32.mrb[58].mxu0  ;;  %v12866_v40 = vsel %vm2550_vm3, %v2507_v3, %v2508_v62 }
 0x15c   :  { %v1706_v63 = vrot.slane %v1578_v15, 1  ;;  %v1452_v11 = vadd.f32 %v12770_v24, %v1320_v39  ;;  %v12862_v32 = vld [vmem:[#allocation2 + $0x170] ss:$2 sm:$0xff]  ;;  %16493 = vst [vmem:[#allocation36_spill] sm:$0xff] %v12866_v40  ;;  %v16494_v46 = vrot.slane %v12555_v0, 1  ;;  %2092 = vst.msk [vmem:[#allocation2 + $0x1a0] sm:$0xff] %vm2039_vm2, %v1963_v14  ;;  %v1323_v20 = vmul.f32 %v12764_v12, %v10327_v56 }
 0x15d   :  { %2091 = vst.msk [vmem:[#allocation2 + $0x198] sm:$0xff] %vm2039_vm2, %v1962_v41  ;;  %v1581_v43 = vmax.f32 %v1453_v37, 0.0  ;;  %v911_v36 = vpop.f32.mrb[59].mxu0  ;;  %v2509_v48 = vrot.slane %v12862_v32, 7  ;;  %10468 = vmatmul.mubr.msk.f32.gmra.mrb[22].mxu1 %vm2039_vm2, %v12862_v32 }
 0x15e   :  { %v12872_v19 = vsel %vm1782_vm1, %v2880_v58, %v16494_v46  ;;  %v1855_v3 = vsel %vm1782_vm1, %v1706_v63, %v1707_v52  ;;  %v1856_v58 = vsel %vm1782_vm1, %v1705_v16, %v1706_v63  ;;  %v1580_v33 = vmax.f32 %v1452_v11, 0.0 }
 0x15f   :  { %16495 = vst [vmem:[#allocation37_spill] sm:$0xff] %v12872_v19  ;;  %v1322_v9 = vmul.f32 %v12764_v12, %v911_v36  ;;  %v1964_v54 = vmax.f32 %v1577_v7, %v1856_v58  ;;  %v1965_v39 = vmax.f32 %v1578_v15, %v1855_v3  ;;  %v1709_v41 = vrot.slane %v1581_v43, 1  ;;  %v10330_v46 = vpop.f32.mrb[60].mxu0  ;;  %v12887_v19 = vld [vmem:[#allocation2 + $0x180] ss:$2 sm:$0xff] }
 0x160   :  { %v1455_v56 = vadd.f32 %v12770_v24, %v1323_v20  ;;  %v1708_v14 = vrot.slane %v1580_v33, 1  ;;  %v12891_v40 = vsel %vm2550_vm3, %v2508_v62, %v2509_v48  ;;  %v16497_v16 = vrot.slane %v12574_v29, 1  ;;  %v921_v20 = vpop.f32.mrb[61].mxu0  ;;  %10470 = vmatprep.mubr.msk.f32.mxu1 %vm2039_vm2, %v12887_v19 }
 0x161   :  { %v1454_v37 = vadd.f32 %v12770_v24, %v1322_v9  ;;  %16496 = vst [vmem:[#allocation38_spill] sm:$0xff] %v12891_v40  ;;  %v16498_v63 = vrot.slane %v12555_v0, 1  ;;  %2093 = vst.msk [vmem:[#allocation2 + $0x1a8] sm:$0xff] %vm2039_vm2, %v1964_v54  ;;  %v1325_v11 = vmul.f32 %v12764_v12, %v10330_v46  ;;  %v2510_v36 = vrot.slane %v12887_v19, 7 }
 0x162   :  { %2094 = vst.msk [vmem:[#allocation2 + $0x1b0] sm:$0xff] %vm2039_vm2, %v1965_v39  ;;  %v1583_v15 = vmax.f32 %v1455_v56, 0.0  ;;  %v1853_v0 = vsel %vm1782_vm1, %v1708_v14, %v1709_v41  ;;  %v1854_v62 = vsel %vm1782_vm1, %v1707_v52, %v1708_v14  ;;  %v1324_v58 = vmul.f32 %v12764_v12, %v921_v20 }
 0x163   :  { %v12899_v7 = vsel %vm1782_vm1, %v16498_v63, %v16497_v16  ;;  %v1582_v3 = vmax.f32 %v1454_v37, 0.0  ;;  %v1966_v9 = vmax.f32 %v1579_v17, %v1854_v62  ;;  %v1967_v54 = vmax.f32 %v1580_v33, %v1853_v0  ;;  %v10333_v63 = vpop.f32.mrb[62].mxu0 }
 0x164   :  { %16499 = vst [vmem:[#allocation39_spill] sm:$0xff] %v12899_v7  ;;  %v1711_v39 = vrot.slane %v1583_v15, 1  ;;  %v1457_v56 = vadd.f32 %v12770_v24, %v1325_v11  ;;  %v1456_v16 = vadd.f32 %v12770_v24, %v1324_v58  ;;  %v12914_v7 = vld [vmem:[#allocation2 + $0x190] ss:$2 sm:$0xff]  ;;  %v12918_v40 = vsel %vm2550_vm3, %v2509_v48, %v2510_v36  ;;  %v931_v33 = vpop.f32.mrb[63].mxu0 }
 0x165   :  { %v1710_v46 = vrot.slane %v1582_v3, 1  ;;  %16500 = vst [vmem:[#allocation40_spill] sm:$0xff] %v12918_v40  ;;  %2095 = vst.msk [vmem:[#allocation2 + $0x1b8] sm:$0xff] %vm2039_vm2, %v1966_v9  ;;  %v1327_v17 = vmul.f32 %v12764_v12, %v10333_v63  ;;  %v2511_v14 = vrot.slane %v12914_v7, 7  ;;  %10471 = vmatmul.mubr.msk.f32.gmra.mrb[24].mxu1 %vm2039_vm2, %v12914_v7  ;;  %v1326_v20 = vmul.f32 %v12764_v12, %v931_v33 }
 0x166   :  { %2096 = vst.msk [vmem:[#allocation2 + $0x1c0] sm:$0xff] %vm2039_vm2, %v1967_v54  ;;  %v1585_v52 = vmax.f32 %v1457_v56, 0.0  ;;  %v1584_v11 = vmax.f32 %v1456_v16, 0.0 }
 0x167   :  { %v1851_v37 = vsel %vm1782_vm1, %v1710_v46, %v1711_v39  ;;  %v1852_v48 = vsel %vm1782_vm1, %v1709_v41, %v1710_v46  ;;  %v1459_v9 = vadd.f32 %v12770_v24, %v1327_v17  ;;  %v1458_v56 = vadd.f32 %v12770_v24, %v1326_v20  ;;  %v10336_v63 = vpop.f32.mrb[64].mxu0 }
 0x168   :  { %v1968_v0 = vmax.f32 %v1581_v43, %v1852_v48  ;;  %v1969_v62 = vmax.f32 %v1582_v3, %v1851_v37  ;;  %v1713_v58 = vrot.slane %v1585_v52, 1  ;;  %v1712_v54 = vrot.slane %v1584_v11, 1  ;;  %v12933_v40 = vld [vmem:[#allocation2 + $0x1a0] ss:$2 sm:$0xff]  ;;  %v941_v3 = vpop.f32.mrb[65].mxu0 }
 0x169   :  { %v12937_v60 = vsel %vm2550_vm3, %v2510_v36, %v2511_v14  ;;  %v1587_v41 = vmax.f32 %v1459_v9, 0.0  ;;  %v1329_v43 = vmul.f32 %v12764_v12, %v10336_v63  ;;  %v2512_v46 = vrot.slane %v12933_v40, 7  ;;  %10473 = vmatprep.mubr.msk.f32.mxu1 %vm2039_vm2, %v12933_v40 }
 0x16a   :  { %16501 = vst [vmem:[#allocation41_spill] sm:$0xff] %v12937_v60  ;;  %2097 = vst.msk [vmem:[#allocation2 + $0x1c8] sm:$0xff] %vm2039_vm2, %v1968_v0  ;;  %v1849_v16 = vsel %vm1782_vm1, %v1712_v54, %v1713_v58  ;;  %v1850_v36 = vsel %vm1782_vm1, %v1711_v39, %v1712_v54  ;;  %v1586_v17 = vmax.f32 %v1458_v56, 0.0  ;;  %v1328_v33 = vmul.f32 %v12764_v12, %v941_v3 }
 0x16b   :  { %2098 = vst.msk [vmem:[#allocation2 + $0x1d0] sm:$0xff] %vm2039_vm2, %v1969_v62  ;;  %v1970_v37 = vmax.f32 %v1583_v15, %v1850_v36  ;;  %v1971_v48 = vmax.f32 %v1584_v11, %v1849_v16  ;;  %v1715_v20 = vrot.slane %v1587_v41, 1  ;;  %v1461_v0 = vadd.f32 %v12770_v24, %v1329_v43  ;;  %v10339_v63 = vpop.f32.mrb[66].mxu0 }
 0x16c   :  { %v1714_v62 = vrot.slane %v1586_v17, 1  ;;  %v1460_v9 = vadd.f32 %v12770_v24, %v1328_v33  ;;  %v12952_v60 = vld [vmem:[#allocation2 + $0x1b0] ss:$2 sm:$0xff]  ;;  %v12956_v2 = vsel %vm2550_vm3, %v2511_v14, %v2512_v46  ;;  %v1331_v15 = vmul.f32 %v12764_v12, %v10339_v63  ;;  %v951_v11 = vpop.f32.mrb[67].mxu0 }
 0x16d   :  { %16502 = vst [vmem:[#allocation42_spill] sm:$0xff] %v12956_v2  ;;  %2099 = vst.msk [vmem:[#allocation2 + $0x1d8] sm:$0xff] %vm2039_vm2, %v1970_v37  ;;  %v1589_v39 = vmax.f32 %v1461_v0, 0.0  ;;  %v2513_v54 = vrot.slane %v12952_v60, 7  ;;  %10474 = vmatmul.mubr.msk.f32.gmra.mrb[26].mxu1 %vm2039_vm2, %v12952_v60  ;;  %v1330_v3 = vmul.f32 %v12764_v12, %v951_v11 }
 0x16e   :  { %2100 = vst.msk [vmem:[#allocation2 + $0x1e0] sm:$0xff] %vm2039_vm2, %v1971_v48  ;;  %v1847_v56 = vsel %vm1782_vm1, %v1714_v62, %v1715_v20  ;;  %v1848_v14 = vsel %vm1782_vm1, %v1713_v58, %v1714_v62  ;;  %v1588_v43 = vmax.f32 %v1460_v9, 0.0  ;;  %v1463_v37 = vadd.f32 %v12770_v24, %v1331_v15 }
 0x16f   :  { %v1972_v16 = vmax.f32 %v1585_v52, %v1848_v14  ;;  %v1973_v36 = vmax.f32 %v1586_v17, %v1847_v56  ;;  %v1717_v33 = vrot.slane %v1589_v39, 1  ;;  %v2883_v48 = vrot.slane %v12596_v59, 1  ;;  %v10342_v2 = vpop.f32.mrb[68].mxu0 }
 0x170   :  { %v1716_v0 = vrot.slane %v1588_v43, 1  ;;  %v1462_v63 = vadd.f32 %v12770_v24, %v1330_v3  ;;  %v12976_v28 = vsel %vm2550_vm3, %v2512_v46, %v2513_v54  ;;  %v1591_v52 = vmax.f32 %v1463_v37, 0.0  ;;  %v961_v59 = vpop.f32.mrb[69].mxu0 }
 0x171   :  { %v12972_v6 = vld [vmem:[#allocation2 + $0x1c0] ss:$2 sm:$0xff]  ;;  %16503 = vst [vmem:[#allocation43_spill] sm:$0xff] %v12976_v28  ;;  %2101 = vst.msk [vmem:[#allocation2 + $0x1e8] sm:$0xff] %vm2039_vm2, %v1972_v16  ;;  %v1333_v17 = vmul.f32 %v12764_v12, %v10342_v2  ;;  %v1332_v11 = vmul.f32 %v12764_v12, %v961_v59 }
 0x172   :  { %2102 = vst.msk [vmem:[#allocation2 + $0x1f0] sm:$0xff] %vm2039_vm2, %v1973_v36  ;;  %v2514_v62 = vrot.slane %v12972_v6, 7  ;;  %10476 = vmatprep.mubr.msk.f32.mxu1 %vm2039_vm2, %v12972_v6  ;;  %v1845_v9 = vsel %vm1782_vm1, %v1716_v0, %v1717_v33  ;;  %v1846_v46 = vsel %vm1782_vm1, %v1715_v20, %v1716_v0  ;;  %v1590_v15 = vmax.f32 %v1462_v63, 0.0 }
 0x173   :  { %v1974_v56 = vmax.f32 %v1587_v41, %v1846_v46  ;;  %v1975_v14 = vmax.f32 %v1588_v43, %v1845_v9  ;;  %v1719_v3 = vrot.slane %v1591_v52, 1  ;;  %v1465_v2 = vadd.f32 %v12770_v24, %v1333_v17  ;;  %v10345_v37 = vpop.f32.mrb[70].mxu0 }
 0x174   :  { %v1718_v16 = vrot.slane %v1590_v15, 1  ;;  %v1464_v36 = vadd.f32 %v12770_v24, %v1332_v11  ;;  %v12992_v58 = vld [vmem:[#allocation2 + $0x1d0] ss:$2 sm:$0xff]  ;;  %v12996_v28 = vsel %vm2550_vm3, %v2513_v54, %v2514_v62  ;;  %v16505_v20 = vrot.slane %v12574_v29, 1  ;;  %v971_v63 = vpop.f32.mrb[71].mxu0 }
 0x175   :  { %16504 = vst [vmem:[#allocation44_spill] sm:$0xff] %v12996_v28  ;;  %2103 = vst.msk [vmem:[#allocation2 + $0x1f8] sm:$0xff] %vm2039_vm2, %v1974_v56  ;;  %v1593_v41 = vmax.f32 %v1465_v2, 0.0  ;;  %v1335_v43 = vmul.f32 %v12764_v12, %v10345_v37  ;;  %v2515_v17 = vrot.slane %v12992_v58, 7  ;;  %10477 = vmatmul.mubr.msk.f32.gmra.mrb[28].mxu1 %vm2039_vm2, %v12992_v58  ;;  %v1334_v9 = vmul.f32 %v12764_v12, %v971_v63 }
 0x176   :  { %v13002_v0 = vsel %vm1782_vm1, %v16505_v20, %v2883_v48  ;;  %2104 = vst.msk [vmem:[#allocation2 + $0x200] sm:$0xff] %vm2039_vm2, %v1975_v14  ;;  %v1843_v29 = vsel %vm1782_vm1, %v1718_v16, %v1719_v3  ;;  %v1844_v54 = vsel %vm1782_vm1, %v1717_v33, %v1718_v16  ;;  %v1592_v59 = vmax.f32 %v1464_v36, 0.0 }
 0x177   :  { %16506 = vst [vmem:[#allocation45_spill] sm:$0xff] %v13002_v0  ;;  %v1976_v46 = vmax.f32 %v1589_v39, %v1844_v54  ;;  %v1977_v11 = vmax.f32 %v1590_v15, %v1843_v29  ;;  %v1721_v56 = vrot.slane %v1593_v41, 1  ;;  %v1467_v14 = vadd.f32 %v12770_v24, %v1335_v43  ;;  %v10348_v20 = vpop.f32.mrb[72].mxu0 }
 0x178   :  { %v1720_v2 = vrot.slane %v1592_v59, 1  ;;  %v1466_v37 = vadd.f32 %v12770_v24, %v1334_v9  ;;  %v13017_v0 = vld [vmem:[#allocation2 + $0x1e0] ss:$2 sm:$0xff]  ;;  %v13021_v28 = vsel %vm2550_vm3, %v2514_v62, %v2515_v17  ;;  %v16508_v33 = vrot.slane %v12619_v31, 1  ;;  %v981_v36 = vpop.f32.mrb[73].mxu0 }
 0x179   :  { %16507 = vst [vmem:[#allocation46_spill] sm:$0xff] %v13021_v28  ;;  %2105 = vst.msk [vmem:[#allocation2 + $0x208] sm:$0xff] %vm2039_vm2, %v1976_v46  ;;  %v1595_v39 = vmax.f32 %v1467_v14, 0.0  ;;  %v1337_v15 = vmul.f32 %v12764_v12, %v10348_v20  ;;  %v2516_v43 = vrot.slane %v13017_v0, 7  ;;  %10479 = vmatprep.mubr.msk.f32.mxu1 %vm2039_vm2, %v13017_v0  ;;  %v1336_v29 = vmul.f32 %v12764_v12, %v981_v36 }
 0x17a   :  { %v13027_v16 = vsel %vm1782_vm1, %v2883_v48, %v16508_v33  ;;  %2106 = vst.msk [vmem:[#allocation2 + $0x210] sm:$0xff] %vm2039_vm2, %v1977_v11  ;;  %v1841_v62 = vsel %vm1782_vm1, %v1720_v2, %v1721_v56  ;;  %v1842_v48 = vsel %vm1782_vm1, %v1719_v3, %v1720_v2  ;;  %v1594_v63 = vmax.f32 %v1466_v37, 0.0  ;;  %v9313_v2 = vld [vmem:[%s16442_s2 + $0x20] sm:$0xff] }
 0x17b   :  { %16509 = vst [vmem:[#allocation47_spill] sm:$0xff] %v13027_v16  ;;  %v1978_v54 = vmax.f32 %v1591_v52, %v1842_v48  ;;  %v1979_v9 = vmax.f32 %v1592_v59, %v1841_v62  ;;  %v1723_v46 = vrot.slane %v1595_v39, 1  ;;  %v1469_v11 = vadd.f32 %v12770_v24, %v1337_v15  ;;  %v10351_v33 = vpop.f32.mrb[74].mxu0 }
 0x17c   :  { %v1722_v14 = vrot.slane %v1594_v63, 1  ;;  %v1468_v20 = vadd.f32 %v12770_v24, %v1336_v29  ;;  %v13042_v16 = vld [vmem:[#allocation2 + $0x1f0] ss:$2 sm:$0xff]  ;;  %v13046_v28 = vsel %vm2550_vm3, %v2515_v17, %v2516_v43  ;;  %v1339_v52 = vmul.f32 %v12764_v12, %v10351_v33  ;;  %v991_v59 = vpop.f32.mrb[75].mxu0  ;;  %v9314_v17 = vld [vmem:[%s16442_s2 + $0x28] sm:$0xff] }
 0x17d   :  { %16510 = vst [vmem:[#allocation48_spill] sm:$0xff] %v13046_v28  ;;  %2107 = vst.msk [vmem:[#allocation2 + $0x218] sm:$0xff] %vm2039_vm2, %v1978_v54  ;;  %v1597_v3 = vmax.f32 %v1469_v11, 0.0  ;;  %10480 = vmatmul.mubr.msk.f32.gmra.mrb[30].mxu1 %vm2039_vm2, %v13042_v16  ;;  %v1338_v62 = vmul.f32 %v12764_v12, %v991_v59  ;;  %v2517_v28 = vrot.slane %v13042_v16, 7  ;;  %v13071_v57 = vpack.c.bf16 %v9314_v17, %v9313_v2 }
 0x17e   :  { %2108 = vst.msk [vmem:[#allocation2 + $0x220] sm:$0xff] %vm2039_vm2, %v1979_v9  ;;  %v1839_v37 = vsel %vm1782_vm1, %v1722_v14, %v1723_v46  ;;  %v1840_v15 = vsel %vm1782_vm1, %v1721_v56, %v1722_v14  ;;  %v1596_v36 = vmax.f32 %v1468_v20, 0.0  ;;  %v13065_v9 = vadd.f32 %v12770_v24, %v1339_v52 }
 0x17f   :  { %v1980_v48 = vmax.f32 %v1593_v41, %v1840_v15  ;;  %v1981_v29 = vmax.f32 %v1594_v63, %v1839_v37  ;;  %v1725_v54 = vrot.slane %v1597_v3, 1  ;;  %v1470_v33 = vadd.f32 %v12770_v24, %v1338_v62  ;;  %v10354_v35 = vpop.f32.mrb[76].mxu0  ;;  %11219 = vmatprep.subr.bf16.mxu1 %v13071_v57 }
 0x180   :  { %v1724_v11 = vrot.slane %v1596_v36, 1  ;;  %v13069_v51 = vld [vmem:[#allocation2 + $0x200] ss:$2 sm:$0xff]  ;;  %v1599_v41 = vmax.f32 %v13065_v9, 0.0  ;;  %v1341_v56 = vmul.f32 %v12764_v12, %v10354_v35  ;;  %v1001_v63 = vpop.f32.mrb[77].mxu0  ;;  %v13092_v13 = vsel %vm2550_vm3, %v2516_v43, %v2517_v28 }
 0x181   :  { %2109 = vst.msk [vmem:[#allocation2 + $0x228] sm:$0xff] %vm2039_vm2, %v1980_v48  ;;  %2110 = vst.msk [vmem:[#allocation2 + $0x230] sm:$0xff] %vm2039_vm2, %v1981_v29  ;;  %v2518_v14 = vrot.slane %v13069_v51, 7  ;;  %10482 = vmatprep.mubr.msk.f32.mxu1 %vm2039_vm2, %v13069_v51  ;;  %v1598_v59 = vmax.f32 %v1470_v33, 0.0  ;;  %v1340_v2 = vmul.f32 %v12764_v12, %v1001_v63 }
 0x182   :  { %v1837_v20 = vsel %vm1782_vm1, %v1724_v11, %v1725_v54  ;;  %v1838_v52 = vsel %vm1782_vm1, %v1723_v46, %v1724_v11  ;;  %v1727_v35 = vrot.slane %v1599_v41, 1  ;;  %v1473_v15 = vadd.f32 %v12770_v24, %v1341_v56  ;;  %16511 = vst [vmem:[#allocation49_spill] sm:$0xff] %v13092_v13 }
 0x183   :  { %v1982_v17 = vmax.f32 %v1595_v39, %v1838_v52  ;;  %v1983_v37 = vmax.f32 %v1596_v36, %v1837_v20  ;;  %v1726_v62 = vrot.slane %v1598_v59, 1  ;;  %v1472_v48 = vadd.f32 %v12770_v24, %v1340_v2  ;;  %v10357_v29 = vpop.f32.mrb[78].mxu0 }
 0x184   :  { %v13088_v9 = vld [vmem:[#allocation2 + $0x210] ss:$2 sm:$0xff]  ;;  %v13096_v46 = vsel %vm2550_vm3, %v2517_v28, %v2518_v14  ;;  %v1601_v39 = vmax.f32 %v1473_v15, 0.0  ;;  %v1343_v36 = vmul.f32 %v12764_v12, %v10357_v29  ;;  %v1011_v11 = vpop.f32.mrb[79].mxu0 }
 0x185   :  { %16512 = vst [vmem:[#allocation50_spill] sm:$0xff] %v13096_v46  ;;  %2111 = vst.msk [vmem:[#allocation2 + $0x238] sm:$0xff] %vm2039_vm2, %v1982_v17  ;;  %v2519_v33 = vrot.slane %v13088_v9, 7  ;;  %10483 = vmatmul.mubr.msk.f32.gmra.mrb[32].mxu1 %vm2039_vm2, %v13088_v9  ;;  %v1835_v43 = vsel %vm1782_vm1, %v1726_v62, %v1727_v35  ;;  %v1836_v28 = vsel %vm1782_vm1, %v1725_v54, %v1726_v62  ;;  %v1600_v56 = vmax.f32 %v1472_v48, 0.0 }
 0x186   :  { %2112 = vst.msk [vmem:[#allocation2 + $0x240] sm:$0xff] %vm2039_vm2, %v1983_v37  ;;  %v1342_v63 = vmul.f32 %v12764_v12, %v1011_v11  ;;  %v1984_v20 = vmax.f32 %v1597_v3, %v1836_v28  ;;  %v1985_v52 = vmax.f32 %v1598_v59, %v1835_v43  ;;  %v1729_v2 = vrot.slane %v1601_v39, 1 }
 0x187   :  { %v1475_v17 = vadd.f32 %v12770_v24, %v1343_v36  ;;  %v2885_v37 = vrot.slane %v12646_v8, 1  ;;  %v1728_v15 = vrot.slane %v1600_v56, 1  ;;  %v10360_v46 = vpop.f32.mrb[80].mxu0  ;;  %v13116_v27 = vsel %vm2550_vm3, %v2518_v14, %v2519_v33 }
 0x188   :  { %v1474_v29 = vadd.f32 %v12770_v24, %v1342_v63  ;;  %v13112_v13 = vld [vmem:[#allocation2 + $0x220] ss:$2 sm:$0xff]  ;;  %16513 = vst [vmem:[#allocation51_spill] sm:$0xff] %v13116_v27  ;;  %2113 = vst.msk [vmem:[#allocation2 + $0x248] sm:$0xff] %vm2039_vm2, %v1984_v20  ;;  %v1345_v59 = vmul.f32 %v12764_v12, %v10360_v46  ;;  %v1021_v8 = vpop.f32.mrb[81].mxu0 }
 0x189   :  { %2114 = vst.msk [vmem:[#allocation2 + $0x250] sm:$0xff] %vm2039_vm2, %v1985_v52  ;;  %v1603_v3 = vmax.f32 %v1475_v17, 0.0  ;;  %v2520_v62 = vrot.slane %v13112_v13, 7  ;;  %10485 = vmatprep.mubr.msk.f32.mxu1 %vm2039_vm2, %v13112_v13  ;;  %v1833_v48 = vsel %vm1782_vm1, %v1728_v15, %v1729_v2  ;;  %v1834_v14 = vsel %vm1782_vm1, %v1727_v35, %v1728_v15 }
 0x18a   :  { %v1602_v36 = vmax.f32 %v1474_v29, 0.0  ;;  %v1344_v11 = vmul.f32 %v12764_v12, %v1021_v8  ;;  %v1986_v43 = vmax.f32 %v1599_v41, %v1834_v14  ;;  %v1987_v28 = vmax.f32 %v1600_v56, %v1833_v48 }
 0x18b   :  { %v1731_v63 = vrot.slane %v1603_v3, 1  ;;  %v1477_v46 = vadd.f32 %v12770_v24, %v1345_v59  ;;  %v10363_v17 = vpop.f32.mrb[82].mxu0  ;;  %v13136_v27 = vsel %vm2550_vm3, %v2519_v33, %v2520_v62  ;;  %v16515_v35 = vrot.slane %v12619_v31, 1 }
 0x18c   :  { %v1730_v20 = vrot.slane %v1602_v36, 1  ;;  %v1476_v52 = vadd.f32 %v12770_v24, %v1344_v11  ;;  %v13132_v54 = vld [vmem:[#allocation2 + $0x230] ss:$2 sm:$0xff]  ;;  %16514 = vst [vmem:[#allocation52_spill] sm:$0xff] %v13136_v27  ;;  %2115 = vst.msk [vmem:[#allocation2 + $0x258] sm:$0xff] %vm2039_vm2, %v1986_v43  ;;  %v1347_v56 = vmul.f32 %v12764_v12, %v10363_v17  ;;  %v1031_v29 = vpop.f32.mrb[83].mxu0 }
 0x18d   :  { %v13142_v15 = vsel %vm1782_vm1, %v16515_v35, %v2885_v37  ;;  %2116 = vst.msk [vmem:[#allocation2 + $0x260] sm:$0xff] %vm2039_vm2, %v1987_v28  ;;  %v1605_v41 = vmax.f32 %v1477_v46, 0.0  ;;  %v2521_v59 = vrot.slane %v13132_v54, 7  ;;  %10486 = vmatmul.mubr.msk.f32.gmra.mrb[34].mxu1 %vm2039_vm2, %v13132_v54  ;;  %v1346_v48 = vmul.f32 %v12764_v12, %v1031_v29 }
 0x18e   :  { %16516 = vst [vmem:[#allocation53_spill] sm:$0xff] %v13142_v15  ;;  %v1831_v31 = vsel %vm1782_vm1, %v1730_v20, %v1731_v63  ;;  %v1832_v33 = vsel %vm1782_vm1, %v1729_v2, %v1730_v20  ;;  %v1604_v8 = vmax.f32 %v1476_v52, 0.0  ;;  %v13156_v28 = vadd.f32 %v12770_v24, %v1347_v56 }
 0x18f   :  { %v1988_v14 = vmax.f32 %v1601_v39, %v1832_v33  ;;  %v1989_v11 = vmax.f32 %v1602_v36, %v1831_v31  ;;  %v1733_v43 = vrot.slane %v1605_v41, 1  ;;  %v1478_v17 = vadd.f32 %v12770_v24, %v1346_v48  ;;  %v10366_v35 = vpop.f32.mrb[84].mxu0  ;;  %v13159_v15 = vld [vmem:[#allocation2 + $0x240] ss:$2 sm:$0xff] }
 0x190   :  { %v1732_v46 = vrot.slane %v1604_v8, 1  ;;  %v13163_v27 = vsel %vm2550_vm3, %v2520_v62, %v2521_v59  ;;  %v16518_v2 = vrot.slane %v12672_v55, 1  ;;  %v1607_v36 = vmax.f32 %v13156_v28, 0.0  ;;  %v1041_v52 = vpop.f32.mrb[85].mxu0  ;;  %10488 = vmatprep.mubr.msk.f32.mxu1 %vm2039_vm2, %v13159_v15 }
 0x191   :  { %16517 = vst [vmem:[#allocation54_spill] sm:$0xff] %v13163_v27  ;;  %2117 = vst.msk [vmem:[#allocation2 + $0x268] sm:$0xff] %vm2039_vm2, %v1988_v14  ;;  %v1349_v20 = vmul.f32 %v12764_v12, %v10366_v35  ;;  %v2522_v56 = vrot.slane %v13159_v15, 7  ;;  %v1606_v29 = vmax.f32 %v1478_v17, 0.0  ;;  %v1348_v31 = vmul.f32 %v12764_v12, %v1041_v52 }
 0x192   :  { %v13169_v39 = vsel %vm1782_vm1, %v2885_v37, %v16518_v2  ;;  %2118 = vst.msk [vmem:[#allocation2 + $0x270] sm:$0xff] %vm2039_vm2, %v1989_v11  ;;  %v1829_v62 = vsel %vm1782_vm1, %v1732_v46, %v1733_v43  ;;  %v1830_v37 = vsel %vm1782_vm1, %v1731_v63, %v1732_v46  ;;  %v1735_v14 = vrot.slane %v1607_v36, 1 }
 0x193   :  { %16519 = vst [vmem:[#allocation55_spill] sm:$0xff] %v13169_v39  ;;  %v1990_v33 = vmax.f32 %v1603_v3, %v1830_v37  ;;  %v1991_v48 = vmax.f32 %v1604_v8, %v1829_v62  ;;  %v13184_v11 = vadd.f32 %v12770_v24, %v1349_v20  ;;  %v1734_v35 = vrot.slane %v1606_v29, 1  ;;  %v10369_v39 = vpop.f32.mrb[86].mxu0  ;;  %v13188_v27 = vld [vmem:[#allocation2 + $0x250] ss:$2 sm:$0xff] }
 0x194   :  { %v1480_v2 = vadd.f32 %v12770_v24, %v1348_v31  ;;  %v13192_v63 = vsel %vm2550_vm3, %v2521_v59, %v2522_v56  ;;  %v1351_v8 = vmul.f32 %v12764_v12, %v10369_v39  ;;  %v1051_v17 = vpop.f32.mrb[87].mxu0  ;;  %v2523_v20 = vrot.slane %v13188_v27, 7  ;;  %10489 = vmatmul.mubr.msk.f32.gmra.mrb[36].mxu1 %vm2039_vm2, %v13188_v27 }
 0x195   :  { %16520 = vst [vmem:[#allocation56_spill] sm:$0xff] %v13192_v63  ;;  %2119 = vst.msk [vmem:[#allocation2 + $0x278] sm:$0xff] %vm2039_vm2, %v1990_v33  ;;  %v1609_v3 = vmax.f32 %v13184_v11, 0.0  ;;  %v1827_v59 = vsel %vm1782_vm1, %v1734_v35, %v1735_v14  ;;  %v1828_v52 = vsel %vm1782_vm1, %v1733_v43, %v1734_v35  ;;  %v1350_v37 = vmul.f32 %v12764_v12, %v1051_v17 }
 0x196   :  { %2120 = vst.msk [vmem:[#allocation2 + $0x280] sm:$0xff] %vm2039_vm2, %v1991_v48  ;;  %v1608_v62 = vmax.f32 %v1480_v2, 0.0  ;;  %v1992_v31 = vmax.f32 %v1605_v41, %v1828_v52  ;;  %v1993_v33 = vmax.f32 %v1606_v29, %v1827_v59  ;;  %v13208_v39 = vadd.f32 %v12770_v24, %v1351_v8 }
 0x197   :  { %v1737_v48 = vrot.slane %v1609_v3, 1  ;;  %v1482_v28 = vadd.f32 %v12770_v24, %v1350_v37  ;;  %v10372_v63 = vpop.f32.mrb[88].mxu0  ;;  %v13216_v43 = vsel %vm2550_vm3, %v2522_v56, %v2523_v20 }
 0x198   :  { %v1736_v46 = vrot.slane %v1608_v62, 1  ;;  %v13212_v53 = vld [vmem:[#allocation2 + $0x260] ss:$2 sm:$0xff]  ;;  %16521 = vst [vmem:[#allocation57_spill] sm:$0xff] %v13216_v43  ;;  %2121 = vst.msk [vmem:[#allocation2 + $0x288] sm:$0xff] %vm2039_vm2, %v1992_v31  ;;  %v1611_v41 = vmax.f32 %v13208_v39, 0.0  ;;  %v1353_v29 = vmul.f32 %v12764_v12, %v10372_v63 }
 0x199   :  { %2122 = vst.msk [vmem:[#allocation2 + $0x290] sm:$0xff] %vm2039_vm2, %v1993_v33  ;;  %v1061_v2 = vpop.f32.mrb[89].mxu0  ;;  %v2524_v8 = vrot.slane %v13212_v53, 7  ;;  %10491 = vmatprep.mubr.msk.f32.mxu1 %vm2039_vm2, %v13212_v53  ;;  %v1610_v59 = vmax.f32 %v1482_v28, 0.0 }
 0x19a   :  { %v1825_v56 = vsel %vm1782_vm1, %v1736_v46, %v1737_v48  ;;  %v1826_v17 = vsel %vm1782_vm1, %v1735_v14, %v1736_v46  ;;  %v1352_v52 = vmul.f32 %v12764_v12, %v1061_v2  ;;  %v1739_v33 = vrot.slane %v1611_v41, 1 }
 0x19b   :  { %v1994_v37 = vmax.f32 %v1607_v36, %v1826_v17  ;;  %v1995_v31 = vmax.f32 %v1608_v62, %v1825_v56  ;;  %v13232_v63 = vadd.f32 %v12770_v24, %v1353_v29  ;;  %v1738_v35 = vrot.slane %v1610_v59, 1  ;;  %v10375_v43 = vpop.f32.mrb[90].mxu0 }
 0x19c   :  { %v1484_v11 = vadd.f32 %v12770_v24, %v1352_v52  ;;  %v13236_v30 = vld [vmem:[#allocation2 + $0x270] ss:$2 sm:$0xff]  ;;  %v13240_v14 = vsel %vm2550_vm3, %v2523_v20, %v2524_v8  ;;  %v1355_v46 = vmul.f32 %v12764_v12, %v10375_v43  ;;  %v1071_v62 = vpop.f32.mrb[91].mxu0 }
 0x19d   :  { %16522 = vst [vmem:[#allocation58_spill] sm:$0xff] %v13240_v14  ;;  %2123 = vst.msk [vmem:[#allocation2 + $0x298] sm:$0xff] %vm2039_vm2, %v1994_v37  ;;  %v1613_v36 = vmax.f32 %v13232_v63, 0.0  ;;  %v2525_v29 = vrot.slane %v13236_v30, 7  ;;  %10492 = vmatmul.mubr.msk.f32.gmra.mrb[38].mxu1 %vm2039_vm2, %v13236_v30  ;;  %v1823_v20 = vsel %vm1782_vm1, %v1738_v35, %v1739_v33  ;;  %v1824_v2 = vsel %vm1782_vm1, %v1737_v48, %v1738_v35 }
 0x19e   :  { %2124 = vst.msk [vmem:[#allocation2 + $0x2a0] sm:$0xff] %vm2039_vm2, %v1995_v31  ;;  %v1612_v56 = vmax.f32 %v1484_v11, 0.0  ;;  %v1354_v17 = vmul.f32 %v12764_v12, %v1071_v62  ;;  %v1996_v52 = vmax.f32 %v1609_v3, %v1824_v2  ;;  %v1997_v37 = vmax.f32 %v1610_v59, %v1823_v20 }
 0x19f   :  { %v1741_v31 = vrot.slane %v1613_v36, 1  ;;  %v13256_v43 = vadd.f32 %v12770_v24, %v1355_v46  ;;  %v10378_v39 = vpop.f32.mrb[92].mxu0  ;;  %v13259_v14 = vld [vmem:[#allocation2 + $0x280] ss:$2 sm:$0xff]  ;;  %v13263_v1 = vsel %vm2550_vm3, %v2524_v8, %v2525_v29  ;;  %v16524_v48 = vrot.slane %v12699_v44, 1 }
 0x1a0   :  { %v1740_v63 = vrot.slane %v1612_v56, 1  ;;  %v1486_v28 = vadd.f32 %v12770_v24, %v1354_v17  ;;  %16523 = vst [vmem:[#allocation59_spill] sm:$0xff] %v13263_v1  ;;  %v16525_v11 = vrot.slane %v12672_v55, 1  ;;  %2125 = vst.msk [vmem:[#allocation2 + $0x2a8] sm:$0xff] %vm2039_vm2, %v1996_v52  ;;  %v1357_v46 = vmul.f32 %v12764_v12, %v10378_v39  ;;  %v1081_v8 = vpop.f32.mrb[93].mxu0  ;;  %10494 = vmatprep.mubr.msk.f32.mxu1 %vm2039_vm2, %v13259_v14 }
 0x1a1   :  { %2126 = vst.msk [vmem:[#allocation2 + $0x2b0] sm:$0xff] %vm2039_vm2, %v1997_v37  ;;  %v1615_v59 = vmax.f32 %v13256_v43, 0.0  ;;  %v2526_v62 = vrot.slane %v13259_v14, 7  ;;  %v1356_v17 = vmul.f32 %v12764_v12, %v1081_v8 }
 0x1a2   :  { %v13271_v3 = vsel %vm1782_vm1, %v16525_v11, %v16524_v48  ;;  %v1821_v55 = vsel %vm1782_vm1, %v1740_v63, %v1741_v31  ;;  %v1822_v20 = vsel %vm1782_vm1, %v1739_v33, %v1740_v63  ;;  %v1614_v2 = vmax.f32 %v1486_v28, 0.0 }
 0x1a3   :  { %16526 = vst [vmem:[#allocation60_spill] sm:$0xff] %v13271_v3  ;;  %v1998_v52 = vmax.f32 %v1611_v41, %v1822_v20  ;;  %v1999_v37 = vmax.f32 %v1612_v56, %v1821_v55  ;;  %v1743_v43 = vrot.slane %v1615_v59, 1  ;;  %v13287_v39 = vadd.f32 %v12770_v24, %v1357_v46  ;;  %v10381_v3 = vpop.f32.mrb[94].mxu0 }
 0x1a4   :  { %v1742_v11 = vrot.slane %v1614_v2, 1  ;;  %v1488_v35 = vadd.f32 %v12770_v24, %v1356_v17  ;;  %v13291_v1 = vld [vmem:[#allocation2 + $0x290] ss:$2 sm:$0xff]  ;;  %v13295_v33 = vsel %vm2550_vm3, %v2525_v29, %v2526_v62  ;;  %v1359_v56 = vmul.f32 %v12764_v12, %v10381_v3  ;;  %v1091_v63 = vpop.f32.mrb[95].mxu0 }
 0x1a5   :  { %16527 = vst [vmem:[#allocation61_spill] sm:$0xff] %v13295_v33  ;;  %2127 = vst.msk [vmem:[#allocation2 + $0x2b8] sm:$0xff] %vm2039_vm2, %v1998_v52  ;;  %v1617_v41 = vmax.f32 %v13287_v39, 0.0  ;;  %v2527_v46 = vrot.slane %v13291_v1, 7  ;;  %10495 = vmatmul.mubr.msk.f32.gmra.mrb[40].mxu1 %vm2039_vm2, %v13291_v1  ;;  %v1358_v20 = vmul.f32 %v12764_v12, %v1091_v63 }
 0x1a6   :  { %2128 = vst.msk [vmem:[#allocation2 + $0x2c0] sm:$0xff] %vm2039_vm2, %v1999_v37  ;;  %v1819_v29 = vsel %vm1782_vm1, %v1742_v11, %v1743_v43  ;;  %v1820_v8 = vsel %vm1782_vm1, %v1741_v31, %v1742_v11  ;;  %v1616_v55 = vmax.f32 %v1488_v35, 0.0  ;;  %v13311_v3 = vadd.f32 %v12770_v24, %v1359_v56  ;;  %v13340_v35 = vld [vmem:[%s16443_s8 + $0x1] ss:$0 sm:$0xff] }
 0x1a7   :  { %v2000_v17 = vmax.f32 %v1613_v36, %v1820_v8  ;;  %v2001_v52 = vmax.f32 %v1614_v2, %v1819_v29  ;;  %v1745_v37 = vrot.slane %v1617_v41, 1  ;;  %v1490_v48 = vadd.f32 %v12770_v24, %v1358_v20  ;;  %v10384_v33 = vpop.f32.mrb[96].mxu0  ;;  %v13315_v34 = vld [vmem:[#allocation2 + $0x2a0] ss:$2 sm:$0xff] }
 0x1a8   :  { %v1744_v28 = vrot.slane %v1616_v55, 1  ;;  %v13319_v31 = vsel %vm2550_vm3, %v2526_v62, %v2527_v46  ;;  %v1619_v36 = vmax.f32 %v13311_v3, 0.0  ;;  %v1361_v2 = vmul.f32 %v12764_v12, %v10384_v33  ;;  %v1101_v11 = vpop.f32.mrb[97].mxu0  ;;  %10497 = vmatprep.mubr.msk.f32.mxu1 %vm2039_vm2, %v13315_v34 }
 0x1a9   :  { %16528 = vst [vmem:[#allocation62_spill] sm:$0xff] %v13319_v31  ;;  %2129 = vst.msk [vmem:[#allocation2 + $0x2c8] sm:$0xff] %vm2039_vm2, %v2000_v17  ;;  %v2528_v56 = vrot.slane %v13315_v34, 7  ;;  %v1618_v29 = vmax.f32 %v1490_v48, 0.0  ;;  %v1360_v8 = vmul.f32 %v12764_v12, %v1101_v11 }
 0x1aa   :  { %2130 = vst.msk [vmem:[#allocation2 + $0x2d0] sm:$0xff] %vm2039_vm2, %v2001_v52  ;;  %v1817_v62 = vsel %vm1782_vm1, %v1744_v28, %v1745_v37  ;;  %v1818_v63 = vsel %vm1782_vm1, %v1743_v43, %v1744_v28  ;;  %v1747_v52 = vrot.slane %v1619_v36, 1  ;;  %v13335_v33 = vadd.f32 %v12770_v24, %v1361_v2 }
 0x1ab   :  { %v2002_v20 = vmax.f32 %v1615_v59, %v1818_v63  ;;  %v2003_v17 = vmax.f32 %v1616_v55, %v1817_v62  ;;  %v1746_v3 = vrot.slane %v1618_v29, 1  ;;  %v1492_v39 = vadd.f32 %v13340_v35, %v1360_v8  ;;  %v10387_v31 = vpop.f32.mrb[98].mxu0 }
 0x1ac   :  { %v13343_v10 = vld [vmem:[#allocation2 + $0x2b0] ss:$2 sm:$0xff]  ;;  %v13347_v12 = vsel %vm2550_vm3, %v2527_v46, %v2528_v56  ;;  %v16530_v59 = vrot.slane %v12726_v38, 1  ;;  %v16531_v24 = vrot.slane %v12699_v44, 1  ;;  %v1621_v28 = vmax.f32 %v13335_v33, 0.0  ;;  %v1111_v44 = vpop.f32.mrb[99].mxu0 }
 0x1ad   :  { %16529 = vst [vmem:[#allocation63_spill] sm:$0xff] %v13347_v12  ;;  %2131 = vst.msk [vmem:[#allocation2 + $0x2d8] sm:$0xff] %vm2039_vm2, %v2002_v20  ;;  %v13364_v46 = vld [vmem:[%s16443_s8] ss:$0 sm:$0xff]  ;;  %v2529_v2 = vrot.slane %v13343_v10, 7  ;;  %10498 = vmatmul.mubr.msk.f32.gmra.mrb[42].mxu1 %vm2039_vm2, %v13343_v10  ;;  %v1815_v11 = vsel %vm1782_vm1, %v1746_v3, %v1747_v52  ;;  %v1816_v62 = vsel %vm1782_vm1, %v1745_v37, %v1746_v3  ;;  %v1620_v63 = vmax.f32 %v1492_v39, 0.0 }
 0x1ae   :  { %v13355_v43 = vsel %vm1782_vm1, %v16531_v24, %v16530_v59  ;;  %2132 = vst.msk [vmem:[#allocation2 + $0x2e0] sm:$0xff] %vm2039_vm2, %v2003_v17  ;;  %v1363_v55 = vmul.f32 %v13364_v46, %v10387_v31  ;;  %v1362_v8 = vmul.f32 %v13364_v46, %v1111_v44  ;;  %v2004_v20 = vmax.f32 %v1617_v41, %v1816_v62 }
 0x1af   :  { %16532 = vst [vmem:[#allocation64_spill] sm:$0xff] %v13355_v43  ;;  %v2005_v17 = vmax.f32 %v1618_v29, %v1815_v11  ;;  %v1749_v33 = vrot.slane %v1621_v28, 1  ;;  %v1748_v59 = vrot.slane %v1620_v63, 1  ;;  %v10390_v48 = vpop.f32.mrb[100].mxu0  ;;  %v13383_v12 = vsel %vm2550_vm3, %v2528_v56, %v2529_v2 }
 0x1b0   :  { %v13376_v31 = vadd.f32 %v13340_v35, %v1363_v55  ;;  %v1494_v24 = vadd.f32 %v13340_v35, %v1362_v8  ;;  %v13379_v43 = vld [vmem:[#allocation2 + $0x2c0] ss:$2 sm:$0xff]  ;;  %16533 = vst [vmem:[#allocation65_spill] sm:$0xff] %v13383_v12  ;;  %v16534_v37 = vrot.slane %v12745_v42, 1  ;;  %v16535_v39 = vrot.slane %v12726_v38, 1  ;;  %2133 = vst.msk [vmem:[#allocation2 + $0x2e8] sm:$0xff] %vm2039_vm2, %v2004_v20 }
 0x1b1   :  { %2134 = vst.msk [vmem:[#allocation2 + $0x2f0] sm:$0xff] %vm2039_vm2, %v2005_v17  ;;  %v1365_v55 = vmul.f32 %v13364_v46, %v10390_v48  ;;  %v1121_v56 = vpop.f32.mrb[101].mxu0  ;;  %v2530_v44 = vrot.slane %v13379_v43, 7  ;;  %10500 = vmatprep.mubr.msk.f32.mxu1 %vm2039_vm2, %v13379_v43  ;;  %v1813_v38 = vsel %vm1782_vm1, %v1748_v59, %v1749_v33  ;;  %v1814_v11 = vsel %vm1782_vm1, %v1747_v52, %v1748_v59 }
 0x1b2   :  { %v13391_v41 = vsel %vm1782_vm1, %v16535_v39, %v16534_v37  ;;  %v1623_v3 = vmax.f32 %v13376_v31, 0.0  ;;  %v1622_v62 = vmax.f32 %v1494_v24, 0.0  ;;  %v1364_v8 = vmul.f32 %v13364_v46, %v1121_v56 }
 0x1b3   :  { %16536 = vst [vmem:[#allocation66_spill] sm:$0xff] %v13391_v41  ;;  %v2006_v20 = vmax.f32 %v1619_v36, %v1814_v11  ;;  %v2007_v17 = vmax.f32 %v1620_v63, %v1813_v38  ;;  %v13407_v48 = vadd.f32 %v13340_v35, %v1365_v55  ;;  %v10393_v29 = vpop.f32.mrb[102].mxu0  ;;  %v13414_v12 = vsel %vm2550_vm3, %v2529_v2, %v2530_v44 }
 0x1b4   :  { %v1751_v31 = vrot.slane %v1623_v3, 1  ;;  %v1750_v37 = vrot.slane %v1622_v62, 1  ;;  %v1496_v39 = vadd.f32 %v13340_v35, %v1364_v8  ;;  %v13410_v41 = vld [vmem:[#allocation2 + $0x2d0] ss:$2 sm:$0xff]  ;;  %16537 = vst [vmem:[#allocation67_spill] sm:$0xff] %v13414_v12  ;;  %v16538_v52 = vrot.slane %v12774_v21, 1 }
 0x1b5   :  { %v16539_v59 = vrot.slane %v12745_v42, 1  ;;  %2135 = vst.msk [vmem:[#allocation2 + $0x2f8] sm:$0xff] %vm2039_vm2, %v2006_v20  ;;  %2136 = vst.msk [vmem:[#allocation2 + $0x300] sm:$0xff] %vm2039_vm2, %v2007_v17  ;;  %v1625_v24 = vmax.f32 %v13407_v48, 0.0  ;;  %v1367_v55 = vmul.f32 %v13364_v46, %v10393_v29  ;;  %v1131_v2 = vpop.f32.mrb[103].mxu0  ;;  %v2531_v56 = vrot.slane %v13410_v41, 7  ;;  %10501 = vmatmul.mubr.msk.f32.gmra.mrb[44].mxu1 %vm2039_vm2, %v13410_v41 }
 0x1b6   :  { %v1811_v42 = vsel %vm1782_vm1, %v1750_v37, %v1751_v31  ;;  %v1812_v38 = vsel %vm1782_vm1, %v1749_v33, %v1750_v37  ;;  %v1624_v11 = vmax.f32 %v1496_v39, 0.0  ;;  %v1366_v8 = vmul.f32 %v13364_v46, %v1131_v2 }
 0x1b7   :  { %v13422_v36 = vsel %vm1782_vm1, %v16539_v59, %v16538_v52  ;;  %v2008_v20 = vmax.f32 %v1621_v28, %v1812_v38  ;;  %v2009_v17 = vmax.f32 %v1622_v62, %v1811_v42  ;;  %v1753_v48 = vrot.slane %v1625_v24, 1  ;;  %v10396_v63 = vpop.f32.mrb[104].mxu0 }
 0x1b8   :  { %16540 = vst [vmem:[#allocation68_spill] sm:$0xff] %v13422_v36  ;;  %v13438_v29 = vadd.f32 %v13340_v35, %v1367_v55  ;;  %v1752_v52 = vrot.slane %v1624_v11, 1  ;;  %v1498_v59 = vadd.f32 %v13340_v35, %v1366_v8  ;;  %v13441_v36 = vld [vmem:[#allocation2 + $0x2e0] ss:$2 sm:$0xff]  ;;  %v13445_v12 = vsel %vm2550_vm3, %v2530_v44, %v2531_v56  ;;  %v1141_v44 = vpop.f32.mrb[105].mxu0 }
 0x1b9   :  { %16541 = vst [vmem:[#allocation69_spill] sm:$0xff] %v13445_v12  ;;  %v16542_v33 = vrot.slane %v12793_v47, 1  ;;  %v16543_v37 = vrot.slane %v12774_v21, 1  ;;  %2137 = vst.msk [vmem:[#allocation2 + $0x308] sm:$0xff] %vm2039_vm2, %v2008_v20  ;;  %v1369_v55 = vmul.f32 %v13364_v46, %v10396_v63  ;;  %v2532_v2 = vrot.slane %v13441_v36, 7  ;;  %10503 = vmatprep.mubr.msk.f32.mxu1 %vm2039_vm2, %v13441_v36 }
 0x1ba   :  { %2138 = vst.msk [vmem:[#allocation2 + $0x310] sm:$0xff] %vm2039_vm2, %v2009_v17  ;;  %v1627_v39 = vmax.f32 %v13438_v29, 0.0  ;;  %v1809_v21 = vsel %vm1782_vm1, %v1752_v52, %v1753_v48  ;;  %v1810_v42 = vsel %vm1782_vm1, %v1751_v31, %v1752_v52  ;;  %v1626_v38 = vmax.f32 %v1498_v59, 0.0 }
 0x1bb   :  { %v13453_v28 = vsel %vm1782_vm1, %v16543_v37, %v16542_v33  ;;  %v1368_v8 = vmul.f32 %v13364_v46, %v1141_v44  ;;  %v2010_v20 = vmax.f32 %v1623_v3, %v1810_v42  ;;  %v2011_v17 = vmax.f32 %v1624_v11, %v1809_v21  ;;  %v10399_v62 = vpop.f32.mrb[106].mxu0 }
 0x1bc   :  { %16544 = vst [vmem:[#allocation70_spill] sm:$0xff] %v13453_v28  ;;  %v1755_v29 = vrot.slane %v1627_v39, 1  ;;  %v13469_v63 = vadd.f32 %v13340_v35, %v1369_v55  ;;  %v1754_v33 = vrot.slane %v1626_v38, 1  ;;  %v13472_v28 = vld [vmem:[#allocation2 + $0x2f0] ss:$2 sm:$0xff]  ;;  %v13476_v12 = vsel %vm2550_vm3, %v2531_v56, %v2532_v2  ;;  %v1151_v55 = vpop.f32.mrb[107].mxu0 }
 0x1bd   :  { %v1500_v37 = vadd.f32 %v13340_v35, %v1368_v8  ;;  %16545 = vst [vmem:[#allocation71_spill] sm:$0xff] %v13476_v12  ;;  %v16546_v31 = vrot.slane %v12815_v50, 1  ;;  %v16547_v52 = vrot.slane %v12793_v47, 1  ;;  %2139 = vst.msk [vmem:[#allocation2 + $0x318] sm:$0xff] %vm2039_vm2, %v2010_v20  ;;  %v1371_v59 = vmul.f32 %v13364_v46, %v10399_v62  ;;  %10504 = vmatmul.mubr.msk.f32.gmra.mrb[46].mxu1 %vm2039_vm2, %v13472_v28 }
 0x1be   :  { %2140 = vst.msk [vmem:[#allocation2 + $0x320] sm:$0xff] %vm2039_vm2, %v2011_v17  ;;  %v1629_v11 = vmax.f32 %v13469_v63, 0.0  ;;  %v2533_v56 = vrot.slane %v13472_v28, 7  ;;  %v1807_v44 = vsel %vm1782_vm1, %v1754_v33, %v1755_v29  ;;  %v1808_v21 = vsel %vm1782_vm1, %v1753_v48, %v1754_v33 }
 0x1bf   :  { %v13484_v3 = vsel %vm1782_vm1, %v16547_v52, %v16546_v31  ;;  %v1628_v42 = vmax.f32 %v1500_v37, 0.0  ;;  %v1370_v8 = vmul.f32 %v13364_v46, %v1151_v55  ;;  %v2012_v20 = vmax.f32 %v1625_v24, %v1808_v21 }
 0x1c0   :  { %16548 = vst [vmem:[#allocation72_spill] sm:$0xff] %v13484_v3  ;;  %v2013_v17 = vmax.f32 %v1626_v38, %v1807_v44  ;;  %v1757_v62 = vrot.slane %v1629_v11, 1  ;;  %v13500_v63 = vadd.f32 %v13340_v35, %v1371_v59  ;;  %v10402_v3 = vpop.f32.mrb[108].mxu0  ;;  %v13503_v47 = vld [vmem:[#allocation2 + $0x300] ss:$2 sm:$0xff]  ;;  %v13507_v12 = vsel %vm2550_vm3, %v2532_v2, %v2533_v56 }
 0x1c1   :  { %v1756_v31 = vrot.slane %v1628_v42, 1  ;;  %v1502_v52 = vadd.f32 %v13340_v35, %v1370_v8  ;;  %16549 = vst [vmem:[#allocation73_spill] sm:$0xff] %v13507_v12  ;;  %v16550_v48 = vrot.slane %v12836_v26, 1  ;;  %v16551_v33 = vrot.slane %v12815_v50, 1  ;;  %2141 = vst.msk [vmem:[#allocation2 + $0x328] sm:$0xff] %vm2039_vm2, %v2012_v20  ;;  %v1161_v2 = vpop.f32.mrb[109].mxu0  ;;  %10506 = vmatprep.mubr.msk.f32.mxu1 %vm2039_vm2, %v13503_v47 }
 0x1c2   :  { %2142 = vst.msk [vmem:[#allocation2 + $0x330] sm:$0xff] %vm2039_vm2, %v2013_v17  ;;  %v1631_v37 = vmax.f32 %v13500_v63, 0.0  ;;  %v1373_v59 = vmul.f32 %v13364_v46, %v10402_v3  ;;  %v2534_v55 = vrot.slane %v13503_v47, 7  ;;  %v1372_v8 = vmul.f32 %v13364_v46, %v1161_v2 }
 0x1c3   :  { %v13515_v24 = vsel %vm1782_vm1, %v16551_v33, %v16550_v48  ;;  %v1805_v50 = vsel %vm1782_vm1, %v1756_v31, %v1757_v62  ;;  %v1806_v44 = vsel %vm1782_vm1, %v1755_v29, %v1756_v31  ;;  %v1630_v21 = vmax.f32 %v1502_v52, 0.0  ;;  %v10405_v38 = vpop.f32.mrb[110].mxu0 }
 0x1c4   :  { %16552 = vst [vmem:[#allocation74_spill] sm:$0xff] %v13515_v24  ;;  %v2014_v20 = vmax.f32 %v1627_v39, %v1806_v44  ;;  %v2015_v17 = vmax.f32 %v1628_v42, %v1805_v50  ;;  %v1759_v63 = vrot.slane %v1631_v37, 1  ;;  %v13531_v3 = vadd.f32 %v13340_v35, %v1373_v59  ;;  %v13534_v24 = vld [vmem:[#allocation2 + $0x310] ss:$2 sm:$0xff] }
 0x1c5   :  { %v1758_v48 = vrot.slane %v1630_v21, 1  ;;  %v1504_v33 = vadd.f32 %v13340_v35, %v1372_v8  ;;  %v13538_v12 = vsel %vm2550_vm3, %v2533_v56, %v2534_v55  ;;  %v16554_v29 = vrot.slane %v12862_v32, 1  ;;  %v1171_v56 = vpop.f32.mrb[111].mxu0  ;;  %10507 = vmatmul.mubr.msk.f32.gmra.mrb[48].mxu1 %vm2039_vm2, %v13534_v24 }
 0x1c6   :  { %16553 = vst [vmem:[#allocation75_spill] sm:$0xff] %v13538_v12  ;;  %v16555_v31 = vrot.slane %v12836_v26, 1  ;;  %2143 = vst.msk [vmem:[#allocation2 + $0x338] sm:$0xff] %vm2039_vm2, %v2014_v20  ;;  %v1633_v52 = vmax.f32 %v13531_v3, 0.0  ;;  %v1375_v59 = vmul.f32 %v13364_v46, %v10405_v38  ;;  %v2535_v2 = vrot.slane %v13534_v24, 7 }
 0x1c7   :  { %2144 = vst.msk [vmem:[#allocation2 + $0x340] sm:$0xff] %vm2039_vm2, %v2015_v17  ;;  %v1803_v26 = vsel %vm1782_vm1, %v1758_v48, %v1759_v63  ;;  %v1804_v50 = vsel %vm1782_vm1, %v1757_v62, %v1758_v48  ;;  %v1632_v44 = vmax.f32 %v1504_v33, 0.0  ;;  %v1374_v8 = vmul.f32 %v13364_v46, %v1171_v56 }
 0x1c8   :  { %v13546_v39 = vsel %vm1782_vm1, %v16555_v31, %v16554_v29  ;;  %v2016_v20 = vmax.f32 %v1629_v11, %v1804_v50  ;;  %v2017_v17 = vmax.f32 %v1630_v21, %v1803_v26  ;;  %v1761_v3 = vrot.slane %v1633_v52, 1  ;;  %v13566_v12 = vld [vmem:[#allocation2 + $0x320] ss:$2 sm:$0xff] }
 0x1c9   :  { %16556 = vst [vmem:[#allocation76_spill] sm:$0xff] %v13546_v39  ;;  %v13562_v38 = vadd.f32 %v13340_v35, %v1375_v59  ;;  %v1760_v31 = vrot.slane %v1632_v44, 1  ;;  %v1506_v42 = vadd.f32 %v13340_v35, %v1374_v8  ;;  %v10408_v39 = vpop.f32.mrb[112].mxu0  ;;  %v13570_v62 = vsel %vm2550_vm3, %v2534_v55, %v2535_v2  ;;  %10509 = vmatprep.mubr.msk.f32.mxu1 %vm2039_vm2, %v13566_v12 }
 0x1ca   :  { %16557 = vst [vmem:[#allocation77_spill] sm:$0xff] %v13570_v62  ;;  %2145 = vst.msk [vmem:[#allocation2 + $0x348] sm:$0xff] %vm2039_vm2, %v2016_v20  ;;  %v1377_v21 = vmul.f32 %v13364_v46, %v10408_v39  ;;  %v1181_v33 = vpop.f32.mrb[113].mxu0  ;;  %v2536_v59 = vrot.slane %v13566_v12, 7 }
 0x1cb   :  { %2146 = vst.msk [vmem:[#allocation2 + $0x350] sm:$0xff] %vm2039_vm2, %v2017_v17  ;;  %v1635_v11 = vmax.f32 %v13562_v38, 0.0  ;;  %v1801_v55 = vsel %vm1782_vm1, %v1760_v31, %v1761_v3  ;;  %v1802_v56 = vsel %vm1782_vm1, %v1759_v63, %v1760_v31  ;;  %v1634_v26 = vmax.f32 %v1506_v42, 0.0  ;;  %v10411_v62 = vpop.f32.mrb[114].mxu0 }
 0x1cc   :  { %v1376_v50 = vmul.f32 %v13364_v46, %v1181_v33  ;;  %v2018_v8 = vmax.f32 %v1631_v37, %v1802_v56  ;;  %v2019_v20 = vmax.f32 %v1632_v44, %v1801_v55  ;;  %v13586_v39 = vadd.f32 %v13340_v35, %v1377_v21  ;;  %v1191_v31 = vpop.f32.mrb[115].mxu0 }
 0x1cd   :  { %v1763_v17 = vrot.slane %v1635_v11, 1  ;;  %v1762_v48 = vrot.slane %v1634_v26, 1  ;;  %v13590_v49 = vld [vmem:[#allocation2 + $0x330] ss:$2 sm:$0xff]  ;;  %v13594_v63 = vsel %vm2550_vm3, %v2535_v2, %v2536_v59  ;;  %v1379_v44 = vmul.f32 %v13364_v46, %v10411_v62 }
 0x1ce   :  { %v1508_v29 = vadd.f32 %v13340_v35, %v1376_v50  ;;  %16558 = vst [vmem:[#allocation78_spill] sm:$0xff] %v13594_v63  ;;  %2147 = vst.msk [vmem:[#allocation2 + $0x358] sm:$0xff] %vm2039_vm2, %v2018_v8  ;;  %v1637_v37 = vmax.f32 %v13586_v39, 0.0  ;;  %v2537_v21 = vrot.slane %v13590_v49, 7  ;;  %10510 = vmatmul.mubr.msk.f32.gmra.mrb[50].mxu1 %vm2039_vm2, %v13590_v49  ;;  %v1378_v56 = vmul.f32 %v13364_v46, %v1191_v31 }
 0x1cf   :  { %2148 = vst.msk [vmem:[#allocation2 + $0x360] sm:$0xff] %vm2039_vm2, %v2019_v20  ;;  %v1799_v2 = vsel %vm1782_vm1, %v1762_v48, %v1763_v17  ;;  %v1800_v33 = vsel %vm1782_vm1, %v1761_v3, %v1762_v48  ;;  %v13610_v62 = vadd.f32 %v13340_v35, %v1379_v44  ;;  %v10414_v63 = vpop.f32.mrb[116].mxu0 }
 0x1d0   :  { %v1636_v55 = vmax.f32 %v1508_v29, 0.0  ;;  %v2020_v50 = vmax.f32 %v1633_v52, %v1800_v33  ;;  %v2021_v8 = vmax.f32 %v1634_v26, %v1799_v2  ;;  %v1765_v20 = vrot.slane %v1637_v37, 1  ;;  %v1201_v26 = vpop.f32.mrb[117].mxu0 }
 0x1d1   :  { %v1510_v38 = vadd.f32 %v13340_v35, %v1378_v56  ;;  %v13614_v25 = vld [vmem:[#allocation2 + $0x340] ss:$2 sm:$0xff]  ;;  %v13618_v3 = vsel %vm2550_vm3, %v2536_v59, %v2537_v21  ;;  %v1639_v52 = vmax.f32 %v13610_v62, 0.0  ;;  %v1381_v48 = vmul.f32 %v13364_v46, %v10414_v63 }
 0x1d2   :  { %v1764_v42 = vrot.slane %v1636_v55, 1  ;;  %16559 = vst [vmem:[#allocation79_spill] sm:$0xff] %v13618_v3  ;;  %2149 = vst.msk [vmem:[#allocation2 + $0x368] sm:$0xff] %vm2039_vm2, %v2020_v50  ;;  %v2538_v44 = vrot.slane %v13614_v25, 7  ;;  %10512 = vmatprep.mubr.msk.f32.mxu1 %vm2039_vm2, %v13614_v25  ;;  %v1380_v33 = vmul.f32 %v13364_v46, %v1201_v26 }
 0x1d3   :  { %2150 = vst.msk [vmem:[#allocation2 + $0x370] sm:$0xff] %vm2039_vm2, %v2021_v8  ;;  %v1638_v2 = vmax.f32 %v1510_v38, 0.0  ;;  %v1767_v8 = vrot.slane %v1639_v52, 1  ;;  %v13634_v63 = vadd.f32 %v13340_v35, %v1381_v48  ;;  %v10417_v3 = vpop.f32.mrb[118].mxu0 }
 0x1d4   :  { %v1797_v59 = vsel %vm1782_vm1, %v1764_v42, %v1765_v20  ;;  %v1798_v31 = vsel %vm1782_vm1, %v1763_v17, %v1764_v42  ;;  %v1512_v39 = vadd.f32 %v13340_v35, %v1380_v33  ;;  %v13642_v17 = vsel %vm2550_vm3, %v2537_v21, %v2538_v44 }
 0x1d5   :  { %v2022_v56 = vmax.f32 %v1635_v11, %v1798_v31  ;;  %v2023_v50 = vmax.f32 %v1636_v55, %v1797_v59  ;;  %v1766_v29 = vrot.slane %v1638_v2, 1  ;;  %v13638_v4 = vld [vmem:[#allocation2 + $0x350] ss:$2 sm:$0xff]  ;;  %16560 = vst [vmem:[#allocation80_spill] sm:$0xff] %v13642_v17  ;;  %v1641_v11 = vmax.f32 %v13634_v63, 0.0  ;;  %v1211_v55 = vpop.f32.mrb[119].mxu0 }
 0x1d6   :  { %v1383_v42 = vmul.f32 %v13364_v46, %v10417_v3  ;;  %v2539_v48 = vrot.slane %v13638_v4, 7  ;;  %10513 = vmatmul.mubr.msk.f32.gmra.mrb[52].mxu1 %vm2039_vm2, %v13638_v4  ;;  %v1640_v59 = vmax.f32 %v1512_v39, 0.0  ;;  %v1382_v31 = vmul.f32 %v13364_v46, %v1211_v55 }
 0x1d7   :  { %2151 = vst.msk [vmem:[#allocation2 + $0x378] sm:$0xff] %vm2039_vm2, %v2022_v56  ;;  %2152 = vst.msk [vmem:[#allocation2 + $0x380] sm:$0xff] %vm2039_vm2, %v2023_v50  ;;  %v1795_v21 = vsel %vm1782_vm1, %v1766_v29, %v1767_v8  ;;  %v1796_v26 = vsel %vm1782_vm1, %v1765_v20, %v1766_v29  ;;  %v1769_v50 = vrot.slane %v1641_v11, 1  ;;  %v10420_v62 = vpop.f32.mrb[120].mxu0  ;;  %v16562_v20 = vrot.slane %v12887_v19, 1 }
 0x1d8   :  { %v2024_v33 = vmax.f32 %v1637_v37, %v1796_v26  ;;  %v2025_v56 = vmax.f32 %v1638_v2, %v1795_v21  ;;  %v13658_v3 = vadd.f32 %v13340_v35, %v1383_v42  ;;  %v1768_v63 = vrot.slane %v1640_v59, 1 }
 0x1d9   :  { %v1514_v38 = vadd.f32 %v13340_v35, %v1382_v31  ;;  %v13661_v17 = vld [vmem:[#allocation2 + $0x360] ss:$2 sm:$0xff]  ;;  %v13665_v45 = vsel %vm2550_vm3, %v2538_v44, %v2539_v48  ;;  %v16563_v39 = vrot.slane %v12862_v32, 1  ;;  %v1385_v42 = vmul.f32 %v13364_v46, %v10420_v62  ;;  %v1221_v44 = vpop.f32.mrb[121].mxu0 }
 0x1da   :  { %16561 = vst [vmem:[#allocation81_spill] sm:$0xff] %v13665_v45  ;;  %2153 = vst.msk [vmem:[#allocation2 + $0x388] sm:$0xff] %vm2039_vm2, %v2024_v33  ;;  %v1643_v2 = vmax.f32 %v13658_v3, 0.0  ;;  %v2540_v55 = vrot.slane %v13661_v17, 7  ;;  %10515 = vmatprep.mubr.msk.f32.mxu1 %vm2039_vm2, %v13661_v17  ;;  %v1793_v32 = vsel %vm1782_vm1, %v1768_v63, %v1769_v50  ;;  %v1794_v21 = vsel %vm1782_vm1, %v1767_v8, %v1768_v63 }
 0x1db   :  { %v13673_v37 = vsel %vm1782_vm1, %v16563_v39, %v16562_v20  ;;  %2154 = vst.msk [vmem:[#allocation2 + $0x390] sm:$0xff] %vm2039_vm2, %v2025_v56  ;;  %v1642_v26 = vmax.f32 %v1514_v38, 0.0  ;;  %v1384_v31 = vmul.f32 %v13364_v46, %v1221_v44  ;;  %v2026_v33 = vmax.f32 %v1639_v52, %v1794_v21 }
 0x1dc   :  { %16564 = vst [vmem:[#allocation82_spill] sm:$0xff] %v13673_v37  ;;  %v2027_v56 = vmax.f32 %v1640_v59, %v1793_v32  ;;  %v1771_v3 = vrot.slane %v1643_v2, 1  ;;  %v13689_v62 = vadd.f32 %v13340_v35, %v1385_v42  ;;  %v10423_v37 = vpop.f32.mrb[122].mxu0  ;;  %v13697_v8 = vsel %vm2550_vm3, %v2539_v48, %v2540_v55 }
 0x1dd   :  { %v1770_v39 = vrot.slane %v1642_v26, 1  ;;  %v1516_v29 = vadd.f32 %v13340_v35, %v1384_v31  ;;  %16565 = vst [vmem:[#allocation83_spill] sm:$0xff] %v13697_v8  ;;  %2155 = vst.msk [vmem:[#allocation2 + $0x398] sm:$0xff] %vm2039_vm2, %v2026_v33  ;;  %v1387_v59 = vmul.f32 %v13364_v46, %v10423_v37  ;;  %v1231_v63 = vpop.f32.mrb[123].mxu0 }
 0x1de   :  { %v13693_v45 = vld [vmem:[#allocation2 + $0x370] ss:$2 sm:$0xff]  ;;  %2156 = vst.msk [vmem:[#allocation2 + $0x3a0] sm:$0xff] %vm2039_vm2, %v2027_v56  ;;  %v1645_v52 = vmax.f32 %v13689_v62, 0.0  ;;  %v1386_v21 = vmul.f32 %v13364_v46, %v1231_v63 }
 0x1df   :  { %v2541_v42 = vrot.slane %v13693_v45, 7  ;;  %10516 = vmatmul.mubr.msk.f32.gmra.mrb[54].mxu1 %vm2039_vm2, %v13693_v45  ;;  %v1791_v48 = vsel %vm1782_vm1, %v1770_v39, %v1771_v3  ;;  %v1792_v44 = vsel %vm1782_vm1, %v1769_v50, %v1770_v39  ;;  %v1644_v32 = vmax.f32 %v1516_v29, 0.0  ;;  %v10426_v20 = vpop.f32.mrb[124].mxu0 }
 0x1e0   :  { %v2028_v31 = vmax.f32 %v1641_v11, %v1792_v44  ;;  %v2029_v33 = vmax.f32 %v1642_v26, %v1791_v48  ;;  %v1773_v56 = vrot.slane %v1645_v52, 1  ;;  %v1519_v37 = vadd.f32 %v13340_v35, %v1387_v59  ;;  %v1241_v63 = vpop.f32.mrb[125].mxu0 }
 0x1e1   :  { %v1772_v62 = vrot.slane %v1644_v32, 1  ;;  %v1518_v38 = vadd.f32 %v13340_v35, %v1386_v21  ;;  %v13714_v8 = vld [vmem:[#allocation2 + $0x380] ss:$2 sm:$0xff]  ;;  %v13718_v22 = vsel %vm2550_vm3, %v2540_v55, %v2541_v42  ;;  %v16567_v50 = vrot.slane %v12914_v7, 1 }
 0x1e2   :  { %16566 = vst [vmem:[#allocation84_spill] sm:$0xff] %v13718_v22  ;;  %v16568_v29 = vrot.slane %v12887_v19, 1  ;;  %2157 = vst.msk [vmem:[#allocation2 + $0x3a8] sm:$0xff] %vm2039_vm2, %v2028_v31  ;;  %v1647_v39 = vmax.f32 %v1519_v37, 0.0  ;;  %v1389_v59 = vmul.f32 %v13364_v46, %v10426_v20  ;;  %v2542_v55 = vrot.slane %v13714_v8, 7  ;;  %10518 = vmatprep.mubr.msk.f32.mxu1 %vm2039_vm2, %v13714_v8 }
 0x1e3   :  { %2158 = vst.msk [vmem:[#allocation2 + $0x3b0] sm:$0xff] %vm2039_vm2, %v2029_v33  ;;  %v1789_v19 = vsel %vm1782_vm1, %v1772_v62, %v1773_v56  ;;  %v1790_v48 = vsel %vm1782_vm1, %v1771_v3, %v1772_v62  ;;  %v1646_v44 = vmax.f32 %v1518_v38, 0.0  ;;  %v1388_v21 = vmul.f32 %v13364_v46, %v1241_v63  ;;  %v10429_v26 = vpop.f32.mrb[126].mxu0 }
 0x1e4   :  { %v13726_v11 = vsel %vm1782_vm1, %v16568_v29, %v16567_v50  ;;  %v2030_v31 = vmax.f32 %v1643_v2, %v1790_v48  ;;  %v2031_v33 = vmax.f32 %v1644_v32, %v1789_v19  ;;  %v1775_v37 = vrot.slane %v1647_v39, 1  ;;  %v1251_v63 = vpop.f32.mrb[127].mxu0 }
 0x1e5   :  { %16569 = vst [vmem:[#allocation85_spill] sm:$0xff] %v13726_v11  ;;  %v1521_v20 = vadd.f32 %v13340_v35, %v1389_v59  ;;  %v1774_v50 = vrot.slane %v1646_v44, 1  ;;  %v1520_v29 = vadd.f32 %v13340_v35, %v1388_v21  ;;  %v13742_v11 = vld [vmem:[#allocation2 + $0x390] ss:$2 sm:$0xff]  ;;  %v13746_v22 = vsel %vm2550_vm3, %v2541_v42, %v2542_v55 }
 0x1e6   :  { %16570 = vst [vmem:[#allocation86_spill] sm:$0xff] %v13746_v22  ;;  %v16571_v3 = vrot.slane %v12933_v40, 1  ;;  %v16572_v38 = vrot.slane %v12914_v7, 1  ;;  %2159 = vst.msk [vmem:[#allocation2 + $0x3b8] sm:$0xff] %vm2039_vm2, %v2030_v31  ;;  %v1391_v59 = vmul.f32 %v13364_v46, %v10429_v26  ;;  %v2543_v42 = vrot.slane %v13742_v11, 7  ;;  %10519 = vmatmul.mubr.msk.f32.gmra.mrb[56].mxu1 %vm2039_vm2, %v13742_v11 }
 0x1e7   :  { %2160 = vst.msk [vmem:[#allocation2 + $0x3c0] sm:$0xff] %vm2039_vm2, %v2031_v33  ;;  %v1649_v62 = vmax.f32 %v1521_v20, 0.0  ;;  %v1787_v7 = vsel %vm1782_vm1, %v1774_v50, %v1775_v37  ;;  %v1788_v19 = vsel %vm1782_vm1, %v1773_v56, %v1774_v50  ;;  %v1648_v48 = vmax.f32 %v1520_v29, 0.0 }
 0x1e8   :  { %v13754_v2 = vsel %vm1782_vm1, %v16572_v38, %v16571_v3  ;;  %v1390_v21 = vmul.f32 %v13364_v46, %v1251_v63  ;;  %v2032_v31 = vmax.f32 %v1645_v52, %v1788_v19  ;;  %v2033_v33 = vmax.f32 %v1646_v44, %v1787_v7 }
 0x1e9   :  { %16573 = vst [vmem:[#allocation87_spill] sm:$0xff] %v13754_v2  ;;  %v1777_v20 = vrot.slane %v1649_v62, 1  ;;  %v1523_v26 = vadd.f32 %v13340_v35, %v1391_v59  ;;  %v2917_v3 = vrot.slane %v13441_v36, 1  ;;  %v1776_v38 = vrot.slane %v1648_v48, 1  ;;  %v13771_v2 = vld [vmem:[#allocation2 + $0x3a0] ss:$2 sm:$0xff] }
 0x1ea   :  { %v1522_v32 = vadd.f32 %v13340_v35, %v1390_v21  ;;  %v13775_v22 = vsel %vm2550_vm3, %v2542_v55, %v2543_v42  ;;  %v2918_v56 = vrot.slane %v13472_v28, 1  ;;  %2161 = vst.msk [vmem:[#allocation2 + $0x3c8] sm:$0xff] %vm2039_vm2, %v2032_v31  ;;  %2162 = vst.msk [vmem:[#allocation2 + $0x3d0] sm:$0xff] %vm2039_vm2, %v2033_v33  ;;  %v2544_v52 = vrot.slane %v13771_v2, 7  ;;  %10521 = vmatprep.mubr.msk.f32.mxu1 %vm2039_vm2, %v13771_v2 }
 0x1eb   :  { %v1651_v46 = vmax.f32 %v1523_v26, 0.0  ;;  %v16574_v35 = vrot.slane %v12952_v60, 1  ;;  %v16575_v44 = vrot.slane %v12933_v40, 1  ;;  %v1785_v50 = vsel %vm1782_vm1, %v1776_v38, %v1777_v20 }
 0x1ec   :  { %v1786_v29 = vsel %vm1782_vm1, %v1775_v37, %v1776_v38  ;;  %v1650_v59 = vmax.f32 %v1522_v32, 0.0  ;;  %v16576_v63 = vrot.slane %v12972_v6, 1  ;;  %v2035_v21 = vmax.f32 %v1648_v48, %v1785_v50 }
 0x1ed   :  { %v13789_v55 = vsel %vm1782_vm1, %v16575_v44, %v16574_v35  ;;  %v16577_v7 = vmov %v16574_v35  ;;  %v2034_v40 = vmax.f32 %v1647_v39, %v1786_v29  ;;  %v1779_v31 = vrot.slane %v1651_v46, 1  ;;  %v13807_v35 = vld [vmem:[#allocation2 + $0x3b0] ss:$2 sm:$0xff] }
 0x1ee   :  { %v13801_v19 = vsel %vm1782_vm1, %v16577_v7, %v16576_v63  ;;  %v13805_v33 = vsel %vm2550_vm3, %v2543_v42, %v2544_v52  ;;  %v1778_v26 = vrot.slane %v1650_v59, 1  ;;  %v16578_v37 = vrot.slane %v12992_v58, 1  ;;  %2164 = vst.msk [vmem:[#allocation2 + $0x3e0] sm:$0xff] %vm2039_vm2, %v2035_v21  ;;  %10522 = vmatmul.mubr.msk.f32.gmra.mrb[58].mxu1 %vm2039_vm2, %v13807_v35 }
 0x1ef   :  { %v16579_v32 = vmov %v16576_v63  ;;  %v16580_v38 = vrot.slane %v13017_v0, 1  ;;  %v16582_v42 = vrot.slane %v13042_v16, 1  ;;  %v2919_v6 = vrot.slane %v13503_v47, 1  ;;  %2163 = vst.msk [vmem:[#allocation2 + $0x3d8] sm:$0xff] %vm2039_vm2, %v2034_v40 }
 0x1f0   :  { %v13815_v60 = vsel %vm1782_vm1, %v16579_v32, %v16578_v37  ;;  %v16581_v39 = vmov %v16578_v37  ;;  %v2920_v29 = vrot.slane %v13534_v24, 1  ;;  %v1910_v58 = vsel %vm1782_vm1, %v1779_v31, %v12210_v18 }
 0x1f1   :  { %v13823_v48 = vsel %vm1782_vm1, %v16581_v39, %v16580_v38  ;;  %v16583_v44 = vmov %v16580_v38  ;;  %v2545_v63 = vrot.slane %v13807_v35, 7  ;;  %v2038_v0 = vmax.f32 %v1651_v46, %v1910_v58 }
 0x1f2   :  { %v13831_v50 = vsel %vm1782_vm1, %v16583_v44, %v16582_v42  ;;  %v1783_v7 = vsel %vm1782_vm1, %v1778_v26, %v1779_v31  ;;  %v1784_v47 = vsel %vm1782_vm1, %v1777_v20, %v1778_v26  ;;  %v16584_v24 = vrot.slane %v13069_v51, 1  ;;  %v13861_v31 = vld [vmem:[#allocation2 + $0x3c0] ss:$2 sm:$0xff] }
 0x1f3   :  { %v16585_v40 = vmov %v16582_v42  ;;  %v2921_v18 = vrot.slane %v13566_v12, 1  ;;  %v2036_v37 = vmax.f32 %v1649_v62, %v1784_v47  ;;  %v2037_v32 = vmax.f32 %v1650_v59, %v1783_v7  ;;  %2167 = vst.msk [vmem:[#allocation2 + $0x3f8] sm:$0xff] %vm2039_vm2, %v2038_v0  ;;  %10524 = vmatprep.mubr.msk.f32.mxu1 %vm2039_vm2, %v13861_v31 }
 0x1f4   :  { %v13853_v21 = vsel %vm1782_vm1, %v16585_v40, %v16584_v24  ;;  %v13858_v46 = vsel %vm2550_vm3, %v2544_v52, %v2545_v63  ;;  %v16586_v20 = vrot.slane %v13088_v9, 1  ;;  %v16587_v16 = vmov %v16584_v24 }
 0x1f5   :  { %v16588_v12 = vrot.slane %v13112_v13, 1  ;;  %v16590_v59 = vrot.slane %v13132_v54, 1  ;;  %v16592_v51 = vrot.slane %v13159_v15, 1  ;;  %v2922_v9 = vrot.slane %v13590_v49, 1  ;;  %2165 = vst.msk [vmem:[#allocation2 + $0x3e8] sm:$0xff] %vm2039_vm2, %v2036_v37  ;;  %2166 = vst.msk [vmem:[#allocation2 + $0x3f0] sm:$0xff] %vm2039_vm2, %v2037_v32 }
 0x1f6   :  { %v13869_v26 = vsel %vm1782_vm1, %v16587_v16, %v16586_v20  ;;  %v16589_v62 = vmov %v16586_v20  ;;  %v2923_v58 = vrot.slane %v13614_v25, 1  ;;  %v2546_v13 = vrot.slane %v13861_v31, 7 }
 0x1f7   :  { %v13877_v52 = vsel %vm1782_vm1, %v16589_v62, %v16588_v12  ;;  %v16591_v38 = vmov %v16588_v12  ;;  %v16593_v42 = vmov %v16590_v59  ;;  %v16594_v0 = vand.u32 63, %v12192_v5 }
 0x1f8   :  { %v13885_v39 = vsel %vm1782_vm1, %v16591_v38, %v16590_v59  ;;  %v13893_v44 = vsel %vm1782_vm1, %v16593_v42, %v16592_v51  ;;  %v16597_v7 = vrot.slane %v13188_v27, 1  ;;  %v16598_v49 = vmov %v16592_v51  ;;  %v2290_v42 = vld [vmem:[#allocation2 + $0x3d0] ss:$2 sm:$0xff] }
 0x1f9   :  { %vm13904_vm4 = vcmp.eq.s32.totalorder %v16594_v0, 0  ;;  %v2924_v47 = vrot.slane %v13638_v4, 1  ;;  %v2925_v24 = vrot.slane %v13661_v17, 1  ;;  %v16599_v40 = vrot.slane %v13212_v53, 1  ;;  %10525 = vmatmul.mubr.msk.f32.gmra.mrb[60].mxu1 %vm2039_vm2, %v2290_v42 }
 0x1fa   :  { %v13914_v25 = vsel %vm1782_vm1, %v16598_v49, %v16597_v7  ;;  %v16600_v37 = vmov %v16597_v7  ;;  %v16601_v20 = vrot.slane %v13236_v30, 1  ;;  %v13936_v4 = vsel %vm2550_vm3, %v2545_v63, %v2546_v13 }
 0x1fb   :  { %v13924_v32 = vsel %vm1782_vm1, %v16600_v37, %v16599_v40  ;;  %v16602_v15 = vmov %v16599_v40  ;;  %v16603_v17 = vrot.slane %v13259_v14, 1  ;;  %v16605_v62 = vrot.slane %v13291_v1, 1 }
 0x1fc   :  { %v13932_v16 = vsel %vm1782_vm1, %v16602_v15, %v16601_v20  ;;  %v16604_v27 = vmov %v16601_v20  ;;  %v16607_v38 = vrot.slane %v13315_v34, 1  ;;  %v2926_v30 = vrot.slane %v13693_v45, 1 }
 0x1fd   :  { %v13944_v12 = vsel %vm1782_vm1, %v16604_v27, %v16603_v17  ;;  %v16606_v53 = vmov %v16603_v17  ;;  %v16608_v63 = vmov %v16605_v62  ;;  %v16609_v0 = vrot.slane %v13343_v10, 1 }
 0x1fe   :  { %v13952_v59 = vsel %vm1782_vm1, %v16606_v53, %v16605_v62  ;;  %v13960_v51 = vsel %vm1782_vm1, %v16608_v63, %v16607_v38  ;;  %v16610_v7 = vmov %v16607_v38  ;;  %v16611_v49 = vrot.slane %v13379_v43, 1  ;;  %v14031_v53 = vld [vmem:[#allocation2 + $0x3f0] ss:$2 sm:$0xff] }
 0x1ff   :  { %v13969_v14 = vsel %vm1782_vm1, %v16610_v7, %v16609_v0  ;;  %v16612_v40 = vmov %v16609_v0  ;;  %v16613_v37 = vrot.slane %v13410_v41, 1  ;;  %v2927_v34 = vrot.slane %v13714_v8, 1 }
 0x200   :  { %v13977_v1 = vsel %vm1782_vm1, %v16612_v40, %v16611_v49  ;;  %v16614_v45 = vmov %v16611_v49  ;;  %v2547_v15 = vrot.slane %v2290_v42, 7  ;;  %v14003_v43 = vsel %vm1782_vm1, %v2917_v3, %v2918_v56 }
 0x201   :  { %v13985_v20 = vsel %vm1782_vm1, %v16614_v45, %v16613_v37  ;;  %v16615_v10 = vmov %v16613_v37  ;;  %v2928_v8 = vrot.slane %v13742_v11, 1  ;;  %v2929_v27 = vrot.slane %v13771_v2, 1 }
 0x202   :  { %v13995_v17 = vsel %vm1782_vm1, %v16615_v10, %v2917_v3  ;;  %v14011_v41 = vsel %vm1782_vm1, %v2918_v56, %v2919_v6  ;;  %v14015_v62 = vsel %vm1782_vm1, %v2919_v6, %v2920_v29  ;;  %v2930_v36 = vrot.slane %v13807_v35, 1  ;;  %v2292_v56 = vld [vmem:[#allocation2 + $0x3e0] ss:$2 sm:$0xff]  ;;  %v16618_v10 = vld [vmem:[#allocation9_spill] sm:$0xff] }
 0x203   :  { %v14020_v3 = vsel %vm2550_vm3, %v2546_v13, %v2547_v15  ;;  %v14024_v11 = vsel %vm1782_vm1, %v2920_v29, %v2921_v18  ;;  %v14028_v28 = vsel %vm1782_vm1, %v2921_v18, %v2922_v9  ;;  %v2931_v2 = vrot.slane %v13861_v31, 1  ;;  %10527 = vmatprep.mubr.msk.f32.mxu1 %vm2039_vm2, %v2292_v56 }
 0x204   :  { %v14035_v35 = vsel %vm1782_vm1, %v2922_v9, %v2923_v58  ;;  %v14039_v6 = vsel %vm1782_vm1, %v2923_v58, %v2924_v47  ;;  %v14043_v29 = vsel %vm1782_vm1, %v2924_v47, %v2925_v24  ;;  %v2932_v13 = vrot.slane %v2290_v42, 1  ;;  %10528 = vmatmul.mubr.msk.f32.gmra.mrb[62].mxu1 %vm2039_vm2, %v14031_v53 }
 0x205   :  { %v2548_v18 = vrot.slane %v2292_v56, 7  ;;  %v2933_v38 = vrot.slane %v2292_v56, 1  ;;  %v2549_v31 = vrot.slane %v14031_v53, 7  ;;  %v2934_v63 = vrot.slane %v14031_v53, 1 }
 0x206   :  { %v14052_v9 = vsel %vm1782_vm1, %v2925_v24, %v2926_v30  ;;  %v14056_v58 = vsel %vm1782_vm1, %v2926_v30, %v2927_v34  ;;  %v16616_v47 = vrot.slane %v12286_v23, 7  ;;  %v14074_v30 = vsel %vm1782_vm1, %v2927_v34, %v2928_v8  ;;  %v16617_v34 = vld [vmem:[#allocation8_spill] sm:$0xff] }
 0x207   :  { %v14064_v0 = vsel %vm2550_vm3, %v2547_v15, %v2548_v18  ;;  %v14068_v7 = vsel %vm2550_vm3, %v2548_v18, %v2549_v31  ;;  %v14078_v23 = vsel %vm1782_vm1, %v2928_v8, %v2929_v27  ;;  %v14083_v49 = vsel %vm1782_vm1, %v2929_v27, %v2930_v36  ;;  %v16619_v8 = vld [vmem:[#allocation10_spill] sm:$0xff]  ;;  %v16620_v27 = vld [vmem:[#allocation11_spill] sm:$0xff] }
 0x208   :  { %v2614_v42 = vsel %vm2550_vm3, %v2549_v31, %v16616_v47  ;;  %v14087_v40 = vsel %vm1782_vm1, %v2930_v36, %v2931_v2  ;;  %v14091_v54 = vsel %vm1782_vm1, %v2931_v2, %v2932_v13  ;;  %v14095_v37 = vsel %vm1782_vm1, %v2932_v13, %v2933_v38  ;;  %v16621_v36 = vld [vmem:[#allocation13_spill] sm:$0xff]  ;;  %v16624_v13 = vld [vmem:[#allocation18_spill] sm:$0xff]  ;;  %v16625_v18 = vld [vmem:[#allocation19_spill] sm:$0xff] }
 0x209   :  { %v2743_v24 = vsel %vm13904_vm4, 0.0, %v2614_v42  ;;  %v14103_v45 = vsel %vm1782_vm1, %v2933_v38, %v2934_v63  ;;  %v14109_v15 = vadd.s32 64, %v12192_v5  ;;  %v16623_v2 = vld [vmem:[#allocation17_spill] sm:$0xff]  ;;  %v14129_v38 = vadd.s32 128, %v12192_v5  ;;  %v16627_v31 = vld [vmem:[#allocation20_spill] sm:$0xff] }
 0x20a   :  { %10534 = vmatprep.mubr.msk.f32.mxu1 %vm2039_vm2, %v2743_v24  ;;  %v16628_v47 = vld [vmem:[#allocation21_spill] sm:$0xff]  ;;  %v16629_v24 = vld [vmem:[#allocation23_spill] sm:$0xff] }
 0x20b   :  { %10535 = vmatmul.mubr.msk.f32.vlgmr.msra.gmra.mrb[0].mxu1 %vm2039_vm2, %v12347_v61  ;;  %v2366_v61 = vand.u32 63, %v14109_v15  ;;  %16626 = vst [vmem:[#allocation8_spill] sm:$0xff] %v14129_v38  ;;  %v2374_v42 = vand.u32 63, %v14129_v38 }
 0x20c   :  { %11221 = vmatpush3.bf16.msra.mxu1 %v13071_v57  ;;  %10537 = vmatprep.mubr.msk.f32.mxu1 %vm2039_vm2, %v16617_v34  ;;  %v16622_v57 = vld [vmem:[#allocation15_spill] sm:$0xff]  ;;  %v16630_v34 = vld [vmem:[#allocation25_spill] sm:$0xff] }
 0x20d   :  { %vm2430_vm5 = vcmp.eq.s32.totalorder %v2366_v61, 0  ;;  %vm2438_vm6 = vcmp.eq.s32.totalorder %v2374_v42, 0  ;;  %v9382_v42 = vld [vmem:[%s16444_s3 + $0x28] sm:$0xff] }
 0x20e   :  { %v2751_v56 = vsel %vm2430_vm5, 0.0, %v16623_v2  ;;  %v16636_v2 = vld [vmem:[#allocation32_spill] sm:$0xff] }
 0x20f   :  { %10538 = vmatmul.mubr.msk.f32.gmra.mrb[2].mxu1 %vm2039_vm2, %v16618_v10  ;;  %v16631_v10 = vld [vmem:[#allocation27_spill] sm:$0xff] }
 0x210   :  { %10540 = vmatprep.mubr.msk.f32.mxu1 %vm2039_vm2, %v16619_v8  ;;  %v16632_v8 = vld [vmem:[#allocation29_spill] sm:$0xff] }
 0x211   :  { %v2759_v61 = vsel %vm2438_vm6, 0.0, %v16632_v8 }
 0x213   :  { %10541 = vmatmul.mubr.msk.f32.gmra.mrb[4].mxu1 %vm2039_vm2, %v16620_v27  ;;  %v16633_v27 = vld [vmem:[#allocation30_spill] sm:$0xff] }
 0x214   :  { %10543 = vmatprep.mubr.msk.f32.mxu1 %vm2039_vm2, %v16621_v36  ;;  %v16634_v36 = vld [vmem:[#allocation31_spill] sm:$0xff] }
 0x217   :  { %10544 = vmatmul.mubr.msk.f32.gmra.mrb[6].mxu1 %vm2039_vm2, %v16622_v57  ;;  %v14149_v57 = vadd.s32 192, %v12192_v5 }
 0x218   :  { %10546 = vmatprep.mubr.msk.f32.mxu1 %vm2039_vm2, %v2751_v56  ;;  %v16637_v56 = vld [vmem:[#allocation33_spill] sm:$0xff] }
 0x219   :  { %16635 = vst [vmem:[#allocation9_spill] sm:$0xff] %v14149_v57 }
 0x21b   :  { %10547 = vmatmul.mubr.msk.f32.gmra.mrb[8].mxu1 %vm2039_vm2, %v16624_v13  ;;  %v2382_v13 = vand.u32 63, %v14149_v57 }
 0x21c   :  { %10549 = vmatprep.mubr.msk.f32.mxu1 %vm2039_vm2, %v16625_v18  ;;  %v16638_v18 = vld [vmem:[#allocation34_spill] sm:$0xff] }
 0x21d   :  { %vm2446_vm7 = vcmp.eq.s32.totalorder %v2382_v13, 0 }
 0x21f   :  { %10550 = vmatmul.mubr.msk.f32.gmra.mrb[10].mxu1 %vm2039_vm2, %v16627_v31  ;;  %v16639_v31 = vld [vmem:[#allocation36_spill] sm:$0xff] }
 0x220   :  { %10552 = vmatprep.mubr.msk.f32.mxu1 %vm2039_vm2, %v16628_v47  ;;  %v9381_v47 = vld [vmem:[%s16444_s3 + $0x20] sm:$0xff] }
 0x223   :  { %10553 = vmatmul.mubr.msk.f32.gmra.mrb[12].mxu1 %vm2039_vm2, %v16629_v24  ;;  %v11222_v24 = vpack.c.bf16 %v9382_v42, %v9381_v47  ;;  %v16648_v47 = vld [vmem:[#allocation49_spill] sm:$0xff]  ;;  %v16649_v42 = vld [vmem:[#allocation50_spill] sm:$0xff] }
 0x224   :  { %10555 = vmatprep.mubr.msk.f32.mxu1 %vm2039_vm2, %v16630_v34  ;;  %v16640_v34 = vld [vmem:[#allocation38_spill] sm:$0xff] }
 0x225   :  { %11223 = vmatprep.subr.bf16.mxu0 %v11222_v24 }
 0x226   :  { %11225 = vmatpush3.bf16.msra.mxu0 %v11222_v24 }
 0x227   :  { %10556 = vmatmul.mubr.msk.f32.gmra.mrb[14].mxu1 %vm2039_vm2, %v16631_v10  ;;  %v16641_v10 = vld [vmem:[#allocation40_spill] sm:$0xff] }
 0x228   :  { %10558 = vmatprep.mubr.msk.f32.mxu1 %vm2039_vm2, %v2759_v61  ;;  %v2767_v8 = vsel %vm2446_vm7, 0.0, %v16641_v10  ;;  %v16642_v61 = vld [vmem:[#allocation41_spill] sm:$0xff]  ;;  %v16651_v10 = vld [vmem:[#allocation52_spill] sm:$0xff] }
 0x22b   :  { %10559 = vmatmul.mubr.msk.f32.gmra.mrb[16].mxu1 %vm2039_vm2, %v16633_v27  ;;  %v16643_v27 = vld [vmem:[#allocation42_spill] sm:$0xff] }
 0x22c   :  { %10561 = vmatprep.mubr.msk.f32.mxu1 %vm2039_vm2, %v16634_v36  ;;  %v2326_v36 = vadd.s32 256, %v12192_v5 }
 0x22e   :  { %v2390_v13 = vand.u32 63, %v2326_v36 }
 0x22f   :  { %10562 = vmatmul.mubr.msk.f32.gmra.mrb[18].mxu1 %vm2039_vm2, %v16636_v2  ;;  %v16644_v2 = vld [vmem:[#allocation43_spill] sm:$0xff] }
 0x230   :  { %10564 = vmatprep.mubr.msk.f32.mxu1 %vm2039_vm2, %v16637_v56  ;;  %v16645_v56 = vld [vmem:[#allocation44_spill] sm:$0xff]  ;;  %vm2454_vm8 = vcmp.eq.s32.totalorder %v2390_v13, 0  ;;  %v16656_v13 = vld [vmem:[#allocation59_spill] sm:$0xff] }
 0x231   :  { %v2775_v24 = vsel %vm2454_vm8, 0.0, %v16649_v42  ;;  %v16659_v42 = vld [vmem:[#allocation63_spill] sm:$0xff] }
 0x233   :  { %10565 = vmatmul.mubr.msk.f32.gmra.mrb[20].mxu1 %vm2039_vm2, %v16638_v18  ;;  %v16646_v18 = vld [vmem:[#allocation46_spill] sm:$0xff] }
 0x234   :  { %10567 = vmatprep.mubr.msk.f32.mxu1 %vm2039_vm2, %v16639_v31  ;;  %v16647_v31 = vld [vmem:[#allocation48_spill] sm:$0xff] }
 0x237   :  { %10568 = vmatmul.mubr.msk.f32.gmra.mrb[22].mxu1 %vm2039_vm2, %v16640_v34  ;;  %v16650_v34 = vld [vmem:[#allocation51_spill] sm:$0xff] }
 0x238   :  { %10570 = vmatprep.mubr.msk.f32.mxu1 %vm2039_vm2, %v2767_v8  ;;  %v2334_v8 = vadd.s32 320, %v12192_v5 }
 0x23a   :  { %v2398_v36 = vand.u32 63, %v2334_v8 }
 0x23b   :  { %10571 = vmatmul.mubr.msk.f32.gmra.mrb[24].mxu1 %vm2039_vm2, %v16642_v61  ;;  %v16652_v61 = vld [vmem:[#allocation54_spill] sm:$0xff] }
 0x23c   :  { %10573 = vmatprep.mubr.msk.f32.mxu1 %vm2039_vm2, %v16643_v27  ;;  %v16653_v27 = vld [vmem:[#allocation56_spill] sm:$0xff]  ;;  %vm2462_vm9 = vcmp.eq.s32.totalorder %v2398_v36, 0  ;;  %v16664_v36 = vld [vmem:[#allocation73_spill] sm:$0xff] }
 0x23f   :  { %10574 = vmatmul.mubr.msk.f32.gmra.mrb[26].mxu1 %vm2039_vm2, %v16644_v2  ;;  %v16654_v2 = vld [vmem:[#allocation57_spill] sm:$0xff] }
 0x240   :  { %10576 = vmatprep.mubr.msk.f32.mxu1 %vm2039_vm2, %v16645_v56  ;;  %v16655_v56 = vld [vmem:[#allocation58_spill] sm:$0xff] }
 0x243   :  { %10577 = vmatmul.mubr.msk.f32.gmra.mrb[28].mxu1 %vm2039_vm2, %v16646_v18  ;;  %v16657_v18 = vld [vmem:[#allocation61_spill] sm:$0xff] }
 0x244   :  { %10579 = vmatprep.mubr.msk.f32.mxu1 %vm2039_vm2, %v16647_v31  ;;  %v2783_v31 = vsel %vm2462_vm9, 0.0, %v16657_v18  ;;  %v16667_v18 = vld [vmem:[#allocation78_spill] sm:$0xff] }
 0x247   :  { %10580 = vmatmul.mubr.msk.f32.gmra.mrb[30].mxu1 %vm2039_vm2, %v16648_v47  ;;  %v16658_v47 = vld [vmem:[#allocation62_spill] sm:$0xff] }
 0x248   :  { %10582 = vmatprep.mubr.msk.f32.mxu1 %vm2039_vm2, %v2775_v24  ;;  %v2342_v24 = vadd.s32 384, %v12192_v5 }
 0x24a   :  { %v2406_v8 = vand.u32 63, %v2342_v24 }
 0x24b   :  { %10583 = vmatmul.mubr.msk.f32.gmra.mrb[32].mxu1 %vm2039_vm2, %v16650_v34  ;;  %v16660_v34 = vld [vmem:[#allocation65_spill] sm:$0xff] }
 0x24c   :  { %10585 = vmatprep.mubr.msk.f32.mxu1 %vm2039_vm2, %v16651_v10  ;;  %v16661_v10 = vld [vmem:[#allocation67_spill] sm:$0xff]  ;;  %vm2470_vm10 = vcmp.eq.s32.totalorder %v2406_v8, 0  ;;  %v16672_v8 = vld [vmem:[#allocation84_spill] sm:$0xff] }
 0x24f   :  { %10586 = vmatmul.mubr.msk.f32.gmra.mrb[34].mxu1 %vm2039_vm2, %v16652_v61  ;;  %v16662_v61 = vld [vmem:[#allocation69_spill] sm:$0xff] }
 0x250   :  { %10588 = vmatprep.mubr.msk.f32.mxu1 %vm2039_vm2, %v16653_v27  ;;  %v16663_v27 = vld [vmem:[#allocation71_spill] sm:$0xff] }
 0x253   :  { %10589 = vmatmul.mubr.msk.f32.gmra.mrb[36].mxu1 %vm2039_vm2, %v16654_v2  ;;  %v16665_v2 = vld [vmem:[#allocation75_spill] sm:$0xff] }
 0x254   :  { %10591 = vmatprep.mubr.msk.f32.mxu1 %vm2039_vm2, %v16655_v56  ;;  %v2791_v56 = vsel %vm2470_vm10, 0.0, %v16665_v2 }
 0x257   :  { %10592 = vmatmul.mubr.msk.f32.gmra.mrb[38].mxu1 %vm2039_vm2, %v16656_v13  ;;  %v16666_v13 = vld [vmem:[#allocation77_spill] sm:$0xff] }
 0x258   :  { %10594 = vmatprep.mubr.msk.f32.mxu1 %vm2039_vm2, %v2783_v31  ;;  %v2350_v31 = vadd.s32 448, %v12192_v5 }
 0x25a   :  { %v2414_v24 = vand.u32 63, %v2350_v31 }
 0x25b   :  { %10595 = vmatmul.mubr.msk.f32.gmra.mrb[40].mxu1 %vm2039_vm2, %v16658_v47  ;;  %v16668_v47 = vld [vmem:[#allocation79_spill] sm:$0xff] }
 0x25c   :  { %10597 = vmatprep.mubr.msk.f32.mxu1 %vm2039_vm2, %v16659_v42  ;;  %v16669_v42 = vld [vmem:[#allocation80_spill] sm:$0xff]  ;;  %vm2478_vm11 = vcmp.eq.s32.totalorder %v2414_v24, 0  ;;  %v16682_v24 = vld [vmem:[#allocation26_spill] sm:$0xff] }
 0x25f   :  { %10598 = vmatmul.mubr.msk.f32.gmra.mrb[42].mxu1 %vm2039_vm2, %v16660_v34  ;;  %v16670_v34 = vld [vmem:[#allocation81_spill] sm:$0xff] }
 0x260   :  { %10600 = vmatprep.mubr.msk.f32.mxu1 %vm2039_vm2, %v16661_v10  ;;  %v16671_v10 = vld [vmem:[#allocation83_spill] sm:$0xff] }
 0x263   :  { %10601 = vmatmul.mubr.msk.f32.gmra.mrb[44].mxu1 %vm2039_vm2, %v16662_v61  ;;  %v16673_v61 = vld [vmem:[#allocation86_spill] sm:$0xff] }
 0x264   :  { %10603 = vmatprep.mubr.msk.f32.mxu1 %vm2039_vm2, %v16663_v27  ;;  %v2799_v27 = vsel %vm2478_vm11, 0.0, %v16673_v61  ;;  %v16685_v61 = vld [vmem:[#allocation37_spill] sm:$0xff] }
 0x267   :  { %10604 = vmatmul.mubr.msk.f32.gmra.mrb[46].mxu1 %vm2039_vm2, %v16664_v36  ;;  %v14250_v36 = vld [vmem:[#allocation2] ss:$2 sm:$0xff] }
 0x268   :  { %10606 = vmatprep.mubr.msk.f32.mxu1 %vm2039_vm2, %v2791_v56  ;;  %v2871_v2 = vrot.slane %v14250_v36, 1  ;;  %v14271_v56 = vadd.s32 56, %v12192_v5 }
 0x26a   :  { %16677 = vst [vmem:[#allocation10_spill] sm:$0xff] %v14271_v56  ;;  %v2365_v31 = vand.u32 63, %v14271_v56 }
 0x26b   :  { %10607 = vmatmul.mubr.msk.f32.gmra.mrb[48].mxu1 %vm2039_vm2, %v16666_v13  ;;  %v16678_v13 = vld [vmem:[#allocation14_spill] sm:$0xff] }
 0x26c   :  { %10609 = vmatprep.mubr.msk.f32.mxu1 %vm2039_vm2, %v16667_v18  ;;  %v16679_v18 = vld [vmem:[#allocation16_spill] sm:$0xff]  ;;  %vm2814_vm12 = vcmp.eq.s32.totalorder %v2365_v31, 63  ;;  %v16694_v31 = vld [vmem:[#allocation66_spill] sm:$0xff] }
 0x26f   :  { %10610 = vmatmul.mubr.msk.f32.gmra.mrb[50].mxu1 %vm2039_vm2, %v16668_v47  ;;  %v16680_v47 = vld [vmem:[#allocation22_spill] sm:$0xff] }
 0x270   :  { %10612 = vmatprep.mubr.msk.f32.mxu1 %vm2039_vm2, %v16669_v42  ;;  %v16681_v42 = vld [vmem:[#allocation24_spill] sm:$0xff] }
 0x273   :  { %10613 = vmatmul.mubr.msk.f32.gmra.mrb[52].mxu1 %vm2039_vm2, %v16670_v34  ;;  %v16683_v34 = vld [vmem:[#allocation28_spill] sm:$0xff] }
 0x274   :  { %10615 = vmatprep.mubr.msk.f32.mxu1 %vm2039_vm2, %v16671_v10  ;;  %v3134_v10 = vsel %vm2814_vm12, 0.0, %v16683_v34 }
 0x277   :  { %10616 = vmatmul.mubr.msk.f32.gmra.mrb[54].mxu1 %vm2039_vm2, %v16672_v8  ;;  %v16684_v8 = vld [vmem:[#allocation35_spill] sm:$0xff] }
 0x278   :  { %10618 = vmatprep.mubr.msk.f32.mxu1 %vm2039_vm2, %v2799_v27  ;;  %v14291_v27 = vadd.s32 120, %v12192_v5 }
 0x27a   :  { %16686 = vst [vmem:[#allocation11_spill] sm:$0xff] %v14291_v27 }
 0x27b   :  { %10619 = vmatmul.mubr.msk.f32.gmra.mrb[56].mxu1 %vm2039_vm2, %v13775_v22  ;;  %v16674_v22 = vld [vmem:[#allocation7_spill] sm:$0xff] }
 0x27c   :  { %10621 = vmatprep.mubr.msk.f32.mxu1 %vm2039_vm2, %v13805_v33  ;;  %v16675_v33 = vrot.slane %v16674_v22, 1  ;;  %v16687_v22 = vld [vmem:[#allocation39_spill] sm:$0xff] }
 0x27f   :  { %10622 = vmatmul.mubr.msk.f32.gmra.mrb[58].mxu1 %vm2039_vm2, %v13858_v46  ;;  %v2997_v46 = vsel %vm1782_vm1, %v2871_v2, %v16675_v33  ;;  %v16688_v33 = vld [vmem:[#allocation45_spill] sm:$0xff] }
 0x280   :  { %10624 = vmatprep.mubr.msk.f32.mxu1 %vm2039_vm2, %v13936_v4  ;;  %v9383_v4 = vld [vmem:[%s16444_s3 + $0x30] sm:$0xff] }
 0x283   :  { %10625 = vmatmul.mubr.msk.f32.gmra.mrb[60].mxu1 %vm2039_vm2, %v14020_v3  ;;  %v9384_v3 = vld [vmem:[%s16444_s3 + $0x38] sm:$0xff] }
 0x284   :  { %10627 = vmatprep.mubr.msk.f32.mxu1 %vm2039_vm2, %v14064_v0  ;;  %v11226_v0 = vpack.c.bf16 %v9384_v3, %v9383_v4  ;;  %v16689_v4 = vld [vmem:[#allocation47_spill] sm:$0xff]  ;;  %v16690_v3 = vld [vmem:[#allocation53_spill] sm:$0xff] }
 0x286   :  { %11227 = vmatprep.subr.bf16.mxu0 %v11226_v0 }
 0x287   :  { %10628 = vmatmul.mubr.msk.f32.gmra.mrb[62].mxu1 %vm2039_vm2, %v14068_v7  ;;  %v16676_v7 = vld [vmem:[#allocation12_spill] sm:$0xff]  ;;  %11229 = vmatpush3.bf16.msra.mxu0 %v11226_v0  ;;  %v16691_v0 = vld [vmem:[#allocation55_spill] sm:$0xff] }
 0x288   :  { %10634 = vmatprep.mubr.msk.f32.mxu1 %vm2039_vm2, %v2997_v46  ;;  %v2373_v46 = vand.u32 63, %v14291_v27 }
 0x28a   :  { %vm2822_vm13 = vcmp.eq.s32.totalorder %v2373_v46, 63  ;;  %v16702_v46 = vld [vmem:[#allocation85_spill] sm:$0xff] }
 0x28b   :  { %10635 = vmatmul.mubr.msk.f32.vlgmr.msra.gmra.mrb[0].mxu1 %vm2039_vm2, %v16676_v7  ;;  %v16692_v7 = vld [vmem:[#allocation60_spill] sm:$0xff] }
 0x28c   :  { %10637 = vmatprep.mubr.msk.f32.mxu1 %vm2039_vm2, %v16678_v13  ;;  %v3142_v13 = vsel %vm2822_vm13, 0.0, %v16692_v7 }
 0x28f   :  { %10638 = vmatmul.mubr.msk.f32.gmra.mrb[2].mxu1 %vm2039_vm2, %v16679_v18  ;;  %v16693_v18 = vld [vmem:[#allocation64_spill] sm:$0xff] }
 0x290   :  { %10640 = vmatprep.mubr.msk.f32.mxu1 %vm2039_vm2, %v16680_v47  ;;  %v14311_v47 = vadd.s32 184, %v12192_v5 }
 0x292   :  { %16695 = vst [vmem:[#allocation13_spill] sm:$0xff] %v14311_v47  ;;  %v2381_v34 = vand.u32 63, %v14311_v47 }
 0x293   :  { %10641 = vmatmul.mubr.msk.f32.gmra.mrb[4].mxu1 %vm2039_vm2, %v16681_v42  ;;  %v16696_v42 = vld [vmem:[#allocation68_spill] sm:$0xff] }
 0x294   :  { %10643 = vmatprep.mubr.msk.f32.mxu1 %vm2039_vm2, %v16682_v24  ;;  %v16697_v24 = vld [vmem:[#allocation70_spill] sm:$0xff]  ;;  %vm2830_vm14 = vcmp.eq.s32.totalorder %v2381_v34, 63 }
 0x297   :  { %10644 = vmatmul.mubr.msk.f32.gmra.mrb[6].mxu1 %vm2039_vm2, %v3134_v10  ;;  %v16698_v10 = vld [vmem:[#allocation72_spill] sm:$0xff] }
 0x298   :  { %10646 = vmatprep.mubr.msk.f32.mxu1 %vm2039_vm2, %v16684_v8  ;;  %v16699_v8 = vld [vmem:[#allocation74_spill] sm:$0xff] }
 0x29b   :  { %10647 = vmatmul.mubr.msk.f32.gmra.mrb[8].mxu1 %vm2039_vm2, %v16685_v61  ;;  %v16700_v61 = vld [vmem:[#allocation76_spill] sm:$0xff] }
 0x29c   :  { %10649 = vmatprep.mubr.msk.f32.mxu1 %vm2039_vm2, %v16687_v22  ;;  %v16701_v22 = vld [vmem:[#allocation82_spill] sm:$0xff] }
 0x29f   :  { %10650 = vmatmul.mubr.msk.f32.gmra.mrb[10].mxu1 %vm2039_vm2, %v16688_v33  ;;  %v3150_v33 = vsel %vm2830_vm14, 0.0, %v16701_v22 }
 0x2a0   :  { %10652 = vmatprep.mubr.msk.f32.mxu1 %vm2039_vm2, %v16689_v4  ;;  %v16703_v4 = vld [vmem:[#allocation87_spill] sm:$0xff] }
 0x2a3   :  { %10653 = vmatmul.mubr.msk.f32.gmra.mrb[12].mxu1 %vm2039_vm2, %v16690_v3  ;;  %v14331_v3 = vadd.s32 248, %v12192_v5 }
 0x2a4   :  { %10655 = vmatprep.mubr.msk.f32.mxu1 %vm2039_vm2, %v16691_v0 }
 0x2a5   :  { %16704 = vst [vmem:[#allocation15_spill] sm:$0xff] %v14331_v3  ;;  %v2389_v0 = vand.u32 63, %v14331_v3 }
 0x2a7   :  { %10656 = vmatmul.mubr.msk.f32.gmra.mrb[14].mxu1 %vm2039_vm2, %v3142_v13  ;;  %vm2838_vm15 = vcmp.eq.s32.totalorder %v2389_v0, 63 }
 0x2a8   :  { %10658 = vmatprep.mubr.msk.f32.mxu1 %vm2039_vm2, %v16693_v18  ;;  %v3158_v7 = vsel %vm2838_vm15, 0.0, %v13853_v21 }
 0x2ab   :  { %10659 = vmatmul.mubr.msk.f32.gmra.mrb[16].mxu1 %vm2039_vm2, %v16694_v31 }
 0x2ac   :  { %10661 = vmatprep.mubr.msk.f32.mxu1 %vm2039_vm2, %v16696_v42 }
 0x2af   :  { %10662 = vmatmul.mubr.msk.f32.gmra.mrb[18].mxu1 %vm2039_vm2, %v16697_v24 }
 0x2b0   :  { %10664 = vmatprep.mubr.msk.f32.mxu1 %vm2039_vm2, %v16698_v10 }
 0x2b3   :  { %10665 = vmatmul.mubr.msk.f32.gmra.mrb[20].mxu1 %vm2039_vm2, %v16699_v8 }
 0x2b4   :  { %10667 = vmatprep.mubr.msk.f32.mxu1 %vm2039_vm2, %v16700_v61 }
 0x2b7   :  { %10668 = vmatmul.mubr.msk.f32.gmra.mrb[22].mxu1 %vm2039_vm2, %v3150_v33 }
 0x2b8   :  { %10670 = vmatprep.mubr.msk.f32.mxu1 %vm2039_vm2, %v16702_v46 }
 0x2bb   :  { %10671 = vmatmul.mubr.msk.f32.gmra.mrb[24].mxu1 %vm2039_vm2, %v16703_v4 }
 0x2bc   :  { %10673 = vmatprep.mubr.msk.f32.mxu1 %vm2039_vm2, %v13789_v55  ;;  %v2333_v55 = vadd.s32 312, %v12192_v5 }
 0x2bf   :  { %10674 = vmatmul.mubr.msk.f32.gmra.mrb[26].mxu1 %vm2039_vm2, %v13801_v19  ;;  %v2397_v19 = vand.u32 63, %v2333_v55 }
 0x2c0   :  { %10676 = vmatprep.mubr.msk.f32.mxu1 %vm2039_vm2, %v13815_v60 }
 0x2c1   :  { %vm2846_vm4 = vcmp.eq.s32.totalorder %v2397_v19, 63 }
 0x2c2   :  { %v3166_v60 = vsel %vm2846_vm4, 0.0, %v13944_v12  ;;  %v5932_v12 = vld [vmem:[%s16444_s3] sm:$0xff] }
 0x2c3   :  { %10677 = vmatmul.mubr.msk.f32.gmra.mrb[28].mxu1 %vm2039_vm2, %v13823_v48  ;;  %v2341_v48 = vadd.s32 376, %v12192_v5 }
 0x2c4   :  { %10679 = vmatprep.mubr.msk.f32.mxu1 %vm2039_vm2, %v13831_v50 }
 0x2c5   :  { %v2405_v50 = vand.u32 63, %v2341_v48 }
 0x2c7   :  { %10680 = vmatmul.mubr.msk.f32.gmra.mrb[30].mxu1 %vm2039_vm2, %v3158_v7  ;;  %vm2854_vm5 = vcmp.eq.s32.totalorder %v2405_v50, 63 }
 0x2c8   :  { %10682 = vmatprep.mubr.msk.f32.mxu1 %vm2039_vm2, %v13869_v26  ;;  %v3174_v21 = vsel %vm2854_vm5, 0.0, %v14011_v41  ;;  %v2349_v26 = vadd.s32 440, %v12192_v5 }
 0x2cb   :  { %10683 = vmatmul.mubr.msk.f32.gmra.mrb[32].mxu1 %vm2039_vm2, %v13877_v52  ;;  %v2413_v52 = vand.u32 63, %v2349_v26 }
 0x2cc   :  { %10685 = vmatprep.mubr.msk.f32.mxu1 %vm2039_vm2, %v13885_v39 }
 0x2cd   :  { %vm2862_vm6 = vcmp.eq.s32.totalorder %v2413_v52, 63 }
 0x2ce   :  { %v3182_v39 = vsel %vm2862_vm6, 0.0, %v14056_v58 }
 0x2cf   :  { %10686 = vmatmul.mubr.msk.f32.gmra.mrb[34].mxu1 %vm2039_vm2, %v13893_v44  ;;  %v2357_v44 = vadd.s32 504, %v12192_v5 }
 0x2d0   :  { %10688 = vmatprep.mubr.msk.f32.mxu1 %vm2039_vm2, %v13914_v25 }
 0x2d1   :  { %v2421_v25 = vand.u32 63, %v2357_v44 }
 0x2d3   :  { %10689 = vmatmul.mubr.msk.f32.gmra.mrb[36].mxu1 %vm2039_vm2, %v13924_v32  ;;  %vm2870_vm7 = vcmp.eq.s32.totalorder %v2421_v25, 63  ;;  %v2998_v32 = vsel %vm1782_vm1, %v2934_v63, %v2871_v2 }
 0x2d4   :  { %10691 = vmatprep.mubr.msk.f32.mxu1 %vm2039_vm2, %v13932_v16  ;;  %v3190_v16 = vsel %vm2870_vm7, 0.0, %v2998_v32 }
 0x2d7   :  { %10692 = vmatmul.mubr.msk.f32.gmra.mrb[38].mxu1 %vm2039_vm2, %v3166_v60 }
 0x2d8   :  { %10694 = vmatprep.mubr.msk.f32.mxu1 %vm2039_vm2, %v13952_v59  ;;  %v5933_v59 = vld [vmem:[%s16444_s3 + $0x8] sm:$0xff] }
 0x2db   :  { %10695 = vmatmul.mubr.msk.f32.gmra.mrb[40].mxu1 %vm2039_vm2, %v13960_v51  ;;  %v14425_v51 = vpack.c.bf16 %v5933_v59, %v5932_v12 }
 0x2dc   :  { %10697 = vmatprep.mubr.msk.f32.mxu1 %vm2039_vm2, %v13969_v14  ;;  %v14431_v14 = vld [vmem:[%s16443_s8 + $0x2] ss:$0 sm:$0xff] }
 0x2dd   :  { %11231 = vmatprep.subr.bf16.mxu0 %v14425_v51 }
 0x2df   :  { %10698 = vmatmul.mubr.msk.f32.gmra.mrb[42].mxu1 %vm2039_vm2, %v13977_v1 }
 0x2e0   :  { %10700 = vmatprep.mubr.msk.f32.mxu1 %vm2039_vm2, %v13985_v20  ;;  %v14436_v20 = vld [vmem:[%s16443_s8 + $0x3] ss:$0 sm:$0xff] }
 0x2e3   :  { %10701 = vmatmul.mubr.msk.f32.gmra.mrb[44].mxu1 %vm2039_vm2, %v13995_v17 }
 0x2e4   :  { %10703 = vmatprep.mubr.msk.f32.mxu1 %vm2039_vm2, %v14003_v43 }
 0x2e7   :  { %10704 = vmatmul.mubr.msk.f32.gmra.mrb[46].mxu1 %vm2039_vm2, %v3174_v21 }
 0x2e8   :  { %10706 = vmatprep.mubr.msk.f32.mxu1 %vm2039_vm2, %v14015_v62 }
 0x2eb   :  { %10707 = vmatmul.mubr.msk.f32.gmra.mrb[48].mxu1 %vm2039_vm2, %v14024_v11 }
 0x2ec   :  { %10709 = vmatprep.mubr.msk.f32.mxu1 %vm2039_vm2, %v14028_v28 }
 0x2ef   :  { %10710 = vmatmul.mubr.msk.f32.gmra.mrb[50].mxu1 %vm2039_vm2, %v14035_v35 }
 0x2f0   :  { %10712 = vmatprep.mubr.msk.f32.mxu1 %vm2039_vm2, %v14039_v6 }
 0x2f3   :  { %10713 = vmatmul.mubr.msk.f32.gmra.mrb[52].mxu1 %vm2039_vm2, %v14043_v29 }
 0x2f4   :  { %10715 = vmatprep.mubr.msk.f32.mxu1 %vm2039_vm2, %v14052_v9 }
 0x2f7   :  { %10716 = vmatmul.mubr.msk.f32.gmra.mrb[54].mxu1 %vm2039_vm2, %v3182_v39 }
 0x2f8   :  { %10718 = vmatprep.mubr.msk.f32.mxu1 %vm2039_vm2, %v14074_v30 }
 0x2fb   :  { %10719 = vmatmul.mubr.msk.f32.gmra.mrb[56].mxu1 %vm2039_vm2, %v14078_v23 }
 0x2fc   :  { %10721 = vmatprep.mubr.msk.f32.mxu1 %vm2039_vm2, %v14083_v49 }
 0x2ff   :  { %10722 = vmatmul.mubr.msk.f32.gmra.mrb[58].mxu1 %vm2039_vm2, %v14087_v40 }
 0x300   :  { %10724 = vmatprep.mubr.msk.f32.mxu1 %vm2039_vm2, %v14091_v54 }
 0x303   :  { %10725 = vmatmul.mubr.msk.f32.gmra.mrb[60].mxu1 %vm2039_vm2, %v14095_v37 }
 0x304   :  { %10727 = vmatprep.mubr.msk.f32.mxu1 %vm2039_vm2, %v14103_v45 }
 0x307   :  { %10728 = vmatmul.mubr.msk.f32.gmra.mrb[62].mxu1 %vm2039_vm2, %v3190_v16  ;;  %vm5388_vm2 = vcmask 261120  }
 0x35e   :  { %v10636_v1 = vpop.f32.mrb[0].mxu1 }
 0x35f   :  { %v5001_v17 = vmul.f32 %v10636_v1, %v14431_v14  ;;  %v4611_v43 = vpop.f32.mrb[1].mxu1 }
 0x360   :  { %v5000_v41 = vmul.f32 %v14431_v14, %v4611_v43 }
 0x361   :  { %v5069_v62 = vadd.f32 %v14436_v20, %v5001_v17 }
 0x362   :  { %v5068_v11 = vadd.f32 %v14436_v20, %v5000_v41  ;;  %v10639_v28 = vpop.f32.mrb[2].mxu1 }
 0x363   :  { %v5133_v53 = vmax.f32 %v5069_v62, 0.0  ;;  %v5003_v35 = vmul.f32 %v10639_v28, %v14431_v14  ;;  %v4621_v6 = vpop.f32.mrb[3].mxu1 }
 0x364   :  { %v5132_v29 = vmax.f32 %v5068_v11, 0.0  ;;  %v5002_v63 = vmul.f32 %v14431_v14, %v4621_v6 }
 0x365   :  { %v5197_v9 = vrot.slane %v5133_v53, 1  ;;  %v5071_v58 = vadd.f32 %v14436_v20, %v5003_v35 }
 0x366   :  { %v14445_v30 = vrot.slane %v5132_v29, 1  ;;  %v5070_v23 = vadd.f32 %v14436_v20, %v5002_v63  ;;  %v10642_v49 = vpop.f32.mrb[4].mxu1  ;;  %v5934_v63 = vld [vmem:[%s16444_s3 + $0x10] sm:$0xff] }
 0x367   :  { %v5135_v40 = vmax.f32 %v5071_v58, 0.0  ;;  %v5005_v54 = vmul.f32 %v10642_v49, %v14431_v14  ;;  %v4631_v37 = vpop.f32.mrb[5].mxu1 }
 0x368   :  { %v5322_v45 = vsel %vm1782_vm1, %v14445_v30, %v5197_v9  ;;  %v5134_v36 = vmax.f32 %v5070_v23, 0.0  ;;  %v5004_v2 = vmul.f32 %v14431_v14, %v4631_v37 }
 0x369   :  { %v5324_v13 = vmax.f32 %v5132_v29, %v5322_v45  ;;  %v5199_v18 = vrot.slane %v5135_v40, 1  ;;  %v5073_v31 = vadd.f32 %v14436_v20, %v5005_v54 }
 0x36a   :  { %v5198_v42 = vrot.slane %v5134_v36, 1  ;;  %v5072_v24 = vadd.f32 %v14436_v20, %v5004_v2  ;;  %v10645_v34 = vpop.f32.mrb[6].mxu1 }
 0x36b   :  { %5389 = vst.msk [vmem:[#allocation3] sm:$0xff] %vm5388_vm2, %v5324_v13  ;;  %v5137_v10 = vmax.f32 %v5073_v31, 0.0  ;;  %v5007_v8 = vmul.f32 %v10645_v34, %v14431_v14  ;;  %v4641_v61 = vpop.f32.mrb[7].mxu1 }
 0x36c   :  { %v5320_v22 = vsel %vm1782_vm1, %v5198_v42, %v5199_v18  ;;  %v5321_v33 = vsel %vm1782_vm1, %v5197_v9, %v5198_v42  ;;  %v5136_v46 = vmax.f32 %v5072_v24, 0.0  ;;  %v5006_v4 = vmul.f32 %v14431_v14, %v4641_v61  ;;  %v5935_v9 = vld [vmem:[%s16444_s3 + $0x18] sm:$0xff]  ;;  %v9449_v42 = vld [vmem:[%s16444_s3 + $0x40] sm:$0xff]  ;;  %v9450_v24 = vld [vmem:[%s16444_s3 + $0x48] sm:$0xff] }
 0x36d   :  { %v5325_v0 = vmax.f32 %v5133_v53, %v5321_v33  ;;  %v5326_v7 = vmax.f32 %v5134_v36, %v5320_v22  ;;  %v5201_v55 = vrot.slane %v5137_v10, 1  ;;  %v5075_v19 = vadd.f32 %v14436_v20, %v5007_v8 }
 0x36e   :  { %v5200_v60 = vrot.slane %v5136_v46, 1  ;;  %v5074_v48 = vadd.f32 %v14436_v20, %v5006_v4  ;;  %v10648_v50 = vpop.f32.mrb[8].mxu1  ;;  %v11234_v31 = vpack.c.bf16 %v5935_v9, %v5934_v63 }
 0x36f   :  { %5390 = vst.msk [vmem:[#allocation3 + $0x8] sm:$0xff] %vm5388_vm2, %v5325_v0  ;;  %5391 = vst.msk [vmem:[#allocation3 + $0x10] sm:$0xff] %vm5388_vm2, %v5326_v7  ;;  %v5139_v21 = vmax.f32 %v5075_v19, 0.0  ;;  %v5009_v26 = vmul.f32 %v10648_v50, %v14431_v14  ;;  %v4651_v52 = vpop.f32.mrb[9].mxu1 }
 0x370   :  { %v5318_v39 = vsel %vm1782_vm1, %v5200_v60, %v5201_v55  ;;  %v5319_v44 = vsel %vm1782_vm1, %v5199_v18, %v5200_v60  ;;  %v5138_v25 = vmax.f32 %v5074_v48, 0.0  ;;  %v5008_v32 = vmul.f32 %v14431_v14, %v4651_v52 }
 0x371   :  { %v5327_v16 = vmax.f32 %v5135_v40, %v5319_v44  ;;  %v5328_v12 = vmax.f32 %v5136_v46, %v5318_v39  ;;  %v5203_v59 = vrot.slane %v5139_v21, 1  ;;  %v5077_v1 = vadd.f32 %v14436_v20, %v5009_v26 }
 0x372   :  { %v5202_v17 = vrot.slane %v5138_v25, 1  ;;  %v5076_v43 = vadd.f32 %v14436_v20, %v5008_v32  ;;  %v10651_v41 = vpop.f32.mrb[10].mxu1  ;;  %v14517_v60 = vpack.c.bf16 %v9450_v24, %v9449_v42 }
 0x373   :  { %5392 = vst.msk [vmem:[#allocation3 + $0x18] sm:$0xff] %vm5388_vm2, %v5327_v16  ;;  %5393 = vst.msk [vmem:[#allocation3 + $0x20] sm:$0xff] %vm5388_vm2, %v5328_v12  ;;  %v5141_v62 = vmax.f32 %v5077_v1, 0.0  ;;  %v5011_v11 = vmul.f32 %v10651_v41, %v14431_v14  ;;  %v4661_v28 = vpop.f32.mrb[11].mxu1 }
 0x374   :  { %v5316_v53 = vsel %vm1782_vm1, %v5202_v17, %v5203_v59  ;;  %v5317_v35 = vsel %vm1782_vm1, %v5201_v55, %v5202_v17  ;;  %v5140_v6 = vmax.f32 %v5076_v43, 0.0  ;;  %v5010_v29 = vmul.f32 %v14431_v14, %v4661_v28 }
 0x375   :  { %v5329_v58 = vmax.f32 %v5137_v10, %v5317_v35  ;;  %v5330_v23 = vmax.f32 %v5138_v25, %v5316_v53  ;;  %v5205_v49 = vrot.slane %v5141_v62, 1  ;;  %v14489_v40 = vadd.f32 %v14436_v20, %v5011_v11 }
 0x376   :  { %v5204_v54 = vrot.slane %v5140_v6, 1  ;;  %v5078_v37 = vadd.f32 %v14436_v20, %v5010_v29  ;;  %v10654_v45 = vpop.f32.mrb[12].mxu1  ;;  %v14492_v36 = vld [vmem:[#allocation3] ss:$2 sm:$0xff] }
 0x377   :  { %5394 = vst.msk [vmem:[#allocation3 + $0x28] sm:$0xff] %vm5388_vm2, %v5329_v58  ;;  %5395 = vst.msk [vmem:[#allocation3 + $0x30] sm:$0xff] %vm5388_vm2, %v5330_v23  ;;  %v5143_v2 = vmax.f32 %v14489_v40, 0.0  ;;  %v5013_v13 = vmul.f32 %v10654_v45, %v14431_v14  ;;  %v4671_v18 = vpop.f32.mrb[13].mxu1  ;;  %10738 = vmatprep.mubr.msk.f32.mxu0 %vm5388_vm2, %v14492_v36  ;;  %v16454_v50 = vrot.slane %v14492_v36, 7 }
 0x378   :  { %v5314_v34 = vsel %vm1782_vm1, %v5204_v54, %v5205_v49  ;;  %v5315_v10 = vsel %vm1782_vm1, %v5203_v59, %v5204_v54  ;;  %v5142_v8 = vmax.f32 %v5078_v37, 0.0  ;;  %v5012_v61 = vmul.f32 %v14431_v14, %v4671_v18 }
 0x379   :  { %v5331_v22 = vmax.f32 %v5139_v21, %v5315_v10  ;;  %v5332_v33 = vmax.f32 %v5140_v6, %v5314_v34  ;;  %v5207_v46 = vrot.slane %v5143_v2, 1  ;;  %v14512_v4 = vadd.f32 %v14436_v20, %v5013_v13 }
 0x37a   :  { %v5206_v0 = vrot.slane %v5142_v8, 1  ;;  %v5080_v7 = vadd.f32 %v14436_v20, %v5012_v61  ;;  %v10657_v55 = vpop.f32.mrb[14].mxu1  ;;  %v14515_v19 = vld [vmem:[#allocation3 + $0x10] ss:$2 sm:$0xff] }
 0x37b   :  { %5396 = vst.msk [vmem:[#allocation3 + $0x38] sm:$0xff] %vm5388_vm2, %v5331_v22  ;;  %5397 = vst.msk [vmem:[#allocation3 + $0x40] sm:$0xff] %vm5388_vm2, %v5332_v33  ;;  %v5145_v48 = vmax.f32 %v14512_v4, 0.0  ;;  %v5015_v21 = vmul.f32 %v10657_v55, %v14431_v14  ;;  %v4681_v26 = vpop.f32.mrb[15].mxu1  ;;  %v5581_v52 = vrot.slane %v14515_v19, 7  ;;  %10739 = vmatmul.mubr.msk.f32.vlgmr.msra.gmra.mrb[128].mxu0 %vm5388_vm2, %v14515_v19 }
 0x37c   :  { %v5312_v39 = vsel %vm1782_vm1, %v5206_v0, %v5207_v46  ;;  %v5313_v44 = vsel %vm1782_vm1, %v5205_v49, %v5206_v0  ;;  %v5144_v25 = vmax.f32 %v5080_v7, 0.0  ;;  %v5014_v32 = vmul.f32 %v14431_v14, %v4681_v26  ;;  %11233 = vmatpush3.bf16.msra.mxu0 %v14425_v51 }
 0x37d   :  { %v5333_v16 = vmax.f32 %v5141_v62, %v5313_v44  ;;  %v5334_v12 = vmax.f32 %v5142_v8, %v5312_v39  ;;  %v5209_v59 = vrot.slane %v5145_v48, 1  ;;  %v5083_v1 = vadd.f32 %v14436_v20, %v5015_v21  ;;  %11235 = vmatprep.subr.bf16.mxu0 %v11234_v31 }
 0x37e   :  { %v5208_v17 = vrot.slane %v5144_v25, 1  ;;  %v5082_v43 = vadd.f32 %v14436_v20, %v5014_v32  ;;  %v10660_v41 = vpop.f32.mrb[16].mxu1  ;;  %v14535_v11 = vld [vmem:[#allocation3 + $0x20] ss:$2 sm:$0xff]  ;;  %v14541_v28 = vsel %vm2550_vm3, %v16454_v50, %v5581_v52 }
 0x37f   :  { %5398 = vst.msk [vmem:[#allocation3 + $0x48] sm:$0xff] %vm5388_vm2, %v5333_v16  ;;  %5399 = vst.msk [vmem:[#allocation3 + $0x50] sm:$0xff] %vm5388_vm2, %v5334_v12  ;;  %v5147_v51 = vmax.f32 %v5083_v1, 0.0  ;;  %v5017_v62 = vmul.f32 %v10660_v41, %v14431_v14  ;;  %v4691_v53 = vpop.f32.mrb[17].mxu1  ;;  %v5582_v35 = vrot.slane %v14535_v11, 7  ;;  %10741 = vmatprep.mubr.msk.f32.mxu0 %vm5388_vm2, %v14535_v11 }
 0x380   :  { %v5310_v6 = vsel %vm1782_vm1, %v5208_v17, %v5209_v59  ;;  %v5311_v29 = vsel %vm1782_vm1, %v5207_v46, %v5208_v17  ;;  %v5146_v63 = vmax.f32 %v5082_v43, 0.0  ;;  %v5016_v9 = vmul.f32 %v14431_v14, %v4691_v53  ;;  %11237 = vmatpush3.bf16.msra.mxu0 %v11234_v31 }
 0x381   :  { %v5335_v58 = vmax.f32 %v5143_v2, %v5311_v29  ;;  %v5336_v23 = vmax.f32 %v5144_v25, %v5310_v6  ;;  %v5211_v49 = vrot.slane %v5147_v51, 1  ;;  %v5085_v40 = vadd.f32 %v14436_v20, %v5017_v62  ;;  %11239 = vmatprep.subr.bf16.mxu0 %v14517_v60 }
 0x382   :  { %v5210_v54 = vrot.slane %v5146_v63, 1  ;;  %v5084_v37 = vadd.f32 %v14436_v20, %v5016_v9  ;;  %v10663_v45 = vpop.f32.mrb[18].mxu1  ;;  %v14557_v13 = vld [vmem:[#allocation3 + $0x30] ss:$2 sm:$0xff]  ;;  %v14561_v18 = vsel %vm2550_vm3, %v5581_v52, %v5582_v35 }
 0x383   :  { %5400 = vst.msk [vmem:[#allocation3 + $0x58] sm:$0xff] %vm5388_vm2, %v5335_v58  ;;  %5401 = vst.msk [vmem:[#allocation3 + $0x60] sm:$0xff] %vm5388_vm2, %v5336_v23  ;;  %v5149_v2 = vmax.f32 %v5085_v40, 0.0  ;;  %v5019_v31 = vmul.f32 %v10663_v45, %v14431_v14  ;;  %v4701_v42 = vpop.f32.mrb[19].mxu1  ;;  %v5583_v24 = vrot.slane %v14557_v13, 7  ;;  %10742 = vmatmul.mubr.msk.f32.gmra.mrb[130].mxu0 %vm5388_vm2, %v14557_v13 }
 0x384   :  { %v5308_v34 = vsel %vm1782_vm1, %v5210_v54, %v5211_v49  ;;  %v5309_v10 = vsel %vm1782_vm1, %v5209_v59, %v5210_v54  ;;  %v5148_v8 = vmax.f32 %v5084_v37, 0.0  ;;  %v5018_v61 = vmul.f32 %v14431_v14, %v4701_v42 }
 0x385   :  { %v5337_v22 = vmax.f32 %v5145_v48, %v5309_v10  ;;  %v5338_v33 = vmax.f32 %v5146_v63, %v5308_v34  ;;  %v5213_v46 = vrot.slane %v5149_v2, 1  ;;  %v5087_v4 = vadd.f32 %v14436_v20, %v5019_v31 }
 0x386   :  { %v5212_v0 = vrot.slane %v5148_v8, 1  ;;  %v5086_v7 = vadd.f32 %v14436_v20, %v5018_v61  ;;  %v10666_v55 = vpop.f32.mrb[20].mxu1  ;;  %v14576_v21 = vld [vmem:[#allocation3 + $0x40] ss:$2 sm:$0xff]  ;;  %v14580_v26 = vsel %vm2550_vm3, %v5582_v35, %v5583_v24 }
 0x387   :  { %5402 = vst.msk [vmem:[#allocation3 + $0x68] sm:$0xff] %vm5388_vm2, %v5337_v22  ;;  %5403 = vst.msk [vmem:[#allocation3 + $0x70] sm:$0xff] %vm5388_vm2, %v5338_v33  ;;  %v5151_v52 = vmax.f32 %v5087_v4, 0.0  ;;  %v5021_v48 = vmul.f32 %v10666_v55, %v14431_v14  ;;  %v4711_v39 = vpop.f32.mrb[21].mxu1  ;;  %v5584_v44 = vrot.slane %v14576_v21, 7  ;;  %10744 = vmatprep.mubr.msk.f32.mxu0 %vm5388_vm2, %v14576_v21 }
 0x388   :  { %v5306_v25 = vsel %vm1782_vm1, %v5212_v0, %v5213_v46  ;;  %v5307_v32 = vsel %vm1782_vm1, %v5211_v49, %v5212_v0  ;;  %v5150_v16 = vmax.f32 %v5086_v7, 0.0  ;;  %v5020_v12 = vmul.f32 %v14431_v14, %v4711_v39 }
 0x389   :  { %v5339_v59 = vmax.f32 %v5147_v51, %v5307_v32  ;;  %v5340_v1 = vmax.f32 %v5148_v8, %v5306_v25  ;;  %v5215_v17 = vrot.slane %v5151_v52, 1  ;;  %v5089_v43 = vadd.f32 %v14436_v20, %v5021_v48 }
 0x38a   :  { %v5214_v41 = vrot.slane %v5150_v16, 1  ;;  %v5088_v62 = vadd.f32 %v14436_v20, %v5020_v12  ;;  %v10669_v53 = vpop.f32.mrb[22].mxu1  ;;  %v14595_v35 = vld [vmem:[#allocation3 + $0x50] ss:$2 sm:$0xff]  ;;  %v14599_v6 = vsel %vm2550_vm3, %v5583_v24, %v5584_v44 }
 0x38b   :  { %5404 = vst.msk [vmem:[#allocation3 + $0x78] sm:$0xff] %vm5388_vm2, %v5339_v59  ;;  %5405 = vst.msk [vmem:[#allocation3 + $0x80] sm:$0xff] %vm5388_vm2, %v5340_v1  ;;  %v5153_v29 = vmax.f32 %v5089_v43, 0.0  ;;  %v5023_v51 = vmul.f32 %v10669_v53, %v14431_v14  ;;  %v4721_v63 = vpop.f32.mrb[23].mxu1  ;;  %v5585_v9 = vrot.slane %v14595_v35, 7  ;;  %10745 = vmatmul.mubr.msk.f32.gmra.mrb[132].mxu0 %vm5388_vm2, %v14595_v35 }
 0x38c   :  { %v5304_v58 = vsel %vm1782_vm1, %v5214_v41, %v5215_v17  ;;  %v5305_v23 = vsel %vm1782_vm1, %v5213_v46, %v5214_v41  ;;  %v5152_v49 = vmax.f32 %v5088_v62, 0.0  ;;  %v5022_v40 = vmul.f32 %v14431_v14, %v4721_v63 }
 0x38d   :  { %v5341_v54 = vmax.f32 %v5149_v2, %v5305_v23  ;;  %v5342_v37 = vmax.f32 %v5150_v16, %v5304_v58  ;;  %v5217_v45 = vrot.slane %v5153_v29, 1  ;;  %v5091_v31 = vadd.f32 %v14436_v20, %v5023_v51 }
 0x38e   :  { %v5216_v42 = vrot.slane %v5152_v49, 1  ;;  %v5090_v24 = vadd.f32 %v14436_v20, %v5022_v40  ;;  %v10672_v34 = vpop.f32.mrb[24].mxu1  ;;  %v14614_v10 = vld [vmem:[#allocation3 + $0x60] ss:$2 sm:$0xff]  ;;  %v14618_v8 = vsel %vm2550_vm3, %v5584_v44, %v5585_v9 }
 0x38f   :  { %5406 = vst.msk [vmem:[#allocation3 + $0x88] sm:$0xff] %vm5388_vm2, %v5341_v54  ;;  %5407 = vst.msk [vmem:[#allocation3 + $0x90] sm:$0xff] %vm5388_vm2, %v5342_v37  ;;  %v5155_v61 = vmax.f32 %v5091_v31, 0.0  ;;  %v5025_v2 = vmul.f32 %v10672_v34, %v14431_v14  ;;  %v4731_v22 = vpop.f32.mrb[25].mxu1  ;;  %v5586_v33 = vrot.slane %v14614_v10, 7  ;;  %10747 = vmatprep.mubr.msk.f32.mxu0 %vm5388_vm2, %v14614_v10 }
 0x390   :  { %v5302_v46 = vsel %vm1782_vm1, %v5216_v42, %v5217_v45  ;;  %v5303_v4 = vsel %vm1782_vm1, %v5215_v17, %v5216_v42  ;;  %v5154_v0 = vmax.f32 %v5090_v24, 0.0  ;;  %v5024_v7 = vmul.f32 %v14431_v14, %v4731_v22 }
 0x391   :  { %v5343_v55 = vmax.f32 %v5151_v52, %v5303_v4  ;;  %v5344_v48 = vmax.f32 %v5152_v49, %v5302_v46  ;;  %v5219_v39 = vrot.slane %v5155_v61, 1  ;;  %v5093_v44 = vadd.f32 %v14436_v20, %v5025_v2 }
 0x392   :  { %v5218_v25 = vrot.slane %v5154_v0, 1  ;;  %v5092_v32 = vadd.f32 %v14436_v20, %v5024_v7  ;;  %v10675_v16 = vpop.f32.mrb[26].mxu1  ;;  %v14633_v12 = vld [vmem:[#allocation3 + $0x70] ss:$2 sm:$0xff]  ;;  %v14637_v59 = vsel %vm2550_vm3, %v5585_v9, %v5586_v33 }
 0x393   :  { %5408 = vst.msk [vmem:[#allocation3 + $0x98] sm:$0xff] %vm5388_vm2, %v5343_v55  ;;  %5409 = vst.msk [vmem:[#allocation3 + $0xa0] sm:$0xff] %vm5388_vm2, %v5344_v48  ;;  %v5157_v1 = vmax.f32 %v5093_v44, 0.0  ;;  %v5027_v52 = vmul.f32 %v10675_v16, %v14431_v14  ;;  %v4741_v17 = vpop.f32.mrb[27].mxu1  ;;  %v5587_v43 = vrot.slane %v14633_v12, 7  ;;  %10748 = vmatmul.mubr.msk.f32.gmra.mrb[134].mxu0 %vm5388_vm2, %v14633_v12 }
 0x394   :  { %v5300_v41 = vsel %vm1782_vm1, %v5218_v25, %v5219_v39  ;;  %v5301_v62 = vsel %vm1782_vm1, %v5217_v45, %v5218_v25  ;;  %v5156_v53 = vmax.f32 %v5092_v32, 0.0  ;;  %v5026_v51 = vmul.f32 %v14431_v14, %v4741_v17 }
 0x395   :  { %v5345_v63 = vmax.f32 %v5153_v29, %v5301_v62  ;;  %v5346_v9 = vmax.f32 %v5154_v0, %v5300_v41  ;;  %v5221_v58 = vrot.slane %v5157_v1, 1  ;;  %v5095_v23 = vadd.f32 %v14436_v20, %v5027_v52 }
 0x396   :  { %v5220_v49 = vrot.slane %v5156_v53, 1  ;;  %v5094_v40 = vadd.f32 %v14436_v20, %v5026_v51  ;;  %v10678_v54 = vpop.f32.mrb[28].mxu1  ;;  %v14652_v37 = vld [vmem:[#allocation3 + $0x80] ss:$2 sm:$0xff]  ;;  %v14656_v31 = vsel %vm2550_vm3, %v5586_v33, %v5587_v43 }
 0x397   :  { %5410 = vst.msk [vmem:[#allocation3 + $0xa8] sm:$0xff] %vm5388_vm2, %v5345_v63  ;;  %5411 = vst.msk [vmem:[#allocation3 + $0xb0] sm:$0xff] %vm5388_vm2, %v5346_v9  ;;  %v5159_v45 = vmax.f32 %v5095_v23, 0.0  ;;  %v5029_v29 = vmul.f32 %v10678_v54, %v14431_v14  ;;  %v4751_v42 = vpop.f32.mrb[29].mxu1  ;;  %v5588_v24 = vrot.slane %v14652_v37, 7  ;;  %10750 = vmatprep.mubr.msk.f32.mxu0 %vm5388_vm2, %v14652_v37 }
 0x398   :  { %v5298_v34 = vsel %vm1782_vm1, %v5220_v49, %v5221_v58  ;;  %v5299_v2 = vsel %vm1782_vm1, %v5219_v39, %v5220_v49  ;;  %v5158_v22 = vmax.f32 %v5094_v40, 0.0  ;;  %v5028_v33 = vmul.f32 %v14431_v14, %v4751_v42 }
 0x399   :  { %v5347_v46 = vmax.f32 %v5155_v61, %v5299_v2  ;;  %v5348_v4 = vmax.f32 %v5156_v53, %v5298_v34  ;;  %v5223_v0 = vrot.slane %v5159_v45, 1  ;;  %v5097_v7 = vadd.f32 %v14436_v20, %v5029_v29 }
 0x39a   :  { %v5222_v55 = vrot.slane %v5158_v22, 1  ;;  %v5096_v48 = vadd.f32 %v14436_v20, %v5028_v33  ;;  %v10681_v44 = vpop.f32.mrb[30].mxu1  ;;  %v14671_v25 = vld [vmem:[#allocation3 + $0x90] ss:$2 sm:$0xff]  ;;  %v14675_v32 = vsel %vm2550_vm3, %v5587_v43, %v5588_v24 }
 0x39b   :  { %16705 = vst [vmem:[#allocation17_spill] sm:$0xff] %v14675_v32  ;;  %5412 = vst.msk [vmem:[#allocation3 + $0xb8] sm:$0xff] %vm5388_vm2, %v5347_v46  ;;  %v5161_v39 = vmax.f32 %v5097_v7, 0.0  ;;  %v5031_v61 = vmul.f32 %v10681_v44, %v14431_v14  ;;  %v4761_v16 = vpop.f32.mrb[31].mxu1  ;;  %v5589_v52 = vrot.slane %v14671_v25, 7  ;;  %10751 = vmatmul.mubr.msk.f32.gmra.mrb[136].mxu0 %vm5388_vm2, %v14671_v25 }
 0x39c   :  { %5413 = vst.msk [vmem:[#allocation3 + $0xc0] sm:$0xff] %vm5388_vm2, %v5348_v4  ;;  %v5296_v17 = vsel %vm1782_vm1, %v5222_v55, %v5223_v0  ;;  %v5297_v43 = vsel %vm1782_vm1, %v5221_v58, %v5222_v55  ;;  %v5160_v41 = vmax.f32 %v5096_v48, 0.0  ;;  %v5030_v62 = vmul.f32 %v14431_v14, %v4761_v16 }
 0x39d   :  { %v5349_v53 = vmax.f32 %v5157_v1, %v5297_v43  ;;  %v5350_v51 = vmax.f32 %v5158_v22, %v5296_v17  ;;  %v5225_v63 = vrot.slane %v5161_v39, 1  ;;  %v5099_v9 = vadd.f32 %v14436_v20, %v5031_v61 }
 0x39e   :  { %v5224_v23 = vrot.slane %v5160_v41, 1  ;;  %v5098_v49 = vadd.f32 %v14436_v20, %v5030_v62  ;;  %v10684_v40 = vpop.f32.mrb[32].mxu1  ;;  %v14690_v54 = vld [vmem:[#allocation3 + $0xa0] ss:$2 sm:$0xff]  ;;  %v14694_v29 = vsel %vm2550_vm3, %v5588_v24, %v5589_v52 }
 0x39f   :  { %16706 = vst [vmem:[#allocation18_spill] sm:$0xff] %v14694_v29  ;;  %5414 = vst.msk [vmem:[#allocation3 + $0xc8] sm:$0xff] %vm5388_vm2, %v5349_v53  ;;  %v5163_v58 = vmax.f32 %v5099_v9, 0.0  ;;  %v5033_v1 = vmul.f32 %v10684_v40, %v14431_v14  ;;  %v4771_v42 = vpop.f32.mrb[33].mxu1  ;;  %v5590_v34 = vrot.slane %v14690_v54, 7  ;;  %10753 = vmatprep.mubr.msk.f32.mxu0 %vm5388_vm2, %v14690_v54 }
 0x3a0   :  { %5415 = vst.msk [vmem:[#allocation3 + $0xd0] sm:$0xff] %vm5388_vm2, %v5350_v51  ;;  %v5294_v2 = vsel %vm1782_vm1, %v5224_v23, %v5225_v63  ;;  %v5295_v24 = vsel %vm1782_vm1, %v5223_v0, %v5224_v23  ;;  %v5162_v22 = vmax.f32 %v5098_v49, 0.0  ;;  %v5032_v33 = vmul.f32 %v14431_v14, %v4771_v42 }
 0x3a1   :  { %v5351_v46 = vmax.f32 %v5159_v45, %v5295_v24  ;;  %v5352_v4 = vmax.f32 %v5160_v41, %v5294_v2  ;;  %v5227_v7 = vrot.slane %v5163_v58, 1  ;;  %v5101_v55 = vadd.f32 %v14436_v20, %v5033_v1 }
 0x3a2   :  { %v5226_v48 = vrot.slane %v5162_v22, 1  ;;  %v5100_v44 = vadd.f32 %v14436_v20, %v5032_v33  ;;  %v10687_v61 = vpop.f32.mrb[34].mxu1  ;;  %v14709_v16 = vld [vmem:[#allocation3 + $0xb0] ss:$2 sm:$0xff]  ;;  %v14713_v17 = vsel %vm2550_vm3, %v5589_v52, %v5590_v34 }
 0x3a3   :  { %16707 = vst [vmem:[#allocation19_spill] sm:$0xff] %v14713_v17  ;;  %5416 = vst.msk [vmem:[#allocation3 + $0xd8] sm:$0xff] %vm5388_vm2, %v5351_v46  ;;  %v5165_v0 = vmax.f32 %v5101_v55, 0.0  ;;  %v5035_v45 = vmul.f32 %v10687_v61, %v14431_v14  ;;  %v4781_v43 = vpop.f32.mrb[35].mxu1  ;;  %v5591_v41 = vrot.slane %v14709_v16, 7  ;;  %10754 = vmatmul.mubr.msk.f32.gmra.mrb[138].mxu0 %vm5388_vm2, %v14709_v16 }
 0x3a4   :  { %5417 = vst.msk [vmem:[#allocation3 + $0xe0] sm:$0xff] %vm5388_vm2, %v5352_v4  ;;  %v5292_v62 = vsel %vm1782_vm1, %v5226_v48, %v5227_v7  ;;  %v5293_v52 = vsel %vm1782_vm1, %v5225_v63, %v5226_v48  ;;  %v5164_v53 = vmax.f32 %v5100_v44, 0.0  ;;  %v5034_v51 = vmul.f32 %v14431_v14, %v4781_v43 }
 0x3a5   :  { %v5353_v9 = vmax.f32 %v5161_v39, %v5293_v52  ;;  %v5354_v23 = vmax.f32 %v5162_v22, %v5292_v62  ;;  %v5229_v49 = vrot.slane %v5165_v0, 1  ;;  %v5103_v40 = vadd.f32 %v14436_v20, %v5035_v45 }
 0x3a6   :  { %v5228_v1 = vrot.slane %v5164_v53, 1  ;;  %v5102_v42 = vadd.f32 %v14436_v20, %v5034_v51  ;;  %v10690_v2 = vpop.f32.mrb[36].mxu1  ;;  %v14728_v24 = vld [vmem:[#allocation3 + $0xc0] ss:$2 sm:$0xff]  ;;  %v14732_v33 = vsel %vm2550_vm3, %v5590_v34, %v5591_v41 }
 0x3a7   :  { %16708 = vst [vmem:[#allocation20_spill] sm:$0xff] %v14732_v33  ;;  %5418 = vst.msk [vmem:[#allocation3 + $0xe8] sm:$0xff] %vm5388_vm2, %v5353_v9  ;;  %v5167_v63 = vmax.f32 %v5103_v40, 0.0  ;;  %v5037_v39 = vmul.f32 %v10690_v2, %v14431_v14  ;;  %v4791_v22 = vpop.f32.mrb[37].mxu1  ;;  %v5592_v46 = vrot.slane %v14728_v24, 7  ;;  %10756 = vmatprep.mubr.msk.f32.mxu0 %vm5388_vm2, %v14728_v24 }
 0x3a8   :  { %5419 = vst.msk [vmem:[#allocation3 + $0xf0] sm:$0xff] %vm5388_vm2, %v5354_v23  ;;  %v5290_v4 = vsel %vm1782_vm1, %v5228_v1, %v5229_v49  ;;  %v5291_v34 = vsel %vm1782_vm1, %v5227_v7, %v5228_v1  ;;  %v5166_v55 = vmax.f32 %v5102_v42, 0.0  ;;  %v5036_v48 = vmul.f32 %v14431_v14, %v4791_v22 }
 0x3a9   :  { %v5355_v44 = vmax.f32 %v5163_v58, %v5291_v34  ;;  %v5356_v61 = vmax.f32 %v5164_v53, %v5290_v4  ;;  %v5231_v45 = vrot.slane %v5167_v63, 1  ;;  %v5105_v43 = vadd.f32 %v14436_v20, %v5037_v39 }
 0x3aa   :  { %v5230_v62 = vrot.slane %v5166_v55, 1  ;;  %v5104_v52 = vadd.f32 %v14436_v20, %v5036_v48  ;;  %v10693_v51 = vpop.f32.mrb[38].mxu1  ;;  %v14747_v9 = vld [vmem:[#allocation3 + $0xd0] ss:$2 sm:$0xff]  ;;  %v14751_v23 = vsel %vm2550_vm3, %v5591_v41, %v5592_v46 }
 0x3ab   :  { %16709 = vst [vmem:[#allocation21_spill] sm:$0xff] %v14751_v23  ;;  %5420 = vst.msk [vmem:[#allocation3 + $0xf8] sm:$0xff] %vm5388_vm2, %v5355_v44  ;;  %v5169_v7 = vmax.f32 %v5105_v43, 0.0  ;;  %v5039_v58 = vmul.f32 %v10693_v51, %v14431_v14  ;;  %v4801_v53 = vpop.f32.mrb[39].mxu1  ;;  %v5593_v40 = vrot.slane %v14747_v9, 7  ;;  %10757 = vmatmul.mubr.msk.f32.gmra.mrb[140].mxu0 %vm5388_vm2, %v14747_v9 }
 0x3ac   :  { %5421 = vst.msk [vmem:[#allocation3 + $0x100] sm:$0xff] %vm5388_vm2, %v5356_v61  ;;  %v5288_v1 = vsel %vm1782_vm1, %v5230_v62, %v5231_v45  ;;  %v5289_v41 = vsel %vm1782_vm1, %v5229_v49, %v5230_v62  ;;  %v5168_v42 = vmax.f32 %v5104_v52, 0.0  ;;  %v5038_v2 = vmul.f32 %v14431_v14, %v4801_v53 }
 0x3ad   :  { %v5357_v39 = vmax.f32 %v5165_v0, %v5289_v41  ;;  %v5358_v22 = vmax.f32 %v5166_v55, %v5288_v1  ;;  %v5233_v4 = vrot.slane %v5169_v7, 1  ;;  %v5107_v34 = vadd.f32 %v14436_v20, %v5039_v58 }
 0x3ae   :  { %v5232_v48 = vrot.slane %v5168_v42, 1  ;;  %v5106_v44 = vadd.f32 %v14436_v20, %v5038_v2  ;;  %v10696_v61 = vpop.f32.mrb[40].mxu1  ;;  %v14766_v43 = vld [vmem:[#allocation3 + $0xe0] ss:$2 sm:$0xff]  ;;  %v14770_v51 = vsel %vm2550_vm3, %v5592_v46, %v5593_v40 }
 0x3af   :  { %16710 = vst [vmem:[#allocation23_spill] sm:$0xff] %v14770_v51  ;;  %5422 = vst.msk [vmem:[#allocation3 + $0x108] sm:$0xff] %vm5388_vm2, %v5357_v39  ;;  %v5171_v49 = vmax.f32 %v5107_v34, 0.0  ;;  %v5041_v0 = vmul.f32 %v10696_v61, %v14431_v14  ;;  %v4811_v55 = vpop.f32.mrb[41].mxu1  ;;  %v5594_v62 = vrot.slane %v14766_v43, 7  ;;  %10759 = vmatprep.mubr.msk.f32.mxu0 %vm5388_vm2, %v14766_v43 }
 0x3b0   :  { %5423 = vst.msk [vmem:[#allocation3 + $0x110] sm:$0xff] %vm5388_vm2, %v5358_v22  ;;  %v5286_v52 = vsel %vm1782_vm1, %v5232_v48, %v5233_v4  ;;  %v5287_v46 = vsel %vm1782_vm1, %v5231_v45, %v5232_v48  ;;  %v5170_v58 = vmax.f32 %v5106_v44, 0.0  ;;  %v5040_v53 = vmul.f32 %v14431_v14, %v4811_v55 }
 0x3b1   :  { %v5359_v1 = vmax.f32 %v5167_v63, %v5287_v46  ;;  %v5360_v41 = vmax.f32 %v5168_v42, %v5286_v52  ;;  %v5235_v2 = vrot.slane %v5171_v49, 1  ;;  %v5109_v39 = vadd.f32 %v14436_v20, %v5041_v0 }
 0x3b2   :  { %v5234_v22 = vrot.slane %v5170_v58, 1  ;;  %v5108_v34 = vadd.f32 %v14436_v20, %v5040_v53  ;;  %v10699_v61 = vpop.f32.mrb[42].mxu1  ;;  %v14785_v50 = vld [vmem:[#allocation3 + $0xf0] ss:$2 sm:$0xff]  ;;  %v14789_v3 = vsel %vm2550_vm3, %v5593_v40, %v5594_v62 }
 0x3b3   :  { %16711 = vst [vmem:[#allocation25_spill] sm:$0xff] %v14789_v3  ;;  %5424 = vst.msk [vmem:[#allocation3 + $0x118] sm:$0xff] %vm5388_vm2, %v5359_v1  ;;  %v5173_v45 = vmax.f32 %v5109_v39, 0.0  ;;  %v5043_v63 = vmul.f32 %v10699_v61, %v14431_v14  ;;  %v4821_v42 = vpop.f32.mrb[43].mxu1  ;;  %v5595_v48 = vrot.slane %v14785_v50, 7  ;;  %10760 = vmatmul.mubr.msk.f32.gmra.mrb[142].mxu0 %vm5388_vm2, %v14785_v50 }
 0x3b4   :  { %5425 = vst.msk [vmem:[#allocation3 + $0x120] sm:$0xff] %vm5388_vm2, %v5360_v41  ;;  %v5284_v44 = vsel %vm1782_vm1, %v5234_v22, %v5235_v2  ;;  %v5285_v40 = vsel %vm1782_vm1, %v5233_v4, %v5234_v22  ;;  %v5172_v0 = vmax.f32 %v5108_v34, 0.0  ;;  %v5042_v55 = vmul.f32 %v14431_v14, %v4821_v42 }
 0x3b5   :  { %v5361_v52 = vmax.f32 %v5169_v7, %v5285_v40  ;;  %v5362_v46 = vmax.f32 %v5170_v58, %v5284_v44  ;;  %v5237_v53 = vrot.slane %v5173_v45, 1  ;;  %v5111_v1 = vadd.f32 %v14436_v20, %v5043_v63 }
 0x3b6   :  { %v5236_v41 = vrot.slane %v5172_v0, 1  ;;  %v5110_v39 = vadd.f32 %v14436_v20, %v5042_v55  ;;  %v10702_v61 = vpop.f32.mrb[44].mxu1  ;;  %v14804_v47 = vld [vmem:[#allocation3 + $0x100] ss:$2 sm:$0xff]  ;;  %v14808_v27 = vsel %vm2550_vm3, %v5594_v62, %v5595_v48 }
 0x3b7   :  { %16712 = vst [vmem:[#allocation27_spill] sm:$0xff] %v14808_v27  ;;  %5426 = vst.msk [vmem:[#allocation3 + $0x128] sm:$0xff] %vm5388_vm2, %v5361_v52  ;;  %v5175_v4 = vmax.f32 %v5111_v1, 0.0  ;;  %v5045_v7 = vmul.f32 %v10702_v61, %v14431_v14  ;;  %v4831_v58 = vpop.f32.mrb[45].mxu1  ;;  %v5596_v22 = vrot.slane %v14804_v47, 7  ;;  %10762 = vmatprep.mubr.msk.f32.mxu0 %vm5388_vm2, %v14804_v47 }
 0x3b8   :  { %5427 = vst.msk [vmem:[#allocation3 + $0x130] sm:$0xff] %vm5388_vm2, %v5362_v46  ;;  %v5282_v34 = vsel %vm1782_vm1, %v5236_v41, %v5237_v53  ;;  %v5283_v62 = vsel %vm1782_vm1, %v5235_v2, %v5236_v41  ;;  %v5174_v63 = vmax.f32 %v5110_v39, 0.0  ;;  %v5044_v42 = vmul.f32 %v14431_v14, %v4831_v58 }
 0x3b9   :  { %v5363_v44 = vmax.f32 %v5171_v49, %v5283_v62  ;;  %v5364_v40 = vmax.f32 %v5172_v0, %v5282_v34  ;;  %v5239_v55 = vrot.slane %v5175_v4, 1  ;;  %v5113_v52 = vadd.f32 %v14436_v20, %v5045_v7 }
 0x3ba   :  { %v5238_v46 = vrot.slane %v5174_v63, 1  ;;  %v5112_v1 = vadd.f32 %v14436_v20, %v5044_v42  ;;  %v10705_v61 = vpop.f32.mrb[46].mxu1  ;;  %v14823_v56 = vld [vmem:[#allocation3 + $0x110] ss:$2 sm:$0xff]  ;;  %v14827_v57 = vsel %vm2550_vm3, %v5595_v48, %v5596_v22 }
 0x3bb   :  { %16713 = vst [vmem:[#allocation29_spill] sm:$0xff] %v14827_v57  ;;  %5428 = vst.msk [vmem:[#allocation3 + $0x138] sm:$0xff] %vm5388_vm2, %v5363_v44  ;;  %v5177_v2 = vmax.f32 %v5113_v52, 0.0  ;;  %v5047_v49 = vmul.f32 %v10705_v61, %v14431_v14  ;;  %v4841_v0 = vpop.f32.mrb[47].mxu1  ;;  %v5597_v41 = vrot.slane %v14823_v56, 7  ;;  %10763 = vmatmul.mubr.msk.f32.gmra.mrb[144].mxu0 %vm5388_vm2, %v14823_v56 }
 0x3bc   :  { %5429 = vst.msk [vmem:[#allocation3 + $0x140] sm:$0xff] %vm5388_vm2, %v5364_v40  ;;  %v5280_v39 = vsel %vm1782_vm1, %v5238_v46, %v5239_v55  ;;  %v5281_v48 = vsel %vm1782_vm1, %v5237_v53, %v5238_v46  ;;  %v5176_v7 = vmax.f32 %v5112_v1, 0.0  ;;  %v5046_v58 = vmul.f32 %v14431_v14, %v4841_v0 }
 0x3bd   :  { %v5365_v34 = vmax.f32 %v5173_v45, %v5281_v48  ;;  %v5366_v62 = vmax.f32 %v5174_v63, %v5280_v39  ;;  %v5241_v42 = vrot.slane %v5177_v2, 1  ;;  %v5115_v44 = vadd.f32 %v14436_v20, %v5047_v49 }
 0x3be   :  { %v5240_v40 = vrot.slane %v5176_v7, 1  ;;  %v5114_v52 = vadd.f32 %v14436_v20, %v5046_v58  ;;  %v10708_v61 = vpop.f32.mrb[48].mxu1  ;;  %v14842_v57 = vld [vmem:[#allocation3 + $0x120] ss:$2 sm:$0xff]  ;;  %v14846_v27 = vsel %vm2550_vm3, %v5596_v22, %v5597_v41 }
 0x3bf   :  { %16714 = vst [vmem:[#allocation30_spill] sm:$0xff] %v14846_v27  ;;  %5430 = vst.msk [vmem:[#allocation3 + $0x148] sm:$0xff] %vm5388_vm2, %v5365_v34  ;;  %v5179_v53 = vmax.f32 %v5115_v44, 0.0  ;;  %v5049_v45 = vmul.f32 %v10708_v61, %v14431_v14  ;;  %v4851_v63 = vpop.f32.mrb[49].mxu1  ;;  %v5598_v46 = vrot.slane %v14842_v57, 7  ;;  %10765 = vmatprep.mubr.msk.f32.mxu0 %vm5388_vm2, %v14842_v57 }
 0x3c0   :  { %5431 = vst.msk [vmem:[#allocation3 + $0x150] sm:$0xff] %vm5388_vm2, %v5366_v62  ;;  %v5278_v1 = vsel %vm1782_vm1, %v5240_v40, %v5241_v42  ;;  %v5279_v22 = vsel %vm1782_vm1, %v5239_v55, %v5240_v40  ;;  %v5178_v49 = vmax.f32 %v5114_v52, 0.0  ;;  %v5048_v0 = vmul.f32 %v14431_v14, %v4851_v63 }
 0x3c1   :  { %v5367_v39 = vmax.f32 %v5175_v4, %v5279_v22  ;;  %v5368_v48 = vmax.f32 %v5176_v7, %v5278_v1  ;;  %v5243_v58 = vrot.slane %v5179_v53, 1  ;;  %v5117_v34 = vadd.f32 %v14436_v20, %v5049_v45 }
 0x3c2   :  { %v5242_v62 = vrot.slane %v5178_v49, 1  ;;  %v5116_v44 = vadd.f32 %v14436_v20, %v5048_v0  ;;  %v10711_v61 = vpop.f32.mrb[50].mxu1  ;;  %v14861_v27 = vld [vmem:[#allocation3 + $0x130] ss:$2 sm:$0xff]  ;;  %v14865_v3 = vsel %vm2550_vm3, %v5597_v41, %v5598_v46 }
 0x3c3   :  { %16715 = vst [vmem:[#allocation31_spill] sm:$0xff] %v14865_v3  ;;  %5432 = vst.msk [vmem:[#allocation3 + $0x158] sm:$0xff] %vm5388_vm2, %v5367_v39  ;;  %v5181_v55 = vmax.f32 %v5117_v34, 0.0  ;;  %v5051_v4 = vmul.f32 %v10711_v61, %v14431_v14  ;;  %v4861_v7 = vpop.f32.mrb[51].mxu1  ;;  %v5599_v40 = vrot.slane %v14861_v27, 7  ;;  %10766 = vmatmul.mubr.msk.f32.gmra.mrb[146].mxu0 %vm5388_vm2, %v14861_v27 }
 0x3c4   :  { %5433 = vst.msk [vmem:[#allocation3 + $0x160] sm:$0xff] %vm5388_vm2, %v5368_v48  ;;  %v5276_v52 = vsel %vm1782_vm1, %v5242_v62, %v5243_v58  ;;  %v5277_v41 = vsel %vm1782_vm1, %v5241_v42, %v5242_v62  ;;  %v5180_v45 = vmax.f32 %v5116_v44, 0.0  ;;  %v5050_v63 = vmul.f32 %v14431_v14, %v4861_v7 }
 0x3c5   :  { %v5369_v1 = vmax.f32 %v5177_v2, %v5277_v41  ;;  %v5370_v22 = vmax.f32 %v5178_v49, %v5276_v52  ;;  %v5245_v0 = vrot.slane %v5181_v55, 1  ;;  %v14879_v39 = vadd.f32 %v14436_v20, %v5051_v4 }
 0x3c6   :  { %v5244_v48 = vrot.slane %v5180_v45, 1  ;;  %v5118_v34 = vadd.f32 %v14436_v20, %v5050_v63  ;;  %v10714_v61 = vpop.f32.mrb[52].mxu1  ;;  %v14882_v3 = vld [vmem:[#allocation3 + $0x140] ss:$2 sm:$0xff]  ;;  %v14886_v51 = vsel %vm2550_vm3, %v5598_v46, %v5599_v40 }
 0x3c7   :  { %16716 = vst [vmem:[#allocation32_spill] sm:$0xff] %v14886_v51  ;;  %5434 = vst.msk [vmem:[#allocation3 + $0x168] sm:$0xff] %vm5388_vm2, %v5369_v1  ;;  %v5183_v2 = vmax.f32 %v14879_v39, 0.0  ;;  %v5053_v49 = vmul.f32 %v10714_v61, %v14431_v14  ;;  %v4871_v62 = vpop.f32.mrb[53].mxu1  ;;  %v5600_v44 = vrot.slane %v14882_v3, 7  ;;  %10768 = vmatprep.mubr.msk.f32.mxu0 %vm5388_vm2, %v14882_v3 }
 0x3c8   :  { %5435 = vst.msk [vmem:[#allocation3 + $0x170] sm:$0xff] %vm5388_vm2, %v5370_v22  ;;  %v5274_v46 = vsel %vm1782_vm1, %v5244_v48, %v5245_v0  ;;  %v5275_v4 = vsel %vm1782_vm1, %v5243_v58, %v5244_v48  ;;  %v5182_v7 = vmax.f32 %v5118_v34, 0.0  ;;  %v5052_v52 = vmul.f32 %v14431_v14, %v4871_v62 }
 0x3c9   :  { %v5371_v41 = vmax.f32 %v5179_v53, %v5275_v4  ;;  %v5372_v63 = vmax.f32 %v5180_v45, %v5274_v46  ;;  %v5247_v1 = vrot.slane %v5183_v2, 1  ;;  %v14902_v22 = vadd.f32 %v14436_v20, %v5053_v49 }
 0x3ca   :  { %v5246_v39 = vrot.slane %v5182_v7, 1  ;;  %v5120_v61 = vadd.f32 %v14436_v20, %v5052_v52  ;;  %v10717_v42 = vpop.f32.mrb[54].mxu1  ;;  %v14905_v51 = vld [vmem:[#allocation3 + $0x150] ss:$2 sm:$0xff]  ;;  %v14909_v38 = vsel %vm2550_vm3, %v5599_v40, %v5600_v44  ;;  %v14919_v20 = vld [vmem:[%s16443_s8 + $0x2] ss:$0 sm:$0xff] }
 0x3cb   :  { %16717 = vst [vmem:[#allocation33_spill] sm:$0xff] %v14909_v38  ;;  %5436 = vst.msk [vmem:[#allocation3 + $0x178] sm:$0xff] %vm5388_vm2, %v5371_v41  ;;  %v5185_v53 = vmax.f32 %v14902_v22, 0.0  ;;  %v5055_v45 = vmul.f32 %v14919_v20, %v10717_v42  ;;  %v4881_v48 = vpop.f32.mrb[55].mxu1  ;;  %v5601_v40 = vrot.slane %v14905_v51, 7  ;;  %10769 = vmatmul.mubr.msk.f32.gmra.mrb[148].mxu0 %vm5388_vm2, %v14905_v51 }
 0x3cc   :  { %5437 = vst.msk [vmem:[#allocation3 + $0x180] sm:$0xff] %vm5388_vm2, %v5372_v63  ;;  %v5272_v34 = vsel %vm1782_vm1, %v5246_v39, %v5247_v1  ;;  %v5273_v49 = vsel %vm1782_vm1, %v5245_v0, %v5246_v39  ;;  %v5184_v62 = vmax.f32 %v5120_v61, 0.0  ;;  %v5054_v46 = vmul.f32 %v14919_v20, %v4881_v48  ;;  %v14933_v42 = vld [vmem:[%s16443_s8 + $0x3] ss:$0 sm:$0xff] }
 0x3cd   :  { %v5373_v4 = vmax.f32 %v5181_v55, %v5273_v49  ;;  %v5374_v52 = vmax.f32 %v5182_v7, %v5272_v34  ;;  %v5249_v41 = vrot.slane %v5185_v53, 1  ;;  %v14936_v63 = vadd.f32 %v14933_v42, %v5055_v45 }
 0x3ce   :  { %v5248_v14 = vrot.slane %v5184_v62, 1  ;;  %v5122_v58 = vadd.f32 %v14933_v42, %v5054_v46  ;;  %v10720_v0 = vpop.f32.mrb[56].mxu1  ;;  %v14940_v39 = vld [vmem:[#allocation3 + $0x160] ss:$2 sm:$0xff]  ;;  %v14944_v55 = vsel %vm2550_vm3, %v5600_v44, %v5601_v40 }
 0x3cf   :  { %16718 = vst [vmem:[#allocation34_spill] sm:$0xff] %v14944_v55  ;;  %5438 = vst.msk [vmem:[#allocation3 + $0x188] sm:$0xff] %vm5388_vm2, %v5373_v4  ;;  %v5187_v61 = vmax.f32 %v14936_v63, 0.0  ;;  %v5057_v45 = vmul.f32 %v14919_v20, %v10720_v0  ;;  %v4891_v48 = vpop.f32.mrb[57].mxu1  ;;  %v5602_v34 = vrot.slane %v14940_v39, 7  ;;  %10771 = vmatprep.mubr.msk.f32.mxu0 %vm5388_vm2, %v14940_v39 }
 0x3d0   :  { %5439 = vst.msk [vmem:[#allocation3 + $0x190] sm:$0xff] %vm5388_vm2, %v5374_v52  ;;  %v5270_v44 = vsel %vm1782_vm1, %v5248_v14, %v5249_v41  ;;  %v5271_v49 = vsel %vm1782_vm1, %v5247_v1, %v5248_v14  ;;  %v5186_v46 = vmax.f32 %v5122_v58, 0.0  ;;  %v5056_v4 = vmul.f32 %v14919_v20, %v4891_v48 }
 0x3d1   :  { %v5375_v52 = vmax.f32 %v5183_v2, %v5271_v49  ;;  %v5376_v7 = vmax.f32 %v5184_v62, %v5270_v44  ;;  %v5251_v63 = vrot.slane %v5187_v61, 1  ;;  %v14960_v0 = vadd.f32 %v14933_v42, %v5057_v45 }
 0x3d2   :  { %v5250_v55 = vrot.slane %v5186_v46, 1  ;;  %v5124_v38 = vadd.f32 %v14933_v42, %v5056_v4  ;;  %v10723_v23 = vpop.f32.mrb[58].mxu1  ;;  %v14964_v33 = vld [vmem:[#allocation3 + $0x170] ss:$2 sm:$0xff]  ;;  %v14968_v1 = vsel %vm2550_vm3, %v5601_v40, %v5602_v34 }
 0x3d3   :  { %16719 = vst [vmem:[#allocation36_spill] sm:$0xff] %v14968_v1  ;;  %5440 = vst.msk [vmem:[#allocation3 + $0x198] sm:$0xff] %vm5388_vm2, %v5375_v52  ;;  %v5189_v2 = vmax.f32 %v14960_v0, 0.0  ;;  %v5059_v14 = vmul.f32 %v14919_v20, %v10723_v23  ;;  %v4901_v62 = vpop.f32.mrb[59].mxu1  ;;  %v5603_v45 = vrot.slane %v14964_v33, 7  ;;  %10772 = vmatmul.mubr.msk.f32.gmra.mrb[150].mxu0 %vm5388_vm2, %v14964_v33 }
 0x3d4   :  { %5441 = vst.msk [vmem:[#allocation3 + $0x1a0] sm:$0xff] %vm5388_vm2, %v5376_v7  ;;  %v5268_v40 = vsel %vm1782_vm1, %v5250_v55, %v5251_v63  ;;  %v5269_v48 = vsel %vm1782_vm1, %v5249_v41, %v5250_v55  ;;  %v5188_v44 = vmax.f32 %v5124_v38, 0.0  ;;  %v5058_v49 = vmul.f32 %v14919_v20, %v4901_v62 }
 0x3d5   :  { %v5377_v7 = vmax.f32 %v5185_v53, %v5269_v48  ;;  %v5378_v4 = vmax.f32 %v5186_v46, %v5268_v40  ;;  %v5253_v52 = vrot.slane %v5189_v2, 1  ;;  %v5127_v23 = vadd.f32 %v14933_v42, %v5059_v14 }
 0x3d6   :  { %v5252_v58 = vrot.slane %v5188_v44, 1  ;;  %v5126_v22 = vadd.f32 %v14933_v42, %v5058_v49  ;;  %v10726_v1 = vpop.f32.mrb[60].mxu1  ;;  %v14986_v17 = vld [vmem:[#allocation3 + $0x180] ss:$2 sm:$0xff]  ;;  %v14990_v29 = vsel %vm2550_vm3, %v5602_v34, %v5603_v45 }
 0x3d7   :  { %16720 = vst [vmem:[#allocation38_spill] sm:$0xff] %v14990_v29  ;;  %5442 = vst.msk [vmem:[#allocation3 + $0x1a8] sm:$0xff] %vm5388_vm2, %v5377_v7  ;;  %v5191_v53 = vmax.f32 %v5127_v23, 0.0  ;;  %v5061_v41 = vmul.f32 %v14919_v20, %v10726_v1  ;;  %v4911_v55 = vpop.f32.mrb[61].mxu1  ;;  %v5604_v46 = vrot.slane %v14986_v17, 7  ;;  %10774 = vmatprep.mubr.msk.f32.mxu0 %vm5388_vm2, %v14986_v17 }
 0x3d8   :  { %5443 = vst.msk [vmem:[#allocation3 + $0x1b0] sm:$0xff] %vm5388_vm2, %v5378_v4  ;;  %v5266_v14 = vsel %vm1782_vm1, %v5252_v58, %v5253_v52  ;;  %v5267_v34 = vsel %vm1782_vm1, %v5251_v63, %v5252_v58  ;;  %v5190_v62 = vmax.f32 %v5126_v22, 0.0  ;;  %v5060_v40 = vmul.f32 %v14919_v20, %v4911_v55 }
 0x3d9   :  { %v5379_v48 = vmax.f32 %v5187_v61, %v5267_v34  ;;  %v5380_v49 = vmax.f32 %v5188_v44, %v5266_v14  ;;  %v5255_v7 = vrot.slane %v5191_v53, 1  ;;  %v5129_v1 = vadd.f32 %v14933_v42, %v5061_v41 }
 0x3da   :  { %v5254_v4 = vrot.slane %v5190_v62, 1  ;;  %v5128_v23 = vadd.f32 %v14933_v42, %v5060_v40  ;;  %v10729_v38 = vpop.f32.mrb[62].mxu1  ;;  %v15006_v0 = vld [vmem:[#allocation3 + $0x190] ss:$2 sm:$0xff]  ;;  %v15010_v29 = vsel %vm2550_vm3, %v5603_v45, %v5604_v46  ;;  %v16722_v63 = vrot.slane %v14515_v19, 1 }
 0x3db   :  { %16721 = vst [vmem:[#allocation40_spill] sm:$0xff] %v15010_v29  ;;  %v16723_v22 = vrot.slane %v14492_v36, 1  ;;  %5444 = vst.msk [vmem:[#allocation3 + $0x1b8] sm:$0xff] %vm5388_vm2, %v5379_v48  ;;  %v5193_v44 = vmax.f32 %v5129_v1, 0.0  ;;  %v5063_v41 = vmul.f32 %v14919_v20, %v10729_v38  ;;  %v4921_v55 = vpop.f32.mrb[63].mxu1  ;;  %v5605_v45 = vrot.slane %v15006_v0, 7  ;;  %10775 = vmatmul.mubr.msk.f32.gmra.mrb[152].mxu0 %vm5388_vm2, %v15006_v0 }
 0x3dc   :  { %5445 = vst.msk [vmem:[#allocation3 + $0x1c0] sm:$0xff] %vm5388_vm2, %v5380_v49  ;;  %v5264_v14 = vsel %vm1782_vm1, %v5254_v4, %v5255_v7  ;;  %v5265_v34 = vsel %vm1782_vm1, %v5253_v52, %v5254_v4  ;;  %v5192_v40 = vmax.f32 %v5128_v23, 0.0  ;;  %v5062_v48 = vmul.f32 %v14919_v20, %v4921_v55 }
 0x3dd   :  { %v15018_v61 = vsel %vm1782_vm1, %v16723_v22, %v16722_v63  ;;  %v5381_v63 = vmax.f32 %v5189_v2, %v5265_v34  ;;  %v5382_v49 = vmax.f32 %v5190_v62, %v5264_v14  ;;  %v5257_v1 = vrot.slane %v5193_v44, 1 }
 0x3de   :  { %16724 = vst [vmem:[#allocation41_spill] sm:$0xff] %v15018_v61  ;;  %v5131_v38 = vadd.f32 %v14933_v42, %v5063_v41  ;;  %v5782_v22 = vrot.slane %v14690_v54, 1  ;;  %v5256_v58 = vrot.slane %v5192_v40, 1  ;;  %v5130_v61 = vadd.f32 %v14933_v42, %v5062_v48  ;;  %v15035_v29 = vld [vmem:[#allocation3 + $0x1a0] ss:$2 sm:$0xff] }
 0x3df   :  { %v15039_v32 = vsel %vm2550_vm3, %v5604_v46, %v5605_v45  ;;  %v5783_v52 = vrot.slane %v14709_v16, 1  ;;  %5446 = vst.msk [vmem:[#allocation3 + $0x1c8] sm:$0xff] %vm5388_vm2, %v5381_v63  ;;  %5447 = vst.msk [vmem:[#allocation3 + $0x1d0] sm:$0xff] %vm5388_vm2, %v5382_v49  ;;  %v5606_v2 = vrot.slane %v15035_v29, 7  ;;  %10777 = vmatprep.mubr.msk.f32.mxu0 %vm5388_vm2, %v15035_v29  ;;  %v16725_v54 = vrot.slane %v14535_v11, 1 }
 0x3e0   :  { %v5195_v20 = vmax.f32 %v5131_v38, 0.0  ;;  %v16726_v42 = vrot.slane %v14515_v19, 1  ;;  %v5262_v16 = vsel %vm1782_vm1, %v5256_v58, %v5257_v1  ;;  %v5263_v62 = vsel %vm1782_vm1, %v5255_v7, %v5256_v58 }
 0x3e1   :  { %v5194_v4 = vmax.f32 %v5130_v61, 0.0  ;;  %v16727_v23 = vrot.slane %v14557_v13, 1  ;;  %v16728_v41 = vmov %v16725_v54  ;;  %v5383_v19 = vmax.f32 %v5191_v53, %v5263_v62 }
 0x3e2   :  { %v15053_v46 = vsel %vm1782_vm1, %v16726_v42, %v16725_v54  ;;  %v5384_v14 = vmax.f32 %v5192_v40, %v5262_v16  ;;  %v5259_v34 = vrot.slane %v5195_v20, 1  ;;  %v15069_v48 = vsel %vm2550_vm3, %v5605_v45, %v5606_v2  ;;  %v15072_v7 = vld [vmem:[#allocation3 + $0x1b0] ss:$2 sm:$0xff] }
 0x3e3   :  { %v15065_v55 = vsel %vm1782_vm1, %v16728_v41, %v16727_v23  ;;  %v5784_v63 = vrot.slane %v14728_v24, 1  ;;  %v5258_v49 = vrot.slane %v5194_v4, 1  ;;  %v16729_v61 = vrot.slane %v14576_v21, 1  ;;  %5448 = vst.msk [vmem:[#allocation3 + $0x1d8] sm:$0xff] %vm5388_vm2, %v5383_v19  ;;  %10778 = vmatmul.mubr.msk.f32.gmra.mrb[154].mxu0 %vm5388_vm2, %v15072_v7 }
 0x3e4   :  { %v16730_v11 = vmov %v16727_v23  ;;  %v16731_v53 = vrot.slane %v14595_v35, 1  ;;  %v5785_v24 = vrot.slane %v14747_v9, 1  ;;  %5449 = vst.msk [vmem:[#allocation3 + $0x1e0] sm:$0xff] %vm5388_vm2, %v5384_v14  ;;  %v5323_v13 = vsel %vm1782_vm1, %v5259_v34, %v14445_v30 }
 0x3e5   :  { %v15080_v58 = vsel %vm1782_vm1, %v16730_v11, %v16729_v61  ;;  %v16732_v40 = vmov %v16729_v61  ;;  %v5607_v38 = vrot.slane %v15072_v7, 7  ;;  %v16733_v21 = vrot.slane %v14614_v10, 1 }
 0x3e6   :  { %v15088_v45 = vsel %vm1782_vm1, %v16732_v40, %v16731_v53  ;;  %v16734_v54 = vmov %v16731_v53  ;;  %v5786_v42 = vrot.slane %v14766_v43, 1  ;;  %v5387_v16 = vmax.f32 %v5195_v20, %v5323_v13 }
 0x3e7   :  { %v15105_v9 = vsel %vm1782_vm1, %v16734_v54, %v16733_v21  ;;  %v5260_v62 = vsel %vm1782_vm1, %v5258_v49, %v5259_v34  ;;  %v5261_v30 = vsel %vm1782_vm1, %v5257_v1, %v5258_v49  ;;  %v15116_v35 = vsel %vm2550_vm3, %v5606_v2, %v5607_v38 }
 0x3e8   :  { %v5385_v23 = vmax.f32 %v5193_v44, %v5261_v30  ;;  %v5386_v41 = vmax.f32 %v5194_v4, %v5260_v62  ;;  %v16735_v19 = vrot.slane %v14633_v12, 1  ;;  %v16736_v14 = vmov %v16733_v21  ;;  %5452 = vst.msk [vmem:[#allocation3 + $0x1f8] sm:$0xff] %vm5388_vm2, %v5387_v16  ;;  %v15128_v44 = vld [vmem:[#allocation3 + $0x1c0] ss:$2 sm:$0xff] }
 0x3e9   :  { %v5787_v20 = vrot.slane %v14785_v50, 1  ;;  %v16737_v1 = vrot.slane %v14652_v37, 1  ;;  %v16739_v10 = vrot.slane %v14671_v25, 1  ;;  %v5788_v50 = vrot.slane %v14804_v47, 1  ;;  %10780 = vmatprep.mubr.msk.f32.mxu0 %vm5388_vm2, %v15128_v44 }
 0x3ea   :  { %v15124_v43 = vsel %vm1782_vm1, %v16736_v14, %v16735_v19  ;;  %v16738_v4 = vmov %v16735_v19  ;;  %v5789_v61 = vrot.slane %v14823_v56, 1  ;;  %5450 = vst.msk [vmem:[#allocation3 + $0x1e8] sm:$0xff] %vm5388_vm2, %v5385_v23  ;;  %5451 = vst.msk [vmem:[#allocation3 + $0x1f0] sm:$0xff] %vm5388_vm2, %v5386_v41  ;;  %v5790_v11 = vrot.slane %v14842_v57, 1  ;;  %v15180_v21 = vld [vmem:[#allocation3 + $0x1d0] ss:$2 sm:$0xff] }
 0x3eb   :  { %v15136_v2 = vsel %vm1782_vm1, %v16738_v4, %v16737_v1  ;;  %v16740_v34 = vmov %v16737_v1  ;;  %v16741_v12 = vmov %v16739_v10  ;;  %v5791_v53 = vrot.slane %v14861_v27, 1  ;;  %10781 = vmatmul.mubr.msk.f32.gmra.mrb[156].mxu0 %vm5388_vm2, %v15180_v21  ;;  %v9451_v4 = vld [vmem:[%s16444_s3 + $0x50] sm:$0xff] }
 0x3ec   :  { %v15144_v49 = vsel %vm1782_vm1, %v16740_v34, %v16739_v10  ;;  %v15156_v37 = vsel %vm1782_vm1, %v16741_v12, %v5782_v22  ;;  %v15162_v56 = vsel %vm1782_vm1, %v5782_v22, %v5783_v52  ;;  %v15166_v47 = vsel %vm1782_vm1, %v5783_v52, %v5784_v63  ;;  %v9452_v10 = vld [vmem:[%s16444_s3 + $0x58] sm:$0xff]  ;;  %v9489_v1 = vld [vmem:[%s16445_s4 + $0x50] sm:$0xff] }
 0x3ed   :  { %v5792_v40 = vrot.slane %v14882_v3, 1  ;;  %v15171_v25 = vsel %vm1782_vm1, %v5784_v63, %v5785_v24  ;;  %v15175_v13 = vsel %vm1782_vm1, %v5785_v24, %v5786_v42  ;;  %v5793_v57 = vrot.slane %v14905_v51, 1 }
 0x3ee   :  { %v5794_v27 = vrot.slane %v14940_v39, 1  ;;  %v5795_v22 = vrot.slane %v14964_v33, 1  ;;  %v15184_v52 = vsel %vm1782_vm1, %v5786_v42, %v5787_v20  ;;  %v5516_v3 = vand.u32 31, %v12192_v5 }
 0x3ef   :  { %v15191_v63 = vsel %vm1782_vm1, %v5787_v20, %v5788_v50  ;;  %v15195_v51 = vsel %vm1782_vm1, %v5788_v50, %v5789_v61  ;;  %v5796_v33 = vrot.slane %v14986_v17, 1  ;;  %v5797_v39 = vrot.slane %v15006_v0, 1 }
 0x3f0   :  { %v15201_v24 = vsel %vm1782_vm1, %v5789_v61, %v5790_v11  ;;  %v15205_v54 = vsel %vm1782_vm1, %v5790_v11, %v5791_v53  ;;  %v5798_v42 = vrot.slane %v15035_v29, 1  ;;  %v5799_v16 = vrot.slane %v15072_v7, 1 }
 0x3f1   :  { %v15210_v62 = vadd.s32 32, %v12192_v5  ;;  %v15212_v30 = vld [vmem:[#allocation3 + $0x1e0] ss:$2 sm:$0xff]  ;;  %v15214_v17 = vld [vmem:[#allocation3 + $0x1f0] ss:$2 sm:$0xff]  ;;  %v15218_v0 = vsel %vm1782_vm1, %v5791_v53, %v5792_v40  ;;  %v15222_v23 = vsel %vm1782_vm1, %v5792_v40, %v5793_v57  ;;  %v15226_v29 = vsel %vm1782_vm1, %v5793_v57, %v5794_v27 }
 0x3f2   :  { %v15230_v41 = vsel %vm1782_vm1, %v5794_v27, %v5795_v22  ;;  %v5800_v19 = vrot.slane %v15128_v44, 1  ;;  %v5801_v14 = vrot.slane %v15180_v21, 1  ;;  %10783 = vmatprep.mubr.msk.f32.mxu0 %vm5388_vm2, %v15212_v30  ;;  %v5611_v20 = vrot.slane %v15214_v17, 7 }
 0x3f3   :  { %vm15237_vm8 = vcmp.eq.s32.totalorder %v5516_v3, 0  ;;  %v5802_v34 = vrot.slane %v15212_v30, 1  ;;  %v5803_v50 = vrot.slane %v15214_v17, 1  ;;  %10784 = vmatmul.mubr.msk.f32.gmra.mrb[158].mxu0 %vm5388_vm2, %v15214_v17  ;;  %v15253_v61 = vsel %vm1782_vm1, %v5795_v22, %v5796_v33  ;;  %v16766_v17 = vld [vmem:[#allocation10_spill] sm:$0xff] }
 0x3f4   :  { %v15257_v12 = vsel %vm1782_vm1, %v5796_v33, %v5797_v39  ;;  %v16744_v11 = vrot.slane %v14492_v36, 7  ;;  %v5520_v40 = vand.u32 31, %v15210_v62  ;;  %v15268_v57 = vsel %vm1782_vm1, %v5797_v39, %v5798_v42  ;;  %v9487_v33 = vld [vmem:[%s16445_s4 + $0x40] sm:$0xff] }
 0x3f5   :  { %v11242_v22 = vpack.c.bf16 %v9452_v10, %v9451_v4  ;;  %v15274_v3 = vsel %vm1782_vm1, %v5798_v42, %v5799_v16  ;;  %v15285_v39 = vsel %vm1782_vm1, %v5799_v16, %v5800_v19  ;;  %v9490_v42 = vld [vmem:[%s16445_s4 + $0x58] sm:$0xff]  ;;  %v15297_v4 = vsel %vm1782_vm1, %v5800_v19, %v5801_v14 }
 0x3f6   :  { %v5643_v53 = vsel %vm2550_vm3, %v5611_v20, %v16744_v11  ;;  %v9488_v11 = vld [vmem:[%s16445_s4 + $0x48] sm:$0xff]  ;;  %v15301_v10 = vsel %vm1782_vm1, %v5801_v14, %v5802_v34  ;;  %v15305_v16 = vsel %vm1782_vm1, %v5802_v34, %v5803_v50  ;;  %vm5552_vm9 = vcmp.eq.s32.totalorder %v5520_v40, 0  ;;  %v9491_v34 = vld [vmem:[%s16445_s4 + $0x60] sm:$0xff] }
 0x3f7   :  { %v5708_v27 = vsel %vm15237_vm8, 0.0, %v5643_v53  ;;  %v11246_v53 = vpack.c.bf16 %v9488_v11, %v9487_v33  ;;  %v11250_v14 = vpack.c.bf16 %v9490_v42, %v9489_v1  ;;  %v16750_v33 = vld [vmem:[#allocation21_spill] sm:$0xff]  ;;  %v16752_v42 = vld [vmem:[#allocation23_spill] sm:$0xff]  ;;  %v15395_v7 = vadd.s32 24, %v12192_v5 }
 0x3f8   :  { %10794 = vmatprep.mubr.msk.f32.mxu0 %vm5388_vm2, %v5708_v27 }
 0x3f9   :  { %10795 = vmatmul.mubr.msk.f32.vlgmr.msra.gmra.mrb[128].mxu0 %vm5388_vm2, %v14541_v28  ;;  %v16745_v28 = vrot.slane %v14492_v36, 1  ;;  %11247 = vmatprep.subr.bf16.mxu1 %v11246_v53  ;;  %v5712_v36 = vsel %vm5552_vm9, 0.0, %v14599_v6  ;;  %v16746_v6 = vld [vmem:[#allocation17_spill] sm:$0xff] }
 0x3fa   :  { %11241 = vmatpush3.bf16.msra.mxu0 %v14517_v60  ;;  %10797 = vmatprep.mubr.msk.f32.mxu0 %vm5388_vm2, %v14561_v18  ;;  %v9492_v60 = vld [vmem:[%s16445_s4 + $0x68] sm:$0xff]  ;;  %v5524_v18 = vand.u32 31, %v14109_v15 }
 0x3fb   :  { %v15314_v19 = vsel %vm1782_vm1, %v5803_v50, %v16745_v28  ;;  %11243 = vmatprep.subr.bf16.mxu0 %v11242_v22  ;;  %11249 = vmatpush3.bf16.msra.mxu1 %v11246_v53  ;;  %v11254_v50 = vpack.c.bf16 %v9492_v60, %v9491_v34  ;;  %v16753_v28 = vld [vmem:[#allocation25_spill] sm:$0xff]  ;;  %v2314_v53 = vadd.s32 160, %v12192_v5 }
 0x3fc   :  { %11251 = vmatprep.subr.bf16.mxu1 %v11250_v14  ;;  %vm5556_vm10 = vcmp.eq.s32.totalorder %v5524_v18, 0  ;;  %v16755_v34 = vld [vmem:[#allocation29_spill] sm:$0xff]  ;;  %v16756_v18 = vld [vmem:[#allocation30_spill] sm:$0xff] }
 0x3fd   :  { %10798 = vmatmul.mubr.msk.f32.gmra.mrb[130].mxu0 %vm5388_vm2, %v14580_v26  ;;  %v15332_v26 = vadd.s32 96, %v12192_v5  ;;  %v5716_v40 = vsel %vm5556_vm10, 0.0, %v16746_v6  ;;  %v16758_v6 = vld [vmem:[#allocation32_spill] sm:$0xff] }
 0x3fe   :  { %10800 = vmatprep.mubr.msk.f32.mxu0 %vm5388_vm2, %v5712_v36  ;;  %11245 = vmatpush3.bf16.msra.mxu0 %v11242_v22  ;;  %v16748_v22 = vld [vmem:[#allocation19_spill] sm:$0xff]  ;;  %v5536_v36 = vand.u32 31, %v2314_v53 }
 0x3ff   :  { %11253 = vmatpush3.bf16.msra.mxu1 %v11250_v14  ;;  %v5528_v27 = vand.u32 31, %v15332_v26  ;;  %v16754_v14 = vld [vmem:[#allocation27_spill] sm:$0xff] }
 0x400   :  { %11255 = vmatprep.subr.bf16.mxu1 %v11254_v50  ;;  %vm5568_vm13 = vcmp.eq.s32.totalorder %v5536_v36, 0  ;;  %v15418_v36 = vadd.s32 88, %v12192_v5 }
 0x401   :  { %10801 = vmatmul.mubr.msk.f32.gmra.mrb[132].mxu0 %vm5388_vm2, %v14618_v8  ;;  %v16747_v8 = vld [vmem:[#allocation18_spill] sm:$0xff]  ;;  %vm5560_vm11 = vcmp.eq.s32.totalorder %v5528_v27, 0 }
 0x402   :  { %10803 = vmatprep.mubr.msk.f32.mxu0 %vm5388_vm2, %v14637_v59  ;;  %v16749_v59 = vld [vmem:[#allocation20_spill] sm:$0xff]  ;;  %v5720_v11 = vsel %vm5560_vm11, 0.0, %v16750_v33 }
 0x403   :  { %11257 = vmatpush3.bf16.msra.mxu1 %v11254_v50  ;;  %v16757_v50 = vld [vmem:[#allocation31_spill] sm:$0xff]  ;;  %v16762_v33 = vld [vmem:[#allocation36_spill] sm:$0xff] }
 0x405   :  { %10804 = vmatmul.mubr.msk.f32.gmra.mrb[134].mxu0 %vm5388_vm2, %v14656_v31  ;;  %v16751_v31 = vld [vmem:[#allocation8_spill] sm:$0xff] }
 0x406   :  { %10806 = vmatprep.mubr.msk.f32.mxu0 %vm5388_vm2, %v5716_v40  ;;  %v5532_v1 = vand.u32 31, %v16751_v31  ;;  %v16759_v40 = vld [vmem:[#allocation33_spill] sm:$0xff]  ;;  %v16763_v31 = vld [vmem:[#allocation38_spill] sm:$0xff] }
 0x407   :  { %v5728_v27 = vsel %vm5568_vm13, 0.0, %v16759_v40 }
 0x408   :  { %vm5564_vm12 = vcmp.eq.s32.totalorder %v5532_v1, 0  ;;  %v16764_v1 = vld [vmem:[#allocation40_spill] sm:$0xff] }
 0x409   :  { %10807 = vmatmul.mubr.msk.f32.gmra.mrb[136].mxu0 %vm5388_vm2, %v16747_v8  ;;  %v5724_v60 = vsel %vm5564_vm12, 0.0, %v16755_v34  ;;  %v16760_v8 = vld [vmem:[#allocation9_spill] sm:$0xff]  ;;  %v5609_v34 = vrot.slane %v15180_v21, 7 }
 0x40a   :  { %10809 = vmatprep.mubr.msk.f32.mxu0 %vm5388_vm2, %v16748_v22  ;;  %v5540_v22 = vand.u32 31, %v16760_v8  ;;  %v16765_v21 = vld [vmem:[#allocation41_spill] sm:$0xff] }
 0x40c   :  { %vm5572_vm14 = vcmp.eq.s32.totalorder %v5540_v22, 0 }
 0x40d   :  { %10810 = vmatmul.mubr.msk.f32.gmra.mrb[138].mxu0 %vm5388_vm2, %v16749_v59  ;;  %v16761_v59 = vld [vmem:[#allocation34_spill] sm:$0xff] }
 0x40e   :  { %10812 = vmatprep.mubr.msk.f32.mxu0 %vm5388_vm2, %v5720_v11  ;;  %v2322_v11 = vadd.s32 224, %v12192_v5 }
 0x410   :  { %v5544_v53 = vand.u32 31, %v2322_v11 }
 0x411   :  { %10813 = vmatmul.mubr.msk.f32.gmra.mrb[140].mxu0 %vm5388_vm2, %v16752_v42  ;;  %v5732_v42 = vsel %vm5572_vm14, 0.0, %v16764_v1 }
 0x412   :  { %10815 = vmatprep.mubr.msk.f32.mxu0 %vm5388_vm2, %v16753_v28  ;;  %v5608_v28 = vrot.slane %v15128_v44, 7  ;;  %vm5576_vm15 = vcmp.eq.s32.totalorder %v5544_v53, 0 }
 0x415   :  { %10816 = vmatmul.mubr.msk.f32.gmra.mrb[142].mxu0 %vm5388_vm2, %v16754_v14  ;;  %v5615_v14 = vsel %vm2550_vm3, %v5607_v38, %v5608_v28 }
 0x416   :  { %10818 = vmatprep.mubr.msk.f32.mxu0 %vm5388_vm2, %v5724_v60  ;;  %v5610_v60 = vrot.slane %v15212_v30, 7  ;;  %v5736_v44 = vsel %vm5576_vm15, 0.0, %v5615_v14 }
 0x418   :  { %v5612_v38 = vsel %vm2550_vm3, %v5610_v60, %v5611_v20  ;;  %v5523_v20 = vand.u32 31, %v16766_v17 }
 0x419   :  { %10819 = vmatmul.mubr.msk.f32.gmra.mrb[144].mxu0 %vm5388_vm2, %v16756_v18 }
 0x41a   :  { %10821 = vmatprep.mubr.msk.f32.mxu0 %vm5388_vm2, %v16757_v50  ;;  %vm5747_vm5 = vcmp.eq.s32.totalorder %v5523_v20, 31 }
 0x41d   :  { %10822 = vmatmul.mubr.msk.f32.gmra.mrb[146].mxu0 %vm5388_vm2, %v16758_v6 }
 0x41e   :  { %10824 = vmatprep.mubr.msk.f32.mxu0 %vm5388_vm2, %v5728_v27 }
 0x421   :  { %10825 = vmatmul.mubr.msk.f32.gmra.mrb[148].mxu0 %vm5388_vm2, %v16761_v59 }
 0x422   :  { %10827 = vmatprep.mubr.msk.f32.mxu0 %vm5388_vm2, %v16762_v33 }
 0x425   :  { %10828 = vmatmul.mubr.msk.f32.gmra.mrb[150].mxu0 %vm5388_vm2, %v16763_v31 }
 0x426   :  { %10830 = vmatprep.mubr.msk.f32.mxu0 %vm5388_vm2, %v5732_v42 }
 0x429   :  { %10831 = vmatmul.mubr.msk.f32.gmra.mrb[152].mxu0 %vm5388_vm2, %v15039_v32  ;;  %v5614_v32 = vsel %vm2550_vm3, %v5608_v28, %v5609_v34 }
 0x42a   :  { %10833 = vmatprep.mubr.msk.f32.mxu0 %vm5388_vm2, %v15069_v48  ;;  %v5613_v48 = vsel %vm2550_vm3, %v5609_v34, %v5610_v60 }
 0x42d   :  { %10834 = vmatmul.mubr.msk.f32.gmra.mrb[154].mxu0 %vm5388_vm2, %v15116_v35  ;;  %v5519_v35 = vand.u32 31, %v15395_v7 }
 0x42e   :  { %10836 = vmatprep.mubr.msk.f32.mxu0 %vm5388_vm2, %v5736_v44 }
 0x42f   :  { %vm5743_vm4 = vcmp.eq.s32.totalorder %v5519_v35, 31 }
 0x430   :  { %v5903_v30 = vsel %vm5743_vm4, 0.0, %v15080_v58 }
 0x431   :  { %10837 = vmatmul.mubr.msk.f32.gmra.mrb[156].mxu0 %vm5388_vm2, %v5614_v32 }
 0x432   :  { %10839 = vmatprep.mubr.msk.f32.mxu0 %vm5388_vm2, %v5613_v48 }
 0x435   :  { %10840 = vmatmul.mubr.msk.f32.gmra.mrb[158].mxu0 %vm5388_vm2, %v5612_v38 }
 0x436   :  { %10850 = vmatprep.mubr.msk.f32.mxu0 %vm5388_vm2, %v16765_v21 }
 0x439   :  { %10851 = vmatmul.mubr.msk.f32.vlgmr.msra.gmra.mrb[128].mxu0 %vm5388_vm2, %v15053_v46  ;;  %v5907_v46 = vsel %vm5747_vm5, 0.0, %v15136_v2 }
 0x43a   :  { %10853 = vmatprep.mubr.msk.f32.mxu0 %vm5388_vm2, %v15065_v55  ;;  %v5527_v55 = vand.u32 31, %v15418_v36 }
 0x43c   :  { %vm5751_vm6 = vcmp.eq.s32.totalorder %v5527_v55, 31 }
 0x43d   :  { %10854 = vmatmul.mubr.msk.f32.gmra.mrb[130].mxu0 %vm5388_vm2, %v5903_v30  ;;  %v5911_v58 = vsel %vm5751_vm6, 0.0, %v15166_v47 }
 0x43e   :  { %10856 = vmatprep.mubr.msk.f32.mxu0 %vm5388_vm2, %v15088_v45  ;;  %v16767_v45 = vld [vmem:[#allocation11_spill] sm:$0xff] }
 0x441   :  { %10857 = vmatmul.mubr.msk.f32.gmra.mrb[132].mxu0 %vm5388_vm2, %v15105_v9  ;;  %v5531_v9 = vand.u32 31, %v16767_v45 }
 0x442   :  { %10859 = vmatprep.mubr.msk.f32.mxu0 %vm5388_vm2, %v15124_v43  ;;  %v2313_v43 = vadd.s32 152, %v12192_v5 }
 0x443   :  { %vm5755_vm7 = vcmp.eq.s32.totalorder %v5531_v9, 31 }
 0x444   :  { %v5915_v2 = vsel %vm5755_vm7, 0.0, %v15191_v63 }
 0x445   :  { %10860 = vmatmul.mubr.msk.f32.gmra.mrb[134].mxu0 %vm5388_vm2, %v5907_v46 }
 0x446   :  { %10862 = vmatprep.mubr.msk.f32.mxu0 %vm5388_vm2, %v15144_v49  ;;  %v5535_v49 = vand.u32 31, %v2313_v43 }
 0x448   :  { %vm5759_vm8 = vcmp.eq.s32.totalorder %v5535_v49, 31 }
 0x449   :  { %10863 = vmatmul.mubr.msk.f32.gmra.mrb[136].mxu0 %vm5388_vm2, %v15156_v37  ;;  %v5919_v37 = vsel %vm5759_vm8, 0.0, %v15218_v0  ;;  %v9493_v0 = vld [vmem:[%s16445_s4 + $0x70] sm:$0xff] }
 0x44a   :  { %10865 = vmatprep.mubr.msk.f32.mxu0 %vm5388_vm2, %v15162_v56  ;;  %v16768_v56 = vld [vmem:[#allocation13_spill] sm:$0xff] }
 0x44b   :  { %v5539_v47 = vand.u32 31, %v16768_v56 }
 0x44d   :  { %10866 = vmatmul.mubr.msk.f32.gmra.mrb[138].mxu0 %vm5388_vm2, %v5911_v58  ;;  %vm5763_vm9 = vcmp.eq.s32.totalorder %v5539_v47, 31 }
 0x44e   :  { %10868 = vmatprep.mubr.msk.f32.mxu0 %vm5388_vm2, %v15171_v25  ;;  %v2321_v25 = vadd.s32 216, %v12192_v5 }
 0x451   :  { %10869 = vmatmul.mubr.msk.f32.gmra.mrb[140].mxu0 %vm5388_vm2, %v15175_v13  ;;  %v5923_v13 = vsel %vm5763_vm9, 0.0, %v15253_v61  ;;  %v7415_v61 = vld [vmem:[%s16445_s4 + $0x8] sm:$0xff] }
 0x452   :  { %10871 = vmatprep.mubr.msk.f32.mxu0 %vm5388_vm2, %v15184_v52  ;;  %v5543_v52 = vand.u32 31, %v2321_v25 }
 0x454   :  { %vm5767_vm10 = vcmp.eq.s32.totalorder %v5543_v52, 31 }
 0x455   :  { %10872 = vmatmul.mubr.msk.f32.gmra.mrb[142].mxu0 %vm5388_vm2, %v5915_v2  ;;  %v5927_v63 = vsel %vm5767_vm10, 0.0, %v15285_v39  ;;  %v15501_v39 = vld [vmem:[%s16443_s8 + $0x5] ss:$0 sm:$0xff] }
 0x456   :  { %10874 = vmatprep.mubr.msk.f32.mxu0 %vm5388_vm2, %v15195_v51  ;;  %v16769_v51 = vld [vmem:[#allocation15_spill] sm:$0xff] }
 0x459   :  { %10875 = vmatmul.mubr.msk.f32.gmra.mrb[144].mxu0 %vm5388_vm2, %v15201_v24  ;;  %v5547_v24 = vand.u32 31, %v16769_v51 }
 0x45a   :  { %10877 = vmatprep.mubr.msk.f32.mxu0 %vm5388_vm2, %v15205_v54 }
 0x45b   :  { %vm5771_vm11 = vcmp.eq.s32.totalorder %v5547_v24, 31 }
 0x45c   :  { %v5931_v54 = vsel %vm5771_vm11, 0.0, %v15314_v19 }
 0x45d   :  { %10878 = vmatmul.mubr.msk.f32.gmra.mrb[146].mxu0 %vm5388_vm2, %v5919_v37 }
 0x45e   :  { %10880 = vmatprep.mubr.msk.f32.mxu0 %vm5388_vm2, %v15222_v23  ;;  %v9494_v23 = vld [vmem:[%s16445_s4 + $0x78] sm:$0xff] }
 0x461   :  { %10881 = vmatmul.mubr.msk.f32.gmra.mrb[148].mxu0 %vm5388_vm2, %v15226_v29  ;;  %v11258_v29 = vpack.c.bf16 %v9494_v23, %v9493_v0 }
 0x462   :  { %10883 = vmatprep.mubr.msk.f32.mxu0 %vm5388_vm2, %v15230_v41  ;;  %v7414_v41 = vld [vmem:[%s16445_s4] sm:$0xff] }
 0x463   :  { %11259 = vmatprep.subr.bf16.mxu1 %v11258_v29 }
 0x464   :  { %11261 = vmatpush3.bf16.msra.mxu1 %v11258_v29 }
 0x465   :  { %10884 = vmatmul.mubr.msk.f32.gmra.mrb[150].mxu0 %vm5388_vm2, %v5923_v13 }
 0x466   :  { %10886 = vmatprep.mubr.msk.f32.mxu0 %vm5388_vm2, %v15257_v12  ;;  %v15490_v12 = vpack.c.bf16 %v7415_v61, %v7414_v41 }
 0x468   :  { %11263 = vmatprep.subr.bf16.mxu1 %v15490_v12 }
 0x469   :  { %10887 = vmatmul.mubr.msk.f32.gmra.mrb[152].mxu0 %vm5388_vm2, %v15268_v57  ;;  %v15496_v57 = vld [vmem:[%s16443_s8 + $0x4] ss:$0 sm:$0xff] }
 0x46a   :  { %10889 = vmatprep.mubr.msk.f32.mxu0 %vm5388_vm2, %v15274_v3 }
 0x46d   :  { %10890 = vmatmul.mubr.msk.f32.gmra.mrb[154].mxu0 %vm5388_vm2, %v5927_v63 }
 0x46e   :  { %10892 = vmatprep.mubr.msk.f32.mxu0 %vm5388_vm2, %v15297_v4 }
 0x471   :  { %10893 = vmatmul.mubr.msk.f32.gmra.mrb[156].mxu0 %vm5388_vm2, %v15301_v10 }
 0x472   :  { %10895 = vmatprep.mubr.msk.f32.mxu0 %vm5388_vm2, %v15305_v16 }
 0x475   :  { %10896 = vmatmul.mubr.msk.f32.gmra.mrb[158].mxu0 %vm5388_vm2, %v5931_v54 }
 0x50c   :  { %v10852_v3 = vpop.f32.mrb[128].mxu0 }
 0x50d   :  { %v6948_v4 = vmul.f32 %v10852_v3, %v15496_v57  ;;  %v6750_v10 = vpop.f32.mrb[129].mxu0 }
 0x50e   :  { %v6947_v16 = vmul.f32 %v15496_v57, %v6750_v10  ;;  %v9554_v10 = vld [vmem:[%s16446_s5 + $0x48] sm:$0xff] }
 0x50f   :  { %v6984_v19 = vadd.f32 %v15501_v39, %v6948_v4  ;;  %v9553_v4 = vld [vmem:[%s16446_s5 + $0x40] sm:$0xff] }
 0x510   :  { %v6983_v18 = vadd.f32 %v15501_v39, %v6947_v16  ;;  %v10855_v50 = vpop.f32.mrb[130].mxu0  ;;  %v9555_v16 = vld [vmem:[%s16446_s5 + $0x50] sm:$0xff] }
 0x511   :  { %v7016_v6 = vmax.f32 %v6984_v19, 0.0  ;;  %v6950_v40 = vmul.f32 %v10855_v50, %v15496_v57  ;;  %v6760_v27 = vpop.f32.mrb[131].mxu0 }
 0x512   :  { %v7015_v8 = vmax.f32 %v6983_v18, 0.0  ;;  %v6949_v22 = vmul.f32 %v15496_v57, %v6760_v27 }
 0x513   :  { %v7048_v59 = vrot.slane %v7016_v6, 1  ;;  %v6986_v33 = vadd.f32 %v15501_v39, %v6950_v40  ;;  %v9556_v40 = vld [vmem:[%s16446_s5 + $0x58] sm:$0xff] }
 0x514   :  { %v15510_v11 = vrot.slane %v7015_v8, 1  ;;  %v6985_v31 = vadd.f32 %v15501_v39, %v6949_v22  ;;  %v10858_v1 = vpop.f32.mrb[132].mxu0 }
 0x515   :  { %v7018_v42 = vmax.f32 %v6986_v33, 0.0  ;;  %v6952_v28 = vmul.f32 %v10858_v1, %v15496_v57  ;;  %v6770_v53 = vpop.f32.mrb[133].mxu0 }
 0x516   :  { %v7109_v14 = vsel %vm1782_vm1, %v15510_v11, %v7048_v59  ;;  %v7017_v34 = vmax.f32 %v6985_v31, 0.0  ;;  %v6951_v60 = vmul.f32 %v15496_v57, %v6770_v53  ;;  %v7417_v53 = vld [vmem:[%s16445_s4 + $0x18] sm:$0xff] }
 0x517   :  { %v7111_v44 = vmax.f32 %v7015_v8, %v7109_v14  ;;  %v7050_v32 = vrot.slane %v7018_v42, 1  ;;  %v6988_v48 = vadd.f32 %v15501_v39, %v6952_v28  ;;  %v7416_v28 = vld [vmem:[%s16445_s4 + $0x10] sm:$0xff] }
 0x518   :  { %v7049_v38 = vrot.slane %v7017_v34, 1  ;;  %v6987_v35 = vadd.f32 %v15501_v39, %v6951_v60  ;;  %v10861_v21 = vpop.f32.mrb[134].mxu0 }
 0x519   :  { %7143 = vst.msk [vmem:[#allocation4] sm:$0xff] %vm170_vm0, %v7111_v44  ;;  %v7020_v30 = vmax.f32 %v6988_v48, 0.0  ;;  %v6954_v20 = vmul.f32 %v10861_v21, %v15496_v57  ;;  %v6780_v46 = vpop.f32.mrb[135].mxu0 }
 0x51a   :  { %v7107_v55 = vsel %vm1782_vm1, %v7049_v38, %v7050_v32  ;;  %v7108_v58 = vsel %vm1782_vm1, %v7048_v59, %v7049_v38  ;;  %v7019_v9 = vmax.f32 %v6987_v35, 0.0  ;;  %v6953_v43 = vmul.f32 %v15496_v57, %v6780_v46 }
 0x51b   :  { %v7112_v2 = vmax.f32 %v7016_v6, %v7108_v58  ;;  %v7113_v49 = vmax.f32 %v7017_v34, %v7107_v55  ;;  %v7052_v37 = vrot.slane %v7020_v30, 1  ;;  %v15528_v56 = vadd.f32 %v15501_v39, %v6954_v20  ;;  %v7418_v55 = vld [vmem:[%s16445_s4 + $0x20] sm:$0xff]  ;;  %v7419_v58 = vld [vmem:[%s16445_s4 + $0x28] sm:$0xff] }
 0x51c   :  { %v7051_v47 = vrot.slane %v7019_v9, 1  ;;  %v6989_v25 = vadd.f32 %v15501_v39, %v6953_v43  ;;  %v10864_v13 = vpop.f32.mrb[136].mxu0  ;;  %v11294_v6 = vpack.c.bf16 %v9554_v10, %v9553_v4  ;;  %v11298_v59 = vpack.c.bf16 %v9556_v40, %v9555_v16  ;;  %v7420_v16 = vld [vmem:[%s16445_s4 + $0x30] sm:$0xff] }
 0x51d   :  { %7144 = vst.msk [vmem:[#allocation4 + $0x8] sm:$0xff] %vm170_vm0, %v7112_v2  ;;  %7145 = vst.msk [vmem:[#allocation4 + $0x10] sm:$0xff] %vm170_vm0, %v7113_v49  ;;  %v7022_v52 = vmax.f32 %v15528_v56, 0.0  ;;  %v6956_v63 = vmul.f32 %v10864_v13, %v15496_v57  ;;  %v6790_v51 = vpop.f32.mrb[137].mxu0  ;;  %v11266_v46 = vpack.c.bf16 %v7417_v53, %v7416_v28 }
 0x51e   :  { %v7105_v24 = vsel %vm1782_vm1, %v7051_v47, %v7052_v37  ;;  %v7106_v54 = vsel %vm1782_vm1, %v7050_v32, %v7051_v47  ;;  %v7021_v0 = vmax.f32 %v6989_v25, 0.0  ;;  %v6955_v23 = vmul.f32 %v15496_v57, %v6790_v51  ;;  %11295 = vmatprep.subr.bf16.mxu0 %v11294_v6 }
 0x51f   :  { %v7114_v29 = vmax.f32 %v7018_v42, %v7106_v54  ;;  %v7115_v41 = vmax.f32 %v7019_v9, %v7105_v24  ;;  %v7054_v61 = vrot.slane %v7022_v52, 1  ;;  %v15541_v3 = vadd.f32 %v15501_v39, %v6956_v63  ;;  %11297 = vmatpush3.bf16.msra.mxu0 %v11294_v6 }
 0x520   :  { %v7053_v19 = vrot.slane %v7021_v0, 1  ;;  %v6991_v18 = vadd.f32 %v15501_v39, %v6955_v23  ;;  %v10867_v50 = vpop.f32.mrb[138].mxu0  ;;  %11299 = vmatprep.subr.bf16.mxu0 %v11298_v59  ;;  %v11270_v54 = vpack.c.bf16 %v7419_v58, %v7418_v55 }
 0x521   :  { %7146 = vst.msk [vmem:[#allocation4 + $0x18] sm:$0xff] %vm170_vm0, %v7114_v29  ;;  %7147 = vst.msk [vmem:[#allocation4 + $0x20] sm:$0xff] %vm170_vm0, %v7115_v41  ;;  %v7024_v27 = vmax.f32 %v15541_v3, 0.0  ;;  %v6958_v8 = vmul.f32 %v10867_v50, %v15496_v57  ;;  %v6800_v22 = vpop.f32.mrb[139].mxu0 }
 0x522   :  { %v7103_v33 = vsel %vm1782_vm1, %v7053_v19, %v7054_v61  ;;  %v7104_v31 = vsel %vm1782_vm1, %v7052_v37, %v7053_v19  ;;  %v7023_v1 = vmax.f32 %v6991_v18, 0.0  ;;  %v6957_v42 = vmul.f32 %v15496_v57, %v6800_v22  ;;  %v7421_v19 = vld [vmem:[%s16445_s4 + $0x38] sm:$0xff] }
 0x523   :  { %v7116_v14 = vmax.f32 %v7020_v30, %v7104_v31  ;;  %v7117_v34 = vmax.f32 %v7021_v0, %v7103_v33  ;;  %v7056_v60 = vrot.slane %v7024_v27, 1  ;;  %v15572_v44 = vadd.f32 %v15501_v39, %v6958_v8  ;;  %11301 = vmatpush3.bf16.msra.mxu0 %v11298_v59 }
 0x524   :  { %v7055_v32 = vrot.slane %v7023_v1, 1  ;;  %v6993_v48 = vadd.f32 %v15501_v39, %v6957_v42  ;;  %v10870_v38 = vpop.f32.mrb[140].mxu0  ;;  %v15575_v35 = vld [vmem:[#allocation4] ss:$2 sm:$0xff]  ;;  %v11274_v28 = vpack.c.bf16 %v7421_v19, %v7420_v16 }
 0x525   :  { %7148 = vst.msk [vmem:[#allocation4 + $0x28] sm:$0xff] %vm170_vm0, %v7116_v14  ;;  %7149 = vst.msk [vmem:[#allocation4 + $0x30] sm:$0xff] %vm170_vm0, %v7117_v34  ;;  %v7026_v21 = vmax.f32 %v15572_v44, 0.0  ;;  %v6960_v30 = vmul.f32 %v10870_v38, %v15496_v57  ;;  %v6810_v20 = vpop.f32.mrb[141].mxu0  ;;  %10914 = vmatprep.mubr.msk.f32.mxu1 %vm170_vm0, %v15575_v35  ;;  %v9527_v44 = vld [vmem:[%s16445_s4 + $0x80] sm:$0xff] }
 0x526   :  { %v7101_v9 = vsel %vm1782_vm1, %v7055_v32, %v7056_v60  ;;  %v7102_v43 = vsel %vm1782_vm1, %v7054_v61, %v7055_v32  ;;  %v7025_v2 = vmax.f32 %v6993_v48, 0.0  ;;  %v6959_v49 = vmul.f32 %v15496_v57, %v6810_v20  ;;  %v9528_v32 = vld [vmem:[%s16445_s4 + $0x88] sm:$0xff] }
 0x527   :  { %v7118_v37 = vmax.f32 %v7022_v52, %v7102_v43  ;;  %v7119_v56 = vmax.f32 %v7023_v1, %v7101_v9  ;;  %v7058_v47 = vrot.slane %v7026_v21, 1  ;;  %v15595_v25 = vadd.f32 %v15501_v39, %v6960_v30 }
 0x528   :  { %v7057_v13 = vrot.slane %v7025_v2, 1  ;;  %v6995_v63 = vadd.f32 %v15501_v39, %v6959_v49  ;;  %v10873_v51 = vpop.f32.mrb[142].mxu0  ;;  %v15598_v24 = vld [vmem:[#allocation4 + $0x10] ss:$2 sm:$0xff]  ;;  %v7334_v52 = vrot.slane %v15575_v35, 1 }
 0x529   :  { %7150 = vst.msk [vmem:[#allocation4 + $0x38] sm:$0xff] %vm170_vm0, %v7118_v37  ;;  %7151 = vst.msk [vmem:[#allocation4 + $0x40] sm:$0xff] %vm170_vm0, %v7119_v56  ;;  %v7028_v0 = vmax.f32 %v15595_v25, 0.0  ;;  %v6962_v23 = vmul.f32 %v10873_v51, %v15496_v57  ;;  %v6820_v29 = vpop.f32.mrb[143].mxu0  ;;  %10915 = vmatmul.mubr.msk.f32.vlgmr.msra.gmra.mrb[64].mxu1 %vm170_vm0, %v15598_v24  ;;  %v7335_v41 = vrot.slane %v15598_v24, 1  ;;  %v15665_v37 = vpack.c.bf16 %v9528_v32, %v9527_v44 }
 0x52a   :  { %v7099_v61 = vsel %vm1782_vm1, %v7057_v13, %v7058_v47  ;;  %v7100_v3 = vsel %vm1782_vm1, %v7056_v60, %v7057_v13  ;;  %v7027_v4 = vmax.f32 %v6995_v63, 0.0  ;;  %v6961_v10 = vmul.f32 %v15496_v57, %v6820_v29  ;;  %11265 = vmatpush3.bf16.msra.mxu1 %v15490_v12 }
 0x52b   :  { %v7120_v18 = vmax.f32 %v7024_v27, %v7100_v3  ;;  %v7121_v50 = vmax.f32 %v7025_v2, %v7099_v61  ;;  %v7060_v6 = vrot.slane %v7028_v0, 1  ;;  %v15621_v40 = vadd.f32 %v15501_v39, %v6962_v23  ;;  %11267 = vmatprep.subr.bf16.mxu1 %v11266_v46 }
 0x52c   :  { %v7059_v8 = vrot.slane %v7027_v4, 1  ;;  %v6997_v22 = vadd.f32 %v15501_v39, %v6961_v10  ;;  %v10876_v59 = vpop.f32.mrb[144].mxu0  ;;  %v15624_v12 = vld [vmem:[#allocation4 + $0x20] ss:$2 sm:$0xff]  ;;  %v15630_v33 = vsel %vm1782_vm1, %v7334_v52, %v7335_v41 }
 0x52d   :  { %7152 = vst.msk [vmem:[#allocation4 + $0x48] sm:$0xff] %vm170_vm0, %v7120_v18  ;;  %7153 = vst.msk [vmem:[#allocation4 + $0x50] sm:$0xff] %vm170_vm0, %v7121_v50  ;;  %v7030_v27 = vmax.f32 %v15621_v40, 0.0  ;;  %v6964_v31 = vmul.f32 %v10876_v59, %v15496_v57  ;;  %v6830_v1 = vpop.f32.mrb[145].mxu0  ;;  %v7336_v42 = vrot.slane %v15624_v12, 1  ;;  %10917 = vmatprep.mubr.msk.f32.mxu1 %vm170_vm0, %v15624_v12 }
 0x52e   :  { %v7097_v53 = vsel %vm1782_vm1, %v7059_v8, %v7060_v6  ;;  %v7098_v14 = vsel %vm1782_vm1, %v7058_v47, %v7059_v8  ;;  %v7029_v34 = vmax.f32 %v6997_v22, 0.0  ;;  %v6963_v60 = vmul.f32 %v15496_v57, %v6830_v1  ;;  %11269 = vmatpush3.bf16.msra.mxu1 %v11266_v46 }
 0x52f   :  { %v7122_v48 = vmax.f32 %v7026_v21, %v7098_v14  ;;  %v7123_v38 = vmax.f32 %v7027_v4, %v7097_v53  ;;  %v7062_v30 = vrot.slane %v7030_v27, 1  ;;  %v7000_v20 = vadd.f32 %v15501_v39, %v6964_v31  ;;  %11271 = vmatprep.subr.bf16.mxu1 %v11270_v54 }
 0x530   :  { %v7061_v55 = vrot.slane %v7029_v34, 1  ;;  %v6999_v58 = vadd.f32 %v15501_v39, %v6963_v60  ;;  %v10879_v9 = vpop.f32.mrb[146].mxu0  ;;  %v15652_v43 = vld [vmem:[#allocation4 + $0x30] ss:$2 sm:$0xff]  ;;  %v15658_v46 = vsel %vm1782_vm1, %v7335_v41, %v7336_v42 }
 0x531   :  { %7154 = vst.msk [vmem:[#allocation4 + $0x58] sm:$0xff] %vm170_vm0, %v7122_v48  ;;  %7155 = vst.msk [vmem:[#allocation4 + $0x60] sm:$0xff] %vm170_vm0, %v7123_v38  ;;  %v7032_v21 = vmax.f32 %v7000_v20, 0.0  ;;  %v6966_v2 = vmul.f32 %v10879_v9, %v15496_v57  ;;  %v6840_v49 = vpop.f32.mrb[147].mxu0  ;;  %10918 = vmatmul.mubr.msk.f32.gmra.mrb[66].mxu1 %vm170_vm0, %v15652_v43 }
 0x532   :  { %v7095_v56 = vsel %vm1782_vm1, %v7061_v55, %v7062_v30  ;;  %v7096_v47 = vsel %vm1782_vm1, %v7060_v6, %v7061_v55  ;;  %v7031_v25 = vmax.f32 %v6999_v58, 0.0  ;;  %v6965_v13 = vmul.f32 %v15496_v57, %v6840_v49  ;;  %11273 = vmatpush3.bf16.msra.mxu1 %v11270_v54 }
 0x533   :  { %v7124_v63 = vmax.f32 %v7028_v0, %v7096_v47  ;;  %v7125_v51 = vmax.f32 %v7029_v34, %v7095_v56  ;;  %v7064_v23 = vrot.slane %v7032_v21, 1  ;;  %v7002_v29 = vadd.f32 %v15501_v39, %v6966_v2  ;;  %11275 = vmatprep.subr.bf16.mxu1 %v11274_v28 }
 0x534   :  { %v7063_v41 = vrot.slane %v7031_v25, 1  ;;  %v7001_v61 = vadd.f32 %v15501_v39, %v6965_v13  ;;  %v10882_v3 = vpop.f32.mrb[148].mxu0  ;;  %v15674_v4 = vld [vmem:[#allocation4 + $0x40] ss:$2 sm:$0xff]  ;;  %v7337_v55 = vrot.slane %v15652_v43, 1 }
 0x535   :  { %7156 = vst.msk [vmem:[#allocation4 + $0x68] sm:$0xff] %vm170_vm0, %v7124_v63  ;;  %7157 = vst.msk [vmem:[#allocation4 + $0x70] sm:$0xff] %vm170_vm0, %v7125_v51  ;;  %v7034_v10 = vmax.f32 %v7002_v29, 0.0  ;;  %v6968_v16 = vmul.f32 %v10882_v3, %v15496_v57  ;;  %v6850_v54 = vpop.f32.mrb[149].mxu0  ;;  %10920 = vmatprep.mubr.msk.f32.mxu1 %vm170_vm0, %v15674_v4 }
 0x536   :  { %v7093_v0 = vsel %vm1782_vm1, %v7063_v41, %v7064_v23  ;;  %v7094_v19 = vsel %vm1782_vm1, %v7062_v30, %v7063_v41  ;;  %v7033_v18 = vmax.f32 %v7001_v61, 0.0  ;;  %v6967_v50 = vmul.f32 %v15496_v57, %v6850_v54  ;;  %11277 = vmatpush3.bf16.msra.mxu1 %v11274_v28 }
 0x537   :  { %v7126_v6 = vmax.f32 %v7030_v27, %v7094_v19  ;;  %v7127_v40 = vmax.f32 %v7031_v25, %v7093_v0  ;;  %v7066_v8 = vrot.slane %v7034_v10, 1  ;;  %v7004_v22 = vadd.f32 %v15501_v39, %v6968_v16  ;;  %11279 = vmatprep.subr.bf16.mxu1 %v15665_v37 }
 0x538   :  { %v7065_v59 = vrot.slane %v7033_v18, 1  ;;  %v7003_v31 = vadd.f32 %v15501_v39, %v6967_v50  ;;  %v10885_v1 = vpop.f32.mrb[150].mxu0  ;;  %v15689_v53 = vld [vmem:[#allocation4 + $0x50] ss:$2 sm:$0xff]  ;;  %v15724_v19 = vsel %vm1782_vm1, %v7336_v42, %v7337_v55 }
 0x539   :  { %7158 = vst.msk [vmem:[#allocation4 + $0x78] sm:$0xff] %vm170_vm0, %v7126_v6  ;;  %7159 = vst.msk [vmem:[#allocation4 + $0x80] sm:$0xff] %vm170_vm0, %v7127_v40  ;;  %v7036_v14 = vmax.f32 %v7004_v22, 0.0  ;;  %v6970_v28 = vmul.f32 %v10885_v1, %v15496_v57  ;;  %v6860_v27 = vpop.f32.mrb[151].mxu0  ;;  %10921 = vmatmul.mubr.msk.f32.gmra.mrb[68].mxu1 %vm170_vm0, %v15689_v53 }
 0x53a   :  { %v7091_v34 = vsel %vm1782_vm1, %v7065_v59, %v7066_v8  ;;  %v7092_v60 = vsel %vm1782_vm1, %v7064_v23, %v7065_v59  ;;  %v7035_v44 = vmax.f32 %v7003_v31, 0.0  ;;  %v6969_v32 = vmul.f32 %v15496_v57, %v6860_v27 }
 0x53b   :  { %v7128_v48 = vmax.f32 %v7032_v21, %v7092_v60  ;;  %v7129_v38 = vmax.f32 %v7033_v18, %v7091_v34  ;;  %v7068_v30 = vrot.slane %v7036_v14, 1  ;;  %v7006_v20 = vadd.f32 %v15501_v39, %v6970_v28 }
 0x53c   :  { %v7067_v58 = vrot.slane %v7035_v44, 1  ;;  %v7005_v9 = vadd.f32 %v15501_v39, %v6969_v32  ;;  %v10888_v2 = vpop.f32.mrb[152].mxu0  ;;  %v15704_v49 = vld [vmem:[#allocation4 + $0x60] ss:$2 sm:$0xff]  ;;  %v7338_v28 = vrot.slane %v15674_v4, 1 }
 0x53d   :  { %7160 = vst.msk [vmem:[#allocation4 + $0x88] sm:$0xff] %vm170_vm0, %v7128_v48  ;;  %7161 = vst.msk [vmem:[#allocation4 + $0x90] sm:$0xff] %vm170_vm0, %v7129_v38  ;;  %v7038_v56 = vmax.f32 %v7006_v20, 0.0  ;;  %v6972_v47 = vmul.f32 %v10888_v2, %v15496_v57  ;;  %v6870_v21 = vpop.f32.mrb[153].mxu0  ;;  %10923 = vmatprep.mubr.msk.f32.mxu1 %vm170_vm0, %v15704_v49 }
 0x53e   :  { %v7089_v25 = vsel %vm1782_vm1, %v7067_v58, %v7068_v30  ;;  %v7090_v13 = vsel %vm1782_vm1, %v7066_v8, %v7067_v58  ;;  %v7037_v63 = vmax.f32 %v7005_v9, 0.0  ;;  %v6971_v51 = vmul.f32 %v15496_v57, %v6870_v21 }
 0x53f   :  { %v7130_v23 = vmax.f32 %v7034_v10, %v7090_v13  ;;  %v7131_v29 = vmax.f32 %v7035_v44, %v7089_v25  ;;  %v7070_v41 = vrot.slane %v7038_v56, 1  ;;  %v7008_v61 = vadd.f32 %v15501_v39, %v6972_v47 }
 0x540   :  { %v7069_v3 = vrot.slane %v7037_v63, 1  ;;  %v7007_v16 = vadd.f32 %v15501_v39, %v6971_v51  ;;  %v10891_v54 = vpop.f32.mrb[154].mxu0  ;;  %v15718_v0 = vld [vmem:[#allocation4 + $0x70] ss:$2 sm:$0xff] }
 0x541   :  { %7162 = vst.msk [vmem:[#allocation4 + $0x98] sm:$0xff] %vm170_vm0, %v7130_v23  ;;  %7163 = vst.msk [vmem:[#allocation4 + $0xa0] sm:$0xff] %vm170_vm0, %v7131_v29  ;;  %v7040_v10 = vmax.f32 %v7008_v61, 0.0  ;;  %v6974_v18 = vmul.f32 %v10891_v54, %v15496_v57  ;;  %v6880_v50 = vpop.f32.mrb[155].mxu0  ;;  %10924 = vmatmul.mubr.msk.f32.gmra.mrb[70].mxu1 %vm170_vm0, %v15718_v0  ;;  %v15757_v23 = vsel %vm1782_vm1, %v7337_v55, %v7338_v28  ;;  %v7339_v29 = vrot.slane %v15689_v53, 1 }
 0x542   :  { %v7087_v6 = vsel %vm1782_vm1, %v7069_v3, %v7070_v41  ;;  %v7088_v40 = vsel %vm1782_vm1, %v7068_v30, %v7069_v3  ;;  %v7039_v8 = vmax.f32 %v7007_v16, 0.0  ;;  %v6973_v42 = vmul.f32 %v15496_v57, %v6880_v50 }
 0x543   :  { %v7132_v22 = vmax.f32 %v7036_v14, %v7088_v40  ;;  %v7133_v59 = vmax.f32 %v7037_v63, %v7087_v6  ;;  %v7072_v31 = vrot.slane %v7040_v10, 1  ;;  %v7010_v1 = vadd.f32 %v15501_v39, %v6974_v18 }
 0x544   :  { %v7071_v27 = vrot.slane %v7039_v8, 1  ;;  %v7009_v34 = vadd.f32 %v15501_v39, %v6973_v42  ;;  %v10894_v60 = vpop.f32.mrb[156].mxu0  ;;  %v15739_v44 = vld [vmem:[#allocation4 + $0x80] ss:$2 sm:$0xff]  ;;  %v7341_v42 = vrot.slane %v15718_v0, 1 }
 0x545   :  { %7164 = vst.msk [vmem:[#allocation4 + $0xa8] sm:$0xff] %vm170_vm0, %v7132_v22  ;;  %7165 = vst.msk [vmem:[#allocation4 + $0xb0] sm:$0xff] %vm170_vm0, %v7133_v59  ;;  %v7042_v32 = vmax.f32 %v7010_v1, 0.0  ;;  %v6976_v48 = vmul.f32 %v10894_v60, %v15496_v57  ;;  %v6890_v14 = vpop.f32.mrb[157].mxu0  ;;  %10926 = vmatprep.mubr.msk.f32.mxu1 %vm170_vm0, %v15739_v44 }
 0x546   :  { %v7085_v38 = vsel %vm1782_vm1, %v7071_v27, %v7072_v31  ;;  %v7086_v30 = vsel %vm1782_vm1, %v7070_v41, %v7071_v27  ;;  %v7041_v20 = vmax.f32 %v7009_v34, 0.0  ;;  %v6975_v58 = vmul.f32 %v15496_v57, %v6890_v14 }
 0x547   :  { %v7134_v9 = vmax.f32 %v7038_v56, %v7086_v30  ;;  %v7135_v2 = vmax.f32 %v7039_v8, %v7085_v38  ;;  %v7074_v47 = vrot.slane %v7042_v32, 1  ;;  %v7012_v21 = vadd.f32 %v15501_v39, %v6976_v48 }
 0x548   :  { %v7073_v25 = vrot.slane %v7041_v20, 1  ;;  %v7011_v13 = vadd.f32 %v15501_v39, %v6975_v58  ;;  %v10897_v63 = vpop.f32.mrb[158].mxu0  ;;  %v15753_v51 = vld [vmem:[#allocation4 + $0x90] ss:$2 sm:$0xff]  ;;  %v7340_v8 = vrot.slane %v15704_v49, 1 }
 0x549   :  { %7166 = vst.msk [vmem:[#allocation4 + $0xb8] sm:$0xff] %vm170_vm0, %v7134_v9  ;;  %7167 = vst.msk [vmem:[#allocation4 + $0xc0] sm:$0xff] %vm170_vm0, %v7135_v2  ;;  %v7044_v56 = vmax.f32 %v7012_v21, 0.0  ;;  %v6978_v41 = vmul.f32 %v10897_v63, %v15496_v57  ;;  %v6900_v61 = vpop.f32.mrb[159].mxu0  ;;  %10927 = vmatmul.mubr.msk.f32.gmra.mrb[72].mxu1 %vm170_vm0, %v15753_v51  ;;  %v7343_v38 = vrot.slane %v15753_v51, 1 }
 0x54a   :  { %v7083_v3 = vsel %vm1782_vm1, %v7073_v25, %v7074_v47  ;;  %v7084_v55 = vsel %vm1782_vm1, %v7072_v31, %v7073_v25  ;;  %v7043_v16 = vmax.f32 %v7011_v13, 0.0  ;;  %v6977_v54 = vmul.f32 %v15496_v57, %v6900_v61 }
 0x54b   :  { %v7136_v18 = vmax.f32 %v7040_v10, %v7084_v55  ;;  %v7137_v50 = vmax.f32 %v7041_v20, %v7083_v3  ;;  %v7076_v6 = vrot.slane %v7044_v56, 1  ;;  %v7014_v40 = vadd.f32 %v15501_v39, %v6978_v41 }
 0x54c   :  { %v7075_v22 = vrot.slane %v7043_v16, 1  ;;  %v7013_v59 = vadd.f32 %v15501_v39, %v6977_v54  ;;  %v15774_v1 = vld [vmem:[#allocation4 + $0xa0] ss:$2 sm:$0xff]  ;;  %v7342_v57 = vrot.slane %v15739_v44, 1  ;;  %v15787_v39 = vsel %vm1782_vm1, %v7338_v28, %v7339_v29 }
 0x54d   :  { %7168 = vst.msk [vmem:[#allocation4 + $0xc8] sm:$0xff] %vm170_vm0, %v7136_v18  ;;  %7169 = vst.msk [vmem:[#allocation4 + $0xd0] sm:$0xff] %vm170_vm0, %v7137_v50  ;;  %v7046_v10 = vmax.f32 %v7014_v40, 0.0  ;;  %10929 = vmatprep.mubr.msk.f32.mxu1 %vm170_vm0, %v15774_v1  ;;  %v7344_v20 = vrot.slane %v15774_v1, 1  ;;  %v15795_v9 = vsel %vm1782_vm1, %v7339_v29, %v7340_v8  ;;  %v15799_v2 = vsel %vm1782_vm1, %v7340_v8, %v7341_v42  ;;  %v9529_v8 = vld [vmem:[%s16445_s4 + $0x90] sm:$0xff] }
 0x54e   :  { %v7081_v31 = vsel %vm1782_vm1, %v7075_v22, %v7076_v6  ;;  %v7082_v27 = vsel %vm1782_vm1, %v7074_v47, %v7075_v22  ;;  %v7045_v34 = vmax.f32 %v7013_v59, 0.0  ;;  %v15814_v25 = vsel %vm1782_vm1, %v7341_v42, %v7342_v57 }
 0x54f   :  { %v7138_v60 = vmax.f32 %v7042_v32, %v7082_v27  ;;  %v7139_v48 = vmax.f32 %v7043_v16, %v7081_v31  ;;  %v7078_v14 = vrot.slane %v7046_v10, 1  ;;  %v15827_v41 = vsel %vm1782_vm1, %v7343_v38, %v7344_v20 }
 0x550   :  { %v7077_v30 = vrot.slane %v7045_v34, 1  ;;  %v15791_v58 = vld [vmem:[#allocation4 + $0xb0] ss:$2 sm:$0xff]  ;;  %v7206_v3 = vand.u32 15, %v12192_v5  ;;  %v7240_v16 = vrot.slane %v15624_v12, 7  ;;  %v7238_v50 = vrot.slane %v15575_v35, 7 }
 0x551   :  { %7170 = vst.msk [vmem:[#allocation4 + $0xd8] sm:$0xff] %vm170_vm0, %v7138_v60  ;;  %7171 = vst.msk [vmem:[#allocation4 + $0xe0] sm:$0xff] %vm170_vm0, %v7139_v48  ;;  %v7110_v28 = vsel %vm1782_vm1, %v7078_v14, %v15510_v11  ;;  %10930 = vmatmul.mubr.msk.f32.gmra.mrb[74].mxu1 %vm170_vm0, %v15791_v58  ;;  %v15821_v11 = vsel %vm1782_vm1, %v7342_v57, %v7343_v38  ;;  %v9530_v12 = vld [vmem:[%s16445_s4 + $0x98] sm:$0xff]  ;;  %v7242_v22 = vrot.slane %v15674_v4, 7  ;;  %v9531_v4 = vld [vmem:[%s16445_s4 + $0xa0] sm:$0xff] }
 0x552   :  { %v7142_v32 = vmax.f32 %v7046_v10, %v7110_v28  ;;  %v7079_v47 = vsel %vm1782_vm1, %v7077_v30, %v7078_v14  ;;  %v7080_v21 = vsel %vm1782_vm1, %v7076_v6, %v7077_v30  ;;  %v7239_v6 = vrot.slane %v15598_v24, 7  ;;  %v9532_v60 = vld [vmem:[%s16445_s4 + $0xa8] sm:$0xff]  ;;  %v9559_v35 = vld [vmem:[%s16446_s5 + $0x70] sm:$0xff] }
 0x553   :  { %v7140_v13 = vmax.f32 %v7044_v56, %v7080_v21  ;;  %v7141_v63 = vmax.f32 %v7045_v34, %v7079_v47  ;;  %v2296_v56 = vadd.s32 16, %v12192_v5  ;;  %vm7222_vm2 = vcmp.eq.s32.totalorder %v7206_v3, 0 }
 0x554   :  { %7174 = vst.msk [vmem:[#allocation4 + $0xf8] sm:$0xff] %vm170_vm0, %v7142_v32  ;;  %v15817_v29 = vld [vmem:[#allocation4 + $0xc0] ss:$2 sm:$0xff]  ;;  %v7210_v24 = vand.u32 15, %v15210_v62  ;;  %v7267_v57 = vsel %vm2550_vm3, %v7239_v6, %v7240_v16  ;;  %v2300_v10 = vadd.s32 48, %v12192_v5  ;;  %v11282_v27 = vpack.c.bf16 %v9530_v12, %v9529_v8 }
 0x555   :  { %7172 = vst.msk [vmem:[#allocation4 + $0xe8] sm:$0xff] %vm170_vm0, %v7140_v13  ;;  %7173 = vst.msk [vmem:[#allocation4 + $0xf0] sm:$0xff] %vm170_vm0, %v7141_v63  ;;  %10932 = vmatprep.mubr.msk.f32.mxu1 %vm170_vm0, %v15817_v29  ;;  %v7208_v55 = vand.u32 15, %v2296_v56  ;;  %v7241_v34 = vrot.slane %v15652_v43, 7  ;;  %v7268_v62 = vsel %vm2550_vm3, %v7238_v50, %v7239_v6  ;;  %v7244_v43 = vrot.slane %v15704_v49, 7  ;;  %v9533_v49 = vld [vmem:[%s16445_s4 + $0xb0] sm:$0xff] }
 0x556   :  { %vm7226_vm13 = vcmp.eq.s32.totalorder %v7210_v24, 0  ;;  %v7212_v38 = vand.u32 15, %v2300_v10  ;;  %v11286_v30 = vpack.c.bf16 %v9532_v60, %v9531_v4  ;;  %v7243_v28 = vrot.slane %v15689_v53, 7 }
 0x557   :  { %vm15857_vm12 = vcmp.eq.s32.totalorder %v7208_v55, 0  ;;  %v7265_v14 = vsel %vm2550_vm3, %v7241_v34, %v7242_v22  ;;  %v7266_v32 = vsel %vm2550_vm3, %v7240_v16, %v7241_v34  ;;  %v2304_v21 = vadd.s32 80, %v12192_v5 }
 0x558   :  { %v15834_v61 = vld [vmem:[#allocation4 + $0xd0] ss:$2 sm:$0xff]  ;;  %v7304_v48 = vsel %vm15857_vm12, 0.0, %v7267_v57  ;;  %v7306_v47 = vsel %vm7226_vm13, 0.0, %v7265_v14  ;;  %v7246_v13 = vrot.slane %v15739_v44, 7  ;;  %vm7228_vm14 = vcmp.eq.s32.totalorder %v7212_v38, 0 }
 0x559   :  { %10933 = vmatmul.mubr.msk.f32.gmra.mrb[76].mxu1 %vm170_vm0, %v15834_v61  ;;  %v7263_v53 = vsel %vm2550_vm3, %v7243_v28, %v7244_v43  ;;  %v7214_v63 = vand.u32 15, %v14109_v15  ;;  %v7245_v3 = vrot.slane %v15718_v0, 7  ;;  %v7264_v55 = vsel %vm2550_vm3, %v7242_v22, %v7243_v28 }
 0x55a   :  { %v7308_v16 = vsel %vm7228_vm14, 0.0, %v7263_v53  ;;  %v7216_v44 = vand.u32 15, %v2304_v21  ;;  %v7247_v15 = vrot.slane %v15753_v51, 7  ;;  %v7250_v12 = vrot.slane %v15817_v29, 7  ;;  %v9558_v53 = vld [vmem:[%s16446_s5 + $0x68] sm:$0xff] }
 0x55b   :  { %vm7230_vm15 = vcmp.eq.s32.totalorder %v7214_v63, 0  ;;  %v7261_v6 = vsel %vm2550_vm3, %v7245_v3, %v7246_v13  ;;  %v7262_v0 = vsel %vm2550_vm3, %v7244_v43, %v7245_v3  ;;  %v7218_v24 = vand.u32 15, %v15332_v26  ;;  %v8172_v3 = vld [vmem:[%s16446_s5] sm:$0xff] }
 0x55c   :  { %v15840_v54 = vld [vmem:[#allocation4 + $0xe0] ss:$2 sm:$0xff]  ;;  %v15842_v18 = vld [vmem:[#allocation4 + $0xf0] ss:$2 sm:$0xff]  ;;  %v7310_v8 = vsel %vm7230_vm15, 0.0, %v7261_v6  ;;  %vm7232_vm4 = vcmp.eq.s32.totalorder %v7216_v44, 0 }
 0x55d   :  { %10935 = vmatprep.mubr.msk.f32.mxu1 %vm170_vm0, %v15840_v54  ;;  %v7253_v40 = vrot.slane %v15842_v18, 7  ;;  %v2308_v22 = vadd.s32 112, %v12192_v5  ;;  %v7249_v51 = vrot.slane %v15791_v58, 7  ;;  %v7252_v10 = vrot.slane %v15840_v54, 7  ;;  %v16025_v44 = vld [vmem:[%s16443_s8 + $0x6] ss:$0 sm:$0xff] }
 0x55e   :  { %10936 = vmatmul.mubr.msk.f32.gmra.mrb[78].mxu1 %vm170_vm0, %v15842_v18  ;;  %vm7234_vm5 = vcmp.eq.s32.totalorder %v7218_v24, 0  ;;  %v2295_v4 = vadd.s32 8, %v12192_v5  ;;  %v2299_v28 = vadd.s32 40, %v12192_v5  ;;  %v7346_v21 = vrot.slane %v15817_v29, 1  ;;  %v16030_v6 = vld [vmem:[%s16443_s8 + $0x7] ss:$0 sm:$0xff] }
 0x55f   :  { %v7269_v59 = vsel %vm2550_vm3, %v7253_v40, %v7238_v50  ;;  %v7248_v50 = vrot.slane %v15774_v1, 7  ;;  %v7220_v26 = vand.u32 15, %v2308_v22  ;;  %v7254_v38 = vsel %vm2550_vm3, %v7252_v10, %v7253_v40 }
 0x560   :  { %v7302_v31 = vsel %vm7222_vm2, 0.0, %v7269_v59  ;;  %v7260_v59 = vsel %vm2550_vm3, %v7246_v13, %v7247_v15  ;;  %v7207_v14 = vand.u32 15, %v2295_v4  ;;  %vm8471_vm13 = vcmp.lt.s32.totalorder %v12192_v5, 6 }
 0x561   :  { %10954 = vmatprep.mubr.msk.f32.mxu1 %vm170_vm0, %v7302_v31  ;;  %v7259_v42 = vsel %vm2550_vm3, %v7247_v15, %v7248_v50  ;;  %v7257_v31 = vsel %vm2550_vm3, %v7249_v51, %v7250_v12  ;;  %v7258_v34 = vsel %vm2550_vm3, %v7248_v50, %v7249_v51  ;;  %vm7236_vm6 = vcmp.eq.s32.totalorder %v7220_v26, 0 }
 0x562   :  { %10955 = vmatmul.mubr.msk.f32.vlgmr.msra.gmra.mrb[64].mxu1 %vm170_vm0, %v7268_v62  ;;  %v7312_v57 = vsel %vm7232_vm4, 0.0, %v7259_v42  ;;  %v7314_v62 = vsel %vm7234_vm5, 0.0, %v7257_v31  ;;  %vm7319_vm7 = vcmp.eq.s32.totalorder %v7207_v14, 15  ;;  %vm11658_vm14 = vmmov 0  }
 0x563   :  { %11281 = vmatpush3.bf16.msra.mxu1 %v15665_v37  ;;  %10957 = vmatprep.mubr.msk.f32.mxu1 %vm170_vm0, %v7304_v48  ;;  %v9534_v37 = vld [vmem:[%s16445_s4 + $0xb8] sm:$0xff] }
 0x564   :  { %11283 = vmatprep.subr.bf16.mxu1 %v11282_v27  ;;  %v11290_v56 = vpack.c.bf16 %v9534_v37, %v9533_v49  ;;  %v7211_v49 = vand.u32 15, %v2299_v28  ;;  %v2303_v37 = vadd.s32 72, %v12192_v5 }
 0x566   :  { %10958 = vmatmul.mubr.msk.f32.gmra.mrb[66].mxu1 %vm170_vm0, %v7266_v32  ;;  %v7399_v32 = vsel %vm7319_vm7, 0.0, %v15658_v46  ;;  %v7215_v46 = vand.u32 15, %v2303_v37 }
 0x567   :  { %10960 = vmatprep.mubr.msk.f32.mxu1 %vm170_vm0, %v7306_v47  ;;  %11285 = vmatpush3.bf16.msra.mxu1 %v11282_v27  ;;  %v7251_v27 = vrot.slane %v15834_v61, 7  ;;  %v7345_v47 = vrot.slane %v15791_v58, 1 }
 0x568   :  { %11287 = vmatprep.subr.bf16.mxu1 %v11286_v30  ;;  %vm7327_vm10 = vcmp.eq.s32.totalorder %v7215_v46, 15 }
 0x569   :  { %v7255_v60 = vsel %vm2550_vm3, %v7251_v27, %v7252_v10  ;;  %v7256_v48 = vsel %vm2550_vm3, %v7250_v12, %v7251_v27  ;;  %vm7323_vm3 = vcmp.eq.s32.totalorder %v7211_v49, 15  ;;  %v7354_v58 = vsel %vm1782_vm1, %v7344_v20, %v7345_v47 }
 0x56a   :  { %10961 = vmatmul.mubr.msk.f32.gmra.mrb[68].mxu1 %vm170_vm0, %v7264_v55  ;;  %v7316_v43 = vsel %vm7236_vm6, 0.0, %v7255_v60  ;;  %v8173_v55 = vld [vmem:[%s16446_s5 + $0x8] sm:$0xff] }
 0x56b   :  { %10963 = vmatprep.mubr.msk.f32.mxu1 %vm170_vm0, %v7308_v16  ;;  %11289 = vmatpush3.bf16.msra.mxu1 %v11286_v30  ;;  %v7209_v30 = vand.u32 15, %v15395_v7  ;;  %v7213_v7 = vand.u32 15, %v16766_v17  ;;  %v2307_v17 = vadd.s32 104, %v12192_v5  ;;  %v16019_v16 = vpack.c.bf16 %v8173_v55, %v8172_v3 }
 0x56c   :  { %11291 = vmatprep.subr.bf16.mxu1 %v11290_v56 }
 0x56d   :  { %vm7321_vm8 = vcmp.eq.s32.totalorder %v7209_v30, 15  ;;  %vm7325_vm9 = vcmp.eq.s32.totalorder %v7213_v7, 15 }
 0x56e   :  { %10964 = vmatmul.mubr.msk.f32.gmra.mrb[70].mxu1 %vm170_vm0, %v7262_v0  ;;  %v7401_v40 = vsel %vm7321_vm8, 0.0, %v15757_v23  ;;  %v7217_v23 = vand.u32 15, %v15418_v36  ;;  %v7348_v36 = vrot.slane %v15840_v54, 1 }
 0x56f   :  { %10966 = vmatprep.mubr.msk.f32.mxu1 %vm170_vm0, %v7310_v8  ;;  %11293 = vmatpush3.bf16.msra.mxu1 %v11290_v56 }
 0x570   :  { %vm7329_vm11 = vcmp.eq.s32.totalorder %v7217_v23, 15 }
 0x572   :  { %10967 = vmatmul.mubr.msk.f32.gmra.mrb[72].mxu1 %vm170_vm0, %v7260_v59 }
 0x573   :  { %10969 = vmatprep.mubr.msk.f32.mxu1 %vm170_vm0, %v7312_v57 }
 0x576   :  { %10970 = vmatmul.mubr.msk.f32.gmra.mrb[74].mxu1 %vm170_vm0, %v7258_v34 }
 0x577   :  { %10972 = vmatprep.mubr.msk.f32.mxu1 %vm170_vm0, %v7314_v62 }
 0x57a   :  { %10973 = vmatmul.mubr.msk.f32.gmra.mrb[76].mxu1 %vm170_vm0, %v7256_v48 }
 0x57b   :  { %10975 = vmatprep.mubr.msk.f32.mxu1 %vm170_vm0, %v7316_v43 }
 0x57e   :  { %10976 = vmatmul.mubr.msk.f32.gmra.mrb[78].mxu1 %vm170_vm0, %v7254_v38 }
 0x57f   :  { %10994 = vmatprep.mubr.msk.f32.mxu1 %vm170_vm0, %v15630_v33  ;;  %v7403_v33 = vsel %vm7323_vm3, 0.0, %v15795_v9  ;;  %v7219_v9 = vand.u32 15, %v2307_v17 }
 0x581   :  { %vm7331_vm2 = vcmp.eq.s32.totalorder %v7219_v9, 15 }
 0x582   :  { %10995 = vmatmul.mubr.msk.f32.vlgmr.msra.gmra.mrb[64].mxu1 %vm170_vm0, %v7399_v32 }
 0x583   :  { %10997 = vmatprep.mubr.msk.f32.mxu1 %vm170_vm0, %v15724_v19  ;;  %v7405_v19 = vsel %vm7325_vm9, 0.0, %v15814_v25  ;;  %v7353_v25 = vsel %vm1782_vm1, %v7345_v47, %v7346_v21 }
 0x584   :  { %v7409_v29 = vsel %vm7329_vm11, 0.0, %v7353_v25 }
 0x586   :  { %10998 = vmatmul.mubr.msk.f32.gmra.mrb[66].mxu1 %vm170_vm0, %v7401_v40 }
 0x587   :  { %11000 = vmatprep.mubr.msk.f32.mxu1 %vm170_vm0, %v15787_v39  ;;  %v7407_v39 = vsel %vm7327_vm10, 0.0, %v15827_v41 }
 0x58a   :  { %11001 = vmatmul.mubr.msk.f32.gmra.mrb[68].mxu1 %vm170_vm0, %v7403_v33 }
 0x58b   :  { %11003 = vmatprep.mubr.msk.f32.mxu1 %vm170_vm0, %v15799_v2  ;;  %v7347_v2 = vrot.slane %v15834_v61, 1  ;;  %v7221_v61 = vand.u32 15, %v16767_v45  ;;  %v9557_v45 = vld [vmem:[%s16446_s5 + $0x60] sm:$0xff] }
 0x58c   :  { %v11302_v63 = vpack.c.bf16 %v9558_v53, %v9557_v45 }
 0x58d   :  { %v7352_v41 = vsel %vm1782_vm1, %v7346_v21, %v7347_v2  ;;  %v7351_v1 = vsel %vm1782_vm1, %v7347_v2, %v7348_v36  ;;  %vm7333_vm12 = vcmp.eq.s32.totalorder %v7221_v61, 15 }
 0x58e   :  { %11004 = vmatmul.mubr.msk.f32.gmra.mrb[70].mxu1 %vm170_vm0, %v7405_v19  ;;  %v7411_v20 = vsel %vm7331_vm2, 0.0, %v7351_v1  ;;  %11303 = vmatprep.subr.bf16.mxu0 %v11302_v63 }
 0x58f   :  { %11006 = vmatprep.mubr.msk.f32.mxu1 %vm170_vm0, %v15821_v11  ;;  %v7349_v11 = vrot.slane %v15842_v18, 1  ;;  %11305 = vmatpush3.bf16.msra.mxu0 %v11302_v63 }
 0x591   :  { %v7350_v54 = vsel %vm1782_vm1, %v7348_v36, %v7349_v11  ;;  %v7365_v18 = vsel %vm1782_vm1, %v7349_v11, %v7334_v52  ;;  %v9560_v52 = vld [vmem:[%s16446_s5 + $0x78] sm:$0xff] }
 0x592   :  { %11007 = vmatmul.mubr.msk.f32.gmra.mrb[72].mxu1 %vm170_vm0, %v7407_v39  ;;  %v7413_v13 = vsel %vm7333_vm12, 0.0, %v7365_v18  ;;  %v11306_v56 = vpack.c.bf16 %v9560_v52, %v9559_v35 }
 0x593   :  { %11009 = vmatprep.mubr.msk.f32.mxu1 %vm170_vm0, %v7354_v58 }
 0x594   :  { %11307 = vmatprep.subr.bf16.mxu0 %v11306_v56 }
 0x595   :  { %11309 = vmatpush3.bf16.msra.mxu0 %v11306_v56 }
 0x596   :  { %11010 = vmatmul.mubr.msk.f32.gmra.mrb[74].mxu1 %vm170_vm0, %v7409_v29  ;;  %11311 = vmatprep.subr.bf16.mxu0 %v16019_v16 }
 0x597   :  { %11012 = vmatprep.mubr.msk.f32.mxu1 %vm170_vm0, %v7352_v41 }
 0x59a   :  { %11013 = vmatmul.mubr.msk.f32.gmra.mrb[76].mxu1 %vm170_vm0, %v7411_v20 }
 0x59b   :  { %11015 = vmatprep.mubr.msk.f32.mxu1 %vm170_vm0, %v7350_v54 }
 0x59e   :  { %11016 = vmatmul.mubr.msk.f32.gmra.mrb[78].mxu1 %vm170_vm0, %v7413_v13 }
 0x655   :  { %v10996_v50 = vpop.f32.mrb[64].mxu1 }
 0x656   :  { %v8042_v15 = vmul.f32 %v10996_v50, %v16025_v44  ;;  %v7940_v0 = vpop.f32.mrb[65].mxu1 }
 0x657   :  { %v8041_v8 = vmul.f32 %v16025_v44, %v7940_v0 }
 0x658   :  { %v8062_v12 = vadd.f32 %v16030_v6, %v8042_v15 }
 0x659   :  { %v8061_v42 = vadd.f32 %v16030_v6, %v8041_v8  ;;  %v10999_v24 = vpop.f32.mrb[66].mxu1 }
 0x65a   :  { %v8078_v22 = vmax.f32 %v8062_v12, 0.0  ;;  %v8044_v51 = vmul.f32 %v10999_v24, %v16025_v44  ;;  %v7950_v59 = vpop.f32.mrb[67].mxu1 }
 0x65b   :  { %v8077_v57 = vmax.f32 %v8061_v42, 0.0  ;;  %v8043_v10 = vmul.f32 %v16025_v44, %v7950_v59 }
 0x65c   :  { %v8094_v31 = vrot.slane %v8078_v22, 1  ;;  %v8064_v26 = vadd.f32 %v16030_v6, %v8044_v51 }
 0x65d   :  { %v16039_v27 = vrot.slane %v8077_v57, 1  ;;  %v8063_v34 = vadd.f32 %v16030_v6, %v8043_v10  ;;  %v11002_v62 = vpop.f32.mrb[68].mxu1 }
 0x65e   :  { %v8080_v4 = vmax.f32 %v8064_v26, 0.0  ;;  %v8046_v60 = vmul.f32 %v11002_v62, %v16025_v44  ;;  %v7960_v48 = vpop.f32.mrb[69].mxu1 }
 0x65f   :  { %v8123_v43 = vsel %vm1782_vm1, %v16039_v27, %v8094_v31  ;;  %v8079_v14 = vmax.f32 %v8063_v34, 0.0  ;;  %v8045_v38 = vmul.f32 %v16025_v44, %v7960_v48 }
 0x660   :  { %v8125_v30 = vmax.f32 %v8077_v57, %v8123_v43  ;;  %v8096_v28 = vrot.slane %v8080_v4, 1  ;;  %v8066_v32 = vadd.f32 %v16030_v6, %v8046_v60 }
 0x661   :  { %v8095_v49 = vrot.slane %v8079_v14, 1  ;;  %v8065_v40 = vadd.f32 %v16030_v6, %v8045_v38  ;;  %v11005_v7 = vpop.f32.mrb[70].mxu1 }
 0x662   :  { %8141 = vst.msk [vmem:[#allocation5] sm:$0xff] %vm170_vm0, %v8125_v30  ;;  %v8082_v37 = vmax.f32 %v8066_v32, 0.0  ;;  %v8048_v33 = vmul.f32 %v11005_v7, %v16025_v44  ;;  %v7970_v46 = vpop.f32.mrb[71].mxu1 }
 0x663   :  { %v8121_v19 = vsel %vm1782_vm1, %v8095_v49, %v8096_v28  ;;  %v8122_v23 = vsel %vm1782_vm1, %v8094_v31, %v8095_v49  ;;  %v8081_v17 = vmax.f32 %v8065_v40, 0.0  ;;  %v8047_v47 = vmul.f32 %v16025_v44, %v7970_v46 }
 0x664   :  { %v8126_v21 = vmax.f32 %v8078_v22, %v8122_v23  ;;  %v8127_v39 = vmax.f32 %v8079_v14, %v8121_v19  ;;  %v8098_v9 = vrot.slane %v8082_v37, 1  ;;  %v8068_v2 = vadd.f32 %v16030_v6, %v8048_v33 }
 0x665   :  { %v8097_v36 = vrot.slane %v8081_v17, 1  ;;  %v8067_v58 = vadd.f32 %v16030_v6, %v8047_v47  ;;  %v11008_v25 = vpop.f32.mrb[72].mxu1 }
 0x666   :  { %8142 = vst.msk [vmem:[#allocation5 + $0x8] sm:$0xff] %vm170_vm0, %v8126_v21  ;;  %8143 = vst.msk [vmem:[#allocation5 + $0x10] sm:$0xff] %vm170_vm0, %v8127_v39  ;;  %v8084_v29 = vmax.f32 %v8068_v2, 0.0  ;;  %v8050_v11 = vmul.f32 %v11008_v25, %v16025_v44  ;;  %v7980_v41 = vpop.f32.mrb[73].mxu1  ;;  %v8175_v25 = vld [vmem:[%s16446_s5 + $0x18] sm:$0xff] }
 0x667   :  { %v8119_v1 = vsel %vm1782_vm1, %v8097_v36, %v8098_v9  ;;  %v8120_v61 = vsel %vm1782_vm1, %v8096_v28, %v8097_v36  ;;  %v8083_v20 = vmax.f32 %v8067_v58, 0.0  ;;  %v8049_v54 = vmul.f32 %v16025_v44, %v7980_v41  ;;  %v8174_v58 = vld [vmem:[%s16446_s5 + $0x10] sm:$0xff] }
 0x668   :  { %v8128_v18 = vmax.f32 %v8080_v4, %v8120_v61  ;;  %v8129_v13 = vmax.f32 %v8081_v17, %v8119_v1  ;;  %v8100_v45 = vrot.slane %v8084_v29, 1  ;;  %v8070_v53 = vadd.f32 %v16030_v6, %v8050_v11 }
 0x669   :  { %v8099_v63 = vrot.slane %v8083_v20, 1  ;;  %v8069_v35 = vadd.f32 %v16030_v6, %v8049_v54  ;;  %v11011_v52 = vpop.f32.mrb[74].mxu1 }
 0x66a   :  { %8144 = vst.msk [vmem:[#allocation5 + $0x18] sm:$0xff] %vm170_vm0, %v8128_v18  ;;  %8145 = vst.msk [vmem:[#allocation5 + $0x20] sm:$0xff] %vm170_vm0, %v8129_v13  ;;  %v8086_v56 = vmax.f32 %v8070_v53, 0.0  ;;  %v8052_v3 = vmul.f32 %v11011_v52, %v16025_v44  ;;  %v7990_v55 = vpop.f32.mrb[75].mxu1  ;;  %v11314_v18 = vpack.c.bf16 %v8175_v25, %v8174_v58  ;;  %v8177_v52 = vld [vmem:[%s16446_s5 + $0x28] sm:$0xff] }
 0x66b   :  { %v8117_v50 = vsel %vm1782_vm1, %v8099_v63, %v8100_v45  ;;  %v8118_v15 = vsel %vm1782_vm1, %v8098_v9, %v8099_v63  ;;  %v8085_v0 = vmax.f32 %v8069_v35, 0.0  ;;  %v8051_v8 = vmul.f32 %v16025_v44, %v7990_v55  ;;  %v8176_v35 = vld [vmem:[%s16446_s5 + $0x20] sm:$0xff] }
 0x66c   :  { %v8130_v12 = vmax.f32 %v8082_v37, %v8118_v15  ;;  %v8131_v42 = vmax.f32 %v8083_v20, %v8117_v50  ;;  %v8102_v24 = vrot.slane %v8086_v56, 1  ;;  %v8072_v22 = vadd.f32 %v16030_v6, %v8052_v3 }
 0x66d   :  { %v8101_v51 = vrot.slane %v8085_v0, 1  ;;  %v8071_v59 = vadd.f32 %v16030_v6, %v8051_v8  ;;  %v11014_v57 = vpop.f32.mrb[76].mxu1  ;;  %v16086_v48 = vld [vmem:[#allocation5] ss:$2 sm:$0xff] }
 0x66e   :  { %8146 = vst.msk [vmem:[#allocation5 + $0x28] sm:$0xff] %vm170_vm0, %v8130_v12  ;;  %8147 = vst.msk [vmem:[#allocation5 + $0x30] sm:$0xff] %vm170_vm0, %v8131_v42  ;;  %v8088_v10 = vmax.f32 %v8072_v22, 0.0  ;;  %v8054_v31 = vmul.f32 %v11014_v57, %v16025_v44  ;;  %v8000_v26 = vpop.f32.mrb[77].mxu1  ;;  %v8180_v46 = vrot.slane %v16086_v48, 1  ;;  %v11318_v12 = vpack.c.bf16 %v8177_v52, %v8176_v35  ;;  %v8700_v52 = vld [vmem:[%s16447_s6 + $0x20] sm:$0xff] }
 0x66f   :  { %v8115_v34 = vsel %vm1782_vm1, %v8101_v51, %v8102_v24  ;;  %v8116_v62 = vsel %vm1782_vm1, %v8100_v45, %v8101_v51  ;;  %v8087_v4 = vmax.f32 %v8071_v59, 0.0  ;;  %v8053_v60 = vmul.f32 %v16025_v44, %v8000_v26  ;;  %v9578_v26 = vld [vmem:[%s16446_s5 + $0x88] sm:$0xff] }
 0x670   :  { %v8132_v43 = vmax.f32 %v8084_v29, %v8116_v62  ;;  %v8133_v14 = vmax.f32 %v8085_v0, %v8115_v34  ;;  %v8104_v38 = vrot.slane %v8088_v10, 1  ;;  %v8074_v30 = vadd.f32 %v16030_v6, %v8054_v31  ;;  %v9577_v31 = vld [vmem:[%s16446_s5 + $0x80] sm:$0xff] }
 0x671   :  { %v8103_v28 = vrot.slane %v8087_v4, 1  ;;  %v8073_v32 = vadd.f32 %v16030_v6, %v8053_v60  ;;  %v11017_v49 = vpop.f32.mrb[78].mxu1  ;;  %v16090_v40 = vld [vmem:[#allocation5 + $0x10] ss:$2 sm:$0xff] }
 0x672   :  { %8148 = vst.msk [vmem:[#allocation5 + $0x38] sm:$0xff] %vm170_vm0, %v8132_v43  ;;  %8149 = vst.msk [vmem:[#allocation5 + $0x40] sm:$0xff] %vm170_vm0, %v8133_v14  ;;  %v8090_v7 = vmax.f32 %v8074_v30, 0.0  ;;  %v8056_v37 = vmul.f32 %v11017_v49, %v16025_v44  ;;  %v8010_v33 = vpop.f32.mrb[79].mxu1  ;;  %v8181_v19 = vrot.slane %v16090_v40, 1 }
 0x673   :  { %v8113_v23 = vsel %vm1782_vm1, %v8103_v28, %v8104_v38  ;;  %v8114_v17 = vsel %vm1782_vm1, %v8102_v24, %v8103_v28  ;;  %v8089_v47 = vmax.f32 %v8073_v32, 0.0  ;;  %v8055_v21 = vmul.f32 %v16025_v44, %v8010_v33 }
 0x674   :  { %v8134_v39 = vmax.f32 %v8086_v56, %v8114_v17  ;;  %v8135_v9 = vmax.f32 %v8087_v4, %v8113_v23  ;;  %v8106_v2 = vrot.slane %v8090_v7, 1  ;;  %v8076_v36 = vadd.f32 %v16030_v6, %v8056_v37  ;;  %v9580_v37 = vld [vmem:[%s16446_s5 + $0x98] sm:$0xff]  ;;  %v9583_v17 = vld [vmem:[%s16446_s5 + $0xb0] sm:$0xff] }
 0x675   :  { %v8105_v29 = vrot.slane %v8089_v47, 1  ;;  %v8075_v11 = vadd.f32 %v16030_v6, %v8055_v21  ;;  %v8194_v44 = vsel %vm1782_vm1, %v8180_v46, %v8181_v19  ;;  %v16114_v41 = vld [vmem:[#allocation5 + $0x20] ss:$2 sm:$0xff]  ;;  %v11326_v4 = vpack.c.bf16 %v9578_v26, %v9577_v31 }
 0x676   :  { %8150 = vst.msk [vmem:[#allocation5 + $0x48] sm:$0xff] %vm170_vm0, %v8134_v39  ;;  %8151 = vst.msk [vmem:[#allocation5 + $0x50] sm:$0xff] %vm170_vm0, %v8135_v9  ;;  %v8092_v1 = vmax.f32 %v8076_v36, 0.0  ;;  %11034 = vmatprep.mubr.msk.f32.mxu0 %vm170_vm0, %v8194_v44  ;;  %v8182_v61 = vrot.slane %v16114_v41, 1  ;;  %v8464_v39 = vrot.slane %v16090_v40, 2  ;;  %v8463_v9 = vrot.slane %v16086_v48, 2 }
 0x677   :  { %v8111_v20 = vsel %vm1782_vm1, %v8105_v29, %v8106_v2  ;;  %v8112_v6 = vsel %vm1782_vm1, %v8104_v38, %v8105_v29  ;;  %v8091_v54 = vmax.f32 %v8075_v11, 0.0  ;;  %v8965_v26 = vld [vmem:[%s16448_s7 + $0x40] sm:$0xff] }
 0x678   :  { %v8136_v13 = vmax.f32 %v8088_v10, %v8112_v6  ;;  %v8137_v45 = vmax.f32 %v8089_v47, %v8111_v20  ;;  %v8108_v53 = vrot.slane %v8092_v1, 1  ;;  %v8193_v63 = vsel %vm1782_vm1, %v8181_v19, %v8182_v61  ;;  %v9581_v19 = vld [vmem:[%s16446_s5 + $0xa0] sm:$0xff]  ;;  %v9584_v47 = vld [vmem:[%s16446_s5 + $0xb8] sm:$0xff] }
 0x679   :  { %v8107_v56 = vrot.slane %v8091_v54, 1  ;;  %11035 = vmatmul.mubr.msk.f32.vlgmr.msra.gmra.mrb[160].mxu0 %vm170_vm0, %v8193_v63  ;;  %v16133_v3 = vld [vmem:[#allocation5 + $0x30] ss:$2 sm:$0xff]  ;;  %v11338_v21 = vpack.c.bf16 %v9584_v47, %v9583_v17  ;;  %v8478_v36 = vsel %vm8471_vm13, %v8463_v9, %v8464_v39 }
 0x67a   :  { %8152 = vst.msk [vmem:[#allocation5 + $0x58] sm:$0xff] %vm170_vm0, %v8136_v13  ;;  %8153 = vst.msk [vmem:[#allocation5 + $0x60] sm:$0xff] %vm170_vm0, %v8137_v45  ;;  %v8124_v55 = vsel %vm1782_vm1, %v8108_v53, %v16039_v27  ;;  %v8183_v50 = vrot.slane %v16133_v3, 1  ;;  %11313 = vmatpush3.bf16.msra.mxu0 %v16019_v16  ;;  %v8178_v27 = vld [vmem:[%s16446_s5 + $0x30] sm:$0xff]  ;;  %v8179_v16 = vld [vmem:[%s16446_s5 + $0x38] sm:$0xff]  ;;  %v8466_v58 = vrot.slane %v16133_v3, 2 }
 0x67b   :  { %v8140_v15 = vmax.f32 %v8092_v1, %v8124_v55  ;;  %v8109_v0 = vsel %vm1782_vm1, %v8107_v56, %v8108_v53  ;;  %v8110_v8 = vsel %vm1782_vm1, %v8106_v2, %v8107_v56  ;;  %11315 = vmatprep.subr.bf16.mxu0 %v11314_v18  ;;  %v11322_v57 = vpack.c.bf16 %v8179_v16, %v8178_v27  ;;  %v8697_v13 = vld [vmem:[%s16447_s6 + $0x8] sm:$0xff]  ;;  %v8698_v53 = vld [vmem:[%s16447_s6 + $0x10] sm:$0xff]  ;;  %v8699_v63 = vld [vmem:[%s16447_s6 + $0x18] sm:$0xff] }
 0x67c   :  { %v8138_v42 = vmax.f32 %v8090_v7, %v8110_v8  ;;  %v8139_v24 = vmax.f32 %v8091_v54, %v8109_v0  ;;  %v8192_v22 = vsel %vm1782_vm1, %v8182_v61, %v8183_v50  ;;  %v9579_v7 = vld [vmem:[%s16446_s5 + $0x90] sm:$0xff]  ;;  %v8465_v2 = vrot.slane %v16114_v41, 2  ;;  %v8701_v56 = vld [vmem:[%s16447_s6 + $0x28] sm:$0xff]  ;;  %v8957_v8 = vld [vmem:[%s16448_s7] sm:$0xff] }
 0x67d   :  { %8156 = vst.msk [vmem:[#allocation5 + $0x78] sm:$0xff] %vm170_vm0, %v8140_v15  ;;  %11037 = vmatprep.mubr.msk.f32.mxu0 %vm170_vm0, %v8192_v22  ;;  %v16156_v51 = vld [vmem:[#allocation5 + $0x40] ss:$2 sm:$0xff]  ;;  %v11330_v33 = vpack.c.bf16 %v9580_v37, %v9579_v7  ;;  %v11657_v54 = vmov 0.0|0.0   ;;  %v11346_v35 = vpack.c.bf16 %v8699_v63, %v8698_v53  ;;  %v11349_v55 = vpack.c.bf16 %v8701_v56, %v8700_v52  ;;  %v8960_v22 = vld [vmem:[%s16448_s7 + $0x18] sm:$0xff] }
 0x67e   :  { %8154 = vst.msk [vmem:[#allocation5 + $0x68] sm:$0xff] %vm170_vm0, %v8138_v42  ;;  %8155 = vst.msk [vmem:[#allocation5 + $0x70] sm:$0xff] %vm170_vm0, %v8139_v24  ;;  %v8184_v59 = vrot.slane %v16156_v51, 1  ;;  %11317 = vmatpush3.bf16.msra.mxu0 %v11314_v18  ;;  %v8467_v25 = vrot.slane %v16156_v51, 2  ;;  %11342 = vmatprep.subr.bf16.mxu1 %v11657_v54  ;;  %v8696_v18 = vld [vmem:[%s16447_s6] sm:$0xff]  ;;  %v11659_v15 = vmov 0.0  }
 0x67f   :  { %11319 = vmatprep.subr.bf16.mxu0 %v11318_v12  ;;  %v11343_v45 = vpack.c.bf16 %v8697_v13, %v8696_v18  ;;  %11118 = vmatprep.mubr.msk.f32.mxu1 %vm11658_vm14, %v11659_v15  ;;  %v8959_v42 = vld [vmem:[%s16448_s7 + $0x10] sm:$0xff]  ;;  %v8961_v16 = vld [vmem:[%s16448_s7 + $0x20] sm:$0xff] }
 0x680   :  { %v8191_v10 = vsel %vm1782_vm1, %v8183_v50, %v8184_v59  ;;  %v8475_v11 = vsel %vm8471_vm13, %v8466_v58, %v8467_v25  ;;  %v8703_v50 = vld [vmem:[%s16447_s6 + $0x38] sm:$0xff]  ;;  %v11382_v27 = vpack.c.bf16 %v8960_v22, %v8959_v42 }
 0x681   :  { %11038 = vmatmul.mubr.msk.f32.gmra.mrb[162].mxu0 %vm170_vm0, %v8191_v10  ;;  %v16170_v34 = vld [vmem:[#allocation5 + $0x50] ss:$2 sm:$0xff]  ;;  %11344 = vmatpush3.bf16.msra.mxu1 %v11343_v45 }
 0x682   :  { %v8185_v62 = vrot.slane %v16170_v34, 1  ;;  %11321 = vmatpush3.bf16.msra.mxu0 %v11318_v12  ;;  %v8468_v29 = vrot.slane %v16170_v34, 2  ;;  %11345 = vmatprep.subr.bf16.mxu1 %v11657_v54  ;;  %v8958_v12 = vld [vmem:[%s16448_s7 + $0x8] sm:$0xff]  ;;  %v8964_v10 = vld [vmem:[%s16448_s7 + $0x38] sm:$0xff] }
 0x683   :  { %11323 = vmatprep.subr.bf16.mxu0 %v11322_v57  ;;  %v11379_v24 = vpack.c.bf16 %v8958_v12, %v8957_v8 }
 0x684   :  { %v8190_v60 = vsel %vm1782_vm1, %v8184_v59, %v8185_v62 }
 0x685   :  { %11040 = vmatprep.mubr.msk.f32.mxu0 %vm170_vm0, %v8190_v60  ;;  %v8169_v43 = vld [vmem:[#allocation5 + $0x60] ss:$2 sm:$0xff]  ;;  %v8171_v14 = vld [vmem:[#allocation5 + $0x70] ss:$2 sm:$0xff]  ;;  %11347 = vmatpush3.bf16.msra.mxu1 %v11346_v35 }
 0x686   :  { %v8186_v38 = vrot.slane %v8169_v43, 1  ;;  %v8187_v30 = vrot.slane %v8171_v14, 1  ;;  %11325 = vmatpush3.bf16.msra.mxu0 %v11322_v57  ;;  %v8469_v44 = vrot.slane %v8169_v43, 2  ;;  %v8470_v1 = vrot.slane %v8171_v14, 2  ;;  %11348 = vmatprep.subr.bf16.mxu1 %v11657_v54  ;;  %v8963_v57 = vld [vmem:[%s16448_s7 + $0x30] sm:$0xff]  ;;  %v8968_v60 = vld [vmem:[%s16448_s7 + $0x58] sm:$0xff] }
 0x687   :  { %11327 = vmatprep.subr.bf16.mxu0 %v11326_v4  ;;  %v11388_v31 = vpack.c.bf16 %v8964_v10, %v8963_v57 }
 0x688   :  { %v8189_v28 = vsel %vm1782_vm1, %v8185_v62, %v8186_v38  ;;  %v8188_v32 = vsel %vm1782_vm1, %v8186_v38, %v8187_v30  ;;  %v8195_v49 = vsel %vm1782_vm1, %v8187_v30, %v8180_v46  ;;  %v9582_v46 = vld [vmem:[%s16446_s5 + $0xa8] sm:$0xff]  ;;  %v8473_v61 = vsel %vm8471_vm13, %v8468_v29, %v8469_v44 }
 0x689   :  { %11041 = vmatmul.mubr.msk.f32.gmra.mrb[164].mxu0 %vm170_vm0, %v8189_v28  ;;  %v11334_v23 = vpack.c.bf16 %v9582_v46, %v9581_v19  ;;  %v8472_v20 = vsel %vm8471_vm13, %v8469_v44, %v8470_v1  ;;  %v8479_v6 = vsel %vm8471_vm13, %v8470_v1, %v8463_v9  ;;  %11350 = vmatpush3.bf16.msra.mxu1 %v11349_v55  ;;  %v8970_v38 = vld [vmem:[%s16448_s7 + $0x68] sm:$0xff] }
 0x68a   :  { %11043 = vmatprep.mubr.msk.f32.mxu0 %vm170_vm0, %v8188_v32  ;;  %11351 = vmatprep.subr.bf16.mxu1 %v11657_v54  ;;  %v9593_v28 = vld [vmem:[%s16443_s8 + $0x8] ss:$0 sm:$0xff] }
 0x68d   :  { %11044 = vmatmul.mubr.msk.f32.gmra.mrb[166].mxu0 %vm170_vm0, %v8195_v49  ;;  %v9594_v49 = vld [vmem:[%s16443_s8 + $0x9] ss:$0 sm:$0xff] }
 0x68e   :  { %11062 = vmatprep.mubr.msk.f32.mxu0 %vm170_vm0, %v16086_v48  ;;  %v8476_v48 = vsel %vm8471_vm13, %v8465_v2, %v8466_v58 }
 0x691   :  { %11063 = vmatmul.mubr.msk.f32.vlgmr.msra.gmra.mrb[160].mxu0 %vm170_vm0, %v16090_v40  ;;  %v8477_v40 = vsel %vm8471_vm13, %v8464_v39, %v8465_v2 }
 0x692   :  { %11329 = vmatpush3.bf16.msra.mxu0 %v11326_v4  ;;  %11065 = vmatprep.mubr.msk.f32.mxu0 %vm170_vm0, %v16114_v41  ;;  %v8474_v41 = vsel %vm8471_vm13, %v8467_v25, %v8468_v29  ;;  %v8967_v4 = vld [vmem:[%s16448_s7 + $0x50] sm:$0xff] }
 0x693   :  { %11331 = vmatprep.subr.bf16.mxu0 %v11330_v33 }
 0x695   :  { %11066 = vmatmul.mubr.msk.f32.gmra.mrb[162].mxu0 %vm170_vm0, %v16133_v3  ;;  %v8702_v3 = vld [vmem:[%s16447_s6 + $0x30] sm:$0xff] }
 0x696   :  { %11333 = vmatpush3.bf16.msra.mxu0 %v11330_v33  ;;  %11068 = vmatprep.mubr.msk.f32.mxu0 %vm170_vm0, %v16156_v51  ;;  %v11352_v0 = vpack.c.bf16 %v8703_v50, %v8702_v3  ;;  %v8962_v51 = vld [vmem:[%s16448_s7 + $0x28] sm:$0xff] }
 0x697   :  { %11335 = vmatprep.subr.bf16.mxu0 %v11334_v23  ;;  %v11385_v59 = vpack.c.bf16 %v8962_v51, %v8961_v16 }
 0x698   :  { %11353 = vmatpush3.bf16.msra.mxu1 %v11352_v0 }
 0x699   :  { %11069 = vmatmul.mubr.msk.f32.gmra.mrb[164].mxu0 %vm170_vm0, %v16170_v34  ;;  %11354 = vmatprep.subr.bf16.mxu1 %v11657_v54  ;;  %v8966_v34 = vld [vmem:[%s16448_s7 + $0x48] sm:$0xff] }
 0x69a   :  { %11337 = vmatpush3.bf16.msra.mxu0 %v11334_v23  ;;  %11071 = vmatprep.mubr.msk.f32.mxu0 %vm170_vm0, %v8169_v43  ;;  %v11391_v62 = vpack.c.bf16 %v8966_v34, %v8965_v26  ;;  %v11394_v43 = vpack.c.bf16 %v8968_v60, %v8967_v4 }
 0x69b   :  { %11339 = vmatprep.subr.bf16.mxu0 %v11338_v21 }
 0x69d   :  { %11072 = vmatmul.mubr.msk.f32.gmra.mrb[166].mxu0 %vm170_vm0, %v8171_v14  ;;  %v8969_v14 = vld [vmem:[%s16448_s7 + $0x60] sm:$0xff] }
 0x69e   :  { %11341 = vmatpush3.bf16.msra.mxu0 %v11338_v21  ;;  %11090 = vmatprep.mubr.msk.f32.mxu0 %vm170_vm0, %v8478_v36  ;;  %v11397_v30 = vpack.c.bf16 %v8970_v38, %v8969_v14  ;;  %v9597_v14 = vld [vmem:[%s16447_s6 + $0x40] sm:$0xff]  ;;  %v9598_v38 = vld [vmem:[%s16447_s6 + $0x48] sm:$0xff] }
 0x69f   :  { %11378 = vmatprep.subr.bf16.mxu0 %v11657_v54  ;;  %v11355_v5 = vpack.c.bf16 %v9598_v38, %v9597_v14 }
 0x6a1   :  { %11091 = vmatmul.mubr.msk.f32.vlgmr.msra.gmra.mrb[160].mxu0 %vm170_vm0, %v8477_v40 }
 0x6a2   :  { %11093 = vmatprep.mubr.msk.f32.mxu0 %vm170_vm0, %v8476_v48  ;;  %11380 = vmatpush3.bf16.msra.mxu0 %v11379_v24 }
 0x6a3   :  { %11381 = vmatprep.subr.bf16.mxu0 %v11657_v54 }
 0x6a5   :  { %11094 = vmatmul.mubr.msk.f32.gmra.mrb[162].mxu0 %vm170_vm0, %v8475_v11 }
 0x6a6   :  { %11096 = vmatprep.mubr.msk.f32.mxu0 %vm170_vm0, %v8474_v41  ;;  %11383 = vmatpush3.bf16.msra.mxu0 %v11382_v27 }
 0x6a7   :  { %11384 = vmatprep.subr.bf16.mxu0 %v11657_v54 }
 0x6a9   :  { %11097 = vmatmul.mubr.msk.f32.gmra.mrb[164].mxu0 %vm170_vm0, %v8473_v61 }
 0x6aa   :  { %11099 = vmatprep.mubr.msk.f32.mxu0 %vm170_vm0, %v8472_v20  ;;  %11386 = vmatpush3.bf16.msra.mxu0 %v11385_v59 }
 0x6ab   :  { %11387 = vmatprep.subr.bf16.mxu0 %v11657_v54 }
 0x6ad   :  { %11100 = vmatmul.mubr.msk.f32.gmra.mrb[166].mxu0 %vm170_vm0, %v8479_v6 }
 0x6ae   :  { %11191 = vmatprep.mubr.msk.f32.mxu0 %vm11658_vm14, %v11659_v15  ;;  %11389 = vmatpush3.bf16.msra.mxu0 %v11388_v31 }
 0x6af   :  { %11390 = vmatprep.subr.bf16.mxu0 %v11657_v54 }
 0x6b2   :  { %11392 = vmatpush3.bf16.msra.mxu0 %v11391_v62 }
 0x6b3   :  { %11393 = vmatprep.subr.bf16.mxu0 %v11657_v54 }
 0x6b6   :  { %11395 = vmatpush3.bf16.msra.mxu0 %v11394_v43 }
 0x6b7   :  { %11396 = vmatprep.subr.bf16.mxu0 %v11657_v54 }
 0x6ba   :  { %11398 = vmatpush3.bf16.msra.mxu0 %v11397_v30 }
 0x6bb   :  { %11399 = vmatprep.subr.bf16.mxu0 %v11657_v54 }
 0x774   :  { %v11092_v32 = vpop.f32.mrb[160].mxu0 }
 0x775   :  { %v8633_v7 = vmul.f32 %v11092_v32, %v9593_v28  ;;  %v8579_v37 = vpop.f32.mrb[161].mxu0 }
 0x776   :  { %v8632_v33 = vmul.f32 %v9593_v28, %v8579_v37 }
 0x777   :  { %v8645_v19 = vadd.f32 %v9594_v49, %v8633_v7  ;;  %v9600_v7 = vld [vmem:[%s16447_s6 + $0x58] sm:$0xff] }
 0x778   :  { %v8644_v46 = vadd.f32 %v9594_v49, %v8632_v33  ;;  %v11095_v23 = vpop.f32.mrb[162].mxu0  ;;  %v9601_v33 = vld [vmem:[%s16447_s6 + $0x60] sm:$0xff] }
 0x779   :  { %v8653_v17 = vmax.f32 %v8645_v19, 0.0  ;;  %v8635_v47 = vmul.f32 %v11095_v23, %v9593_v28  ;;  %v8589_v21 = vpop.f32.mrb[163].mxu0  ;;  %v9602_v19 = vld [vmem:[%s16447_s6 + $0x68] sm:$0xff]  ;;  %v9603_v23 = vld [vmem:[%s16447_s6 + $0x70] sm:$0xff] }
 0x77a   :  { %v8652_v39 = vmax.f32 %v8644_v46, 0.0  ;;  %v8634_v9 = vmul.f32 %v9593_v28, %v8589_v21  ;;  %v11361_v46 = vpack.c.bf16 %v9602_v19, %v9601_v33  ;;  %v9606_v21 = vld [vmem:[%s16447_s6 + $0x80] sm:$0xff] }
 0x77b   :  { %v8661_v2 = vrot.slane %v8653_v17, 1  ;;  %v8647_v36 = vadd.f32 %v9594_v49, %v8635_v47 }
 0x77c   :  { %v8660_v58 = vrot.slane %v8652_v39, 1  ;;  %v8646_v40 = vadd.f32 %v9594_v49, %v8634_v9  ;;  %v11098_v25 = vpop.f32.mrb[164].mxu0 }
 0x77d   :  { %v8655_v48 = vmax.f32 %v8647_v36, 0.0  ;;  %v8637_v29 = vmul.f32 %v11098_v25, %v9593_v28  ;;  %v8599_v11 = vpop.f32.mrb[165].mxu0  ;;  %v9609_v25 = vld [vmem:[%s16447_s6 + $0x98] sm:$0xff] }
 0x77e   :  { %v8674_v44 = vsel %vm1782_vm1, %v8660_v58, %v8661_v2  ;;  %v8654_v41 = vmax.f32 %v8646_v40, 0.0  ;;  %v8636_v1 = vmul.f32 %v9593_v28, %v8599_v11  ;;  %v9608_v40 = vld [vmem:[%s16447_s6 + $0x90] sm:$0xff]  ;;  %v9611_v11 = vld [vmem:[%s16447_s6 + $0xa8] sm:$0xff] }
 0x77f   :  { %v8676_v61 = vmax.f32 %v8652_v39, %v8674_v44  ;;  %v8663_v20 = vrot.slane %v8655_v48, 1  ;;  %v8649_v6 = vadd.f32 %v9594_v49, %v8637_v29  ;;  %v9607_v39 = vld [vmem:[%s16447_s6 + $0x88] sm:$0xff]  ;;  %v9610_v29 = vld [vmem:[%s16447_s6 + $0xa0] sm:$0xff] }
 0x780   :  { %v8662_v18 = vrot.slane %v8654_v41, 1  ;;  %v8648_v13 = vadd.f32 %v9594_v49, %v8636_v1  ;;  %v11101_v45 = vpop.f32.mrb[166].mxu0  ;;  %v11367_v36 = vpack.c.bf16 %v9607_v39, %v9606_v21  ;;  %v11373_v44 = vpack.c.bf16 %v9611_v11, %v9610_v29 }
 0x781   :  { %8684 = vst.msk [vmem:[#allocation6] sm:$0xff] %vm170_vm0, %v8676_v61  ;;  %v8657_v53 = vmax.f32 %v8649_v6, 0.0  ;;  %v8639_v63 = vmul.f32 %v11101_v45, %v9593_v28  ;;  %v8609_v35 = vpop.f32.mrb[167].mxu0 }
 0x782   :  { %v8672_v52 = vsel %vm1782_vm1, %v8662_v18, %v8663_v20  ;;  %v8673_v56 = vsel %vm1782_vm1, %v8661_v2, %v8662_v18  ;;  %v8656_v3 = vmax.f32 %v8648_v13, 0.0  ;;  %v8638_v55 = vmul.f32 %v9593_v28, %v8609_v35  ;;  %v8971_v18 = vld [vmem:[%s16448_s7 + $0x70] sm:$0xff]  ;;  %v8972_v13 = vld [vmem:[%s16448_s7 + $0x78] sm:$0xff] }
 0x783   :  { %v8677_v50 = vmax.f32 %v8653_v17, %v8673_v56  ;;  %v8678_v0 = vmax.f32 %v8654_v41, %v8672_v52  ;;  %v8665_v8 = vrot.slane %v8657_v53, 1  ;;  %v8651_v12 = vadd.f32 %v9594_v49, %v8639_v63  ;;  %v9604_v17 = vld [vmem:[%s16447_s6 + $0x78] sm:$0xff]  ;;  %v9612_v41 = vld [vmem:[%s16447_s6 + $0xb0] sm:$0xff]  ;;  %v9615_v56 = vld [vmem:[%s16443_s8 + $0xb] ss:$0 sm:$0xff] }
 0x784   :  { %v8664_v42 = vrot.slane %v8656_v3, 1  ;;  %v8650_v24 = vadd.f32 %v9594_v49, %v8638_v55  ;;  %v9599_v49 = vld [vmem:[%s16447_s6 + $0x50] sm:$0xff]  ;;  %v11364_v47 = vpack.c.bf16 %v9604_v17, %v9603_v23  ;;  %v11400_v45 = vpack.c.bf16 %v8972_v13, %v8971_v18 }
 0x785   :  { %8685 = vst.msk [vmem:[#allocation6 + $0x8] sm:$0xff] %vm170_vm0, %v8677_v50  ;;  %8686 = vst.msk [vmem:[#allocation6 + $0x10] sm:$0xff] %vm170_vm0, %v8678_v0  ;;  %v8659_v22 = vmax.f32 %v8651_v12, 0.0  ;;  %v11358_v37 = vpack.c.bf16 %v9600_v7, %v9599_v49 }
 0x786   :  { %v8670_v27 = vsel %vm1782_vm1, %v8664_v42, %v8665_v8  ;;  %v8671_v16 = vsel %vm1782_vm1, %v8663_v20, %v8664_v42  ;;  %v8658_v51 = vmax.f32 %v8650_v24, 0.0  ;;  %11401 = vmatpush3.bf16.msra.mxu0 %v11400_v45 }
 0x787   :  { %v8679_v59 = vmax.f32 %v8655_v48, %v8671_v16  ;;  %v8680_v57 = vmax.f32 %v8656_v3, %v8670_v27  ;;  %v8667_v10 = vrot.slane %v8659_v22, 1  ;;  %v11370_v48 = vpack.c.bf16 %v9609_v25, %v9608_v40 }
 0x788   :  { %v8666_v31 = vrot.slane %v8658_v51, 1 }
 0x789   :  { %8687 = vst.msk [vmem:[#allocation6 + $0x18] sm:$0xff] %vm170_vm0, %v8679_v59  ;;  %8688 = vst.msk [vmem:[#allocation6 + $0x20] sm:$0xff] %vm170_vm0, %v8680_v57  ;;  %v8675_v26 = vsel %vm1782_vm1, %v8667_v10, %v8660_v58 }
 0x78a   :  { %v8683_v34 = vmax.f32 %v8659_v22, %v8675_v26  ;;  %v8668_v62 = vsel %vm1782_vm1, %v8666_v31, %v8667_v10  ;;  %v8669_v4 = vsel %vm1782_vm1, %v8665_v8, %v8666_v31 }
 0x78b   :  { %v8681_v60 = vmax.f32 %v8657_v53, %v8669_v4  ;;  %v8682_v43 = vmax.f32 %v8658_v51, %v8668_v62 }
 0x78c   :  { %8691 = vst.msk [vmem:[#allocation6 + $0x38] sm:$0xff] %vm170_vm0, %v8683_v34 }
 0x78d   :  { %8689 = vst.msk [vmem:[#allocation6 + $0x28] sm:$0xff] %vm170_vm0, %v8681_v60  ;;  %8690 = vst.msk [vmem:[#allocation6 + $0x30] sm:$0xff] %vm170_vm0, %v8682_v43 }
 0x790   :  { %v8693_v30 = vld [vmem:[#allocation6] ss:$8 sm:$0xf]  ;;  %v8783_v2 = vld [vmem:[#allocation6 + $0x2] ss:$8 sm:$0xf] }
 0x791   :  { %v8870_v20 = vld [vmem:[#allocation6 + $0x4] ss:$8 sm:$0xf] }
 0x794   :  { %v8694_v28 = vld [vmem:[#allocation6] ss:$8 sm:$0xf0]  ;;  %v8784_v9 = vld [vmem:[#allocation6 + $0x2] ss:$8 sm:$0xf0] }
 0x795   :  { %v8695_v32 = vor.u32 %v8694_v28, %v8693_v30  ;;  %v8785_v58 = vor.u32 %v8784_v9, %v8783_v2  ;;  %v8871_v61 = vld [vmem:[#allocation6 + $0x4] ss:$8 sm:$0xf0] }
 0x796   :  { %v8872_v6 = vor.u32 %v8871_v61, %v8870_v20 }
 0x797   :  { %11119 = vmatmul.mubr.msk.f32.vlgmr.msra.gmra.mrb[80].mxu1 %vm170_vm0, %v8695_v32 }
 0x798   :  { %11356 = vmatpush3.bf16.msra.mxu1 %v11355_v5  ;;  %11137 = vmatprep.mubr.msk.f32.mxu1 %vm11658_vm14, %v11659_v15 }
 0x799   :  { %11357 = vmatprep.subr.bf16.mxu1 %v11657_v54 }
 0x79c   :  { %11359 = vmatpush3.bf16.msra.mxu1 %v11358_v37 }
 0x79d   :  { %11360 = vmatprep.subr.bf16.mxu1 %v11657_v54 }
 0x7a0   :  { %11362 = vmatpush3.bf16.msra.mxu1 %v11361_v46 }
 0x7a1   :  { %11363 = vmatprep.subr.bf16.mxu1 %v11657_v54 }
 0x7a4   :  { %11365 = vmatpush3.bf16.msra.mxu1 %v11364_v47 }
 0x7a5   :  { %11366 = vmatprep.subr.bf16.mxu1 %v11657_v54 }
 0x7a7   :  { %11138 = vmatmul.mubr.msk.f32.vlgmr.msra.gmra.mrb[80].mxu1 %vm170_vm0, %v8785_v58 }
 0x7a8   :  { %11368 = vmatpush3.bf16.msra.mxu1 %v11367_v36  ;;  %11156 = vmatprep.mubr.msk.f32.mxu1 %vm11658_vm14, %v11659_v15  ;;  %v9613_v15 = vld [vmem:[%s16447_s6 + $0xb8] sm:$0xff] }
 0x7a9   :  { %11369 = vmatprep.subr.bf16.mxu1 %v11657_v54  ;;  %v11376_v1 = vpack.c.bf16 %v9613_v15, %v9612_v41 }
 0x7ac   :  { %11371 = vmatpush3.bf16.msra.mxu1 %v11370_v48 }
 0x7ad   :  { %11372 = vmatprep.subr.bf16.mxu1 %v11657_v54 }
 0x7b0   :  { %11374 = vmatpush3.bf16.msra.mxu1 %v11373_v44 }
 0x7b1   :  { %11375 = vmatprep.subr.bf16.mxu1 %v11657_v54  ;;  %v9596_v54 = vld [vmem:[%s16443_s8 + $0xa] ss:$0 sm:$0xff] }
 0x7b4   :  { %11377 = vmatpush3.bf16.msra.mxu1 %v11376_v1 }
 0x7b7   :  { %11157 = vmatmul.mubr.msk.f32.vlgmr.msra.gmra.mrb[80].mxu1 %vm170_vm0, %v8872_v6 }
 0x88a   :  { %v8951_v53 = vpop.f32.mrb[80].mxu1 }
 0x88b   :  { %v11402_v63 = vadd.f32 %v9596_v54, %v8951_v53  ;;  %v11158_v35 = vpop.f32.mrb[81].mxu1 }
 0x88d   :  { %v8956_v52 = vmax.f32 %v11402_v63, 0.0 }
 0x88f   :  { %11192 = vmatmul.mubr.f32.vlgmr.msra.gmra.mrb[168].mxu0 %v8956_v52 }
 0x962   :  { %v9044_v3 = vpop.f32.mrb[168].mxu0 }
 0x963   :  { %v9045_v55 = vadd.f32 %v9615_v56, %v9044_v3  ;;  %v11193_v50 = vpop.f32.mrb[169].mxu0 }
 0x965   :  { %9048 = vst [vmem:[%s16449_s9] sm:$0xff] %v9045_v55 }

</bundles_post_ra>
